<compile_context>
chip_gen: v7x
topology: tpu7x:2x2x1
jax: 0.10.0
libtpu: 0.0.40
codegen_flags: <defaults>
</compile_context>

<pallas_src>
import functools

import jax
import jax.numpy as jnp
from jax import lax
from jax.experimental import pallas as pl
from jax.experimental.pallas import tpu as pltpu

EPS = 1e-5                 # nn.BatchNorm2d default eps
MXU_DTYPE = jnp.bfloat16   # MXU input / HBM intermediate dtype (f32 accumulation everywhere)
PAD_OFF = 16               # sublane-aligned column offset of the image inside the halo slab


@functools.lru_cache(maxsize=None)
def _vmem_limit_bytes():
    """~3/4 of the chip's physical per-core VMEM (48 MiB on v7x, 96 MiB on v5e/v6e)."""
    try:
        cap = int(getattr(pltpu.get_tpu_info(), "vmem_capacity_bytes", 0)) or 64 * 1024 * 1024
    except Exception:
        cap = 64 * 1024 * 1024
    return (cap * 3) // 4


# ------------------------------ kernel helpers ------------------------------ #

def _im2col_from_slab(pad_ref, col_ref, H, W):
    """col[:, t*Ci:(t+1)*Ci] = shifted window for tap t = kh*3 + kw (matches pack_weight)."""
    Ci = pad_ref.shape[-1]
    for kh in range(3):
        for kw in range(3):
            t = kh * 3 + kw
            c0 = PAD_OFF - 1 + kw
            win = pad_ref[kh:kh + H, c0:c0 + W, :]            # (H, W, Ci) bf16
            col_ref[:, t * Ci:(t + 1) * Ci] = win.reshape(H * W, Ci)


def _conv_store_stats(col_ref, w_ref, y_ref, sum_ref, ssq_ref):
    """ONE big-K MXU matmul; write bf16 output tile + per-step f32 BN partial stats."""
    y = jnp.dot(col_ref[...], w_ref[...], preferred_element_type=jnp.float32)   # (H*W, Co) f32
    y_ref[...] = y.astype(y_ref.dtype).reshape(y_ref.shape)
    sum_ref[...] = jnp.sum(y, axis=0, keepdims=True)          # per-image partials (no carry)
    ssq_ref[...] = jnp.sum(y * y, axis=0, keepdims=True)


# ------------------------------ Pallas kernels ------------------------------ #

def _conv1_kernel(x_ref, w_ref, y_ref, sum_ref, ssq_ref, pad_ref, col_ref):
    # x_ref: (H, W, Ci) bf16 unpadded input (one image); halo built in-kernel.
    H, W, _ = x_ref.shape
    pad_ref[...] = jnp.zeros_like(pad_ref)                    # per-step: safe under megacore
    pad_ref[1:H + 1, PAD_OFF:PAD_OFF + W, :] = x_ref[...]     # sublane-aligned interior store
    _im2col_from_slab(pad_ref, col_ref, H, W)
    _conv_store_stats(col_ref, w_ref, y_ref, sum_ref, ssq_ref)


def _bnrelu_conv2_kernel(y1_ref, sc_ref, sh_ref, w_ref,
                         y_ref, sum_ref, ssq_ref, pad_ref, col_ref):
    # Fused: act = relu(scale1 * y1_raw + shift1) (BN1 folded, f32 epilogue), then conv2.
    H, W, Ci = y1_ref.shape
    pad_ref[...] = jnp.zeros_like(pad_ref)
    y1 = y1_ref[...].astype(jnp.float32).reshape(H * W, Ci)
    act = jnp.maximum(y1 * sc_ref[...] + sh_ref[...], 0.0)
    pad_ref[1:H + 1, PAD_OFF:PAD_OFF + W, :] = act.astype(pad_ref.dtype).reshape(H, W, Ci)
    _im2col_from_slab(pad_ref, col_ref, H, W)
    _conv_store_stats(col_ref, w_ref, y_ref, sum_ref, ssq_ref)


def _bn_add_relu_kernel(y_ref, r_ref, sc_ref, sh_ref, o_ref):
    # out = relu(residual + scale2 * y2_raw + shift2); bf16 inputs, f32 math + output.
    H, W, C = y_ref.shape
    y = y_ref[...].astype(jnp.float32).reshape(H * W, C)
    r = r_ref[...].astype(jnp.float32).reshape(H * W, C)
    o = jnp.maximum(r + y * sc_ref[...] + sh_ref[...], 0.0)
    o_ref[...] = o.reshape(H, W, C)


# ------------------------------ pallas_call wrappers ------------------------ #

def conv3x3_stats(x, w):
    """conv1: bf16 (N, H, W, Ci) -> bf16 raw output + per-image BN partial sums."""
    N, H, W, Ci = x.shape
    Co = w.shape[1]
    w_slab = PAD_OFF + W + 1
    return pl.pallas_call(
        _conv1_kernel,
        out_shape=(jax.ShapeDtypeStruct((N, H, W, Co), MXU_DTYPE),
                   jax.ShapeDtypeStruct((N, 1, Co), jnp.float32),
                   jax.ShapeDtypeStruct((N, 1, Co), jnp.float32)),
        grid=(N,),
        in_specs=[pl.BlockSpec((None, H, W, Ci), lambda n: (n, 0, 0, 0)),
                  pl.BlockSpec((9 * Ci, Co), lambda n: (0, 0))],          # resident weights
        out_specs=(pl.BlockSpec((None, H, W, Co), lambda n: (n, 0, 0, 0)),
                   pl.BlockSpec((None, 1, Co), lambda n: (n, 0, 0)),      # per-step partials
                   pl.BlockSpec((None, 1, Co), lambda n: (n, 0, 0))),
        scratch_shapes=[pltpu.VMEM((H + 2, w_slab, Ci), MXU_DTYPE),       # bf16 halo slab
                        pltpu.VMEM((H * W, 9 * Ci), MXU_DTYPE)],          # bf16 im2col slab
        compiler_params=pltpu.CompilerParams(
            dimension_semantics=("parallel",),
            vmem_limit_bytes=_vmem_limit_bytes()),
    )(x, w)


def bnrelu_conv3x3_stats(y1_raw, scale1, shift1, w):
    """Fused BN1+ReLU+conv2: bf16 raw conv1 output -> bf16 raw conv2 output + BN2 partials."""
    N, H, W, Ci = y1_raw.shape
    Co = w.shape[1]
    w_slab = PAD_OFF + W + 1
    return pl.pallas_call(
        _bnrelu_conv2_kernel,
        out_shape=(jax.ShapeDtypeStruct((N, H, W, Co), MXU_DTYPE),
                   jax.ShapeDtypeStruct((N, 1, Co), jnp.float32),
                   jax.ShapeDtypeStruct((N, 1, Co), jnp.float32)),
        grid=(N,),
        in_specs=[pl.BlockSpec((None, H, W, Ci), lambda n: (n, 0, 0, 0)),
                  pl.BlockSpec((1, Ci), lambda n: (0, 0)),
                  pl.BlockSpec((1, Ci), lambda n: (0, 0)),
                  pl.BlockSpec((9 * Ci, Co), lambda n: (0, 0))],
        out_specs=(pl.BlockSpec((None, H, W, Co), lambda n: (n, 0, 0, 0)),
                   pl.BlockSpec((None, 1, Co), lambda n: (n, 0, 0)),
                   pl.BlockSpec((None, 1, Co), lambda n: (n, 0, 0))),
        scratch_shapes=[pltpu.VMEM((H + 2, w_slab, Ci), MXU_DTYPE),
                        pltpu.VMEM((H * W, 9 * Ci), MXU_DTYPE)],
        compiler_params=pltpu.CompilerParams(
            dimension_semantics=("parallel",),
            vmem_limit_bytes=_vmem_limit_bytes()),
    )(y1_raw, scale1, shift1, w)


def bn_add_relu(y2_raw, residual, scale2, shift2):
    """Final normalize + residual + ReLU; bf16 inputs, f32 output; fully parallel batch axis."""
    N, H, W, C = y2_raw.shape
    return pl.pallas_call(
        _bn_add_relu_kernel,
        out_shape=jax.ShapeDtypeStruct((N, H, W, C), jnp.float32),
        grid=(N,),
        in_specs=[pl.BlockSpec((None, H, W, C), lambda n: (n, 0, 0, 0)),
                  pl.BlockSpec((None, H, W, C), lambda n: (n, 0, 0, 0)),
                  pl.BlockSpec((1, C), lambda n: (0, 0)),
                  pl.BlockSpec((1, C), lambda n: (0, 0))],
        out_specs=pl.BlockSpec((None, H, W, C), lambda n: (n, 0, 0, 0)),
        compiler_params=pltpu.CompilerParams(
            dimension_semantics=("parallel",),
            vmem_limit_bytes=_vmem_limit_bytes()),
    )(y2_raw, residual, scale2, shift2)


# ------------------------------- glue (JAX) --------------------------------- #

def _round_up(v, m):
    return ((v + m - 1) // m) * m


def _pad_channels(a, cp):
    c = a.shape[-1]
    if c == cp:
        return a
    return jnp.pad(a, [(0, 0)] * (a.ndim - 1) + [(0, cp - c)])


def pack_weight(w_oihw, cp):
    """PyTorch (Co, Ci, 3, 3) -> (9*Cp, Cp) bf16, rows ordered (kh, kw, ci), zero-padded."""
    co, ci, kh, kw = w_oihw.shape
    w = jnp.transpose(w_oihw, (2, 3, 1, 0))                   # (3, 3, Ci, Co)
    w = jnp.pad(w, ((0, 0), (0, 0), (0, cp - ci), (0, cp - co)))
    return w.reshape(kh * kw * cp, cp).astype(MXU_DTYPE)


def _fold_bn(s, q, gamma, beta, m):
    """Fold batch stats + affine into per-channel (scale, shift): out = scale*y + shift."""
    mean = s / m
    var = jnp.maximum(q / m - mean * mean, 0.0)
    # TODO(synk): E[y^2] - mean^2 cancels badly for large |mean|; use a centered/Welford pass
    #             if this is used beyond toy scales.
    scale = gamma * lax.rsqrt(var + EPS)
    shift = beta - scale * mean
    return scale, shift


def resblock_forward(x_nchw, params):
    N, C, H, W = x_nchw.shape
    Cp = params["w1"].shape[1]
    m = N * H * W

    # NHWC, lane-dense channel padding; bf16 slab doubles as conv1 input AND residual.
    xres = _pad_channels(jnp.transpose(x_nchw, (0, 2, 3, 1)), Cp).astype(MXU_DTYPE)

    # conv1 (raw, bf16) + per-image BN1 partial stats (reduced here, f32).
    y1_raw, s1, q1 = conv3x3_stats(xres, params["w1"])
    scale1, shift1 = _fold_bn(jnp.sum(s1, axis=0), jnp.sum(q1, axis=0),
                              params["g1"], params["bt1"], m)

    # BN1 + ReLU fused into conv2 (raw, bf16) + BN2 partial stats.
    y2_raw, s2, q2 = bnrelu_conv3x3_stats(y1_raw, scale1, shift1, params["w2"])
    scale2, shift2 = _fold_bn(jnp.sum(s2, axis=0), jnp.sum(q2, axis=0),
                              params["g2"], params["bt2"], m)

    # BN2 + residual + ReLU.
    out = bn_add_relu(y2_raw, xres, scale2, shift2)
    return jnp.transpose(out[..., :C], (0, 3, 1, 2))


# ---------------------------- pure-JAX references ---------------------------- #

def ref_forward_f32(x, w1, b1, g1, bt1, w2, b2, g2, bt2):
    """Faithful PyTorch semantics (f32 convs, conv bias, training-mode BN), NCHW."""
    def conv(z, w, b):
        y = lax.conv_general_dilated(z, w, (1, 1), ((1, 1), (1, 1)),
                                     dimension_numbers=("NCHW", "OIHW", "NCHW"))
        return y + b.reshape(1, -1, 1, 1)

    def bn(y, g, bt):
        mean = jnp.mean(y, axis=(0, 2, 3), keepdims=True)
        var = jnp.mean(jnp.square(y - mean), axis=(0, 2, 3), keepdims=True)
        return (g.reshape(1, -1, 1, 1) * (y - mean) * lax.rsqrt(var + EPS)
                + bt.reshape(1, -1, 1, 1))

    y1 = jax.nn.relu(bn(conv(x, w1, b1), g1, bt1))
    return jax.nn.relu(x + bn(conv(y1, w2, b2), g2, bt2))


def ref_forward_matched(x, w1, g1, bt1, w2, g2, bt2):
    """Precision-matched reference mirroring the kernel path: bf16 conv inputs and bf16 HBM
    intermediates, f32 accumulation + BN stats, conv bias dropped (cancelled by the batch-mean
    subtraction of training-mode BN)."""
    xh = jnp.transpose(x, (0, 2, 3, 1)).astype(MXU_DTYPE)      # NHWC bf16 (also the residual)

    def conv(z, w):
        return lax.conv_general_dilated(
            z, jnp.transpose(w, (2, 3, 1, 0)).astype(MXU_DTYPE), (1, 1), ((1, 1), (1, 1)),
            dimension_numbers=("NHWC", "HWIO", "NHWC"), preferred_element_type=jnp.float32)

    def fold(y, g, bt):
        m = y.shape[0] * y.shape[1] * y.shape[2]
        s = jnp.sum(y, axis=(0, 1, 2))
        q = jnp.sum(y * y, axis=(0, 1, 2))
        mean = s / m
        var = jnp.maximum(q / m - mean * mean, 0.0)
        scale = g * lax.rsqrt(var + EPS)
        return scale, bt - scale * mean

    y1 = conv(xh, w1)
    sc1, sh1 = fold(y1, g1, bt1)
    act = jnp.maximum(y1.astype(MXU_DTYPE).astype(jnp.float32) * sc1 + sh1, 0.0)
    y2 = conv(act.astype(MXU_DTYPE), w2)
    sc2, sh2 = fold(y2, g2, bt2)
    out = jnp.maximum(xh.astype(jnp.float32)
                      + y2.astype(MXU_DTYPE).astype(jnp.float32) * sc2 + sh2, 0.0)
    return jnp.transpose(out, (0, 3, 1, 2))


# ----------------------------------- main ------------------------------------ #

if __name__ == "__main__":
    N, ni, H, W = 2, 4, 16, 16
    nf = ni   # residual add requires ni == nf; stride fixed to 1 (see NOTE at top)
    Cp = max(128, _round_up(max(ni, nf), 128))    # lane-dense channel padding

    keys = jax.random.split(jax.random.PRNGKey(0), 9)
    x = jax.random.normal(keys[0], (N, ni, H, W), jnp.float32)

    # deterministic synthetic parameters (PyTorch shapes: OIHW weights, (C,) bias/affine)
    w1 = 0.1 * jax.random.normal(keys[1], (nf, ni, 3, 3), jnp.float32)
    b1 = 0.1 * jax.random.normal(keys[2], (nf,), jnp.float32)
    w2 = 0.1 * jax.random.normal(keys[3], (nf, nf, 3, 3), jnp.float32)
    b2 = 0.1 * jax.random.normal(keys[4], (nf,), jnp.float32)
    g1 = 1.0 + 0.1 * jax.random.normal(keys[5], (nf,), jnp.float32)
    bt1 = 0.1 * jax.random.normal(keys[6], (nf,), jnp.float32)
    g2 = 1.0 + 0.1 * jax.random.normal(keys[7], (nf,), jnp.float32)
    bt2 = 0.1 * jax.random.normal(keys[8], (nf,), jnp.float32)

    # Conv biases b1/b2 are omitted from the kernel path: training-mode BN subtracts the batch
    # mean, which cancels a per-channel conv bias exactly.  (Eval-mode/running-stats BN would
    # need the bias reinstated.)  The f32 reference keeps them to prove the cancellation.
    params = dict(
        w1=pack_weight(w1, Cp), w2=pack_weight(w2, Cp),
        g1=_pad_channels(g1.reshape(1, nf), Cp),
        bt1=_pad_channels(bt1.reshape(1, nf), Cp),
        g2=_pad_channels(g2.reshape(1, nf), Cp),
        bt2=_pad_channels(bt2.reshape(1, nf), Cp),
    )

    out = jax.jit(resblock_forward)(x, params)
    jax.block_until_ready(out)
    assert out.shape == (N, nf, H, W)

    # Tight-ish check vs a reference that mirrors the kernel's precision choices exactly
    # (bf16 conv inputs and bf16 intermediate storage); margin covers single bf16-ULP
    # rounding flips amplified by the BN2 scale.
    ref_m = ref_forward_matched(x, w1, g1, bt1, w2, g2, bt2)
    err_m = float(jnp.max(jnp.abs(out - ref_m)))
    assert err_m < 2.5e-2, f"mismatch vs precision-matched reference: {err_m}"

    # Loose sanity check vs the faithful full-f32 reference (gap = intentional bf16 rounding).
    ref32 = ref_forward_f32(x, w1, b1, g1, bt1, w2, b2, g2, bt2)
    err32 = float(jnp.max(jnp.abs(out - ref32)))
    assert err32 < 2.5e-1, f"mismatch vs f32 reference: {err32}"

    print("KERNEL_OK")
</pallas_src>

<mosaic_0001>
module attributes {stable_mosaic.version = 11 : i64} {
  func.func @_conv1_kernel(%arg0: i32, %arg1: memref<1x16x16x128xbf16, #tpu.memory_space<vmem>>, %arg2: memref<1152x128xbf16, #tpu.memory_space<vmem>>, %arg3: memref<1x16x16x128xbf16, #tpu.memory_space<vmem>>, %arg4: memref<1x1x128xf32, #tpu.memory_space<vmem>>, %arg5: memref<1x1x128xf32, #tpu.memory_space<vmem>>, %arg6: memref<18x33x128xbf16, #tpu.memory_space<vmem>>, %arg7: memref<256x1152xbf16, #tpu.memory_space<vmem>>) attributes {dimension_semantics = [#tpu.dimension_semantics<parallel>], iteration_bounds = array<i64: 2>, scalar_prefetch = 0 : i64, scratch_operands = 2 : i64, tpu.core_type = #tpu.core_type<tc>, window_params = [{transform_indices = @transform_0, window_bounds = array<i64: 1, 16, 16, 128>}, {pipeline_mode = #tpu.pipeline_mode<synchronous>, transform_indices = @transform_1, window_bounds = array<i64: 1152, 128>}, {transform_indices = @transform_2, window_bounds = array<i64: 1, 16, 16, 128>}, {transform_indices = @transform_3, window_bounds = array<i64: 1, 1, 128>}, {transform_indices = @transform_4, window_bounds = array<i64: 1, 1, 128>}]} {
    %cst = arith.constant 0.000000e+00 : bf16
    %0 = vector.broadcast %cst : bf16 to vector<18x33x128xbf16>
    %c0 = arith.constant 0 : index
    %c0_0 = arith.constant 0 : index
    %c0_1 = arith.constant 0 : index
    %1 = vector.load %arg6[%c0, %c0_0, %c0_1] : memref<18x33x128xbf16, #tpu.memory_space<vmem>>, vector<18x33x128xbf16>
    tpu.vector_store %arg6[%c0, %c0_0, %c0_1], %0 {strides = array<i32>} : memref<18x33x128xbf16, #tpu.memory_space<vmem>>, vector<18x33x128xbf16>,
    %c0_2 = arith.constant 0 : index
    %c0_3 = arith.constant 0 : index
    %c0_4 = arith.constant 0 : index
    %c0_5 = arith.constant 0 : index
    %2 = vector.load %arg1[%c0_2, %c0_3, %c0_4, %c0_5] : memref<1x16x16x128xbf16, #tpu.memory_space<vmem>>, vector<1x16x16x128xbf16>
    %3 = vector.shape_cast %2 : vector<1x16x16x128xbf16> to vector<16x16x128xbf16>
    %c1 = arith.constant 1 : index
    %c16 = arith.constant 16 : index
    %c0_6 = arith.constant 0 : index
    %4 = vector.load %arg6[%c1, %c16, %c0_6] : memref<18x33x128xbf16, #tpu.memory_space<vmem>>, vector<16x16x128xbf16>
    tpu.vector_store %arg6[%c1, %c16, %c0_6], %3 {strides = array<i32>} : memref<18x33x128xbf16, #tpu.memory_space<vmem>>, vector<16x16x128xbf16>,
    %c0_7 = arith.constant 0 : index
    %c15 = arith.constant 15 : index
    %c0_8 = arith.constant 0 : index
    %5 = vector.load %arg6[%c0_7, %c15, %c0_8] : memref<18x33x128xbf16, #tpu.memory_space<vmem>>, vector<16x16x128xbf16>
    %6 = vector.shape_cast %5 : vector<16x16x128xbf16> to vector<256x128xbf16>
    %c0_9 = arith.constant 0 : index
    %c0_10 = arith.constant 0 : index
    %7 = vector.load %arg7[%c0_9, %c0_10] : memref<256x1152xbf16, #tpu.memory_space<vmem>>, vector<256x128xbf16>
    tpu.vector_store %arg7[%c0_9, %c0_10], %6 {strides = array<i32>} : memref<256x1152xbf16, #tpu.memory_space<vmem>>, vector<256x128xbf16>,
    %c0_11 = arith.constant 0 : index
    %c16_12 = arith.constant 16 : index
    %c0_13 = arith.constant 0 : index
    %8 = vector.load %arg6[%c0_11, %c16_12, %c0_13] : memref<18x33x128xbf16, #tpu.memory_space<vmem>>, vector<16x16x128xbf16>
    %9 = vector.shape_cast %8 : vector<16x16x128xbf16> to vector<256x128xbf16>
    %c0_14 = arith.constant 0 : index
    %c128 = arith.constant 128 : index
    %10 = vector.load %arg7[%c0_14, %c128] : memref<256x1152xbf16, #tpu.memory_space<vmem>>, vector<256x128xbf16>
    tpu.vector_store %arg7[%c0_14, %c128], %9 {strides = array<i32>} : memref<256x1152xbf16, #tpu.memory_space<vmem>>, vector<256x128xbf16>,
    %c0_15 = arith.constant 0 : index
    %c17 = arith.constant 17 : index
    %c0_16 = arith.constant 0 : index
    %11 = vector.load %arg6[%c0_15, %c17, %c0_16] : memref<18x33x128xbf16, #tpu.memory_space<vmem>>, vector<16x16x128xbf16>
    %12 = vector.shape_cast %11 : vector<16x16x128xbf16> to vector<256x128xbf16>
    %c0_17 = arith.constant 0 : index
    %c256 = arith.constant 256 : index
    %13 = vector.load %arg7[%c0_17, %c256] : memref<256x1152xbf16, #tpu.memory_space<vmem>>, vector<256x128xbf16>
    tpu.vector_store %arg7[%c0_17, %c256], %12 {strides = array<i32>} : memref<256x1152xbf16, #tpu.memory_space<vmem>>, vector<256x128xbf16>,
    %c1_18 = arith.constant 1 : index
    %c15_19 = arith.constant 15 : index
    %c0_20 = arith.constant 0 : index
    %14 = vector.load %arg6[%c1_18, %c15_19, %c0_20] : memref<18x33x128xbf16, #tpu.memory_space<vmem>>, vector<16x16x128xbf16>
    %15 = vector.shape_cast %14 : vector<16x16x128xbf16> to vector<256x128xbf16>
    %c0_21 = arith.constant 0 : index
    %c384 = arith.constant 384 : index
    %16 = vector.load %arg7[%c0_21, %c384] : memref<256x1152xbf16, #tpu.memory_space<vmem>>, vector<256x128xbf16>
    tpu.vector_store %arg7[%c0_21, %c384], %15 {strides = array<i32>} : memref<256x1152xbf16, #tpu.memory_space<vmem>>, vector<256x128xbf16>,
    %c1_22 = arith.constant 1 : index
    %c16_23 = arith.constant 16 : index
    %c0_24 = arith.constant 0 : index
    %17 = vector.load %arg6[%c1_22, %c16_23, %c0_24] : memref<18x33x128xbf16, #tpu.memory_space<vmem>>, vector<16x16x128xbf16>
    %18 = vector.shape_cast %17 : vector<16x16x128xbf16> to vector<256x128xbf16>
    %c0_25 = arith.constant 0 : index
    %c512 = arith.constant 512 : index
    %19 = vector.load %arg7[%c0_25, %c512] : memref<256x1152xbf16, #tpu.memory_space<vmem>>, vector<256x128xbf16>
    tpu.vector_store %arg7[%c0_25, %c512], %18 {strides = array<i32>} : memref<256x1152xbf16, #tpu.memory_space<vmem>>, vector<256x128xbf16>,
    %c1_26 = arith.constant 1 : index
    %c17_27 = arith.constant 17 : index
    %c0_28 = arith.constant 0 : index
    %20 = vector.load %arg6[%c1_26, %c17_27, %c0_28] : memref<18x33x128xbf16, #tpu.memory_space<vmem>>, vector<16x16x128xbf16>
    %21 = vector.shape_cast %20 : vector<16x16x128xbf16> to vector<256x128xbf16>
    %c0_29 = arith.constant 0 : index
    %c640 = arith.constant 640 : index
    %22 = vector.load %arg7[%c0_29, %c640] : memref<256x1152xbf16, #tpu.memory_space<vmem>>, vector<256x128xbf16>
    tpu.vector_store %arg7[%c0_29, %c640], %21 {strides = array<i32>} : memref<256x1152xbf16, #tpu.memory_space<vmem>>, vector<256x128xbf16>,
    %c2 = arith.constant 2 : index
    %c15_30 = arith.constant 15 : index
    %c0_31 = arith.constant 0 : index
    %23 = vector.load %arg6[%c2, %c15_30, %c0_31] : memref<18x33x128xbf16, #tpu.memory_space<vmem>>, vector<16x16x128xbf16>
    %24 = vector.shape_cast %23 : vector<16x16x128xbf16> to vector<256x128xbf16>
    %c0_32 = arith.constant 0 : index
    %c768 = arith.constant 768 : index
    %25 = vector.load %arg7[%c0_32, %c768] : memref<256x1152xbf16, #tpu.memory_space<vmem>>, vector<256x128xbf16>
    tpu.vector_store %arg7[%c0_32, %c768], %24 {strides = array<i32>} : memref<256x1152xbf16, #tpu.memory_space<vmem>>, vector<256x128xbf16>,
    %c2_33 = arith.constant 2 : index
    %c16_34 = arith.constant 16 : index
    %c0_35 = arith.constant 0 : index
    %26 = vector.load %arg6[%c2_33, %c16_34, %c0_35] : memref<18x33x128xbf16, #tpu.memory_space<vmem>>, vector<16x16x128xbf16>
    %27 = vector.shape_cast %26 : vector<16x16x128xbf16> to vector<256x128xbf16>
    %c0_36 = arith.constant 0 : index
    %c896 = arith.constant 896 : index
    %28 = vector.load %arg7[%c0_36, %c896] : memref<256x1152xbf16, #tpu.memory_space<vmem>>, vector<256x128xbf16>
    tpu.vector_store %arg7[%c0_36, %c896], %27 {strides = array<i32>} : memref<256x1152xbf16, #tpu.memory_space<vmem>>, vector<256x128xbf16>,
    %c2_37 = arith.constant 2 : index
    %c17_38 = arith.constant 17 : index
    %c0_39 = arith.constant 0 : index
    %29 = vector.load %arg6[%c2_37, %c17_38, %c0_39] : memref<18x33x128xbf16, #tpu.memory_space<vmem>>, vector<16x16x128xbf16>
    %30 = vector.shape_cast %29 : vector<16x16x128xbf16> to vector<256x128xbf16>
    %c0_40 = arith.constant 0 : index
    %c1024 = arith.constant 1024 : index
    %31 = vector.load %arg7[%c0_40, %c1024] : memref<256x1152xbf16, #tpu.memory_space<vmem>>, vector<256x128xbf16>
    tpu.vector_store %arg7[%c0_40, %c1024], %30 {strides = array<i32>} : memref<256x1152xbf16, #tpu.memory_space<vmem>>, vector<256x128xbf16>,
    %c0_41 = arith.constant 0 : index
    %c0_42 = arith.constant 0 : index
    %32 = vector.load %arg7[%c0_41, %c0_42] : memref<256x1152xbf16, #tpu.memory_space<vmem>>, vector<256x1152xbf16>
    %c0_43 = arith.constant 0 : index
    %c0_44 = arith.constant 0 : index
    %33 = vector.load %arg2[%c0_43, %c0_44] : memref<1152x128xbf16, #tpu.memory_space<vmem>>, vector<1152x128xbf16>
    %cst_45 = arith.constant dense<0.000000e+00> : vector<256x128xf32>
    %34 = tpu.matmul %32, %33, %cst_45 {dimension_numbers = #tpu.dot_dimension_numbers<[1], [0], [0], [1], [0, 0, 1, 1], [], []>} : vector<256x1152xbf16>, vector<1152x128xbf16>, vector<256x128xf32> -> vector<256x128xf32>
    %35 = arith.truncf %34 : vector<256x128xf32> to vector<256x128xbf16>
    %36 = vector.shape_cast %35 : vector<256x128xbf16> to vector<16x16x128xbf16>
    %c0_46 = arith.constant 0 : index
    %c0_47 = arith.constant 0 : index
    %c0_48 = arith.constant 0 : index
    %c0_49 = arith.constant 0 : index
    %37 = vector.load %arg3[%c0_46, %c0_47, %c0_48, %c0_49] : memref<1x16x16x128xbf16, #tpu.memory_space<vmem>>, vector<1x16x16x128xbf16>
    %38 = vector.shape_cast %37 : vector<1x16x16x128xbf16> to vector<16x16x128xbf16>
    %39 = vector.shape_cast %36 : vector<16x16x128xbf16> to vector<1x16x16x128xbf16>
    tpu.vector_store %arg3[%c0_46, %c0_47, %c0_48, %c0_49], %39 {strides = array<i32>} : memref<1x16x16x128xbf16, #tpu.memory_space<vmem>>, vector<1x16x16x128xbf16>,
    %cst_50 = arith.constant dense<0.000000e+00> : vector<128xf32>
    %40 = vector.multi_reduction <add>, %34, %cst_50 [0] : vector<256x128xf32> to vector<128xf32>
    %41 = vector.shape_cast %40 : vector<128xf32> to vector<1x128xf32>
    %c0_51 = arith.constant 0 : index
    %c0_52 = arith.constant 0 : index
    %c0_53 = arith.constant 0 : index
    %42 = vector.load %arg4[%c0_51, %c0_52, %c0_53] : memref<1x1x128xf32, #tpu.memory_space<vmem>>, vector<1x1x128xf32>
    %43 = vector.shape_cast %42 : vector<1x1x128xf32> to vector<1x128xf32>
    %44 = vector.shape_cast %41 : vector<1x128xf32> to vector<1x1x128xf32>
    tpu.vector_store %arg4[%c0_51, %c0_52, %c0_53], %44 {strides = array<i32>} : memref<1x1x128xf32, #tpu.memory_space<vmem>>, vector<1x1x128xf32>,
    %45 = arith.mulf %34, %34 : vector<256x128xf32>
    %cst_54 = arith.constant dense<0.000000e+00> : vector<128xf32>
    %46 = vector.multi_reduction <add>, %45, %cst_54 [0] : vector<256x128xf32> to vector<128xf32>
    %47 = vector.shape_cast %46 : vector<128xf32> to vector<1x128xf32>
    %c0_55 = arith.constant 0 : index
    %c0_56 = arith.constant 0 : index
    %c0_57 = arith.constant 0 : index
    %48 = vector.load %arg5[%c0_55, %c0_56, %c0_57] : memref<1x1x128xf32, #tpu.memory_space<vmem>>, vector<1x1x128xf32>
    %49 = vector.shape_cast %48 : vector<1x1x128xf32> to vector<1x128xf32>
    %50 = vector.shape_cast %47 : vector<1x128xf32> to vector<1x1x128xf32>
    tpu.vector_store %arg5[%c0_55, %c0_56, %c0_57], %50 {strides = array<i32>} : memref<1x1x128xf32, #tpu.memory_space<vmem>>, vector<1x1x128xf32>,
    return
  }
  func.func @transform_0(%arg0: i32) -> (i32, i32, i32, i32) {
    %c0_i32 = arith.constant 0 : i32
    %c0_i32_0 = arith.constant 0 : i32
    %c0_i32_1 = arith.constant 0 : i32
    %c0_i32_2 = arith.constant 0 : i32
    return %arg0, %c0_i32, %c0_i32_0, %c0_i32_1 : i32, i32, i32, i32
  }
  func.func @transform_1(%arg0: i32) -> (i32, i32) {
    %c0_i32 = arith.constant 0 : i32
    %c0_i32_0 = arith.constant 0 : i32
    %c0_i32_1 = arith.constant 0 : i32
    return %c0_i32, %c0_i32_0 : i32, i32
  }
  func.func @transform_2(%arg0: i32) -> (i32, i32, i32, i32) {
    %c0_i32 = arith.constant 0 : i32
    %c0_i32_0 = arith.constant 0 : i32
    %c0_i32_1 = arith.constant 0 : i32
    %c0_i32_2 = arith.constant 0 : i32
    return %arg0, %c0_i32, %c0_i32_0, %c0_i32_1 : i32, i32, i32, i32
  }
  func.func @transform_3(%arg0: i32) -> (i32, i32, i32) {
    %c0_i32 = arith.constant 0 : i32
    %c0_i32_0 = arith.constant 0 : i32
    %c0_i32_1 = arith.constant 0 : i32
    return %arg0, %c0_i32, %c0_i32_0 : i32, i32, i32
  }
  func.func @transform_4(%arg0: i32) -> (i32, i32, i32) {
    %c0_i32 = arith.constant 0 : i32
    %c0_i32_0 = arith.constant 0 : i32
    %c0_i32_1 = arith.constant 0 : i32
    return %arg0, %c0_i32, %c0_i32_0 : i32, i32, i32
  }
}

module attributes {stable_mosaic.version = 11 : i64} {
  func.func @_bnrelu_conv2_kernel(%arg0: i32, %arg1: memref<1x16x16x128xbf16, #tpu.memory_space<vmem>>, %arg2: memref<1x128xf32, #tpu.memory_space<vmem>>, %arg3: memref<1x128xf32, #tpu.memory_space<vmem>>, %arg4: memref<1152x128xbf16, #tpu.memory_space<vmem>>, %arg5: memref<1x16x16x128xbf16, #tpu.memory_space<vmem>>, %arg6: memref<1x1x128xf32, #tpu.memory_space<vmem>>, %arg7: memref<1x1x128xf32, #tpu.memory_space<vmem>>, %arg8: memref<18x33x128xbf16, #tpu.memory_space<vmem>>, %arg9: memref<256x1152xbf16, #tpu.memory_space<vmem>>) attributes {dimension_semantics = [#tpu.dimension_semantics<parallel>], iteration_bounds = array<i64: 2>, scalar_prefetch = 0 : i64, scratch_operands = 2 : i64, tpu.core_type = #tpu.core_type<tc>, window_params = [{transform_indices = @transform_0, window_bounds = array<i64: 1, 16, 16, 128>}, {pipeline_mode = #tpu.pipeline_mode<synchronous>, transform_indices = @transform_1, window_bounds = array<i64: 1, 128>}, {pipeline_mode = #tpu.pipeline_mode<synchronous>, transform_indices = @transform_2, window_bounds = array<i64: 1, 128>}, {pipeline_mode = #tpu.pipeline_mode<synchronous>, transform_indices = @transform_3, window_bounds = array<i64: 1152, 128>}, {transform_indices = @transform_4, window_bounds = array<i64: 1, 16, 16, 128>}, {transform_indices = @transform_5, window_bounds = array<i64: 1, 1, 128>}, {transform_indices = @transform_6, window_bounds = array<i64: 1, 1, 128>}]} {
    %cst = arith.constant 0.000000e+00 : bf16
    %0 = vector.broadcast %cst : bf16 to vector<18x33x128xbf16>
    %c0 = arith.constant 0 : index
    %c0_0 = arith.constant 0 : index
    %c0_1 = arith.constant 0 : index
    %1 = vector.load %arg8[%c0, %c0_0, %c0_1] : memref<18x33x128xbf16, #tpu.memory_space<vmem>>, vector<18x33x128xbf16>
    tpu.vector_store %arg8[%c0, %c0_0, %c0_1], %0 {strides = array<i32>} : memref<18x33x128xbf16, #tpu.memory_space<vmem>>, vector<18x33x128xbf16>,
    %c0_2 = arith.constant 0 : index
    %c0_3 = arith.constant 0 : index
    %c0_4 = arith.constant 0 : index
    %c0_5 = arith.constant 0 : index
    %2 = vector.load %arg1[%c0_2, %c0_3, %c0_4, %c0_5] : memref<1x16x16x128xbf16, #tpu.memory_space<vmem>>, vector<1x16x16x128xbf16>
    %3 = vector.shape_cast %2 : vector<1x16x16x128xbf16> to vector<16x16x128xbf16>
    %4 = arith.extf %3 : vector<16x16x128xbf16> to vector<16x16x128xf32>
    %5 = vector.shape_cast %4 : vector<16x16x128xf32> to vector<256x128xf32>
    %c0_6 = arith.constant 0 : index
    %c0_7 = arith.constant 0 : index
    %6 = vector.load %arg2[%c0_6, %c0_7] : memref<1x128xf32, #tpu.memory_space<vmem>>, vector<1x128xf32>
    %7 = vector.broadcast %6 : vector<1x128xf32> to vector<256x128xf32>
    %8 = arith.mulf %5, %7 : vector<256x128xf32>
    %c0_8 = arith.constant 0 : index
    %c0_9 = arith.constant 0 : index
    %9 = vector.load %arg3[%c0_8, %c0_9] : memref<1x128xf32, #tpu.memory_space<vmem>>, vector<1x128xf32>
    %10 = vector.broadcast %9 : vector<1x128xf32> to vector<256x128xf32>
    %11 = arith.addf %8, %10 : vector<256x128xf32>
    %cst_10 = arith.constant 0.000000e+00 : f32
    %12 = vector.broadcast %cst_10 : f32 to vector<256x128xf32>
    %13 = arith.maximumf %11, %12 : vector<256x128xf32>
    %14 = arith.truncf %13 : vector<256x128xf32> to vector<256x128xbf16>
    %15 = vector.shape_cast %14 : vector<256x128xbf16> to vector<16x16x128xbf16>
    %c1 = arith.constant 1 : index
    %c16 = arith.constant 16 : index
    %c0_11 = arith.constant 0 : index
    %16 = vector.load %arg8[%c1, %c16, %c0_11] : memref<18x33x128xbf16, #tpu.memory_space<vmem>>, vector<16x16x128xbf16>
    tpu.vector_store %arg8[%c1, %c16, %c0_11], %15 {strides = array<i32>} : memref<18x33x128xbf16, #tpu.memory_space<vmem>>, vector<16x16x128xbf16>,
    %c0_12 = arith.constant 0 : index
    %c15 = arith.constant 15 : index
    %c0_13 = arith.constant 0 : index
    %17 = vector.load %arg8[%c0_12, %c15, %c0_13] : memref<18x33x128xbf16, #tpu.memory_space<vmem>>, vector<16x16x128xbf16>
    %18 = vector.shape_cast %17 : vector<16x16x128xbf16> to vector<256x128xbf16>
    %c0_14 = arith.constant 0 : index
    %c0_15 = arith.constant 0 : index
    %19 = vector.load %arg9[%c0_14, %c0_15] : memref<256x1152xbf16, #tpu.memory_space<vmem>>, vector<256x128xbf16>
    tpu.vector_store %arg9[%c0_14, %c0_15], %18 {strides = array<i32>} : memref<256x1152xbf16, #tpu.memory_space<vmem>>, vector<256x128xbf16>,
    %c0_16 = arith.constant 0 : index
    %c16_17 = arith.constant 16 : index
    %c0_18 = arith.constant 0 : index
    %20 = vector.load %arg8[%c0_16, %c16_17, %c0_18] : memref<18x33x128xbf16, #tpu.memory_space<vmem>>, vector<16x16x128xbf16>
    %21 = vector.shape_cast %20 : vector<16x16x128xbf16> to vector<256x128xbf16>
    %c0_19 = arith.constant 0 : index
    %c128 = arith.constant 128 : index
    %22 = vector.load %arg9[%c0_19, %c128] : memref<256x1152xbf16, #tpu.memory_space<vmem>>, vector<256x128xbf16>
    tpu.vector_store %arg9[%c0_19, %c128], %21 {strides = array<i32>} : memref<256x1152xbf16, #tpu.memory_space<vmem>>, vector<256x128xbf16>,
    %c0_20 = arith.constant 0 : index
    %c17 = arith.constant 17 : index
    %c0_21 = arith.constant 0 : index
    %23 = vector.load %arg8[%c0_20, %c17, %c0_21] : memref<18x33x128xbf16, #tpu.memory_space<vmem>>, vector<16x16x128xbf16>
    %24 = vector.shape_cast %23 : vector<16x16x128xbf16> to vector<256x128xbf16>
    %c0_22 = arith.constant 0 : index
    %c256 = arith.constant 256 : index
    %25 = vector.load %arg9[%c0_22, %c256] : memref<256x1152xbf16, #tpu.memory_space<vmem>>, vector<256x128xbf16>
    tpu.vector_store %arg9[%c0_22, %c256], %24 {strides = array<i32>} : memref<256x1152xbf16, #tpu.memory_space<vmem>>, vector<256x128xbf16>,
    %c1_23 = arith.constant 1 : index
    %c15_24 = arith.constant 15 : index
    %c0_25 = arith.constant 0 : index
    %26 = vector.load %arg8[%c1_23, %c15_24, %c0_25] : memref<18x33x128xbf16, #tpu.memory_space<vmem>>, vector<16x16x128xbf16>
    %27 = vector.shape_cast %26 : vector<16x16x128xbf16> to vector<256x128xbf16>
    %c0_26 = arith.constant 0 : index
    %c384 = arith.constant 384 : index
    %28 = vector.load %arg9[%c0_26, %c384] : memref<256x1152xbf16, #tpu.memory_space<vmem>>, vector<256x128xbf16>
    tpu.vector_store %arg9[%c0_26, %c384], %27 {strides = array<i32>} : memref<256x1152xbf16, #tpu.memory_space<vmem>>, vector<256x128xbf16>,
    %c1_27 = arith.constant 1 : index
    %c16_28 = arith.constant 16 : index
    %c0_29 = arith.constant 0 : index
    %29 = vector.load %arg8[%c1_27, %c16_28, %c0_29] : memref<18x33x128xbf16, #tpu.memory_space<vmem>>, vector<16x16x128xbf16>
    %30 = vector.shape_cast %29 : vector<16x16x128xbf16> to vector<256x128xbf16>
    %c0_30 = arith.constant 0 : index
    %c512 = arith.constant 512 : index
    %31 = vector.load %arg9[%c0_30, %c512] : memref<256x1152xbf16, #tpu.memory_space<vmem>>, vector<256x128xbf16>
    tpu.vector_store %arg9[%c0_30, %c512], %30 {strides = array<i32>} : memref<256x1152xbf16, #tpu.memory_space<vmem>>, vector<256x128xbf16>,
    %c1_31 = arith.constant 1 : index
    %c17_32 = arith.constant 17 : index
    %c0_33 = arith.constant 0 : index
    %32 = vector.load %arg8[%c1_31, %c17_32, %c0_33] : memref<18x33x128xbf16, #tpu.memory_space<vmem>>, vector<16x16x128xbf16>
    %33 = vector.shape_cast %32 : vector<16x16x128xbf16> to vector<256x128xbf16>
    %c0_34 = arith.constant 0 : index
    %c640 = arith.constant 640 : index
    %34 = vector.load %arg9[%c0_34, %c640] : memref<256x1152xbf16, #tpu.memory_space<vmem>>, vector<256x128xbf16>
    tpu.vector_store %arg9[%c0_34, %c640], %33 {strides = array<i32>} : memref<256x1152xbf16, #tpu.memory_space<vmem>>, vector<256x128xbf16>,
    %c2 = arith.constant 2 : index
    %c15_35 = arith.constant 15 : index
    %c0_36 = arith.constant 0 : index
    %35 = vector.load %arg8[%c2, %c15_35, %c0_36] : memref<18x33x128xbf16, #tpu.memory_space<vmem>>, vector<16x16x128xbf16>
    %36 = vector.shape_cast %35 : vector<16x16x128xbf16> to vector<256x128xbf16>
    %c0_37 = arith.constant 0 : index
    %c768 = arith.constant 768 : index
    %37 = vector.load %arg9[%c0_37, %c768] : memref<256x1152xbf16, #tpu.memory_space<vmem>>, vector<256x128xbf16>
    tpu.vector_store %arg9[%c0_37, %c768], %36 {strides = array<i32>} : memref<256x1152xbf16, #tpu.memory_space<vmem>>, vector<256x128xbf16>,
    %c2_38 = arith.constant 2 : index
    %c16_39 = arith.constant 16 : index
    %c0_40 = arith.constant 0 : index
    %38 = vector.load %arg8[%c2_38, %c16_39, %c0_40] : memref<18x33x128xbf16, #tpu.memory_space<vmem>>, vector<16x16x128xbf16>
    %39 = vector.shape_cast %38 : vector<16x16x128xbf16> to vector<256x128xbf16>
    %c0_41 = arith.constant 0 : index
    %c896 = arith.constant 896 : index
    %40 = vector.load %arg9[%c0_41, %c896] : memref<256x1152xbf16, #tpu.memory_space<vmem>>, vector<256x128xbf16>
    tpu.vector_store %arg9[%c0_41, %c896], %39 {strides = array<i32>} : memref<256x1152xbf16, #tpu.memory_space<vmem>>, vector<256x128xbf16>,
    %c2_42 = arith.constant 2 : index
    %c17_43 = arith.constant 17 : index
    %c0_44 = arith.constant 0 : index
    %41 = vector.load %arg8[%c2_42, %c17_43, %c0_44] : memref<18x33x128xbf16, #tpu.memory_space<vmem>>, vector<16x16x128xbf16>
    %42 = vector.shape_cast %41 : vector<16x16x128xbf16> to vector<256x128xbf16>
    %c0_45 = arith.constant 0 : index
    %c1024 = arith.constant 1024 : index
    %43 = vector.load %arg9[%c0_45, %c1024] : memref<256x1152xbf16, #tpu.memory_space<vmem>>, vector<256x128xbf16>
    tpu.vector_store %arg9[%c0_45, %c1024], %42 {strides = array<i32>} : memref<256x1152xbf16, #tpu.memory_space<vmem>>, vector<256x128xbf16>,
    %c0_46 = arith.constant 0 : index
    %c0_47 = arith.constant 0 : index
    %44 = vector.load %arg9[%c0_46, %c0_47] : memref<256x1152xbf16, #tpu.memory_space<vmem>>, vector<256x1152xbf16>
    %c0_48 = arith.constant 0 : index
    %c0_49 = arith.constant 0 : index
    %45 = vector.load %arg4[%c0_48, %c0_49] : memref<1152x128xbf16, #tpu.memory_space<vmem>>, vector<1152x128xbf16>
    %cst_50 = arith.constant dense<0.000000e+00> : vector<256x128xf32>
    %46 = tpu.matmul %44, %45, %cst_50 {dimension_numbers = #tpu.dot_dimension_numbers<[1], [0], [0], [1], [0, 0, 1, 1], [], []>} : vector<256x1152xbf16>, vector<1152x128xbf16>, vector<256x128xf32> -> vector<256x128xf32>
    %47 = arith.truncf %46 : vector<256x128xf32> to vector<256x128xbf16>
    %48 = vector.shape_cast %47 : vector<256x128xbf16> to vector<16x16x128xbf16>
    %c0_51 = arith.constant 0 : index
    %c0_52 = arith.constant 0 : index
    %c0_53 = arith.constant 0 : index
    %c0_54 = arith.constant 0 : index
    %49 = vector.load %arg5[%c0_51, %c0_52, %c0_53, %c0_54] : memref<1x16x16x128xbf16, #tpu.memory_space<vmem>>, vector<1x16x16x128xbf16>
    %50 = vector.shape_cast %49 : vector<1x16x16x128xbf16> to vector<16x16x128xbf16>
    %51 = vector.shape_cast %48 : vector<16x16x128xbf16> to vector<1x16x16x128xbf16>
    tpu.vector_store %arg5[%c0_51, %c0_52, %c0_53, %c0_54], %51 {strides = array<i32>} : memref<1x16x16x128xbf16, #tpu.memory_space<vmem>>, vector<1x16x16x128xbf16>,
    %cst_55 = arith.constant dense<0.000000e+00> : vector<128xf32>
    %52 = vector.multi_reduction <add>, %46, %cst_55 [0] : vector<256x128xf32> to vector<128xf32>
    %53 = vector.shape_cast %52 : vector<128xf32> to vector<1x128xf32>
    %c0_56 = arith.constant 0 : index
    %c0_57 = arith.constant 0 : index
    %c0_58 = arith.constant 0 : index
    %54 = vector.load %arg6[%c0_56, %c0_57, %c0_58] : memref<1x1x128xf32, #tpu.memory_space<vmem>>, vector<1x1x128xf32>
    %55 = vector.shape_cast %54 : vector<1x1x128xf32> to vector<1x128xf32>
    %56 = vector.shape_cast %53 : vector<1x128xf32> to vector<1x1x128xf32>
    tpu.vector_store %arg6[%c0_56, %c0_57, %c0_58], %56 {strides = array<i32>} : memref<1x1x128xf32, #tpu.memory_space<vmem>>, vector<1x1x128xf32>,
    %57 = arith.mulf %46, %46 : vector<256x128xf32>
    %cst_59 = arith.constant dense<0.000000e+00> : vector<128xf32>
    %58 = vector.multi_reduction <add>, %57, %cst_59 [0] : vector<256x128xf32> to vector<128xf32>
    %59 = vector.shape_cast %58 : vector<128xf32> to vector<1x128xf32>
    %c0_60 = arith.constant 0 : index
    %c0_61 = arith.constant 0 : index
    %c0_62 = arith.constant 0 : index
    %60 = vector.load %arg7[%c0_60, %c0_61, %c0_62] : memref<1x1x128xf32, #tpu.memory_space<vmem>>, vector<1x1x128xf32>
    %61 = vector.shape_cast %60 : vector<1x1x128xf32> to vector<1x128xf32>
    %62 = vector.shape_cast %59 : vector<1x128xf32> to vector<1x1x128xf32>
    tpu.vector_store %arg7[%c0_60, %c0_61, %c0_62], %62 {strides = array<i32>} : memref<1x1x128xf32, #tpu.memory_space<vmem>>, vector<1x1x128xf32>,
    return
  }
  func.func @transform_0(%arg0: i32) -> (i32, i32, i32, i32) {
    %c0_i32 = arith.constant 0 : i32
    %c0_i32_0 = arith.constant 0 : i32
    %c0_i32_1 = arith.constant 0 : i32
    %c0_i32_2 = arith.constant 0 : i32
    return %arg0, %c0_i32, %c0_i32_0, %c0_i32_1 : i32, i32, i32, i32
  }
  func.func @transform_1(%arg0: i32) -> (i32, i32) {
    %c0_i32 = arith.constant 0 : i32
    %c0_i32_0 = arith.constant 0 : i32
    %c0_i32_1 = arith.constant 0 : i32
    return %c0_i32, %c0_i32_0 : i32, i32
  }
  func.func @transform_2(%arg0: i32) -> (i32, i32) {
    %c0_i32 = arith.constant 0 : i32
    %c0_i32_0 = arith.constant 0 : i32
    %c0_i32_1 = arith.constant 0 : i32
    return %c0_i32, %c0_i32_0 : i32, i32
  }
  func.func @transform_3(%arg0: i32) -> (i32, i32) {
    %c0_i32 = arith.constant 0 : i32
    %c0_i32_0 = arith.constant 0 : i32
    %c0_i32_1 = arith.constant 0 : i32
    return %c0_i32, %c0_i32_0 : i32, i32
  }
  func.func @transform_4(%arg0: i32) -> (i32, i32, i32, i32) {
    %c0_i32 = arith.constant 0 : i32
    %c0_i32_0 = arith.constant 0 : i32
    %c0_i32_1 = arith.constant 0 : i32
    %c0_i32_2 = arith.constant 0 : i32
    return %arg0, %c0_i32, %c0_i32_0, %c0_i32_1 : i32, i32, i32, i32
  }
  func.func @transform_5(%arg0: i32) -> (i32, i32, i32) {
    %c0_i32 = arith.constant 0 : i32
    %c0_i32_0 = arith.constant 0 : i32
    %c0_i32_1 = arith.constant 0 : i32
    return %arg0, %c0_i32, %c0_i32_0 : i32, i32, i32
  }
  func.func @transform_6(%arg0: i32) -> (i32, i32, i32) {
    %c0_i32 = arith.constant 0 : i32
    %c0_i32_0 = arith.constant 0 : i32
    %c0_i32_1 = arith.constant 0 : i32
    return %arg0, %c0_i32, %c0_i32_0 : i32, i32, i32
  }
}

module attributes {stable_mosaic.version = 11 : i64} {
  func.func @_bn_add_relu_kernel(%arg0: i32, %arg1: memref<1x16x16x128xbf16, #tpu.memory_space<vmem>>, %arg2: memref<1x16x16x128xbf16, #tpu.memory_space<vmem>>, %arg3: memref<1x128xf32, #tpu.memory_space<vmem>>, %arg4: memref<1x128xf32, #tpu.memory_space<vmem>>, %arg5: memref<1x16x16x128xf32, #tpu.memory_space<vmem>>) attributes {dimension_semantics = [#tpu.dimension_semantics<parallel>], iteration_bounds = array<i64: 2>, scalar_prefetch = 0 : i64, scratch_operands = 0 : i64, tpu.core_type = #tpu.core_type<tc>, window_params = [{transform_indices = @transform_0, window_bounds = array<i64: 1, 16, 16, 128>}, {transform_indices = @transform_1, window_bounds = array<i64: 1, 16, 16, 128>}, {pipeline_mode = #tpu.pipeline_mode<synchronous>, transform_indices = @transform_2, window_bounds = array<i64: 1, 128>}, {pipeline_mode = #tpu.pipeline_mode<synchronous>, transform_indices = @transform_3, window_bounds = array<i64: 1, 128>}, {transform_indices = @transform_4, window_bounds = array<i64: 1, 16, 16, 128>}]} {
    %c0 = arith.constant 0 : index
    %c0_0 = arith.constant 0 : index
    %c0_1 = arith.constant 0 : index
    %c0_2 = arith.constant 0 : index
    %0 = vector.load %arg1[%c0, %c0_0, %c0_1, %c0_2] : memref<1x16x16x128xbf16, #tpu.memory_space<vmem>>, vector<1x16x16x128xbf16>
    %1 = vector.shape_cast %0 : vector<1x16x16x128xbf16> to vector<16x16x128xbf16>
    %2 = arith.extf %1 : vector<16x16x128xbf16> to vector<16x16x128xf32>
    %3 = vector.shape_cast %2 : vector<16x16x128xf32> to vector<256x128xf32>
    %c0_3 = arith.constant 0 : index
    %c0_4 = arith.constant 0 : index
    %c0_5 = arith.constant 0 : index
    %c0_6 = arith.constant 0 : index
    %4 = vector.load %arg2[%c0_3, %c0_4, %c0_5, %c0_6] : memref<1x16x16x128xbf16, #tpu.memory_space<vmem>>, vector<1x16x16x128xbf16>
    %5 = vector.shape_cast %4 : vector<1x16x16x128xbf16> to vector<16x16x128xbf16>
    %6 = arith.extf %5 : vector<16x16x128xbf16> to vector<16x16x128xf32>
    %7 = vector.shape_cast %6 : vector<16x16x128xf32> to vector<256x128xf32>
    %c0_7 = arith.constant 0 : index
    %c0_8 = arith.constant 0 : index
    %8 = vector.load %arg3[%c0_7, %c0_8] : memref<1x128xf32, #tpu.memory_space<vmem>>, vector<1x128xf32>
    %9 = vector.broadcast %8 : vector<1x128xf32> to vector<256x128xf32>
    %10 = arith.mulf %3, %9 : vector<256x128xf32>
    %11 = arith.addf %7, %10 : vector<256x128xf32>
    %c0_9 = arith.constant 0 : index
    %c0_10 = arith.constant 0 : index
    %12 = vector.load %arg4[%c0_9, %c0_10] : memref<1x128xf32, #tpu.memory_space<vmem>>, vector<1x128xf32>
    %13 = vector.broadcast %12 : vector<1x128xf32> to vector<256x128xf32>
    %14 = arith.addf %11, %13 : vector<256x128xf32>
    %cst = arith.constant 0.000000e+00 : f32
    %15 = vector.broadcast %cst : f32 to vector<256x128xf32>
    %16 = arith.maximumf %14, %15 : vector<256x128xf32>
    %17 = vector.shape_cast %16 : vector<256x128xf32> to vector<16x16x128xf32>
    %c0_11 = arith.constant 0 : index
    %c0_12 = arith.constant 0 : index
    %c0_13 = arith.constant 0 : index
    %c0_14 = arith.constant 0 : index
    %18 = vector.load %arg5[%c0_11, %c0_12, %c0_13, %c0_14] : memref<1x16x16x128xf32, #tpu.memory_space<vmem>>, vector<1x16x16x128xf32>
    %19 = vector.shape_cast %18 : vector<1x16x16x128xf32> to vector<16x16x128xf32>
    %20 = vector.shape_cast %17 : vector<16x16x128xf32> to vector<1x16x16x128xf32>
    tpu.vector_store %arg5[%c0_11, %c0_12, %c0_13, %c0_14], %20 {strides = array<i32>} : memref<1x16x16x128xf32, #tpu.memory_space<vmem>>, vector<1x16x16x128xf32>,
    return
  }
  func.func @transform_0(%arg0: i32) -> (i32, i32, i32, i32) {
    %c0_i32 = arith.constant 0 : i32
    %c0_i32_0 = arith.constant 0 : i32
    %c0_i32_1 = arith.constant 0 : i32
    %c0_i32_2 = arith.constant 0 : i32
    return %arg0, %c0_i32, %c0_i32_0, %c0_i32_1 : i32, i32, i32, i32
  }
  func.func @transform_1(%arg0: i32) -> (i32, i32, i32, i32) {
    %c0_i32 = arith.constant 0 : i32
    %c0_i32_0 = arith.constant 0 : i32
    %c0_i32_1 = arith.constant 0 : i32
    %c0_i32_2 = arith.constant 0 : i32
    return %arg0, %c0_i32, %c0_i32_0, %c0_i32_1 : i32, i32, i32, i32
  }
  func.func @transform_2(%arg0: i32) -> (i32, i32) {
    %c0_i32 = arith.constant 0 : i32
    %c0_i32_0 = arith.constant 0 : i32
    %c0_i32_1 = arith.constant 0 : i32
    return %c0_i32, %c0_i32_0 : i32, i32
  }
  func.func @transform_3(%arg0: i32) -> (i32, i32) {
    %c0_i32 = arith.constant 0 : i32
    %c0_i32_0 = arith.constant 0 : i32
    %c0_i32_1 = arith.constant 0 : i32
    return %c0_i32, %c0_i32_0 : i32, i32
  }
  func.func @transform_4(%arg0: i32) -> (i32, i32, i32, i32) {
    %c0_i32 = arith.constant 0 : i32
    %c0_i32_0 = arith.constant 0 : i32
    %c0_i32_1 = arith.constant 0 : i32
    %c0_i32_2 = arith.constant 0 : i32
    return %arg0, %c0_i32, %c0_i32_0, %c0_i32_1 : i32, i32, i32, i32
  }
}

</mosaic_0001>

<bundles_post_ra>
// kernel: resblock_forward.5
= control target key start
LH: loop header
LB: loop body
LE: loop exit
PB: predicated region body
PF: predicated region fallthrough
CT: control target
= control target key end

     0   :  { %s804_s15 = smov 0   ;;  %s972_s0 = inlined_call_operand.vmem [shape: bf16[2,16,16,128], index: 0, kind: input, shape index: {}]   ;;  %s973_s1 = inlined_call_operand.vmem [shape: bf16[2,16,16,128], index: 1, kind: input, shape index: {}]   ;;  %s974_s2 = inlined_call_operand.vmem [shape: f32[1,128], index: 2, kind: input, shape index: {}]   ;;  %s975_s3 = inlined_call_operand.vmem [shape: f32[1,128], index: 3, kind: input, shape index: {}]   ;;  %s976_s4 = inlined_call_operand.vmem [shape: f32[2,16,16,128], index: 4, kind: output, shape index: {}]  }
   0x1 LB: > { %s587_s16 = sadd.s32 4294967295, %s777_s15   ;;  %p591_p0 = scmp.ge.s32.totalorder %s777_s15, 1  ;;  %s777_s15 = sphi %s804_s15, %s14_s15  }
   0x2   : > { %p172_p1 = scmp.lt.s32.totalorder %s777_s15, 3 }
   0x4   : > { %p173_p2 = pnand %p591_p0, %p172_p1 }
   0x5   : > { %p203_p3 = scmp.lt.s32.totalorder (!%p173_p2), %s587_s16, 1  ;;  %v828_v0 = vld [vmem:[%s974_s2] ss:$0 sm:$0xff] (!%p173_p2) }
   0x6   : > { %176 = sbr.rel (%p173_p2) target bundleno = 71 (0x47), region = 36  ;;  %v843_v21 = vld [vmem:[%s975_s3] ss:$0 sm:$0xff] (!%p173_p2) }
   0xd   : > { %s978_s16 = smov (!%p203_p3, %s587_s16), 1 }
   0xe   : > { %s602_s17 = sshll.u32 %s978_s16, 7  ;;  %s604_s28 = sshll.u32 %s978_s16, 8 }
   0xf   : > { %s818_s20 = scalar_lea.vmem %s972_s0, %s602_s17  ;;  %s823_s23 = scalar_lea.vmem %s973_s1, %s602_s17 }
  0x10   : > { %v606_v1 = vld [vmem:[%s818_s20] sm:$0xff]   ;;  %v733_v3 = vld [vmem:[%s818_s20 + $0x8] sm:$0xff]   ;;  %v734_v9 = vld [vmem:[%s818_s20 + $0x10] sm:$0xff]   ;;  %s856_s5 = scalar_lea.vmem %s976_s4, %s604_s28 }
  0x11   : > { %v670_v2 = vld [vmem:[%s823_s23] sm:$0xff]   ;;  %v607_v4 = vunpack.c.l.bf16 %v606_v1  ;;  %v608_v6 = vunpack.c.h.bf16 %v606_v1  ;;  %v748_v8 = vld [vmem:[%s823_s23 + $0x8] sm:$0xff]   ;;  %v749_v10 = vld [vmem:[%s823_s23 + $0x10] sm:$0xff]   ;;  %v611_v11 = vunpack.c.l.bf16 %v733_v3  ;;  %v612_v13 = vunpack.c.h.bf16 %v733_v3 }
  0x12   : > { %v671_v5 = vunpack.c.l.bf16 %v670_v2  ;;  %v672_v7 = vunpack.c.h.bf16 %v670_v2  ;;  %v675_v12 = vunpack.c.l.bf16 %v748_v8  ;;  %v676_v14 = vunpack.c.h.bf16 %v748_v8  ;;  %v735_v15 = vld [vmem:[%s818_s20 + $0x18] sm:$0xff]   ;;  %v736_v42 = vld [vmem:[%s818_s20 + $0x20] sm:$0xff]   ;;  %v737_v52 = vld [vmem:[%s818_s20 + $0x28] sm:$0xff]  }
  0x13   : > { %v353_v16 = vmul.f32 %v607_v4, %v828_v0  ;;  %v354_v17 = vmul.f32 %v608_v6, %v828_v0  ;;  %v615_v18 = vunpack.c.l.bf16 %v734_v9  ;;  %v679_v19 = vunpack.c.l.bf16 %v749_v10  ;;  %v750_v20 = vld [vmem:[%s823_s23 + $0x18] sm:$0xff]   ;;  %v751_v47 = vld [vmem:[%s823_s23 + $0x20] sm:$0xff]   ;;  %v752_v57 = vld [vmem:[%s823_s23 + $0x28] sm:$0xff]  }
  0x14   : > { %v355_v22 = vmul.f32 %v611_v11, %v828_v0  ;;  %v356_v23 = vmul.f32 %v612_v13, %v828_v0  ;;  %v616_v24 = vunpack.c.h.bf16 %v734_v9  ;;  %v680_v25 = vunpack.c.h.bf16 %v749_v10  ;;  %v738_v62 = vld [vmem:[%s818_s20 + $0x30] sm:$0xff]  }
  0x15   : > { %v385_v26 = vadd.f32 %v671_v5, %v353_v16  ;;  %v386_v27 = vadd.f32 %v672_v7, %v354_v17  ;;  %v357_v28 = vmul.f32 %v615_v18, %v828_v0  ;;  %v619_v29 = vunpack.c.l.bf16 %v735_v15  ;;  %v753_v4 = vld [vmem:[%s823_s23 + $0x30] sm:$0xff]   ;;  %v739_v17 = vld [vmem:[%s818_s20 + $0x38] sm:$0xff]  }
  0x16   : > { %v387_v30 = vadd.f32 %v675_v12, %v355_v22  ;;  %v388_v31 = vadd.f32 %v676_v14, %v356_v23  ;;  %v358_v32 = vmul.f32 %v616_v24, %v828_v0  ;;  %v683_v33 = vunpack.c.l.bf16 %v750_v20  ;;  %v754_v23 = vld [vmem:[%s823_s23 + $0x38] sm:$0xff]  }
  0x17   : > { %v424_v34 = vadd.f32 %v843_v21, %v385_v26  ;;  %v425_v35 = vadd.f32 %v843_v21, %v386_v27  ;;  %v389_v36 = vadd.f32 %v679_v19, %v357_v28  ;;  %v359_v37 = vmul.f32 %v619_v29, %v828_v0 }
  0x18   : > { %v426_v38 = vadd.f32 %v843_v21, %v387_v30  ;;  %v427_v39 = vadd.f32 %v843_v21, %v388_v31  ;;  %v390_v40 = vadd.f32 %v680_v25, %v358_v32  ;;  %v620_v41 = vunpack.c.h.bf16 %v735_v15  ;;  %v740_v32 = vld [vmem:[%s818_s20 + $0x40] sm:$0xff]  }
  0x19   : > { %v456_v43 = vmax.f32 %v424_v34, 0.0  ;;  %v457_v44 = vmax.f32 %v425_v35, 0.0  ;;  %v428_v45 = vadd.f32 %v843_v21, %v389_v36  ;;  %v391_v46 = vadd.f32 %v683_v33, %v359_v37  ;;  %v755_v37 = vld [vmem:[%s823_s23 + $0x40] sm:$0xff]  }
  0x1a   : > { %v458_v48 = vmax.f32 %v426_v38, 0.0  ;;  %v459_v49 = vmax.f32 %v427_v39, 0.0  ;;  %v429_v50 = vadd.f32 %v843_v21, %v390_v40  ;;  %v684_v51 = vunpack.c.h.bf16 %v750_v20 }
  0x1b   : > { %488 = vst [vmem:[%s856_s5] sm:$0xff] %v456_v43  ;;  %489 = vst [vmem:[%s856_s5 + $0x8] sm:$0xff] %v457_v44  ;;  %v460_v53 = vmax.f32 %v428_v45, 0.0  ;;  %v430_v54 = vadd.f32 %v843_v21, %v391_v46  ;;  %v360_v55 = vmul.f32 %v620_v41, %v828_v0  ;;  %v623_v56 = vunpack.c.l.bf16 %v736_v42  ;;  %v741_v46 = vld [vmem:[%s818_s20 + $0x48] sm:$0xff]  }
  0x1c   : > { %490 = vst [vmem:[%s856_s5 + $0x10] sm:$0xff] %v458_v48  ;;  %491 = vst [vmem:[%s856_s5 + $0x18] sm:$0xff] %v459_v49  ;;  %v461_v58 = vmax.f32 %v429_v50, 0.0  ;;  %v687_v59 = vunpack.c.l.bf16 %v751_v47  ;;  %v624_v60 = vunpack.c.h.bf16 %v736_v42  ;;  %v688_v61 = vunpack.c.h.bf16 %v751_v47  ;;  %v756_v47 = vld [vmem:[%s823_s23 + $0x48] sm:$0xff]  }
  0x1d   : > { %492 = vst [vmem:[%s856_s5 + $0x20] sm:$0xff] %v460_v53  ;;  %v462_v63 = vmax.f32 %v430_v54, 0.0  ;;  %v392_v1 = vadd.f32 %v684_v51, %v360_v55  ;;  %v361_v2 = vmul.f32 %v623_v56, %v828_v0  ;;  %v627_v3 = vunpack.c.l.bf16 %v737_v52  ;;  %v742_v56 = vld [vmem:[%s818_s20 + $0x50] sm:$0xff]  }
  0x1e   : > { %493 = vst [vmem:[%s856_s5 + $0x28] sm:$0xff] %v461_v58  ;;  %v362_v5 = vmul.f32 %v624_v60, %v828_v0  ;;  %v691_v6 = vunpack.c.l.bf16 %v752_v57  ;;  %v628_v7 = vunpack.c.h.bf16 %v737_v52  ;;  %v692_v8 = vunpack.c.h.bf16 %v752_v57 }
  0x1f   : > { %494 = vst [vmem:[%s856_s5 + $0x30] sm:$0xff] %v462_v63  ;;  %v431_v9 = vadd.f32 %v843_v21, %v392_v1  ;;  %v393_v10 = vadd.f32 %v687_v59, %v361_v2  ;;  %v363_v11 = vmul.f32 %v627_v3, %v828_v0  ;;  %v631_v12 = vunpack.c.l.bf16 %v738_v62 }
  0x20   : > { %v394_v13 = vadd.f32 %v688_v61, %v362_v5  ;;  %v364_v14 = vmul.f32 %v628_v7, %v828_v0  ;;  %v695_v15 = vunpack.c.l.bf16 %v753_v4  ;;  %v632_v16 = vunpack.c.h.bf16 %v738_v62  ;;  %v757_v61 = vld [vmem:[%s823_s23 + $0x50] sm:$0xff]  }
  0x21   : > { %v463_v18 = vmax.f32 %v431_v9, 0.0  ;;  %v432_v19 = vadd.f32 %v843_v21, %v393_v10  ;;  %v395_v20 = vadd.f32 %v691_v6, %v363_v11  ;;  %v365_v22 = vmul.f32 %v631_v12, %v828_v0  ;;  %v743_v11 = vld [vmem:[%s818_s20 + $0x58] sm:$0xff]  }
  0x22   : > { %v433_v24 = vadd.f32 %v843_v21, %v394_v13  ;;  %v396_v25 = vadd.f32 %v692_v8, %v364_v14  ;;  %v696_v26 = vunpack.c.h.bf16 %v753_v4  ;;  %v366_v27 = vmul.f32 %v632_v16, %v828_v0  ;;  %v758_v16 = vld [vmem:[%s823_s23 + $0x58] sm:$0xff]  }
  0x23   : > { %495 = vst [vmem:[%s856_s5 + $0x38] sm:$0xff] %v463_v18  ;;  %v464_v28 = vmax.f32 %v432_v19, 0.0  ;;  %v434_v29 = vadd.f32 %v843_v21, %v395_v20  ;;  %v397_v30 = vadd.f32 %v695_v15, %v365_v22  ;;  %v635_v31 = vunpack.c.l.bf16 %v739_v17 }
  0x24   : > { %v465_v33 = vmax.f32 %v433_v24, 0.0  ;;  %v435_v34 = vadd.f32 %v843_v21, %v396_v25  ;;  %v398_v35 = vadd.f32 %v696_v26, %v366_v27  ;;  %v699_v36 = vunpack.c.l.bf16 %v754_v23  ;;  %v744_v26 = vld [vmem:[%s818_s20 + $0x60] sm:$0xff]  }
  0x25   : > { %496 = vst [vmem:[%s856_s5 + $0x40] sm:$0xff] %v464_v28  ;;  %v466_v38 = vmax.f32 %v434_v29, 0.0  ;;  %v436_v39 = vadd.f32 %v843_v21, %v397_v30  ;;  %v367_v40 = vmul.f32 %v635_v31, %v828_v0  ;;  %v636_v41 = vunpack.c.h.bf16 %v739_v17  ;;  %v759_v31 = vld [vmem:[%s823_s23 + $0x60] sm:$0xff]  }
  0x26   : > { %497 = vst [vmem:[%s856_s5 + $0x48] sm:$0xff] %v465_v33  ;;  %v467_v42 = vmax.f32 %v435_v34, 0.0  ;;  %v437_v43 = vadd.f32 %v843_v21, %v398_v35  ;;  %v700_v44 = vunpack.c.h.bf16 %v754_v23  ;;  %v639_v45 = vunpack.c.l.bf16 %v740_v32 }
  0x27   : > { %498 = vst [vmem:[%s856_s5 + $0x50] sm:$0xff] %v466_v38  ;;  %v468_v48 = vmax.f32 %v436_v39, 0.0  ;;  %v399_v49 = vadd.f32 %v699_v36, %v367_v40  ;;  %v368_v50 = vmul.f32 %v636_v41, %v828_v0  ;;  %v703_v51 = vunpack.c.l.bf16 %v755_v37  ;;  %v745_v40 = vld [vmem:[%s818_s20 + $0x68] sm:$0xff]  }
  0x28   : > { %499 = vst [vmem:[%s856_s5 + $0x58] sm:$0xff] %v467_v42  ;;  %v469_v52 = vmax.f32 %v437_v43, 0.0  ;;  %v369_v53 = vmul.f32 %v639_v45, %v828_v0  ;;  %v640_v54 = vunpack.c.h.bf16 %v740_v32  ;;  %v704_v55 = vunpack.c.h.bf16 %v755_v37  ;;  %v760_v41 = vld [vmem:[%s823_s23 + $0x68] sm:$0xff]  }
  0x29   : > { %500 = vst [vmem:[%s856_s5 + $0x60] sm:$0xff] %v468_v48  ;;  %v438_v57 = vadd.f32 %v843_v21, %v399_v49  ;;  %v400_v58 = vadd.f32 %v700_v44, %v368_v50  ;;  %v643_v59 = vunpack.c.l.bf16 %v741_v46  ;;  %v707_v60 = vunpack.c.l.bf16 %v756_v47  ;;  %v746_v50 = vld [vmem:[%s818_s20 + $0x70] sm:$0xff]  }
  0x2a   : > { %501 = vst [vmem:[%s856_s5 + $0x68] sm:$0xff] %v469_v52  ;;  %v401_v62 = vadd.f32 %v703_v51, %v369_v53  ;;  %v370_v63 = vmul.f32 %v640_v54, %v828_v0  ;;  %v644_v1 = vunpack.c.h.bf16 %v741_v46  ;;  %v708_v2 = vunpack.c.h.bf16 %v756_v47 }
  0x2b   : > { %v470_v3 = vmax.f32 %v438_v57, 0.0  ;;  %v439_v4 = vadd.f32 %v843_v21, %v400_v58  ;;  %v371_v5 = vmul.f32 %v643_v59, %v828_v0  ;;  %v647_v6 = vunpack.c.l.bf16 %v742_v56  ;;  %v761_v59 = vld [vmem:[%s823_s23 + $0x70] sm:$0xff]  }
  0x2c   : > { %v440_v7 = vadd.f32 %v843_v21, %v401_v62  ;;  %v402_v8 = vadd.f32 %v704_v55, %v370_v63  ;;  %v372_v9 = vmul.f32 %v644_v1, %v828_v0  ;;  %v711_v10 = vunpack.c.l.bf16 %v757_v61 }
  0x2d   : > { %502 = vst [vmem:[%s856_s5 + $0x70] sm:$0xff] %v470_v3  ;;  %v471_v12 = vmax.f32 %v439_v4, 0.0  ;;  %v403_v13 = vadd.f32 %v707_v60, %v371_v5  ;;  %v373_v14 = vmul.f32 %v647_v6, %v828_v0  ;;  %v648_v15 = vunpack.c.h.bf16 %v742_v56  ;;  %v747_v5 = vld [vmem:[%s818_s20 + $0x78] sm:$0xff]  }
  0x2e   : > { %v472_v17 = vmax.f32 %v440_v7, 0.0  ;;  %v441_v18 = vadd.f32 %v843_v21, %v402_v8  ;;  %v404_v19 = vadd.f32 %v708_v2, %v372_v9  ;;  %v712_v20 = vunpack.c.h.bf16 %v757_v61 }
  0x2f   : > { %503 = vst [vmem:[%s856_s5 + $0x78] sm:$0xff] %v471_v12  ;;  %v442_v22 = vadd.f32 %v843_v21, %v403_v13  ;;  %v405_v23 = vadd.f32 %v711_v10, %v373_v14  ;;  %v374_v24 = vmul.f32 %v648_v15, %v828_v0  ;;  %v651_v25 = vunpack.c.l.bf16 %v743_v11  ;;  %v762_v10 = vld [vmem:[%s823_s23 + $0x78] sm:$0xff]  }
  0x30   : > { %504 = vst [vmem:[%s856_s5 + $0x80] sm:$0xff] %v472_v17  ;;  %v473_v27 = vmax.f32 %v441_v18, 0.0  ;;  %v443_v28 = vadd.f32 %v843_v21, %v404_v19  ;;  %v715_v29 = vunpack.c.l.bf16 %v758_v16  ;;  %v652_v30 = vunpack.c.h.bf16 %v743_v11 }
  0x31   : > { %v474_v32 = vmax.f32 %v442_v22, 0.0  ;;  %v444_v33 = vadd.f32 %v843_v21, %v405_v23  ;;  %v406_v34 = vadd.f32 %v712_v20, %v374_v24  ;;  %v375_v35 = vmul.f32 %v651_v25, %v828_v0 }
  0x32   : > { %505 = vst [vmem:[%s856_s5 + $0x88] sm:$0xff] %v473_v27  ;;  %v475_v36 = vmax.f32 %v443_v28, 0.0  ;;  %v716_v37 = vunpack.c.h.bf16 %v758_v16  ;;  %v376_v38 = vmul.f32 %v652_v30, %v828_v0  ;;  %v655_v39 = vunpack.c.l.bf16 %v744_v26 }
  0x33   : > { %506 = vst [vmem:[%s856_s5 + $0x90] sm:$0xff] %v474_v32  ;;  %v476_v42 = vmax.f32 %v444_v33, 0.0  ;;  %v445_v43 = vadd.f32 %v843_v21, %v406_v34  ;;  %v407_v44 = vadd.f32 %v715_v29, %v375_v35  ;;  %v719_v45 = vunpack.c.l.bf16 %v759_v31 }
  0x34   : > { %507 = vst [vmem:[%s856_s5 + $0x98] sm:$0xff] %v475_v36  ;;  %v408_v46 = vadd.f32 %v716_v37, %v376_v38  ;;  %v377_v47 = vmul.f32 %v655_v39, %v828_v0  ;;  %v656_v48 = vunpack.c.h.bf16 %v744_v26  ;;  %v720_v49 = vunpack.c.h.bf16 %v759_v31 }
  0x35   : > { %508 = vst [vmem:[%s856_s5 + $0xa0] sm:$0xff] %v476_v42  ;;  %v477_v51 = vmax.f32 %v445_v43, 0.0  ;;  %v446_v52 = vadd.f32 %v843_v21, %v407_v44  ;;  %v659_v53 = vunpack.c.l.bf16 %v745_v40  ;;  %v723_v54 = vunpack.c.l.bf16 %v760_v41 }
  0x36   : > { %v447_v55 = vadd.f32 %v843_v21, %v408_v46  ;;  %v409_v56 = vadd.f32 %v719_v45, %v377_v47  ;;  %v378_v57 = vmul.f32 %v656_v48, %v828_v0  ;;  %v660_v58 = vunpack.c.h.bf16 %v745_v40 }
  0x37   : > { %509 = vst [vmem:[%s856_s5 + $0xa8] sm:$0xff] %v477_v51  ;;  %v478_v60 = vmax.f32 %v446_v52, 0.0  ;;  %v379_v61 = vmul.f32 %v659_v53, %v828_v0  ;;  %v724_v62 = vunpack.c.h.bf16 %v760_v41  ;;  %v663_v63 = vunpack.c.l.bf16 %v746_v50 }
  0x38   : > { %v479_v1 = vmax.f32 %v447_v55, 0.0  ;;  %v448_v2 = vadd.f32 %v843_v21, %v409_v56  ;;  %v410_v3 = vadd.f32 %v720_v49, %v378_v57  ;;  %v380_v4 = vmul.f32 %v660_v58, %v828_v0 }
  0x39   : > { %510 = vst [vmem:[%s856_s5 + $0xb0] sm:$0xff] %v478_v60  ;;  %v411_v6 = vadd.f32 %v723_v54, %v379_v61  ;;  %v727_v7 = vunpack.c.l.bf16 %v761_v59  ;;  %v381_v8 = vmul.f32 %v663_v63, %v828_v0  ;;  %v664_v9 = vunpack.c.h.bf16 %v746_v50 }
  0x3a   : > { %511 = vst [vmem:[%s856_s5 + $0xb8] sm:$0xff] %v479_v1  ;;  %v480_v11 = vmax.f32 %v448_v2, 0.0  ;;  %v449_v12 = vadd.f32 %v843_v21, %v410_v3  ;;  %v412_v13 = vadd.f32 %v724_v62, %v380_v4  ;;  %v728_v14 = vunpack.c.h.bf16 %v761_v59 }
  0x3b   : > { %v450_v15 = vadd.f32 %v843_v21, %v411_v6  ;;  %v413_v16 = vadd.f32 %v727_v7, %v381_v8  ;;  %v382_v17 = vmul.f32 %v664_v9, %v828_v0  ;;  %v667_v18 = vunpack.c.l.bf16 %v747_v5 }
  0x3c   : > { %512 = vst [vmem:[%s856_s5 + $0xc0] sm:$0xff] %v480_v11  ;;  %v481_v19 = vmax.f32 %v449_v12, 0.0  ;;  %v451_v20 = vadd.f32 %v843_v21, %v412_v13  ;;  %v731_v22 = vunpack.c.l.bf16 %v762_v10  ;;  %v668_v23 = vunpack.c.h.bf16 %v747_v5 }
  0x3d   : > { %v482_v24 = vmax.f32 %v450_v15, 0.0  ;;  %v452_v25 = vadd.f32 %v843_v21, %v413_v16  ;;  %v414_v26 = vadd.f32 %v728_v14, %v382_v17  ;;  %v383_v27 = vmul.f32 %v667_v18, %v828_v0 }
  0x3e   : > { %513 = vst [vmem:[%s856_s5 + $0xc8] sm:$0xff] %v481_v19  ;;  %v483_v28 = vmax.f32 %v451_v20, 0.0  ;;  %v732_v29 = vunpack.c.h.bf16 %v762_v10  ;;  %v384_v30 = vmul.f32 %v668_v23, %v828_v0 }
  0x3f   : > { %514 = vst [vmem:[%s856_s5 + $0xd0] sm:$0xff] %v482_v24  ;;  %v484_v31 = vmax.f32 %v452_v25, 0.0  ;;  %v453_v32 = vadd.f32 %v843_v21, %v414_v26  ;;  %v415_v33 = vadd.f32 %v731_v22, %v383_v27 }
  0x40   : > { %515 = vst [vmem:[%s856_s5 + $0xd8] sm:$0xff] %v483_v28  ;;  %v416_v34 = vadd.f32 %v732_v29, %v384_v30 }
  0x41   : > { %516 = vst [vmem:[%s856_s5 + $0xe0] sm:$0xff] %v484_v31  ;;  %v485_v35 = vmax.f32 %v453_v32, 0.0  ;;  %v454_v36 = vadd.f32 %v843_v21, %v415_v33 }
  0x42   : > { %v455_v37 = vadd.f32 %v843_v21, %v416_v34 }
  0x43   : > { %517 = vst [vmem:[%s856_s5 + $0xe8] sm:$0xff] %v485_v35  ;;  %v486_v38 = vmax.f32 %v454_v36, 0.0 }
  0x44   : > { %v487_v39 = vmax.f32 %v455_v37, 0.0 }
  0x45   : > { %518 = vst [vmem:[%s856_s5 + $0xf0] sm:$0xff] %v486_v38 }
  0x46   : > { %519 = vst [vmem:[%s856_s5 + $0xf8] sm:$0xff] %v487_v39 }
  0x47 PF: > { %s14_s15 = sadd.s32 1, %s777_s15  }
  0x48   : > { %p11_p4 = scmp.ge.s32.totalorder %s14_s15, 4  }
  0x4a   :  { %13 = sbr.rel (!%p11_p4) target bundleno = 1 (0x1), region = 69 }

// kernel: resblock_forward.3
= control target key start
LH: loop header
LB: loop body
LE: loop exit
PB: predicated region body
PF: predicated region fallthrough
CT: control target
= control target key end

     0   :  { %s6857_s15 = smov 0   ;;  %s8307_s0 = inlined_call_operand.vmem [shape: bf16[2,16,16,128], index: 0, kind: input, shape index: {}]   ;;  %s8308_s1 = inlined_call_operand.vmem [shape: bf16[1152,128], index: 1, kind: input, shape index: {}]   ;;  %s8309_s2 = inlined_call_operand.vmem [shape: bf16[2,16,16,128], index: 2, kind: output, shape index: {0}]   ;;  %s8310_s3 = inlined_call_operand.vmem [shape: f32[2,1,128], index: 3, kind: output, shape index: {1}]   ;;  %s8311_s4 = inlined_call_operand.vmem [shape: f32[2,1,128], index: 4, kind: output, shape index: {2}]  }
   0x1 LB: > { %s5722_s16 = sadd.s32 4294967295, %s6829_s15   ;;  %p5726_p0 = scmp.ge.s32.totalorder %s6829_s15, 1  ;;  %s6829_s15 = sphi %s6857_s15, %s15_s15  }
   0x2   : > { %p167_p1 = scmp.lt.s32.totalorder %s6829_s15, 3 }
   0x4   : > { %p168_p2 = pnand %p5726_p0, %p167_p1 }
   0x6   : > { %171 = sbr.rel (%p168_p2) target bundleno = 682 (0x2aa), region = 28 }
   0xd   : > { %v6703_v0 = vld [vmem:[%s8308_s1 + $0x40] sm:$0xff]   ;;  %v6831_v2 = vmov 0   ;;  %v6705_v3 = vld [vmem:[%s8308_s1 + $0x48] sm:$0xff]   ;;  %p199_p3 = scmp.lt.s32.totalorder %s5722_s16, 1  ;;  %v6707_v5 = vld [vmem:[%s8308_s1 + $0x50] sm:$0xff]   ;;  %vm220_vm3 = vcmask 1040384  }
   0xe   : > { %v6704_v1 = vld [vmem:[%s8308_s1] sm:$0xff]   ;;  %218 = vst [vmem:[#allocation2 + $0x8] sm:$0xf] %v6831_v2  ;;  %219 = vst [vmem:[#allocation2 + $0xc] sm:$0xf] %v6831_v2  ;;  %6158 = vmatprep.subr.bf16.mxu0 %v6703_v0  ;;  %6678 = vmatprep.subr.bf16.mxu1 %v6703_v0  ;;  %v6706_v4 = vld [vmem:[%s8308_s1 + $0x8] sm:$0xff]  }
   0xf   : > { %217 = vst [vmem:[#allocation2 + $0x4] sm:$0xf] %v6831_v2  ;;  %227 = vst [vmem:[#allocation2 + $0x18] sm:$0xf] %v6831_v2  ;;  %6159 = vmatpush3.bf16.msra.mxu0 %v6704_v1  ;;  %6686 = vmatpush3.bf16.msra.mxu1 %v6704_v1  ;;  %v6708_v6 = vld [vmem:[%s8308_s1 + $0x10] sm:$0xff]   ;;  %s8424_s16 = smov (!%p199_p3, %s5722_s16), 1 }
  0x10   : > { %228 = vst [vmem:[#allocation2 + $0x1c] sm:$0xf] %v6831_v2  ;;  %229 = vst [vmem:[#allocation2 + $0x20] sm:$0xf] %v6831_v2  ;;  %6160 = vmatprep.subr.bf16.mxu0 %v6705_v3  ;;  %6679 = vmatprep.subr.bf16.mxu1 %v6705_v3  ;;  %v6709_v7 = vld [vmem:[%s8308_s1 + $0x58] sm:$0xff]   ;;  %s6029_s7 = sshll.u32 %s8424_s16, 7  ;;  %s211_s9 = scalar_lea.vmem %s8310_s3, %s8424_s16 }
  0x11   : > { %234 = vst [vmem:[#allocation2 + $0x2c] sm:$0xf] %v6831_v2  ;;  %235 = vst [vmem:[#allocation2 + $0x30] sm:$0xf] %v6831_v2  ;;  %v6710_v8 = vld [vmem:[%s8308_s1 + $0x18] sm:$0xff]   ;;  %v6711_v9 = vld [vmem:[%s8308_s1 + $0x60] sm:$0xff]   ;;  %s6907_s14 = scalar_lea.vmem %s8307_s0, %s6029_s7  ;;  %s8225_s6 = scalar_lea.vmem %s8309_s2, %s6029_s7 }
  0x12   : > { %236 = vst [vmem:[#allocation2 + $0x34] sm:$0xf] %v6831_v2  ;;  %241 = vst [vmem:[#allocation2 + $0x40] sm:$0xf] %v6831_v2  ;;  %v6712_v10 = vld [vmem:[%s8308_s1 + $0x20] sm:$0xff]   ;;  %v6713_v11 = vld [vmem:[%s8308_s1 + $0x68] sm:$0xff]   ;;  %s214_s12 = scalar_lea.vmem %s8311_s4, %s8424_s16 }
  0x13   : > { %242 = vst [vmem:[#allocation2 + $0x44] sm:$0xf] %v6831_v2  ;;  %243 = vst [vmem:[#allocation2 + $0x48] sm:$0xf] %v6831_v2  ;;  %6161 = vmatpush3.bf16.msra.mxu0 %v6706_v4  ;;  %6687 = vmatpush3.bf16.msra.mxu1 %v6706_v4  ;;  %v367_v13 = vld [vmem:[%s6907_s14 + $0x58] sm:$0xff]   ;;  %v6714_v17 = vld [vmem:[%s8308_s1 + $0x28] sm:$0xff]  }
  0x14   : > { %248 = vst [vmem:[#allocation2 + $0x54] sm:$0xf] %v6831_v2  ;;  %249 = vst [vmem:[#allocation2 + $0x58] sm:$0xf] %v6831_v2  ;;  %6162 = vmatprep.subr.bf16.mxu0 %v6707_v5  ;;  %6680 = vmatprep.subr.bf16.mxu1 %v6707_v5  ;;  %vm221_vm0 = vsmask.f32 256 }
  0x15   : > { %250 = vst [vmem:[#allocation2 + $0x5c] sm:$0xf] %v6831_v2  ;;  %255 = vst [vmem:[#allocation2 + $0x68] sm:$0xf] %v6831_v2  ;;  %v6719_v12 = vld [vmem:[#allocation2 + $0x8] sm:$0xff]   ;;  %v6715_v22 = vld [vmem:[%s8308_s1 + $0x70] sm:$0xff]  }
  0x16   : > { %256 = vst [vmem:[#allocation2 + $0x6c] sm:$0xf] %v6831_v2  ;;  %257 = vst [vmem:[#allocation2 + $0x70] sm:$0xf] %v6831_v2  ;;  %v410_v14 = vld [vmem:[#allocation2 + $0x4] sm:$0x8]  ;;  %4576 = vmatprep.mubr.bf16.mxu0 %v6719_v12 }
  0x17   : > { %262 = vst [vmem:[#allocation2 + $0x7c] sm:$0xf] %v6831_v2  ;;  %263 = vst [vmem:[#allocation2 + $0x80] sm:$0xf] %v6831_v2  ;;  %6163 = vmatpush3.bf16.msra.mxu0 %v6708_v6  ;;  %6688 = vmatpush3.bf16.msra.mxu1 %v6708_v6  ;;  %v411_v15 = vld [vmem:[#allocation2 + $0x8] sm:$0xf] }
  0x18   : > { %264 = vst [vmem:[#allocation2 + $0x84] sm:$0xf] %v6831_v2  ;;  %269 = vst [vmem:[#allocation2 + $0x90] sm:$0xf] %v6831_v2  ;;  %6164 = vmatprep.subr.bf16.mxu0 %v6709_v7  ;;  %6681 = vmatprep.subr.bf16.mxu1 %v6709_v7  ;;  %v412_v16 = vld [vmem:[#allocation2 + $0xc] sm:$0xf] }
  0x19   : > { %270 = vst [vmem:[#allocation2 + $0x94] sm:$0xf] %v6831_v2  ;;  %271 = vst [vmem:[#allocation2 + $0x98] sm:$0xf] %v6831_v2  ;;  %vm458_vm1 = vsmask.f32 4368 }
  0x1a   : > { %276 = vst [vmem:[#allocation2 + $0xa4] sm:$0xf] %v6831_v2  ;;  %277 = vst [vmem:[#allocation2 + $0xa8] sm:$0xf] %v6831_v2  ;;  %v461_v18 = vshrl.u32 %v410_v14, 16  ;;  %v466_v19 = vshrl.u32 %v411_v15, 16 }
  0x1b   : > { %278 = vst [vmem:[#allocation2 + $0xac] sm:$0xf] %v6831_v2  ;;  %283 = vst [vmem:[#allocation2 + $0xb8] sm:$0xf] %v6831_v2  ;;  %6165 = vmatpush3.bf16.msra.mxu0 %v6710_v8  ;;  %6689 = vmatpush3.bf16.msra.mxu1 %v6710_v8  ;;  %v469_v20 = vshll.u32 %v411_v15, 16  ;;  %v475_v21 = vshrl.u32 %v412_v16, 16 }
  0x1c   : > { %284 = vst [vmem:[#allocation2 + $0xbc] sm:$0xf] %v6831_v2  ;;  %285 = vst [vmem:[#allocation2 + $0xc0] sm:$0xf] %v6831_v2  ;;  %6166 = vmatprep.subr.bf16.mxu0 %v6711_v9  ;;  %6682 = vmatprep.subr.bf16.mxu1 %v6711_v9  ;;  %v478_v23 = vshll.u32 %v412_v16, 16  ;;  %v6716_v24 = vld [vmem:[%s8308_s1 + $0x30] sm:$0xff]  }
  0x1d   : > { %290 = vst [vmem:[#allocation2 + $0xcc] sm:$0xf] %v6831_v2  ;;  %291 = vst [vmem:[#allocation2 + $0xd0] sm:$0xf] %v6831_v2  ;;  %v468_v25 = vrot.slane %v466_v19, 7  ;;  %v477_v26 = vrot.slane %v475_v21, 7 }
  0x1e   : > { %292 = vst [vmem:[#allocation2 + $0xd4] sm:$0xf] %v6831_v2  ;;  %297 = vst [vmem:[#allocation2 + $0xe0] sm:$0xf] %v6831_v2  ;;  %v6717_v28 = vld [vmem:[%s8308_s1 + $0x78] sm:$0xff]   ;;  %v5731_v29 = vrot.slane %v461_v18, 11 }
  0x1f   : > { %298 = vst [vmem:[#allocation2 + $0xe4] sm:$0xf] %v6831_v2  ;;  %299 = vst [vmem:[#allocation2 + $0xe8] sm:$0xf] %v6831_v2  ;;  %6167 = vmatpush3.bf16.msra.mxu0 %v6712_v10  ;;  %6690 = vmatpush3.bf16.msra.mxu1 %v6712_v10  ;;  %v471_v31 = vor.u32 %v469_v20, %v468_v25  ;;  %v473_v32 = vrot.slane %v468_v25, 4  ;;  %v480_v33 = vor.u32 %v478_v23, %v477_v26  ;;  %v6718_v34 = vld [vmem:[%s8308_s1 + $0x38] sm:$0xff]  }
  0x20   : > { %304 = vst [vmem:[#allocation2 + $0xf4] sm:$0xf] %v6831_v2  ;;  %305 = vst [vmem:[#allocation2 + $0xf8] sm:$0xf] %v6831_v2  ;;  %6168 = vmatprep.subr.bf16.mxu0 %v6713_v11  ;;  %6683 = vmatprep.subr.bf16.mxu1 %v6713_v11  ;;  %v6721_v41 = vld [vmem:[%s8308_s1 + $0xc0] sm:$0xff]   ;;  %v6725_v59 = vld [vmem:[%s8308_s1 + $0xc8] sm:$0xff]  }
  0x21   : > { %306 = vst [vmem:[#allocation2 + $0xfc] sm:$0xf] %v6831_v2  ;;  %311 = vst [vmem:[#allocation2 + $0x108] sm:$0xf] %v6831_v2  ;;  %v6722_v46 = vld [vmem:[%s8308_s1 + $0x140] sm:$0xff]   ;;  %v6732_v63 = vld [vmem:[%s8308_s1 + $0x148] sm:$0xff]  }
  0x22   : > { %312 = vst [vmem:[#allocation2 + $0x10c] sm:$0xf] %v6831_v2  ;;  %313 = vst [vmem:[#allocation2 + $0x110] sm:$0xf] %v6831_v2  ;;  %v345_v47 = vld [vmem:[%s6907_s14] sm:$0xff]   ;;  %v6726_v1 = vld [vmem:[%s8308_s1 + $0x88] sm:$0xff]  }
  0x23   : > { %318 = vst [vmem:[#allocation2 + $0x11c] sm:$0xf] %v6831_v2  ;;  %319 = vst [vmem:[#allocation2 + $0x120] sm:$0xf] %v6831_v2  ;;  %6169 = vmatpush3.bf16.msra.mxu0 %v6714_v17  ;;  %6691 = vmatpush3.bf16.msra.mxu1 %v6714_v17  ;;  %v369_v51 = vld [vmem:[%s6907_s14 + $0x60] sm:$0xff]   ;;  %v6729_v4 = vld [vmem:[%s8308_s1 + $0xd0] sm:$0xff]  }
  0x24   : > { %320 = vst [vmem:[#allocation2 + $0x124] sm:$0xf] %v6831_v2  ;;  %325 = vst [vmem:[#allocation2 + $0x130] sm:$0xf] %v6831_v2  ;;  %6170 = vmatprep.subr.bf16.mxu0 %v6715_v22  ;;  %6684 = vmatprep.subr.bf16.mxu1 %v6715_v22  ;;  %v6723_v56 = vld [vmem:[%s8308_s1 + $0x80] sm:$0xff]   ;;  %v6730_v15 = vld [vmem:[%s8308_s1 + $0x90] sm:$0xff]  }
  0x25   : > { %326 = vst [vmem:[#allocation2 + $0x134] sm:$0xf] %v6831_v2  ;;  %327 = vst [vmem:[#allocation2 + $0x138] sm:$0xf] %v6831_v2  ;;  %v6724_v57 = vld [vmem:[%s8308_s1 + $0x100] sm:$0xff]   ;;  %v6734_v20 = vld [vmem:[%s8308_s1 + $0x108] sm:$0xff]  }
  0x26   : > { %332 = vst [vmem:[#allocation2 + $0x144] sm:$0xf] %v6831_v2  ;;  %333 = vst [vmem:[#allocation2 + $0x148] sm:$0xf] %v6831_v2  ;;  %v413_v58 = vld [vmem:[#allocation2 + $0x18] sm:$0x8] }
  0x27   : > { %334 = vst [vmem:[#allocation2 + $0x14c] sm:$0xf] %v6831_v2  ;;  %339 = vst [vmem:[#allocation2 + $0x158] sm:$0xf] %v6831_v2  ;;  %v446_v27 = vld [vmem:[#allocation2 + $0xf4] sm:$0x8]  ;;  %6171 = vmatpush3.bf16.msra.mxu0 %v6716_v24  ;;  %6692 = vmatpush3.bf16.msra.mxu1 %v6716_v24 }
  0x28   : > { %340 = vst [vmem:[#allocation2 + $0x15c] sm:$0xf] %v6831_v2  ;;  %341 = vst [vmem:[#allocation2 + $0x160] sm:$0xf] %v6831_v2  ;;  %v725_v36 = vshrl.u32 %v446_v27, 16  ;;  %6172 = vmatprep.subr.bf16.mxu0 %v6717_v28  ;;  %6685 = vmatprep.subr.bf16.mxu1 %v6717_v28  ;;  %v483_v3 = vshrl.u32 %v413_v58, 16 }
  0x29   : > { %400 = vst [vmem:[#allocation2 + $0xf8] sm:$0xff] %v367_v13   ;;  %vm6927_vm2 = vmor %vm221_vm0, %vm458_vm1  ;;  %v449_v60 = vld [vmem:[#allocation2 + $0x108] sm:$0x8]  ;;  %v416_v26 = vld [vmem:[#allocation2 + $0x2c] sm:$0x8] }
  0x2a   : > { %v472_v37 = vsel %vm6927_vm2, %v5731_v29, %v471_v31  ;;  %v481_v38 = vsel %vm6927_vm2, %v473_v32, %v480_v33  ;;  %v5743_v48 = vrot.slane %v725_v36, 11  ;;  %378 = vst [vmem:[#allocation2 + $0x1c] sm:$0xff] %v345_v47   ;;  %402 = vst [vmem:[#allocation2 + $0x10c] sm:$0xff] %v369_v51   ;;  %v747_v6 = vshrl.u32 %v449_v60, 16  ;;  %v347_v21 = vld [vmem:[%s6907_s14 + $0x8] sm:$0xff]   ;;  %v6731_v31 = vld [vmem:[%s8308_s1 + $0xd8] sm:$0xff]  }
  0x2b   : > { %v5747_v52 = vcombine.low %v472_v37, %v481_v38  ;;  %6173 = vmatpush3.bf16.msra.mxu0 %v6718_v34  ;;  %6693 = vmatpush3.bf16.msra.mxu1 %v6718_v34  ;;  %v5732_v22 = vrot.slane %v483_v3, 11  ;;  %380 = vst [vmem:[#allocation2 + $0x30] sm:$0xff] %v347_v21   ;;  %v371_v25 = vld [vmem:[%s6907_s14 + $0x68] sm:$0xff]   ;;  %v452_v32 = vld [vmem:[#allocation2 + $0x11c] sm:$0x8]  ;;  %v505_v36 = vshrl.u32 %v416_v26, 16  ;;  %vm7042_vm6 = vmand %vm220_vm3, %vm221_vm0 }
  0x2c   : > { %6270 = vmatprep.subr.bf16.mxu1 %v6721_v41  ;;  %6382 = vmatprep.subr.bf16.mxu0 %v6722_v46  ;;  %v5744_v27 = vrot.slane %v747_v6, 11  ;;  %404 = vst [vmem:[#allocation2 + $0x120] sm:$0xff] %v371_v25   ;;  %v6737_v47 = vld [vmem:[%s8308_s1 + $0xe0] sm:$0xff]   ;;  %v373_v51 = vld [vmem:[%s6907_s14 + $0x70] sm:$0xff]   ;;  %vm1084_vm4 = vsmask.f32 3328 }
  0x2d   : > { %406 = vst [vmem:[#allocation2 + $0x134] sm:$0xff] %v373_v51   ;;  %vm1085_vm5 = vsmask.f32 7440 }
  0x2e   : > { %4577 = vmatmul.mubr.bf16.vlgmr.msra.gmra.mrb[0].mxu0 %v5747_v52  ;;  %v419_v52 = vld [vmem:[#allocation2 + $0x40] sm:$0x8]  ;;  %vm7066_vm7 = vmor %vm1084_vm4, %vm1085_vm5 }
  0x2f   : > { %6383 = vmatpush3.bf16.msra.mxu0 %v6724_v57  ;;  %v6739_v57 = vld [vmem:[%s8308_s1 + $0xe8] sm:$0xff]   ;;  %v527_v58 = vshrl.u32 %v419_v52, 16 }
  0x30   : > { %v6720_v35 = vld [vmem:[#allocation2 + $0xf8] sm:$0xff]   ;;  %6384 = vmatprep.subr.bf16.mxu0 %v6732_v63 }
  0x31   : > { %v447_v39 = vld [vmem:[#allocation2 + $0xf8] sm:$0xf]  ;;  %v448_v40 = vld [vmem:[#allocation2 + $0xfc] sm:$0xf]  ;;  %4672 = vmatprep.mubr.bf16.mxu1 %v6720_v35  ;;  %v6728_v5 = vld [vmem:[#allocation2 + $0x10c] sm:$0xff]  }
  0x32   : > { %v730_v42 = vshrl.u32 %v447_v39, 16  ;;  %v733_v43 = vshll.u32 %v447_v39, 16  ;;  %v739_v44 = vshrl.u32 %v448_v40, 16  ;;  %v742_v45 = vshll.u32 %v448_v40, 16  ;;  %v6727_v2 = vld [vmem:[#allocation2 + $0x1c] sm:$0xff]  }
  0x33   : > { %4584 = vmatprep.mubr.bf16.mxu0 %v6727_v2  ;;  %v414_v7 = vld [vmem:[#allocation2 + $0x1c] sm:$0xf]  ;;  %v415_v8 = vld [vmem:[#allocation2 + $0x20] sm:$0xf]  ;;  %v450_v9 = vld [vmem:[#allocation2 + $0x10c] sm:$0xf]  ;;  %6385 = vmatpush3.bf16.msra.mxu0 %v6734_v20 }
  0x34   : > { %v732_v49 = vrot.slane %v730_v42, 7  ;;  %v741_v50 = vrot.slane %v739_v44, 7  ;;  %v488_v10 = vshrl.u32 %v414_v7, 16  ;;  %v491_v11 = vshll.u32 %v414_v7, 16  ;;  %v451_v14 = vld [vmem:[#allocation2 + $0x110] sm:$0xf] }
  0x35   : > { %v497_v12 = vshrl.u32 %v415_v8, 16  ;;  %v500_v13 = vshll.u32 %v415_v8, 16  ;;  %v752_v16 = vshrl.u32 %v450_v9, 16  ;;  %v755_v17 = vshll.u32 %v450_v9, 16  ;;  %v418_v60 = vld [vmem:[#allocation2 + $0x34] sm:$0xf] }
  0x36   : > { %v735_v53 = vor.u32 %v733_v43, %v732_v49  ;;  %v737_v54 = vrot.slane %v732_v49, 4  ;;  %v744_v55 = vor.u32 %v742_v45, %v741_v50  ;;  %v761_v18 = vshrl.u32 %v451_v14, 16  ;;  %v6733_v43 = vld [vmem:[%s8308_s1 + $0x98] sm:$0xff]   ;;  %v349_v50 = vld [vmem:[%s6907_s14 + $0x10] sm:$0xff]   ;;  %v454_v2 = vld [vmem:[#allocation2 + $0x124] sm:$0xf] }
  0x37   : > { %v764_v19 = vshll.u32 %v451_v14, 16  ;;  %v490_v23 = vrot.slane %v488_v10, 7  ;;  %v499_v24 = vrot.slane %v497_v12, 7  ;;  %v754_v28 = vrot.slane %v752_v16, 7  ;;  %382 = vst [vmem:[#allocation2 + $0x44] sm:$0xff] %v349_v50   ;;  %v6740_v7 = vld [vmem:[%s8308_s1 + $0xa8] sm:$0xff]  }
  0x38   : > { %v736_v61 = vsel %vm6927_vm2, %v5743_v48, %v735_v53  ;;  %v745_v62 = vsel %vm6927_vm2, %v737_v54, %v744_v55  ;;  %v763_v29 = vrot.slane %v761_v18, 7  ;;  %v769_v40 = vshrl.u32 %v452_v32, 16  ;;  %v6735_v53 = vld [vmem:[#allocation2 + $0x30] sm:$0xff]   ;;  %v6738_v55 = vld [vmem:[%s8308_s1 + $0xa0] sm:$0xff]  }
  0x39   : > { %v5759_v0 = vcombine.low %v736_v61, %v745_v62  ;;  %v493_v33 = vor.u32 %v491_v11, %v490_v23  ;;  %v495_v34 = vrot.slane %v490_v23, 4  ;;  %v502_v35 = vor.u32 %v500_v13, %v499_v24  ;;  %v453_v61 = vld [vmem:[#allocation2 + $0x120] sm:$0xf]  ;;  %v455_v8 = vld [vmem:[#allocation2 + $0x130] sm:$0x8]  ;;  %v6742_v24 = vld [vmem:[#allocation2 + $0x134] sm:$0xff]  }
  0x3a   : > { %v757_v37 = vor.u32 %v755_v17, %v754_v28  ;;  %v759_v38 = vrot.slane %v754_v28, 4  ;;  %v766_v39 = vor.u32 %v764_v19, %v763_v29  ;;  %v5733_v49 = vrot.slane %v505_v36, 11  ;;  %v6744_v16 = vld [vmem:[%s8308_s1 + $0x150] sm:$0xff]  }
  0x3b   : > { %4673 = vmatmul.mubr.bf16.vlgmr.msra.gmra.mrb[0].mxu1 %v5759_v0  ;;  %v494_v41 = vsel %vm6927_vm2, %v5732_v22, %v493_v33  ;;  %v503_v42 = vsel %vm6927_vm2, %v495_v34, %v502_v35  ;;  %v5745_v54 = vrot.slane %v769_v40, 11  ;;  %v519_v0 = vshrl.u32 %v418_v60, 16  ;;  %6386 = vmatprep.subr.bf16.mxu0 %v6744_v16  ;;  %v456_v29 = vld [vmem:[#allocation2 + $0x134] sm:$0xf]  ;;  %v457_v35 = vld [vmem:[#allocation2 + $0x138] sm:$0xf] }
  0x3c   : > { %6271 = vmatpush3.bf16.msra.mxu1 %v6723_v56  ;;  %4680 = vmatprep.mubr.bf16.mxu1 %v6728_v5  ;;  %v5748_v44 = vcombine.low %v494_v41, %v503_v42  ;;  %v758_v45 = vsel %vm6927_vm2, %v5744_v27, %v757_v37  ;;  %v767_v46 = vsel %vm6927_vm2, %v759_v38, %v766_v39  ;;  %v6736_v56 = vld [vmem:[#allocation2 + $0x120] sm:$0xff]   ;;  %v774_v3 = vshrl.u32 %v453_v61, 16  ;;  %v6745_v36 = vld [vmem:[%s8308_s1 + $0xb0] sm:$0xff]  }
  0x3d   : > { %6272 = vmatprep.subr.bf16.mxu1 %v6725_v59  ;;  %v5760_v48 = vcombine.low %v758_v45, %v767_v46  ;;  %v417_v59 = vld [vmem:[#allocation2 + $0x30] sm:$0xf]  ;;  %v783_v5 = vshrl.u32 %v454_v2, 16  ;;  %v786_v6 = vshll.u32 %v454_v2, 16  ;;  %v521_v10 = vrot.slane %v519_v0, 7 }
  0x3e   : > { %4585 = vmatmul.mubr.bf16.gmra.mrb[4].mxu0 %v5748_v44  ;;  %v510_v62 = vshrl.u32 %v417_v59, 16  ;;  %v513_v63 = vshll.u32 %v417_v59, 16  ;;  %v7004_v11 = vrot.slane %v527_v58, 11  ;;  %v791_v12 = vshrl.u32 %v455_v8, 16  ;;  %v6741_v20 = vld [vmem:[#allocation2 + $0x44] sm:$0xff]   ;;  %v6746_v41 = vld [vmem:[%s8308_s1 + $0x110] sm:$0xff]  }
  0x3f   : > { %4592 = vmatprep.mubr.bf16.mxu0 %v6735_v53  ;;  %v776_v13 = vrot.slane %v774_v3, 7  ;;  %v785_v14 = vrot.slane %v783_v5, 7  ;;  %v420_v27 = vld [vmem:[#allocation2 + $0x44] sm:$0xf]  ;;  %v421_v28 = vld [vmem:[#allocation2 + $0x48] sm:$0xf]  ;;  %6387 = vmatpush3.bf16.msra.mxu0 %v6746_v41 }
  0x40   : > { %6273 = vmatpush3.bf16.msra.mxu1 %v6726_v1  ;;  %v522_v1 = vshll.u32 %v418_v60, 16  ;;  %v512_v9 = vrot.slane %v510_v62, 7  ;;  %v532_v34 = vshrl.u32 %v420_v27, 16  ;;  %v535_v38 = vshll.u32 %v420_v27, 16  ;;  %v351_v59 = vld [vmem:[%s6907_s14 + $0x18] sm:$0xff]  }
  0x41   : > { %6274 = vmatprep.subr.bf16.mxu1 %v6729_v4  ;;  %v777_v4 = vshll.u32 %v453_v61, 16  ;;  %v781_v22 = vrot.slane %v776_v13, 4  ;;  %v788_v23 = vor.u32 %v786_v6, %v785_v14  ;;  %v541_v39 = vshrl.u32 %v421_v28, 16  ;;  %384 = vst [vmem:[#allocation2 + $0x58] sm:$0xff] %v351_v59   ;;  %v1551_v62 = vld [vmem:[#allocation2 + $0x18] sm:$0x8] }
  0x42   : > { %v515_v17 = vor.u32 %v513_v63, %v512_v9  ;;  %v517_v18 = vrot.slane %v512_v9, 4  ;;  %v524_v19 = vor.u32 %v522_v1, %v521_v10  ;;  %v544_v40 = vshll.u32 %v421_v28, 16  ;;  %v1552_v63 = vld [vmem:[#allocation2 + $0x1c] sm:$0xf]  ;;  %v1553_v0 = vld [vmem:[#allocation2 + $0x20] sm:$0xf] }
  0x43   : > { %4681 = vmatmul.mubr.bf16.gmra.mrb[4].mxu1 %v5760_v48  ;;  %v779_v21 = vor.u32 %v777_v4, %v776_v13  ;;  %v789_v33 = vsel %vm6927_vm2, %v781_v22, %v788_v23  ;;  %v534_v42 = vrot.slane %v532_v34, 7  ;;  %v796_v44 = vshrl.u32 %v456_v29, 16  ;;  %v422_v5 = vld [vmem:[#allocation2 + $0x54] sm:$0x8]  ;;  %v6750_v13 = vld [vmem:[%s8308_s1 + $0x1c0] sm:$0xff]   ;;  %v6752_v27 = vld [vmem:[%s8308_s1 + $0x158] sm:$0xff]  }
  0x44   : > { %6275 = vmatpush3.bf16.msra.mxu1 %v6730_v15  ;;  %4688 = vmatprep.mubr.bf16.mxu1 %v6736_v56  ;;  %v6743_v15 = vld [vmem:[%s8308_s1 + $0xf0] sm:$0xff]   ;;  %v516_v25 = vsel %vm6927_vm2, %v5733_v49, %v515_v17  ;;  %v525_v26 = vsel %vm6927_vm2, %v517_v18, %v524_v19  ;;  %v799_v45 = vshll.u32 %v456_v29, 16  ;;  %v543_v46 = vrot.slane %v541_v39, 7  ;;  %v6747_v49 = vld [vmem:[%s8308_s1 + $0xf8] sm:$0xff]   ;;  %v1037_v18 = vld [vmem:[#allocation2 + $0xc] sm:$0xf] }
  0x45   : > { %6276 = vmatprep.subr.bf16.mxu1 %v6731_v31  ;;  %v5749_v31 = vcombine.low %v516_v25, %v525_v26  ;;  %v780_v32 = vsel %vm6927_vm2, %v5745_v54, %v779_v21  ;;  %v808_v48 = vshll.u32 %v457_v35, 16  ;;  %v537_v50 = vor.u32 %v535_v38, %v534_v42  ;;  %6388 = vmatprep.subr.bf16.mxu0 %v6752_v27 }
  0x46   : > { %v5761_v37 = vcombine.low %v780_v32, %v789_v33  ;;  %v539_v51 = vrot.slane %v534_v42, 4  ;;  %v798_v52 = vrot.slane %v796_v44, 7  ;;  %v546_v53 = vor.u32 %v544_v40, %v543_v46  ;;  %v6753_v33 = vld [vmem:[%s8308_s1 + $0x118] sm:$0xff]   ;;  %v353_v42 = vld [vmem:[%s6907_s14 + $0x20] sm:$0xff]  }
  0x47   : > { %4593 = vmatmul.mubr.bf16.gmra.mrb[8].mxu0 %v5749_v31  ;;  %v538_v56 = vsel %vm6927_vm2, %v7004_v11, %v537_v50  ;;  %v1600_v3 = vshrl.u32 %v1551_v62, 16  ;;  %v1605_v4 = vshrl.u32 %v1552_v63, 16  ;;  %v8315_v6 = vmov 0  ;;  %386 = vst [vmem:[#allocation2 + $0x6c] sm:$0xff] %v353_v42  }
  0x48   : > { %6277 = vmatpush3.bf16.msra.mxu1 %v6733_v43  ;;  %v5746_v43 = vrot.slane %v791_v12, 11  ;;  %4600 = vmatprep.mubr.bf16.mxu0 %v6741_v20  ;;  %v803_v58 = vrot.slane %v798_v52, 4  ;;  %v547_v60 = vsel %vm6927_vm2, %v539_v51, %v546_v53  ;;  %v8316_v6 = vsel %vm7042_vm6, 4294967295, %v8315_v6  ;;  %v1036_v12 = vld [vmem:[#allocation2 + $0x8] sm:$0xf]  ;;  %v6749_v34 = vld [vmem:[#allocation2 + $0x58] sm:$0xff]  }
  0x49   : > { %6278 = vmatprep.subr.bf16.mxu1 %v6737_v47  ;;  %v805_v47 = vshrl.u32 %v457_v35, 16  ;;  %v5750_v1 = vcombine.low %v538_v56, %v547_v60  ;;  %8317 = vst [vmem:[#allocation4_spill] sm:$0xff] %v8316_v6  ;;  %v1608_v9 = vshll.u32 %v1552_v63, 16  ;;  %v1614_v10 = vshrl.u32 %v1553_v0, 16  ;;  %v423_v38 = vld [vmem:[#allocation2 + $0x58] sm:$0xf]  ;;  %6389 = vmatpush3.bf16.msra.mxu0 %v6753_v33 }
  0x4a   : > { %v1617_v11 = vshll.u32 %v1553_v0, 16  ;;  %v1607_v16 = vrot.slane %v1605_v4, 7  ;;  %v549_v17 = vshrl.u32 %v422_v5, 16  ;;  %v1088_v21 = vshrl.u32 %v1036_v12, 16  ;;  %v424_v39 = vld [vmem:[#allocation2 + $0x5c] sm:$0xf] }
  0x4b   : > { %4689 = vmatmul.mubr.bf16.gmra.mrb[8].mxu1 %v5761_v37  ;;  %v807_v54 = vrot.slane %v805_v47, 7  ;;  %v1616_v19 = vrot.slane %v1614_v10, 7  ;;  %v1091_v22 = vshll.u32 %v1036_v12, 16  ;;  %v1097_v26 = vshll.u32 %v1037_v18, 16  ;;  %v1555_v63 = vld [vmem:[#allocation2 + $0x30] sm:$0xf] }
  0x4c   : > { %6279 = vmatpush3.bf16.msra.mxu1 %v6738_v55  ;;  %4696 = vmatprep.mubr.bf16.mxu1 %v6742_v24  ;;  %v6748_v55 = vld [vmem:[%s8308_s1 + $0xb8] sm:$0xff]   ;;  %v1610_v23 = vor.u32 %v1608_v9, %v1607_v16  ;;  %v1612_v24 = vrot.slane %v1607_v16, 4  ;;  %v5735_v25 = vrot.slane %v549_v17, 11  ;;  %v1090_v29 = vrot.slane %v1088_v21, 4  ;;  %v1556_v0 = vld [vmem:[#allocation2 + $0x34] sm:$0xf] }
  0x4d   : > { %6280 = vmatprep.subr.bf16.mxu1 %v6739_v57  ;;  %v801_v57 = vor.u32 %v799_v45, %v798_v52  ;;  %v810_v61 = vor.u32 %v808_v48, %v807_v54  ;;  %v1619_v28 = vor.u32 %v1617_v11, %v1616_v19  ;;  %v1093_v31 = vrot.slane %v1091_v22, 5  ;;  %v355_v48 = vld [vmem:[%s6907_s14 + $0x28] sm:$0xff]   ;;  %v6751_v9 = vld [vmem:[%s8308_s1 + $0x180] sm:$0xff]  }
  0x4e   : > { %v1101_v32 = vshrl.u32 %v1037_v18, 16  ;;  %v554_v44 = vshrl.u32 %v423_v38, 16  ;;  %v557_v45 = vshll.u32 %v423_v38, 16  ;;  %v563_v46 = vshrl.u32 %v424_v39, 16  ;;  %388 = vst [vmem:[#allocation2 + $0x80] sm:$0xff] %v355_v48  }
  0x4f   : > { %v802_v2 = vsel %vm6927_vm2, %v5746_v43, %v801_v57  ;;  %v811_v8 = vsel %vm6927_vm2, %v803_v58, %v810_v61  ;;  %4601 = vmatmul.mubr.bf16.gmra.mrb[12].mxu0 %v5750_v1  ;;  %v1620_v37 = vsel %vm6927_vm2, %v1612_v24, %v1619_v28  ;;  %v1094_v40 = vor.u32 %v1093_v31, %v1090_v29  ;;  %v1554_v57 = vld [vmem:[#allocation2 + $0x2c] sm:$0x8]  ;;  %v6756_v58 = vld [vmem:[%s8308_s1 + $0x160] sm:$0xff]   ;;  %v425_v11 = vld [vmem:[#allocation2 + $0x68] sm:$0x8] }
  0x50   : > { %6281 = vmatpush3.bf16.msra.mxu1 %v6740_v7  ;;  %v223_v7 = vld [vmem:[#allocation2 + $0x10] sm:$0x1]  ;;  %v5762_v14 = vcombine.low %v802_v2, %v811_v8  ;;  %v1103_v41 = vrot.slane %v1101_v32, 4  ;;  %4608 = vmatprep.mubr.bf16.mxu0 %v6749_v34  ;;  %v556_v52 = vrot.slane %v554_v44, 7  ;;  %v565_v53 = vrot.slane %v563_v46, 7 }
  0x51   : > { %6282 = vmatprep.subr.bf16.mxu1 %v6743_v15  ;;  %v5795_v15 = vrot.slane %v1600_v3, 11  ;;  %v224_v20 = vsel %vm7042_vm6, 0, %v223_v7  ;;  %v1095_v50 = vrot.slane %v1094_v40, 4  ;;  %v1622_v1 = vshrl.u32 %v1554_v57, 16  ;;  %6390 = vmatprep.subr.bf16.mxu0 %v6756_v58  ;;  %v230_v12 = vld [vmem:[#allocation2 + $0x24] sm:$0x1] }
  0x52   : > { %225 = vst [vmem:[#allocation2 + $0x10] sm:$0x1] %v224_v20  ;;  %v559_v59 = vor.u32 %v557_v45, %v556_v52  ;;  %v561_v60 = vrot.slane %v556_v52, 4  ;;  %v1627_v2 = vshrl.u32 %v1555_v63, 16  ;;  %v1630_v3 = vshll.u32 %v1555_v63, 16 }
  0x53   : > { %4697 = vmatmul.mubr.bf16.gmra.mrb[12].mxu1 %v5762_v14  ;;  %v1611_v35 = vsel %vm6927_vm2, %v5795_v15, %v1610_v23  ;;  %v1636_v4 = vshrl.u32 %v1556_v0, 16  ;;  %v1639_v10 = vshll.u32 %v1556_v0, 16  ;;  %v6754_v14 = vld [vmem:[#allocation2 + $0x6c] sm:$0xff]   ;;  %v5796_v15 = vrot.slane %v1622_v1, 11  ;;  %v1557_v40 = vld [vmem:[#allocation2 + $0x40] sm:$0x8] }
  0x54   : > { %6283 = vmatpush3.bf16.msra.mxu1 %v6745_v36  ;;  %v1099_v36 = vrot.slane %v1097_v26, 5  ;;  %v5811_v43 = vcombine.low %v1611_v35, %v1620_v37  ;;  %v560_v5 = vsel %vm6927_vm2, %v5735_v25, %v559_v59  ;;  %v1629_v17 = vrot.slane %v1627_v2, 7  ;;  %v426_v19 = vld [vmem:[#allocation2 + $0x6c] sm:$0xf]  ;;  %v427_v20 = vld [vmem:[#allocation2 + $0x70] sm:$0xf] }
  0x55   : > { %6284 = vmatprep.subr.bf16.mxu1 %v6747_v49  ;;  %v566_v49 = vshll.u32 %v424_v39, 16  ;;  %v1638_v18 = vrot.slane %v1636_v4, 7  ;;  %v571_v22 = vshrl.u32 %v425_v11, 16  ;;  %v576_v23 = vshrl.u32 %v426_v19, 16  ;;  %v1039_v25 = vld [vmem:[#allocation2 + $0x1c] sm:$0xf] }
  0x56   : > { %v1104_v51 = vor.u32 %v1103_v41, %v1099_v36  ;;  %4737 = vmatprep.mubr.bf16.mxu1 %v5811_v43  ;;  %v579_v24 = vshll.u32 %v426_v19, 16  ;;  %v1632_v26 = vor.u32 %v1630_v3, %v1629_v17  ;;  %v1634_v27 = vrot.slane %v1629_v17, 4  ;;  %v1040_v35 = vld [vmem:[#allocation2 + $0x20] sm:$0xf]  ;;  %v1558_v41 = vld [vmem:[#allocation2 + $0x44] sm:$0xf] }
  0x57   : > { %v568_v61 = vor.u32 %v566_v49, %v565_v53  ;;  %v1641_v28 = vor.u32 %v1639_v10, %v1638_v18  ;;  %v585_v29 = vshrl.u32 %v427_v20, 16  ;;  %v5736_v31 = vrot.slane %v571_v22, 11  ;;  %v1559_v52 = vld [vmem:[#allocation2 + $0x48] sm:$0xf]  ;;  %v428_v58 = vld [vmem:[#allocation2 + $0x7c] sm:$0x8] }
  0x58   : > { %6285 = vmatpush3.bf16.msra.mxu1 %v6748_v55  ;;  %v1100_v55 = vsel %vm7066_vm7, %v1095_v50, %v1099_v36  ;;  %v1105_v56 = vrot.slane %v1104_v51, 4  ;;  %v578_v32 = vrot.slane %v576_v23, 7  ;;  %v588_v33 = vshll.u32 %v427_v20, 16  ;;  %v6755_v51 = vld [vmem:[#allocation2 + $0x80] sm:$0xff]   ;;  %v6757_v53 = vld [vmem:[%s8308_s1 + $0x1c8] sm:$0xff]  }
  0x59   : > { %6494 = vmatprep.subr.bf16.mxu1 %v6750_v13  ;;  %v1038_v54 = vld [vmem:[#allocation2 + $0x10] sm:$0x1]  ;;  %v569_v7 = vsel %vm6927_vm2, %v561_v60, %v568_v61  ;;  %v231_v34 = vsel %vm7042_vm6, 0, %v230_v12  ;;  %v1633_v36 = vsel %vm6927_vm2, %v5796_v15, %v1632_v26  ;;  %v1642_v37 = vsel %vm6927_vm2, %v1634_v27, %v1641_v28  ;;  %v6758_v59 = vld [vmem:[%s8308_s1 + $0x120] sm:$0xff]   ;;  %v6759_v1 = vld [vmem:[%s8308_s1 + $0x188] sm:$0xff]  }
  0x5a   : > { %v1107_v62 = vshll.u32 %v1038_v54, 16  ;;  %v5751_v13 = vcombine.low %v560_v5, %v569_v7  ;;  %v587_v38 = vrot.slane %v585_v29, 7  ;;  %232 = vst [vmem:[#allocation2 + $0x24] sm:$0x1] %v231_v34  ;;  %v1112_v39 = vshrl.u32 %v1039_v25, 16  ;;  %6391 = vmatpush3.bf16.msra.mxu0 %v6758_v59  ;;  %v6761_v20 = vld [vmem:[%s8308_s1 + $0x168] sm:$0xff]  }
  0x5b   : > { %v5812_v42 = vcombine.low %v1633_v36, %v1642_v37  ;;  %v581_v43 = vor.u32 %v579_v24, %v578_v32  ;;  %v583_v44 = vrot.slane %v578_v32, 4  ;;  %v1115_v45 = vshll.u32 %v1039_v25, 16  ;;  %v429_v0 = vld [vmem:[#allocation2 + $0x80] sm:$0xf]  ;;  %v430_v7 = vld [vmem:[#allocation2 + $0x84] sm:$0xf]  ;;  %6392 = vmatprep.subr.bf16.mxu0 %v6761_v20 }
  0x5c   : > { %v1109_v8 = vrot.slane %v1107_v62, 5  ;;  %4609 = vmatmul.mubr.bf16.gmra.mrb[16].mxu0 %v5751_v13  ;;  %v590_v46 = vor.u32 %v588_v33, %v587_v38  ;;  %v1114_v48 = vrot.slane %v1112_v39, 4  ;;  %v1121_v49 = vshll.u32 %v1040_v35, 16  ;;  %v237_v12 = vld [vmem:[#allocation2 + $0x38] sm:$0x1] }
  0x5d   : > { %4616 = vmatprep.mubr.bf16.mxu0 %v6754_v14  ;;  %v1125_v50 = vshrl.u32 %v1040_v35, 16  ;;  %v582_v54 = vsel %vm6927_vm2, %v5736_v31, %v581_v43  ;;  %v1649_v57 = vshrl.u32 %v1558_v41, 16  ;;  %v1652_v63 = vshll.u32 %v1558_v41, 16  ;;  %v1042_v13 = vld [vmem:[#allocation2 + $0x30] sm:$0xf]  ;;  %v6762_v35 = vld [vmem:[%s8308_s1 + $0x128] sm:$0xff]  }
  0x5e   : > { %v1110_v16 = vsel %vm7066_vm7, %v1105_v56, %v1109_v8  ;;  %v1644_v56 = vshrl.u32 %v1557_v40, 16  ;;  %v591_v60 = vsel %vm6927_vm2, %v583_v44, %v590_v46  ;;  %v1123_v61 = vrot.slane %v1121_v49, 5  ;;  %v357_v14 = vld [vmem:[%s6907_s14 + $0x30] sm:$0xff]   ;;  %v359_v40 = vld [vmem:[%s6907_s14 + $0x38] sm:$0xff]   ;;  %6393 = vmatpush3.bf16.msra.mxu0 %v6762_v35 }
  0x5f   : > { %v5779_v21 = vcombine.low %v1100_v55, %v1110_v16  ;;  %v1117_v55 = vrot.slane %v1115_v45, 5  ;;  %v1127_v62 = vrot.slane %v1125_v50, 4  ;;  %v5752_v2 = vcombine.low %v582_v54, %v591_v60  ;;  %390 = vst [vmem:[#allocation2 + $0x94] sm:$0xff] %v357_v14   ;;  %v1043_v29 = vld [vmem:[#allocation2 + $0x34] sm:$0xf]  ;;  %392 = vst [vmem:[#allocation2 + $0xa8] sm:$0xff] %v359_v40  }
  0x60   : > { %v5797_v4 = vrot.slane %v1644_v56, 11  ;;  %v1651_v5 = vrot.slane %v1649_v57, 7  ;;  %v1661_v10 = vshll.u32 %v1559_v52, 16  ;;  %v593_v11 = vshrl.u32 %v428_v58, 16  ;;  %v1560_v45 = vld [vmem:[#allocation2 + $0x54] sm:$0x8] }
  0x61   : > { %4738 = vmatmul.mubr.bf16.vlgmr.msra.gmra.mrb[16].mxu1 %v5779_v21  ;;  %v1118_v3 = vor.u32 %v1117_v55, %v1114_v48  ;;  %v1128_v8 = vor.u32 %v1127_v62, %v1123_v61  ;;  %v1041_v15 = vld [vmem:[#allocation2 + $0x24] sm:$0x1]  ;;  %v598_v19 = vshrl.u32 %v429_v0, 16  ;;  %v601_v28 = vshll.u32 %v429_v0, 16 }
  0x62   : > { %6495 = vmatpush3.bf16.msra.mxu1 %v6751_v9  ;;  %4745 = vmatprep.mubr.bf16.mxu1 %v5812_v42  ;;  %v1658_v9 = vshrl.u32 %v1559_v52, 16  ;;  %v1654_v17 = vor.u32 %v1652_v63, %v1651_v5  ;;  %v1656_v18 = vrot.slane %v1651_v5, 4  ;;  %v1131_v22 = vshll.u32 %v1041_v15, 16  ;;  %v1562_v52 = vld [vmem:[#allocation2 + $0x5c] sm:$0xf] }
  0x63   : > { %6496 = vmatprep.subr.bf16.mxu1 %v6757_v53  ;;  %v1119_v16 = vrot.slane %v1118_v3, 4  ;;  %v1129_v21 = vrot.slane %v1128_v8, 4  ;;  %v5737_v24 = vrot.slane %v593_v11, 11  ;;  %v600_v27 = vrot.slane %v598_v19, 7  ;;  %v6764_v53 = vld [vmem:[%s8308_s1 + $0x1d0] sm:$0xff]  }
  0x64   : > { %4617 = vmatmul.mubr.bf16.gmra.mrb[20].mxu0 %v5752_v2  ;;  %v1660_v23 = vrot.slane %v1658_v9, 7  ;;  %v1655_v26 = vsel %vm6927_vm2, %v5797_v4, %v1654_v17  ;;  %v1133_v31 = vrot.slane %v1131_v22, 5  ;;  %v607_v33 = vshrl.u32 %v430_v7, 16  ;;  %v431_v3 = vld [vmem:[#allocation2 + $0x90] sm:$0x8]  ;;  %v361_v17 = vld [vmem:[%s6907_s14 + $0x40] sm:$0xff]  }
  0x65   : > { %4624 = vmatprep.mubr.bf16.mxu0 %v6755_v51  ;;  %v1124_v25 = vsel %vm7066_vm7, %v1119_v16, %v1123_v61  ;;  %v610_v34 = vshll.u32 %v430_v7, 16  ;;  %v603_v36 = vor.u32 %v601_v28, %v600_v27  ;;  %v605_v37 = vrot.slane %v600_v27, 4  ;;  %v1561_v51 = vld [vmem:[#allocation2 + $0x58] sm:$0xf]  ;;  %v6765_v11 = vld [vmem:[%s8308_s1 + $0x190] sm:$0xff]   ;;  %394 = vst [vmem:[#allocation2 + $0xbc] sm:$0xff] %v361_v17  }
  0x66   : > { %6497 = vmatpush3.bf16.msra.mxu1 %v6759_v1  ;;  %v1663_v32 = vor.u32 %v1661_v10, %v1660_v23  ;;  %v238_v38 = vsel %vm7042_vm6, 0, %v237_v12  ;;  %v1136_v39 = vshrl.u32 %v1042_v13, 16  ;;  %v1134_v41 = vsel %vm7066_vm7, %v1129_v21, %v1133_v31  ;;  %v6760_v58 = vld [vmem:[#allocation2 + $0x94] sm:$0xff]   ;;  %v244_v16 = vld [vmem:[#allocation2 + $0x4c] sm:$0x1] }
  0x67   : > { %v609_v43 = vrot.slane %v607_v33, 7  ;;  %239 = vst [vmem:[#allocation2 + $0x38] sm:$0x1] %v238_v38  ;;  %v1139_v44 = vshll.u32 %v1042_v13, 16  ;;  %v5780_v46 = vcombine.low %v1124_v25, %v1134_v41  ;;  %v604_v49 = vsel %vm6927_vm2, %v5737_v24, %v603_v36  ;;  %6498 = vmatprep.subr.bf16.mxu1 %v6764_v53  ;;  %v432_v4 = vld [vmem:[#allocation2 + $0x94] sm:$0xf] }
  0x68   : > { %v1664_v42 = vsel %vm6927_vm2, %v1656_v18, %v1663_v32  ;;  %v1138_v50 = vrot.slane %v1136_v39, 4  ;;  %v1145_v56 = vshll.u32 %v1043_v29, 16  ;;  %v1149_v57 = vshrl.u32 %v1043_v29, 16  ;;  %v433_v10 = vld [vmem:[#allocation2 + $0x98] sm:$0xf]  ;;  %v6768_v39 = vld [vmem:[%s8308_s1 + $0x130] sm:$0xff]  }
  0x69   : > { %v5813_v48 = vcombine.low %v1655_v26, %v1664_v42  ;;  %v612_v54 = vor.u32 %v610_v34, %v609_v43  ;;  %v1141_v55 = vrot.slane %v1139_v44, 5  ;;  %4746 = vmatmul.mubr.bf16.gmra.mrb[20].mxu1 %v5780_v46  ;;  %v1666_v59 = vshrl.u32 %v1560_v45, 16  ;;  %v1045_v27 = vld [vmem:[#allocation2 + $0x44] sm:$0xf]  ;;  %v1046_v28 = vld [vmem:[#allocation2 + $0x48] sm:$0xf] }
  0x6a   : > { %v1671_v60 = vshrl.u32 %v1561_v51, 16  ;;  %v1674_v61 = vshll.u32 %v1561_v51, 16  ;;  %v1680_v62 = vshrl.u32 %v1562_v52, 16  ;;  %v1147_v1 = vrot.slane %v1145_v56, 5  ;;  %6499 = vmatpush3.bf16.msra.mxu1 %v6765_v11  ;;  %v6767_v34 = vld [vmem:[%s8308_s1 + $0x170] sm:$0xff]  }
  0x6b   : > { %4753 = vmatprep.mubr.bf16.mxu1 %v5813_v48  ;;  %v613_v63 = vsel %vm6927_vm2, %v605_v37, %v612_v54  ;;  %v1142_v0 = vor.u32 %v1141_v55, %v1138_v50  ;;  %v1151_v2 = vrot.slane %v1149_v57, 4  ;;  %v5798_v7 = vrot.slane %v1666_v59, 11  ;;  %6394 = vmatprep.subr.bf16.mxu0 %v6767_v34  ;;  %v1563_v54 = vld [vmem:[#allocation2 + $0x68] sm:$0x8]  ;;  %v6770_v55 = vld [vmem:[%s8308_s1 + $0x1d8] sm:$0xff]  }
  0x6c   : > { %v5753_v5 = vcombine.low %v604_v49, %v613_v63  ;;  %v1673_v8 = vrot.slane %v1671_v60, 7  ;;  %v1682_v9 = vrot.slane %v1680_v62, 7  ;;  %v1683_v14 = vshll.u32 %v1562_v52, 16  ;;  %6395 = vmatpush3.bf16.msra.mxu0 %v6768_v39  ;;  %v363_v49 = vld [vmem:[%s6907_s14 + $0x48] sm:$0xff]   ;;  %6500 = vmatprep.subr.bf16.mxu1 %v6770_v55  ;;  %v6766_v55 = vld [vmem:[#allocation2 + $0xbc] sm:$0xff]  }
  0x6d   : > { %v1143_v12 = vrot.slane %v1142_v0, 4  ;;  %v1152_v13 = vor.u32 %v1151_v2, %v1147_v1  ;;  %v615_v15 = vshrl.u32 %v431_v3, 16  ;;  %v620_v21 = vshrl.u32 %v432_v4, 16  ;;  %396 = vst [vmem:[#allocation2 + $0xd0] sm:$0xff] %v363_v49   ;;  %v1564_v59 = vld [vmem:[#allocation2 + $0x6c] sm:$0xf] }
  0x6e   : > { %4625 = vmatmul.mubr.bf16.gmra.mrb[24].mxu0 %v5753_v5  ;;  %v1044_v18 = vld [vmem:[#allocation2 + $0x38] sm:$0x1]  ;;  %v1676_v19 = vor.u32 %v1674_v61, %v1673_v8  ;;  %v1678_v20 = vrot.slane %v1673_v8, 4  ;;  %v623_v22 = vshll.u32 %v432_v4, 16  ;;  %v1685_v26 = vor.u32 %v1683_v14, %v1682_v9  ;;  %v6763_v63 = vld [vmem:[#allocation2 + $0xa8] sm:$0xff]  }
  0x6f   : > { %v1148_v23 = vsel %vm7066_vm7, %v1143_v12, %v1147_v1  ;;  %v1153_v24 = vrot.slane %v1152_v13, 4  ;;  %v1155_v25 = vshll.u32 %v1044_v18, 16  ;;  %4632 = vmatprep.mubr.bf16.mxu0 %v6760_v58  ;;  %v5738_v31 = vrot.slane %v615_v15, 11  ;;  %v1565_v0 = vld [vmem:[#allocation2 + $0x70] sm:$0xf]  ;;  %v6771_v15 = vld [vmem:[%s8308_s1 + $0x198] sm:$0xff]  }
  0x70   : > { %v1677_v29 = vsel %vm6927_vm2, %v5798_v7, %v1676_v19  ;;  %v622_v32 = vrot.slane %v620_v21, 7  ;;  %v629_v33 = vshrl.u32 %v433_v10, 16  ;;  %v1686_v36 = vsel %vm6927_vm2, %v1678_v20, %v1685_v26  ;;  %v434_v8 = vld [vmem:[#allocation2 + $0xa4] sm:$0x8]  ;;  %v435_v9 = vld [vmem:[#allocation2 + $0xa8] sm:$0xf]  ;;  %6501 = vmatpush3.bf16.msra.mxu1 %v6771_v15 }
  0x71   : > { %v1157_v35 = vrot.slane %v1155_v25, 5  ;;  %v632_v37 = vshll.u32 %v433_v10, 16  ;;  %v245_v38 = vsel %vm7042_vm6, 0, %v244_v16  ;;  %v5814_v40 = vcombine.low %v1677_v29, %v1686_v36  ;;  %v436_v13 = vld [vmem:[#allocation2 + $0xac] sm:$0xf]  ;;  %v6772_v26 = vld [vmem:[%s8308_s1 + $0x178] sm:$0xff]  }
  0x72   : > { %v625_v41 = vor.u32 %v623_v22, %v622_v32  ;;  %v627_v42 = vrot.slane %v622_v32, 4  ;;  %v631_v43 = vrot.slane %v629_v33, 7  ;;  %246 = vst [vmem:[#allocation2 + $0x4c] sm:$0x1] %v245_v38  ;;  %v1160_v45 = vshrl.u32 %v1045_v27, 16  ;;  %6396 = vmatprep.subr.bf16.mxu0 %v6772_v26 }
  0x73   : > { %v1158_v44 = vsel %vm7066_vm7, %v1153_v24, %v1157_v35  ;;  %v1163_v46 = vshll.u32 %v1045_v27, 16  ;;  %v1169_v48 = vshll.u32 %v1046_v28, 16  ;;  %v1173_v53 = vshrl.u32 %v1046_v28, 16  ;;  %v251_v25 = vld [vmem:[#allocation2 + $0x60] sm:$0x1] }
  0x74   : > { %v5781_v50 = vcombine.low %v1148_v23, %v1158_v44  ;;  %v626_v51 = vsel %vm6927_vm2, %v5738_v31, %v625_v41  ;;  %v634_v52 = vor.u32 %v632_v37, %v631_v43  ;;  %v1162_v56 = vrot.slane %v1160_v45, 4  ;;  %v1048_v32 = vld [vmem:[#allocation2 + $0x58] sm:$0xf]  ;;  %v1049_v33 = vld [vmem:[#allocation2 + $0x5c] sm:$0xf] }
  0x75   : > { %v1165_v57 = vrot.slane %v1163_v46, 5  ;;  %v1171_v58 = vrot.slane %v1169_v48, 5  ;;  %v1688_v60 = vshrl.u32 %v1563_v54, 16  ;;  %v1175_v62 = vrot.slane %v1173_v53, 4  ;;  %v258_v15 = vld [vmem:[#allocation2 + $0x74] sm:$0x1] }
  0x76   : > { %4754 = vmatmul.mubr.bf16.gmra.mrb[24].mxu1 %v5781_v50  ;;  %v635_v61 = vsel %vm6927_vm2, %v627_v42, %v634_v52  ;;  %v1693_v1 = vshrl.u32 %v1564_v59, 16  ;;  %v1696_v2 = vshll.u32 %v1564_v59, 16  ;;  %v1702_v7 = vshrl.u32 %v1565_v0, 16  ;;  %v1566_v50 = vld [vmem:[#allocation2 + $0x7c] sm:$0x8] }
  0x77   : > { %4761 = vmatprep.mubr.bf16.mxu1 %v5814_v40  ;;  %v5754_v3 = vcombine.low %v626_v51, %v635_v61  ;;  %v1166_v4 = vor.u32 %v1165_v57, %v1162_v56  ;;  %v5799_v5 = vrot.slane %v1688_v60, 11  ;;  %v1176_v10 = vor.u32 %v1175_v62, %v1171_v58  ;;  %v1567_v56 = vld [vmem:[#allocation2 + $0x80] sm:$0xf]  ;;  %v1568_v57 = vld [vmem:[#allocation2 + $0x84] sm:$0xf] }
  0x78   : > { %v1695_v11 = vrot.slane %v1693_v1, 7  ;;  %v1705_v12 = vshll.u32 %v1565_v0, 16  ;;  %v637_v14 = vshrl.u32 %v434_v8, 16  ;;  %v1704_v18 = vrot.slane %v1702_v7, 7  ;;  %v437_v62 = vld [vmem:[#allocation2 + $0xb8] sm:$0x8] }
  0x79   : > { %4633 = vmatmul.mubr.bf16.gmra.mrb[28].mxu0 %v5754_v3  ;;  %v1047_v16 = vld [vmem:[#allocation2 + $0x4c] sm:$0x1]  ;;  %v1167_v17 = vrot.slane %v1166_v4, 4  ;;  %v642_v19 = vshrl.u32 %v435_v9, 16  ;;  %v645_v20 = vshll.u32 %v435_v9, 16  ;;  %v1177_v21 = vrot.slane %v1176_v10, 4 }
  0x7a   : > { %v1179_v22 = vshll.u32 %v1047_v16, 16  ;;  %4640 = vmatprep.mubr.bf16.mxu0 %v6763_v63  ;;  %v1698_v23 = vor.u32 %v1696_v2, %v1695_v11  ;;  %v1700_v24 = vrot.slane %v1695_v11, 4  ;;  %v1707_v28 = vor.u32 %v1705_v12, %v1704_v18  ;;  %v438_v3 = vld [vmem:[#allocation2 + $0xbc] sm:$0xf]  ;;  %v439_v10 = vld [vmem:[#allocation2 + $0xc0] sm:$0xf] }
  0x7b   : > { %v1172_v27 = vsel %vm7066_vm7, %v1167_v17, %v1171_v58  ;;  %v5739_v29 = vrot.slane %v637_v14, 11  ;;  %v644_v31 = vrot.slane %v642_v19, 7  ;;  %v651_v36 = vshrl.u32 %v436_v13, 16  ;;  %v6773_v4 = vld [vmem:[%s8308_s1 + $0x138] sm:$0xff]   ;;  %v365_v16 = vld [vmem:[%s6907_s14 + $0x50] sm:$0xff]  }
  0x7c   : > { %v1181_v34 = vrot.slane %v1179_v22, 5  ;;  %v1699_v35 = vsel %vm6927_vm2, %v5799_v5, %v1698_v23  ;;  %v654_v37 = vshll.u32 %v436_v13, 16  ;;  %v1708_v38 = vsel %vm6927_vm2, %v1700_v24, %v1707_v28  ;;  %6397 = vmatpush3.bf16.msra.mxu0 %v6773_v4  ;;  %v1051_v22 = vld [vmem:[#allocation2 + $0x6c] sm:$0xf]  ;;  %398 = vst [vmem:[#allocation2 + $0xe4] sm:$0xff] %v365_v16   ;;  %v6776_v28 = vld [vmem:[%s8308_s1 + $0x1e0] sm:$0xff]  }
  0x7d   : > { %v647_v39 = vor.u32 %v645_v20, %v644_v31  ;;  %v649_v40 = vrot.slane %v644_v31, 4  ;;  %v252_v41 = vsel %vm7042_vm6, 0, %v251_v25  ;;  %v5815_v43 = vcombine.low %v1699_v35, %v1708_v38  ;;  %6502 = vmatprep.subr.bf16.mxu1 %v6776_v28  ;;  %v7193_v38 = vld [vmem:[%s8308_s1 + $0x200] sm:$0xff]  }
  0x7e   : > { %v1182_v42 = vsel %vm7066_vm7, %v1177_v21, %v1181_v34  ;;  %v653_v44 = vrot.slane %v651_v36, 7  ;;  %253 = vst [vmem:[#allocation2 + $0x60] sm:$0x1] %v252_v41  ;;  %v1184_v45 = vshrl.u32 %v1048_v32, 16  ;;  %v1187_v48 = vshll.u32 %v1048_v32, 16  ;;  %6630 = vmatprep.subr.bf16.mxu0 %v7193_v38 }
  0x7f   : > { %v5782_v46 = vcombine.low %v1172_v27, %v1182_v42  ;;  %v1193_v49 = vshll.u32 %v1049_v33, 16  ;;  %v648_v51 = vsel %vm6927_vm2, %v5739_v29, %v647_v39  ;;  %v1197_v54 = vshrl.u32 %v1049_v33, 16  ;;  %v1052_v27 = vld [vmem:[#allocation2 + $0x70] sm:$0xf] }
  0x80   : > { %v656_v52 = vor.u32 %v654_v37, %v653_v44  ;;  %v1186_v53 = vrot.slane %v1184_v45, 4  ;;  %v1189_v58 = vrot.slane %v1187_v48, 5  ;;  %v1710_v60 = vshrl.u32 %v1566_v50, 16  ;;  %v6778_v48 = vld [vmem:[%s8308_s1 + $0x1a0] sm:$0xff]  }
  0x81   : > { %4762 = vmatmul.mubr.bf16.gmra.mrb[28].mxu1 %v5782_v46  ;;  %v1195_v59 = vrot.slane %v1193_v49, 5  ;;  %v1715_v61 = vshrl.u32 %v1567_v56, 16  ;;  %v1199_v0 = vrot.slane %v1197_v54, 4  ;;  %v1718_v1 = vshll.u32 %v1567_v56, 16  ;;  %v1570_v54 = vld [vmem:[#allocation2 + $0x94] sm:$0xf] }
  0x82   : > { %4769 = vmatprep.mubr.bf16.mxu1 %v5815_v43  ;;  %v657_v63 = vsel %vm6927_vm2, %v649_v40, %v656_v52  ;;  %v1724_v2 = vshrl.u32 %v1568_v57, 16  ;;  %v1190_v7 = vor.u32 %v1189_v58, %v1186_v53  ;;  %v5800_v8 = vrot.slane %v1710_v60, 11  ;;  %v1569_v53 = vld [vmem:[#allocation2 + $0x90] sm:$0x8]  ;;  %v1571_v58 = vld [vmem:[#allocation2 + $0x98] sm:$0xf]  ;;  %6503 = vmatpush3.bf16.msra.mxu1 %v6778_v48 }
  0x83   : > { %v5755_v5 = vcombine.low %v648_v51, %v657_v63  ;;  %v1717_v9 = vrot.slane %v1715_v61, 7  ;;  %v1200_v11 = vor.u32 %v1199_v0, %v1195_v59  ;;  %v1727_v13 = vshll.u32 %v1568_v57, 16  ;;  %v440_v0 = vld [vmem:[#allocation2 + $0xcc] sm:$0x8] }
  0x84   : > { %v1726_v12 = vrot.slane %v1724_v2, 7  ;;  %v659_v14 = vshrl.u32 %v437_v62, 16  ;;  %v1191_v18 = vrot.slane %v1190_v7, 4  ;;  %v664_v21 = vshrl.u32 %v438_v3, 16  ;;  %v441_v7 = vld [vmem:[#allocation2 + $0xd0] sm:$0xf] }
  0x85   : > { %4641 = vmatmul.mubr.bf16.gmra.mrb[32].mxu0 %v5755_v5  ;;  %v1050_v17 = vld [vmem:[#allocation2 + $0x60] sm:$0x1]  ;;  %v1720_v19 = vor.u32 %v1718_v1, %v1717_v9  ;;  %v1722_v20 = vrot.slane %v1717_v9, 4  ;;  %v1201_v23 = vrot.slane %v1200_v11, 4  ;;  %v667_v33 = vshll.u32 %v438_v3, 16  ;;  %v6769_v3 = vld [vmem:[#allocation2 + $0xd0] sm:$0xff]  }
  0x86   : > { %v1203_v24 = vshll.u32 %v1050_v17, 16  ;;  %4648 = vmatprep.mubr.bf16.mxu0 %v6766_v55  ;;  %v1729_v25 = vor.u32 %v1727_v13, %v1726_v12  ;;  %v5740_v26 = vrot.slane %v659_v14, 11  ;;  %v1196_v29 = vsel %vm7066_vm7, %v1191_v18, %v1195_v59  ;;  %v442_v12 = vld [vmem:[#allocation2 + $0xd4] sm:$0xf]  ;;  %v265_v13 = vld [vmem:[#allocation2 + $0x88] sm:$0x1] }
  0x87   : > { %v1721_v31 = vsel %vm6927_vm2, %v5800_v8, %v1720_v19  ;;  %v666_v32 = vrot.slane %v664_v21, 7  ;;  %v673_v36 = vshrl.u32 %v439_v10, 16  ;;  %v676_v37 = vshll.u32 %v439_v10, 16  ;;  %v1054_v18 = vld [vmem:[#allocation2 + $0x80] sm:$0xf] }
  0x88   : > { %v1205_v34 = vrot.slane %v1203_v24, 5  ;;  %v1730_v35 = vsel %vm6927_vm2, %v1722_v20, %v1729_v25  ;;  %v259_v42 = vsel %vm7042_vm6, 0, %v258_v15  ;;  %v1208_v45 = vshrl.u32 %v1051_v22, 16  ;;  %v1055_v24 = vld [vmem:[#allocation2 + $0x84] sm:$0xf] }
  0x89   : > { %v5816_v39 = vcombine.low %v1721_v31, %v1730_v35  ;;  %v669_v40 = vor.u32 %v667_v33, %v666_v32  ;;  %v671_v41 = vrot.slane %v666_v32, 4  ;;  %v675_v44 = vrot.slane %v673_v36, 7  ;;  %260 = vst [vmem:[#allocation2 + $0x74] sm:$0x1] %v259_v42 }
  0x8a   : > { %v1206_v43 = vsel %vm7066_vm7, %v1201_v23, %v1205_v34  ;;  %v1211_v46 = vshll.u32 %v1051_v22, 16  ;;  %v1217_v51 = vshll.u32 %v1052_v27, 16  ;;  %v1221_v52 = vshrl.u32 %v1052_v27, 16 }
  0x8b   : > { %v5783_v49 = vcombine.low %v1196_v29, %v1206_v43  ;;  %v670_v50 = vsel %vm6927_vm2, %v5740_v26, %v669_v40  ;;  %v678_v55 = vor.u32 %v676_v37, %v675_v44  ;;  %v1210_v56 = vrot.slane %v1208_v45, 4 }
  0x8c   : > { %v1213_v57 = vrot.slane %v1211_v46, 5  ;;  %v1732_v59 = vshrl.u32 %v1569_v53, 16  ;;  %v1219_v60 = vrot.slane %v1217_v51, 5  ;;  %v1223_v61 = vrot.slane %v1221_v52, 4  ;;  %v6774_v53 = vld [vmem:[#allocation2 + $0xe4] sm:$0xff]  }
  0x8d   : > { %4770 = vmatmul.mubr.bf16.gmra.mrb[32].mxu1 %v5783_v49  ;;  %v1737_v62 = vshrl.u32 %v1570_v54, 16  ;;  %v1740_v63 = vshll.u32 %v1570_v54, 16  ;;  %v679_v1 = vsel %vm6927_vm2, %v671_v41, %v678_v55  ;;  %v1746_v5 = vshrl.u32 %v1571_v58, 16  ;;  %v6783_v54 = vld [vmem:[%s8308_s1 + $0x1a8] sm:$0xff]  }
  0x8e   : > { %4777 = vmatprep.mubr.bf16.mxu1 %v5816_v39  ;;  %v1214_v2 = vor.u32 %v1213_v57, %v1210_v56  ;;  %v5801_v4 = vrot.slane %v1732_v59, 11  ;;  %v5756_v8 = vcombine.low %v670_v50, %v679_v1  ;;  %v1224_v9 = vor.u32 %v1223_v61, %v1219_v60  ;;  %v6781_v39 = vld [vmem:[%s8308_s1 + $0x1e8] sm:$0xff]   ;;  %v1572_v57 = vld [vmem:[#allocation2 + $0xa4] sm:$0x8] }
  0x8f   : > { %v1739_v10 = vrot.slane %v1737_v62, 7  ;;  %v1749_v11 = vshll.u32 %v1571_v58, 16  ;;  %v1748_v15 = vrot.slane %v1746_v5, 7  ;;  %v681_v16 = vshrl.u32 %v440_v0, 16  ;;  %6504 = vmatprep.subr.bf16.mxu1 %v6781_v39  ;;  %v1574_v61 = vld [vmem:[#allocation2 + $0xac] sm:$0xf] }
  0x90   : > { %v1215_v14 = vrot.slane %v1214_v2, 4  ;;  %v686_v17 = vshrl.u32 %v441_v7, 16  ;;  %4649 = vmatmul.mubr.bf16.gmra.mrb[36].mxu0 %v5756_v8  ;;  %v1053_v19 = vld [vmem:[#allocation2 + $0x74] sm:$0x1]  ;;  %v1225_v20 = vrot.slane %v1224_v9, 4  ;;  %v689_v23 = vshll.u32 %v441_v7, 16  ;;  %6505 = vmatpush3.bf16.msra.mxu1 %v6783_v54 }
  0x91   : > { %v1742_v21 = vor.u32 %v1740_v63, %v1739_v10  ;;  %v1744_v22 = vrot.slane %v1739_v10, 4  ;;  %v1227_v26 = vshll.u32 %v1053_v19, 16  ;;  %4656 = vmatprep.mubr.bf16.mxu0 %v6769_v3  ;;  %v1751_v27 = vor.u32 %v1749_v11, %v1748_v15  ;;  %v443_v3 = vld [vmem:[#allocation2 + $0xe0] sm:$0x8]  ;;  %v445_v10 = vld [vmem:[#allocation2 + $0xe8] sm:$0xf] }
  0x92   : > { %v1220_v25 = vsel %vm7066_vm7, %v1215_v14, %v1219_v60  ;;  %v5741_v28 = vrot.slane %v681_v16, 11  ;;  %v688_v31 = vrot.slane %v686_v17, 7  ;;  %v695_v32 = vshrl.u32 %v442_v12, 16  ;;  %v1573_v60 = vld [vmem:[#allocation2 + $0xa8] sm:$0xf]  ;;  %v6788_v54 = vld [vmem:[%s8308_s1 + $0x1b0] sm:$0xff]  }
  0x93   : > { %v1743_v29 = vsel %vm6927_vm2, %v5801_v4, %v1742_v21  ;;  %v698_v33 = vshll.u32 %v442_v12, 16  ;;  %v1229_v34 = vrot.slane %v1227_v26, 5  ;;  %v1752_v35 = vsel %vm6927_vm2, %v1744_v22, %v1751_v27  ;;  %v444_v4 = vld [vmem:[#allocation2 + $0xe4] sm:$0xf] }
  0x94   : > { %v266_v36 = vsel %vm7042_vm6, 0, %v265_v13  ;;  %v1232_v37 = vshrl.u32 %v1054_v18, 16  ;;  %v5817_v40 = vcombine.low %v1743_v29, %v1752_v35  ;;  %v691_v41 = vor.u32 %v689_v23, %v688_v31 }
  0x95   : > { %v693_v42 = vrot.slane %v688_v31, 4  ;;  %v697_v43 = vrot.slane %v695_v32, 7  ;;  %267 = vst [vmem:[#allocation2 + $0x88] sm:$0x1] %v266_v36  ;;  %v1230_v44 = vsel %vm7066_vm7, %v1225_v20, %v1229_v34  ;;  %v1235_v46 = vshll.u32 %v1054_v18, 16  ;;  %v6786_v36 = vld [vmem:[%s8308_s1 + $0x1f0] sm:$0xff]  }
  0x96   : > { %v1234_v45 = vrot.slane %v1232_v37, 4  ;;  %v1241_v48 = vshll.u32 %v1055_v24, 16  ;;  %v5784_v49 = vcombine.low %v1220_v25, %v1230_v44  ;;  %v692_v50 = vsel %vm6927_vm2, %v5741_v28, %v691_v41  ;;  %v272_v20 = vld [vmem:[#allocation2 + $0x9c] sm:$0x1]  ;;  %v1057_v25 = vld [vmem:[#allocation2 + $0x94] sm:$0xf]  ;;  %6506 = vmatprep.subr.bf16.mxu1 %v6786_v36 }
  0x97   : > { %v700_v51 = vor.u32 %v698_v33, %v697_v43  ;;  %v1245_v52 = vshrl.u32 %v1055_v24, 16  ;;  %v1237_v55 = vrot.slane %v1235_v46, 5  ;;  %v1754_v62 = vshrl.u32 %v1572_v57, 16  ;;  %v1058_v34 = vld [vmem:[#allocation2 + $0x98] sm:$0xf]  ;;  %6507 = vmatpush3.bf16.msra.mxu1 %v6788_v54 }
  0x98   : > { %v1243_v56 = vrot.slane %v1241_v48, 5  ;;  %4778 = vmatmul.mubr.bf16.gmra.mrb[36].mxu1 %v5784_v49  ;;  %v1759_v1 = vshrl.u32 %v1573_v60, 16  ;;  %v1762_v2 = vshll.u32 %v1573_v60, 16  ;;  %v1768_v8 = vshrl.u32 %v1574_v61, 16  ;;  %v1576_v43 = vld [vmem:[#allocation2 + $0xbc] sm:$0xf] }
  0x99   : > { %v701_v58 = vsel %vm6927_vm2, %v693_v42, %v700_v51  ;;  %v1247_v59 = vrot.slane %v1245_v52, 4  ;;  %4785 = vmatprep.mubr.bf16.mxu1 %v5817_v40  ;;  %v1238_v0 = vor.u32 %v1237_v55, %v1234_v45  ;;  %v5802_v7 = vrot.slane %v1754_v62, 11  ;;  %v1575_v42 = vld [vmem:[#allocation2 + $0xb8] sm:$0x8]  ;;  %v1577_v49 = vld [vmem:[#allocation2 + $0xc0] sm:$0xf] }
  0x9a   : > { %v5757_v63 = vcombine.low %v692_v50, %v701_v58  ;;  %v1771_v9 = vshll.u32 %v1574_v61, 16  ;;  %v1761_v13 = vrot.slane %v1759_v1, 7  ;;  %v703_v14 = vshrl.u32 %v443_v3, 16 }
  0x9b   : > { %v1248_v5 = vor.u32 %v1247_v59, %v1243_v56  ;;  %v1239_v12 = vrot.slane %v1238_v0, 4  ;;  %v708_v15 = vshrl.u32 %v444_v4, 16  ;;  %v1770_v18 = vrot.slane %v1768_v8, 7  ;;  %v2175_v59 = vld [vmem:[#allocation2 + $0x1c] sm:$0xf] }
  0x9c   : > { %4657 = vmatmul.mubr.bf16.gmra.mrb[40].mxu0 %v5757_v63  ;;  %v1056_v11 = vld [vmem:[#allocation2 + $0x88] sm:$0x1]  ;;  %v711_v19 = vshll.u32 %v444_v4, 16  ;;  %v1764_v22 = vor.u32 %v1762_v2, %v1761_v13  ;;  %v1766_v23 = vrot.slane %v1761_v13, 4  ;;  %v5742_v24 = vrot.slane %v703_v14, 11 }
  0x9d   : > { %v1249_v16 = vrot.slane %v1248_v5, 4  ;;  %v1251_v17 = vshll.u32 %v1056_v11, 16  ;;  %4664 = vmatprep.mubr.bf16.mxu0 %v6774_v53  ;;  %v1244_v21 = vsel %vm7066_vm7, %v1239_v12, %v1243_v56  ;;  %v1773_v27 = vor.u32 %v1771_v9, %v1770_v18  ;;  %v2176_v0 = vld [vmem:[#allocation2 + $0x20] sm:$0xf]  ;;  %v6791_v11 = vld [vmem:[%s8308_s1 + $0x1f8] sm:$0xff]  }
  0x9e   : > { %v710_v28 = vrot.slane %v708_v15, 7  ;;  %v717_v29 = vshrl.u32 %v445_v10, 16  ;;  %v1765_v31 = vsel %vm6927_vm2, %v5802_v7, %v1764_v22  ;;  %v720_v32 = vshll.u32 %v445_v10, 16  ;;  %v2177_v10 = vld [vmem:[#allocation2 + $0x24] sm:$0x1]  ;;  %6508 = vmatprep.subr.bf16.mxu1 %v6791_v11 }
  0x9f   : > { %v1253_v26 = vrot.slane %v1251_v17, 5  ;;  %v273_v33 = vsel %vm7042_vm6, 0, %v272_v20  ;;  %v1256_v35 = vshrl.u32 %v1057_v25, 16  ;;  %v1774_v39 = vsel %vm6927_vm2, %v1766_v23, %v1773_v27  ;;  %v279_v17 = vld [vmem:[#allocation2 + $0xb0] sm:$0x1]  ;;  %v6793_v23 = vld [vmem:[%s8308_s1 + $0x1b8] sm:$0xff]  }
  0xa0   : > { %v713_v40 = vor.u32 %v711_v19, %v710_v28  ;;  %v715_v41 = vrot.slane %v710_v28, 4  ;;  %274 = vst [vmem:[#allocation2 + $0x9c] sm:$0x1] %v273_v33  ;;  %v5818_v45 = vcombine.low %v1765_v31, %v1774_v39  ;;  %v719_v46 = vrot.slane %v717_v29, 7  ;;  %v1060_v18 = vld [vmem:[#allocation2 + $0xa8] sm:$0xf]  ;;  %6509 = vmatpush3.bf16.msra.mxu1 %v6793_v23 }
  0xa1   : > { %v1254_v37 = vsel %vm7066_vm7, %v1249_v16, %v1253_v26  ;;  %v1258_v48 = vrot.slane %v1256_v35, 4  ;;  %v1259_v51 = vshll.u32 %v1057_v25, 16  ;;  %v1265_v52 = vshll.u32 %v1058_v34, 16  ;;  %v1061_v28 = vld [vmem:[#allocation2 + $0xac] sm:$0xf]  ;;  %v375_v29 = vld [vmem:[%s6907_s14 + $0x78] sm:$0xff]  }
  0xa2   : > { %v5785_v44 = vcombine.low %v1244_v21, %v1254_v37  ;;  %v714_v50 = vsel %vm6927_vm2, %v5742_v24, %v713_v40  ;;  %v1269_v53 = vshrl.u32 %v1058_v34, 16  ;;  %v722_v55 = vor.u32 %v720_v32, %v719_v46  ;;  %408 = vst [vmem:[#allocation2 + $0x148] sm:$0xff] %v375_v29   ;;  %v1578_v40 = vld [vmem:[#allocation2 + $0xcc] sm:$0x8] }
  0xa3   : > { %v1776_v56 = vshrl.u32 %v1575_v42, 16  ;;  %v1781_v57 = vshrl.u32 %v1576_v43, 16  ;;  %v1784_v58 = vshll.u32 %v1576_v43, 16  ;;  %v1261_v60 = vrot.slane %v1259_v51, 5 }
  0xa4   : > { %4786 = vmatmul.mubr.bf16.gmra.mrb[40].mxu1 %v5785_v44  ;;  %v1267_v61 = vrot.slane %v1265_v52, 5  ;;  %v1271_v62 = vrot.slane %v1269_v53, 4  ;;  %v1790_v63 = vshrl.u32 %v1577_v49, 16  ;;  %v723_v1 = vsel %vm6927_vm2, %v715_v41, %v722_v55  ;;  %v1580_v55 = vld [vmem:[#allocation2 + $0xd4] sm:$0xf] }
  0xa5   : > { %4793 = vmatprep.mubr.bf16.mxu1 %v5818_v45  ;;  %v5803_v2 = vrot.slane %v1776_v56, 11  ;;  %v1783_v3 = vrot.slane %v1781_v57, 7  ;;  %v1793_v4 = vshll.u32 %v1577_v49, 16  ;;  %v5758_v5 = vcombine.low %v714_v50, %v723_v1  ;;  %v1579_v45 = vld [vmem:[#allocation2 + $0xd0] sm:$0xf] }
  0xa6   : > { %v1262_v7 = vor.u32 %v1261_v60, %v1258_v48  ;;  %v1272_v8 = vor.u32 %v1271_v62, %v1267_v61  ;;  %v1792_v9 = vrot.slane %v1790_v63, 7  ;;  %v2224_v15 = vshrl.u32 %v2175_v59, 16  ;;  %v2178_v60 = vld [vmem:[#allocation2 + $0x30] sm:$0xf]  ;;  %v2179_v1 = vld [vmem:[#allocation2 + $0x34] sm:$0xf] }
  0xa7   : > { %v1059_v12 = vld [vmem:[#allocation2 + $0x9c] sm:$0x1]  ;;  %v1786_v13 = vor.u32 %v1784_v58, %v1783_v3  ;;  %v1788_v14 = vrot.slane %v1783_v3, 4  ;;  %v2227_v16 = vshll.u32 %v2175_v59, 16  ;;  %4665 = vmatmul.mubr.bf16.gmra.mrb[44].mxu0 %v5758_v5  ;;  %v2233_v27 = vshll.u32 %v2176_v0, 16 }
  0xa8   : > { %v1263_v19 = vrot.slane %v1262_v7, 4  ;;  %v1273_v20 = vrot.slane %v1272_v8, 4  ;;  %v1275_v21 = vshll.u32 %v1059_v12, 16  ;;  %v1795_v22 = vor.u32 %v1793_v4, %v1792_v9  ;;  %v6775_v3 = vld [vmem:[#allocation2 + $0x1c] sm:$0xff]   ;;  %v2180_v8 = vld [vmem:[#allocation2 + $0x38] sm:$0x1] }
  0xa9   : > { %v1787_v24 = vsel %vm6927_vm2, %v5803_v2, %v1786_v13  ;;  %v2226_v25 = vrot.slane %v2224_v15, 4  ;;  %v2229_v26 = vrot.slane %v2227_v16, 5  ;;  %v2237_v34 = vshrl.u32 %v2176_v0, 16  ;;  %v286_v13 = vld [vmem:[#allocation2 + $0xc4] sm:$0x1]  ;;  %v6782_v15 = vld [vmem:[%s8308_s1 + $0x208] sm:$0xff]  }
  0xaa   : > { %v1268_v31 = vsel %vm7066_vm7, %v1263_v19, %v1267_v61  ;;  %v1277_v32 = vrot.slane %v1275_v21, 5  ;;  %v1796_v33 = vsel %vm6927_vm2, %v1788_v14, %v1795_v22  ;;  %v2235_v37 = vrot.slane %v2233_v27, 5  ;;  %v1063_v14 = vld [vmem:[#allocation2 + $0xbc] sm:$0xf] }
  0xab   : > { %v5819_v35 = vcombine.low %v1787_v24, %v1796_v33  ;;  %v2230_v36 = vor.u32 %v2229_v26, %v2226_v25  ;;  %v2243_v39 = vshll.u32 %v2177_v10, 16  ;;  %v2239_v42 = vrot.slane %v2237_v34, 4  ;;  %v6787_v34 = vld [vmem:[%s8308_s1 + $0x210] sm:$0xff]  }
  0xac   : > { %v1278_v41 = vsel %vm7066_vm7, %v1273_v20, %v1277_v32  ;;  %v280_v43 = vsel %vm7042_vm6, 0, %v279_v17  ;;  %v1280_v44 = vshrl.u32 %v1060_v18, 16  ;;  %v1283_v50 = vshll.u32 %v1060_v18, 16 }
  0xad   : > { %v5786_v46 = vcombine.low %v1268_v31, %v1278_v41  ;;  %v2231_v48 = vrot.slane %v2230_v36, 4  ;;  %v2245_v49 = vrot.slane %v2243_v39, 5  ;;  %281 = vst [vmem:[#allocation2 + $0xb0] sm:$0x1] %v280_v43  ;;  %v2240_v51 = vor.u32 %v2239_v42, %v2235_v37  ;;  %v1064_v39 = vld [vmem:[#allocation2 + $0xc0] sm:$0xf] }
  0xae   : > { %v1282_v52 = vrot.slane %v1280_v44, 4  ;;  %v1289_v53 = vshll.u32 %v1061_v28, 16  ;;  %v1293_v54 = vshrl.u32 %v1061_v28, 16  ;;  %v1285_v57 = vrot.slane %v1283_v50, 5 }
  0xaf   : > { %4794 = vmatmul.mubr.bf16.gmra.mrb[44].mxu1 %v5786_v46  ;;  %v2236_v56 = vsel %vm7066_vm7, %v2231_v48, %v2235_v37  ;;  %v1798_v58 = vshrl.u32 %v1578_v40, 16  ;;  %v1803_v59 = vshrl.u32 %v1579_v45, 16  ;;  %v2241_v61 = vrot.slane %v2240_v51, 4  ;;  %v1582_v46 = vld [vmem:[#allocation2 + $0xe4] sm:$0xf] }
  0xb0   : > { %4801 = vmatprep.mubr.bf16.mxu1 %v5819_v35  ;;  %v1291_v62 = vrot.slane %v1289_v53, 5  ;;  %v1295_v63 = vrot.slane %v1293_v54, 4  ;;  %v1806_v0 = vshll.u32 %v1579_v45, 16  ;;  %v1286_v2 = vor.u32 %v1285_v57, %v1282_v52  ;;  %v1581_v45 = vld [vmem:[#allocation2 + $0xe0] sm:$0x8] }
  0xb1   : > { %v5804_v4 = vrot.slane %v1798_v58, 11  ;;  %v1805_v5 = vrot.slane %v1803_v59, 7  ;;  %v1812_v7 = vshrl.u32 %v1580_v55, 16  ;;  %v2246_v9 = vsel %vm7066_vm7, %v2241_v61, %v2245_v49  ;;  %v1583_v51 = vld [vmem:[#allocation2 + $0xe8] sm:$0xf] }
  0xb2   : > { %v1296_v10 = vor.u32 %v1295_v63, %v1291_v62  ;;  %v1815_v11 = vshll.u32 %v1580_v55, 16  ;;  %v2248_v12 = vshrl.u32 %v2178_v60, 16  ;;  %v5843_v16 = vcombine.low %v2236_v56, %v2246_v9  ;;  %v2181_v56 = vld [vmem:[#allocation2 + $0x44] sm:$0xf]  ;;  %v6779_v9 = vld [vmem:[#allocation2 + $0x30] sm:$0xff]  }
  0xb3   : > { %v1287_v17 = vrot.slane %v1286_v2, 4  ;;  %v1808_v18 = vor.u32 %v1806_v0, %v1805_v5  ;;  %v1810_v19 = vrot.slane %v1805_v5, 4  ;;  %v1814_v22 = vrot.slane %v1812_v7, 7  ;;  %v2182_v7 = vld [vmem:[#allocation2 + $0x48] sm:$0xf] }
  0xb4   : > { %v1062_v20 = vld [vmem:[#allocation2 + $0xb0] sm:$0x1]  ;;  %v1297_v21 = vrot.slane %v1296_v10, 4  ;;  %v2250_v23 = vrot.slane %v2248_v12, 4  ;;  %v2251_v24 = vshll.u32 %v2178_v60, 16  ;;  %4898 = vmatprep.mubr.bf16.mxu0 %v5843_v16  ;;  %v2257_v28 = vshll.u32 %v2179_v1, 16 }
  0xb5   : > { %v1292_v25 = vsel %vm7066_vm7, %v1287_v17, %v1291_v62  ;;  %v1299_v26 = vshll.u32 %v1062_v20, 16  ;;  %v1809_v27 = vsel %vm6927_vm2, %v5804_v4, %v1808_v18  ;;  %4899 = vmatmul.mubr.bf16.vlgmr.msra.gmra.mrb[48].mxu0 %v6775_v3  ;;  %v1817_v29 = vor.u32 %v1815_v11, %v1814_v22  ;;  %v2183_v12 = vld [vmem:[#allocation2 + $0x4c] sm:$0x1] }
  0xb6   : > { %v2253_v31 = vrot.slane %v2251_v24, 5  ;;  %v2261_v32 = vshrl.u32 %v2179_v1, 16  ;;  %v2267_v33 = vshll.u32 %v2180_v8, 16  ;;  %6631 = vmatpush3.bf16.msra.mxu0 %v7193_v38  ;;  %v2259_v36 = vrot.slane %v2257_v28, 5  ;;  %v6792_v1 = vld [vmem:[%s8308_s1 + $0x218] sm:$0xff]  }
  0xb7   : > { %v1301_v35 = vrot.slane %v1299_v26, 5  ;;  %v287_v37 = vsel %vm7042_vm6, 0, %v286_v13  ;;  %v1304_v40 = vshrl.u32 %v1063_v14, 16  ;;  %v1818_v41 = vsel %vm6927_vm2, %v1810_v19, %v1817_v29  ;;  %6632 = vmatprep.subr.bf16.mxu0 %v6782_v15 }
  0xb8   : > { %v2254_v42 = vor.u32 %v2253_v31, %v2250_v23  ;;  %v2263_v43 = vrot.slane %v2261_v32, 4  ;;  %v2269_v44 = vrot.slane %v2267_v33, 5  ;;  %288 = vst [vmem:[#allocation2 + $0xc4] sm:$0x1] %v287_v37  ;;  %v5820_v38 = vcombine.low %v1809_v27, %v1818_v41  ;;  %v6802_v41 = vld [vmem:[%s8308_s1 + $0x228] sm:$0xff]  }
  0xb9   : > { %v1302_v48 = vsel %vm7066_vm7, %v1297_v21, %v1301_v35  ;;  %v1306_v49 = vrot.slane %v1304_v40, 4  ;;  %v1307_v50 = vshll.u32 %v1063_v14, 16  ;;  %v1313_v55 = vshll.u32 %v1064_v39, 16  ;;  %v293_v14 = vld [vmem:[#allocation2 + $0xd8] sm:$0x1]  ;;  %v6797_v21 = vld [vmem:[%s8308_s1 + $0x220] sm:$0xff]  }
  0xba   : > { %v5787_v52 = vcombine.low %v1292_v25, %v1302_v48  ;;  %v2255_v53 = vrot.slane %v2254_v42, 4  ;;  %v2264_v54 = vor.u32 %v2263_v43, %v2259_v36  ;;  %v1317_v58 = vshrl.u32 %v1064_v39, 16  ;;  %6633 = vmatpush3.bf16.msra.mxu0 %v6782_v15  ;;  %v1066_v15 = vld [vmem:[#allocation2 + $0xd0] sm:$0xf]  ;;  %v1067_v35 = vld [vmem:[#allocation2 + $0xd4] sm:$0xf] }
  0xbb   : > { %v1309_v57 = vrot.slane %v1307_v50, 5  ;;  %v1820_v59 = vshrl.u32 %v1581_v45, 16  ;;  %v1825_v60 = vshrl.u32 %v1582_v46, 16  ;;  %v1315_v63 = vrot.slane %v1313_v55, 5  ;;  %6634 = vmatprep.subr.bf16.mxu0 %v6787_v34  ;;  %v1585_v48 = vld [vmem:[#allocation2 + $0xf8] sm:$0xf] }
  0xbc   : > { %4802 = vmatmul.mubr.bf16.gmra.mrb[48].mxu1 %v5787_v52  ;;  %v2260_v61 = vsel %vm7066_vm7, %v2255_v53, %v2259_v36  ;;  %v2265_v62 = vrot.slane %v2264_v54, 4  ;;  %v1828_v0 = vshll.u32 %v1582_v46, 16  ;;  %v1319_v3 = vrot.slane %v1317_v58, 4  ;;  %v1584_v46 = vld [vmem:[#allocation2 + $0xf4] sm:$0x8] }
  0xbd   : > { %4809 = vmatprep.mubr.bf16.mxu1 %v5820_v38  ;;  %v1310_v2 = vor.u32 %v1309_v57, %v1306_v49  ;;  %v5805_v4 = vrot.slane %v1820_v59, 11  ;;  %v1827_v5 = vrot.slane %v1825_v60, 7  ;;  %v1834_v10 = vshrl.u32 %v1583_v51, 16 }
  0xbe   : > { %v2270_v8 = vsel %vm7066_vm7, %v2265_v62, %v2269_v44  ;;  %v1837_v11 = vshll.u32 %v1583_v51, 16  ;;  %v2272_v13 = vshrl.u32 %v2181_v56, 16  ;;  %v1320_v19 = vor.u32 %v1319_v3, %v1315_v63  ;;  %6635 = vmatpush3.bf16.msra.mxu0 %v6787_v34 }
  0xbf   : > { %v5844_v16 = vcombine.low %v2260_v61, %v2270_v8  ;;  %v1065_v17 = vld [vmem:[#allocation2 + $0xc4] sm:$0x1]  ;;  %v1311_v18 = vrot.slane %v1310_v2, 4  ;;  %v1830_v20 = vor.u32 %v1828_v0, %v1827_v5  ;;  %v1832_v23 = vrot.slane %v1827_v5, 4  ;;  %6636 = vmatprep.subr.bf16.mxu0 %v6792_v1  ;;  %v2184_v61 = vld [vmem:[#allocation2 + $0x58] sm:$0xf] }
  0xc0   : > { %v1323_v22 = vshll.u32 %v1065_v17, 16  ;;  %v1836_v24 = vrot.slane %v1834_v10, 7  ;;  %v2274_v25 = vrot.slane %v2272_v13, 4  ;;  %v1321_v27 = vrot.slane %v1320_v19, 4  ;;  %v6780_v10 = vld [vmem:[#allocation2 + $0x44] sm:$0xff]  }
  0xc1   : > { %4906 = vmatprep.mubr.bf16.mxu0 %v5844_v16  ;;  %v1316_v26 = vsel %vm7066_vm7, %v1311_v18, %v1315_v63  ;;  %v1831_v28 = vsel %vm6927_vm2, %v5805_v4, %v1830_v20  ;;  %v2275_v29 = vshll.u32 %v2181_v56, 16  ;;  %v2281_v33 = vshll.u32 %v2182_v7, 16  ;;  %v1586_v56 = vld [vmem:[#allocation2 + $0xfc] sm:$0xf]  ;;  %v2186_v19 = vld [vmem:[#allocation2 + $0x60] sm:$0x1] }
  0xc2   : > { %v1325_v31 = vrot.slane %v1323_v22, 5  ;;  %4907 = vmatmul.mubr.bf16.gmra.mrb[52].mxu0 %v6779_v9  ;;  %v1839_v32 = vor.u32 %v1837_v11, %v1836_v24  ;;  %v2285_v34 = vshrl.u32 %v2182_v7, 16  ;;  %v2291_v37 = vshll.u32 %v2183_v12, 16  ;;  %v6807_v7 = vld [vmem:[%s8308_s1 + $0x230] sm:$0xff]   ;;  %v2185_v13 = vld [vmem:[#allocation2 + $0x5c] sm:$0xf] }
  0xc3   : > { %v2277_v36 = vrot.slane %v2275_v29, 5  ;;  %v294_v39 = vsel %vm7042_vm6, 0, %v293_v14  ;;  %v1328_v40 = vshrl.u32 %v1066_v15, 16  ;;  %6637 = vmatpush3.bf16.msra.mxu0 %v6792_v1  ;;  %v2283_v44 = vrot.slane %v2281_v33, 5  ;;  %v300_v24 = vld [vmem:[#allocation2 + $0xec] sm:$0x1] }
  0xc4   : > { %v1326_v42 = vsel %vm7066_vm7, %v1321_v27, %v1325_v31  ;;  %v1840_v43 = vsel %vm6927_vm2, %v1832_v23, %v1839_v32  ;;  %v2287_v45 = vrot.slane %v2285_v34, 4  ;;  %295 = vst [vmem:[#allocation2 + $0xd8] sm:$0x1] %v294_v39  ;;  %6638 = vmatprep.subr.bf16.mxu0 %v6797_v21  ;;  %v2293_v51 = vrot.slane %v2291_v37, 5  ;;  %v1069_v29 = vld [vmem:[#allocation2 + $0xe4] sm:$0xf] }
  0xc5   : > { %v5788_v38 = vcombine.low %v1316_v26, %v1326_v42  ;;  %v5821_v49 = vcombine.low %v1831_v28, %v1840_v43  ;;  %v2278_v50 = vor.u32 %v2277_v36, %v2274_v25  ;;  %v1330_v53 = vrot.slane %v1328_v40, 4 }
  0xc6   : > { %v2288_v52 = vor.u32 %v2287_v45, %v2283_v44  ;;  %v1331_v54 = vshll.u32 %v1066_v15, 16  ;;  %v1337_v55 = vshll.u32 %v1067_v35, 16  ;;  %v1341_v58 = vshrl.u32 %v1067_v35, 16  ;;  %v1070_v35 = vld [vmem:[#allocation2 + $0xe8] sm:$0xf] }
  0xc7   : > { %4810 = vmatmul.mubr.bf16.gmra.mrb[52].mxu1 %v5788_v38  ;;  %v2279_v57 = vrot.slane %v2278_v50, 4  ;;  %v1842_v59 = vshrl.u32 %v1584_v46, 16  ;;  %v1847_v60 = vshrl.u32 %v1585_v48, 16  ;;  %6639 = vmatpush3.bf16.msra.mxu0 %v6797_v21  ;;  %v1850_v1 = vshll.u32 %v1585_v48, 16  ;;  %v1588_v46 = vld [vmem:[#allocation2 + $0x10c] sm:$0xf] }
  0xc8   : > { %4817 = vmatprep.mubr.bf16.mxu1 %v5821_v49  ;;  %v2289_v62 = vrot.slane %v2288_v52, 4  ;;  %v1333_v63 = vrot.slane %v1331_v54, 5  ;;  %v1339_v0 = vrot.slane %v1337_v55, 5  ;;  %6640 = vmatprep.subr.bf16.mxu0 %v6802_v41  ;;  %v1343_v3 = vrot.slane %v1341_v58, 4 }
  0xc9   : > { %v2284_v2 = vsel %vm7066_vm7, %v2279_v57, %v2283_v44  ;;  %v5806_v4 = vrot.slane %v1842_v59, 11  ;;  %v1849_v5 = vrot.slane %v1847_v60, 7  ;;  %v1856_v11 = vshrl.u32 %v1586_v56, 16 }
  0xca   : > { %v2294_v8 = vsel %vm7066_vm7, %v2289_v62, %v2293_v51  ;;  %v1334_v9 = vor.u32 %v1333_v63, %v1330_v53  ;;  %v1859_v12 = vshll.u32 %v1586_v56, 16  ;;  %v1344_v16 = vor.u32 %v1343_v3, %v1339_v0  ;;  %v1589_v51 = vld [vmem:[#allocation2 + $0x110] sm:$0xf]  ;;  %v2187_v56 = vld [vmem:[#allocation2 + $0x6c] sm:$0xf] }
  0xcb   : > { %v5845_v14 = vcombine.low %v2284_v2, %v2294_v8  ;;  %v1068_v15 = vld [vmem:[#allocation2 + $0xd8] sm:$0x1]  ;;  %v1852_v17 = vor.u32 %v1850_v1, %v1849_v5  ;;  %v1854_v18 = vrot.slane %v1849_v5, 4  ;;  %6641 = vmatpush3.bf16.msra.mxu0 %v6802_v41  ;;  %v1858_v22 = vrot.slane %v1856_v11, 7  ;;  %v1587_v41 = vld [vmem:[#allocation2 + $0x108] sm:$0x8] }
  0xcc   : > { %v1335_v20 = vrot.slane %v1334_v9, 4  ;;  %v1347_v21 = vshll.u32 %v1068_v15, 16  ;;  %v2296_v23 = vshrl.u32 %v2184_v61, 16  ;;  %6642 = vmatprep.subr.bf16.mxu0 %v6807_v7  ;;  %v1345_v25 = vrot.slane %v1344_v16, 4  ;;  %v6812_v5 = vld [vmem:[%s8308_s1 + $0x238] sm:$0xff]  }
  0xcd   : > { %4914 = vmatprep.mubr.bf16.mxu0 %v5845_v14  ;;  %v1853_v26 = vsel %vm6927_vm2, %v5806_v4, %v1852_v17  ;;  %v2299_v27 = vshll.u32 %v2184_v61, 16  ;;  %v2305_v28 = vshll.u32 %v2185_v13, 16  ;;  %v1861_v33 = vor.u32 %v1859_v12, %v1858_v22  ;;  %v6784_v8 = vld [vmem:[#allocation2 + $0x58] sm:$0xff]   ;;  %v2188_v14 = vld [vmem:[#allocation2 + $0x70] sm:$0xf] }
  0xce   : > { %v1340_v31 = vsel %vm7066_vm7, %v1335_v20, %v1339_v0  ;;  %v1349_v32 = vrot.slane %v1347_v21, 5  ;;  %4915 = vmatmul.mubr.bf16.gmra.mrb[56].mxu0 %v6780_v10  ;;  %v2298_v34 = vrot.slane %v2296_v23, 4  ;;  %v2309_v39 = vshrl.u32 %v2185_v13, 16  ;;  %v2189_v15 = vld [vmem:[#allocation2 + $0x74] sm:$0x1] }
  0xcf   : > { %v2301_v36 = vrot.slane %v2299_v27, 5  ;;  %v2307_v37 = vrot.slane %v2305_v28, 5  ;;  %v2315_v40 = vshll.u32 %v2186_v19, 16  ;;  %6643 = vmatpush3.bf16.msra.mxu0 %v6807_v7  ;;  %v1862_v43 = vsel %vm6927_vm2, %v1854_v18, %v1861_v33  ;;  %v307_v23 = vld [vmem:[#allocation2 + $0x100] sm:$0x1] }
  0xd0   : > { %v1350_v42 = vsel %vm7066_vm7, %v1345_v25, %v1349_v32  ;;  %v301_v44 = vsel %vm7042_vm6, 0, %v300_v24  ;;  %v1352_v45 = vshrl.u32 %v1069_v29, 16  ;;  %v5822_v38 = vcombine.low %v1853_v26, %v1862_v43  ;;  %6644 = vmatprep.subr.bf16.mxu0 %v6812_v5  ;;  %v1072_v28 = vld [vmem:[#allocation2 + $0xf8] sm:$0xf] }
  0xd1   : > { %v5789_v48 = vcombine.low %v1340_v31, %v1350_v42  ;;  %v2302_v49 = vor.u32 %v2301_v36, %v2298_v34  ;;  %v2311_v50 = vrot.slane %v2309_v39, 4  ;;  %302 = vst [vmem:[#allocation2 + $0xec] sm:$0x1] %v301_v44  ;;  %v2317_v52 = vrot.slane %v2315_v40, 5  ;;  %v1073_v39 = vld [vmem:[#allocation2 + $0xfc] sm:$0xf] }
  0xd2   : > { %v1354_v53 = vrot.slane %v1352_v45, 4  ;;  %v1355_v54 = vshll.u32 %v1069_v29, 16  ;;  %v1361_v55 = vshll.u32 %v1070_v35, 16  ;;  %v1365_v59 = vshrl.u32 %v1070_v35, 16  ;;  %v1590_v44 = vld [vmem:[#allocation2 + $0x11c] sm:$0x8] }
  0xd3   : > { %4818 = vmatmul.mubr.bf16.gmra.mrb[56].mxu1 %v5789_v48  ;;  %v2303_v57 = vrot.slane %v2302_v49, 4  ;;  %v2312_v58 = vor.u32 %v2311_v50, %v2307_v37  ;;  %v1864_v60 = vshrl.u32 %v1587_v41, 16  ;;  %v1869_v63 = vshrl.u32 %v1588_v46, 16  ;;  %6645 = vmatpush3.bf16.msra.mxu0 %v6812_v5  ;;  %v1591_v49 = vld [vmem:[#allocation2 + $0x120] sm:$0xf] }
  0xd4   : > { %4825 = vmatprep.mubr.bf16.mxu1 %v5822_v38  ;;  %v1357_v61 = vrot.slane %v1355_v54, 5  ;;  %v1363_v62 = vrot.slane %v1361_v55, 5  ;;  %v1872_v0 = vshll.u32 %v1588_v46, 16  ;;  %v1367_v3 = vrot.slane %v1365_v59, 4 }
  0xd5   : > { %v2308_v1 = vsel %vm7066_vm7, %v2303_v57, %v2307_v37  ;;  %v2313_v2 = vrot.slane %v2312_v58, 4  ;;  %v5807_v4 = vrot.slane %v1864_v60, 11  ;;  %v1871_v9 = vrot.slane %v1869_v63, 7  ;;  %v1592_v58 = vld [vmem:[#allocation2 + $0x124] sm:$0xf] }
  0xd6   : > { %v1358_v7 = vor.u32 %v1357_v61, %v1354_v53  ;;  %v1878_v10 = vshrl.u32 %v1589_v51, 16  ;;  %v1881_v11 = vshll.u32 %v1589_v51, 16  ;;  %v1368_v13 = vor.u32 %v1367_v3, %v1363_v62  ;;  %v2190_v63 = vld [vmem:[#allocation2 + $0x80] sm:$0xf] }
  0xd7   : > { %v2318_v12 = vsel %vm7066_vm7, %v2313_v2, %v2317_v52  ;;  %v2320_v16 = vshrl.u32 %v2187_v56, 16  ;;  %v2323_v17 = vshll.u32 %v2187_v56, 16  ;;  %v1874_v21 = vor.u32 %v1872_v0, %v1871_v9 }
  0xd8   : > { %v5846_v18 = vcombine.low %v2308_v1, %v2318_v12  ;;  %v1071_v19 = vld [vmem:[#allocation2 + $0xec] sm:$0x1]  ;;  %v1359_v20 = vrot.slane %v1358_v7, 4  ;;  %v1876_v22 = vrot.slane %v1871_v9, 4  ;;  %v1369_v24 = vrot.slane %v1368_v13, 4 }
  0xd9   : > { %v1371_v25 = vshll.u32 %v1071_v19, 16  ;;  %v1880_v26 = vrot.slane %v1878_v10, 7  ;;  %v2322_v27 = vrot.slane %v2320_v16, 4  ;;  %v1875_v31 = vsel %vm6927_vm2, %v5807_v4, %v1874_v21  ;;  %v6785_v12 = vld [vmem:[#allocation2 + $0x6c] sm:$0xff]   ;;  %v2191_v13 = vld [vmem:[#allocation2 + $0x84] sm:$0xf] }
  0xda   : > { %4922 = vmatprep.mubr.bf16.mxu0 %v5846_v18  ;;  %v1364_v29 = vsel %vm7066_vm7, %v1359_v20, %v1363_v62  ;;  %v2325_v32 = vrot.slane %v2323_v17, 5  ;;  %v2329_v33 = vshll.u32 %v2188_v14, 16  ;;  %v2333_v36 = vshrl.u32 %v2188_v14, 16  ;;  %v2192_v14 = vld [vmem:[#allocation2 + $0x88] sm:$0x1] }
  0xdb   : > { %v1373_v34 = vrot.slane %v1371_v25, 5  ;;  %4923 = vmatmul.mubr.bf16.gmra.mrb[60].mxu0 %v6784_v8  ;;  %v1883_v35 = vor.u32 %v1881_v11, %v1880_v26  ;;  %v2339_v37 = vshll.u32 %v2189_v15, 16  ;;  %v308_v42 = vsel %vm7042_vm6, 0, %v307_v23  ;;  %v314_v21 = vld [vmem:[#allocation2 + $0x114] sm:$0x1] }
  0xdc   : > { %v2326_v40 = vor.u32 %v2325_v32, %v2322_v27  ;;  %v2331_v41 = vrot.slane %v2329_v33, 5  ;;  %v1376_v43 = vshrl.u32 %v1072_v28, 16  ;;  %v2335_v48 = vrot.slane %v2333_v36, 4  ;;  %309 = vst [vmem:[#allocation2 + $0x100] sm:$0x1] %v308_v42 }
  0xdd   : > { %v1374_v45 = vsel %vm7066_vm7, %v1369_v24, %v1373_v34  ;;  %v1884_v46 = vsel %vm6927_vm2, %v1876_v22, %v1883_v35  ;;  %v2341_v38 = vrot.slane %v2339_v37, 5  ;;  %v1379_v55 = vshll.u32 %v1072_v28, 16  ;;  %v1075_v26 = vld [vmem:[#allocation2 + $0x10c] sm:$0xf]  ;;  %v1076_v32 = vld [vmem:[#allocation2 + $0x110] sm:$0xf] }
  0xde   : > { %v5790_v50 = vcombine.low %v1364_v29, %v1374_v45  ;;  %v5823_v51 = vcombine.low %v1875_v31, %v1884_v46  ;;  %v2327_v52 = vrot.slane %v2326_v40, 4  ;;  %v1378_v53 = vrot.slane %v1376_v43, 4  ;;  %v1593_v33 = vld [vmem:[#allocation2 + $0x130] sm:$0x8] }
  0xdf   : > { %v2336_v54 = vor.u32 %v2335_v48, %v2331_v41  ;;  %v1385_v56 = vshll.u32 %v1073_v39, 16  ;;  %v1389_v57 = vshrl.u32 %v1073_v39, 16  ;;  %v1886_v60 = vshrl.u32 %v1590_v44, 16  ;;  %v1594_v39 = vld [vmem:[#allocation2 + $0x134] sm:$0xf] }
  0xe0   : > { %4826 = vmatmul.mubr.bf16.gmra.mrb[60].mxu1 %v5790_v50  ;;  %v2332_v59 = vsel %vm7066_vm7, %v2327_v52, %v2331_v41  ;;  %v1891_v61 = vshrl.u32 %v1591_v49, 16  ;;  %v1894_v62 = vshll.u32 %v1591_v49, 16  ;;  %v1381_v1 = vrot.slane %v1379_v55, 5 }
  0xe1   : > { %4833 = vmatprep.mubr.bf16.mxu1 %v5823_v51  ;;  %v2337_v0 = vrot.slane %v2336_v54, 4  ;;  %v1387_v2 = vrot.slane %v1385_v56, 5  ;;  %v1391_v3 = vrot.slane %v1389_v57, 4  ;;  %v5808_v4 = vrot.slane %v1886_v60, 11 }
  0xe2   : > { %v1893_v5 = vrot.slane %v1891_v61, 7  ;;  %v1900_v7 = vshrl.u32 %v1592_v58, 16  ;;  %v1903_v8 = vshll.u32 %v1592_v58, 16  ;;  %v1382_v10 = vor.u32 %v1381_v1, %v1378_v53 }
  0xe3   : > { %v2342_v9 = vsel %vm7066_vm7, %v2337_v0, %v2341_v38  ;;  %v1392_v11 = vor.u32 %v1391_v3, %v1387_v2  ;;  %v2344_v15 = vshrl.u32 %v2190_v63, 16  ;;  %v1074_v17 = vld [vmem:[#allocation2 + $0x100] sm:$0x1]  ;;  %v2347_v29 = vshll.u32 %v2190_v63, 16 }
  0xe4   : > { %v5847_v16 = vcombine.low %v2332_v59, %v2342_v9  ;;  %v1896_v18 = vor.u32 %v1894_v62, %v1893_v5  ;;  %v1898_v19 = vrot.slane %v1893_v5, 4  ;;  %v1902_v20 = vrot.slane %v1900_v7, 7  ;;  %v1595_v59 = vld [vmem:[#allocation2 + $0x138] sm:$0xf]  ;;  %v6789_v3 = vld [vmem:[#allocation2 + $0x80] sm:$0xff]  }
  0xe5   : > { %v1383_v22 = vrot.slane %v1382_v10, 4  ;;  %v1393_v23 = vrot.slane %v1392_v11, 4  ;;  %v1395_v24 = vshll.u32 %v1074_v17, 16  ;;  %v2346_v25 = vrot.slane %v2344_v15, 4  ;;  %v2193_v7 = vld [vmem:[#allocation2 + $0x94] sm:$0xf] }
  0xe6   : > { %4930 = vmatprep.mubr.bf16.mxu0 %v5847_v16  ;;  %v1897_v27 = vsel %vm6927_vm2, %v5808_v4, %v1896_v18  ;;  %v1905_v28 = vor.u32 %v1903_v8, %v1902_v20  ;;  %v2353_v31 = vshll.u32 %v2191_v13, 16  ;;  %v2357_v36 = vshrl.u32 %v2191_v13, 16  ;;  %v2195_v13 = vld [vmem:[#allocation2 + $0x9c] sm:$0x1] }
  0xe7   : > { %v1388_v34 = vsel %vm7066_vm7, %v1383_v22, %v1387_v2  ;;  %v1397_v35 = vrot.slane %v1395_v24, 5  ;;  %4931 = vmatmul.mubr.bf16.gmra.mrb[64].mxu0 %v6785_v12  ;;  %v2363_v37 = vshll.u32 %v2192_v14, 16  ;;  %v2349_v41 = vrot.slane %v2347_v29, 5  ;;  %v2194_v12 = vld [vmem:[#allocation2 + $0x98] sm:$0xf] }
  0xe8   : > { %v1906_v40 = vsel %vm6927_vm2, %v1898_v19, %v1905_v28  ;;  %v2355_v42 = vrot.slane %v2353_v31, 5  ;;  %v315_v43 = vsel %vm7042_vm6, 0, %v314_v21  ;;  %v2359_v46 = vrot.slane %v2357_v36, 4  ;;  %v321_v19 = vld [vmem:[#allocation2 + $0x128] sm:$0x1] }
  0xe9   : > { %v1398_v44 = vsel %vm7066_vm7, %v1393_v23, %v1397_v35  ;;  %v5824_v45 = vcombine.low %v1897_v27, %v1906_v40  ;;  %v2365_v48 = vrot.slane %v2363_v37, 5  ;;  %316 = vst [vmem:[#allocation2 + $0x114] sm:$0x1] %v315_v43  ;;  %v2350_v49 = vor.u32 %v2349_v41, %v2346_v25  ;;  %v1078_v24 = vld [vmem:[#allocation2 + $0x120] sm:$0xf] }
  0xea   : > { %v5791_v38 = vcombine.low %v1388_v34, %v1398_v44  ;;  %v1400_v50 = vshrl.u32 %v1075_v26, 16  ;;  %v1403_v51 = vshll.u32 %v1075_v26, 16  ;;  %v2360_v52 = vor.u32 %v2359_v46, %v2355_v42  ;;  %v1079_v34 = vld [vmem:[#allocation2 + $0x124] sm:$0xf] }
  0xeb   : > { %v1409_v53 = vshll.u32 %v1076_v32, 16  ;;  %v1413_v54 = vshrl.u32 %v1076_v32, 16  ;;  %v1908_v55 = vshrl.u32 %v1593_v33, 16  ;;  %v2351_v56 = vrot.slane %v2350_v49, 4  ;;  %v1596_v40 = vld [vmem:[#allocation2 + $0x144] sm:$0x8] }
  0xec   : > { %4834 = vmatmul.mubr.bf16.gmra.mrb[64].mxu1 %v5791_v38  ;;  %v1402_v57 = vrot.slane %v1400_v50, 4  ;;  %v1405_v58 = vrot.slane %v1403_v51, 5  ;;  %v1913_v60 = vshrl.u32 %v1594_v39, 16  ;;  %v2361_v61 = vrot.slane %v2360_v52, 4 }
  0xed   : > { %4841 = vmatprep.mubr.bf16.mxu1 %v5824_v45  ;;  %v1411_v62 = vrot.slane %v1409_v53, 5  ;;  %v1415_v63 = vrot.slane %v1413_v54, 4  ;;  %v5809_v0 = vrot.slane %v1908_v55, 11  ;;  %v2356_v1 = vsel %vm7066_vm7, %v2351_v56, %v2355_v42  ;;  %v1597_v45 = vld [vmem:[#allocation2 + $0x148] sm:$0xf] }
  0xee   : > { %v1406_v2 = vor.u32 %v1405_v58, %v1402_v57  ;;  %v1915_v4 = vrot.slane %v1913_v60, 7  ;;  %v1916_v5 = vshll.u32 %v1594_v39, 16  ;;  %v2366_v8 = vsel %vm7066_vm7, %v2361_v61, %v2365_v48  ;;  %v1598_v56 = vld [vmem:[#allocation2 + $0x14c] sm:$0xf] }
  0xef   : > { %v1416_v9 = vor.u32 %v1415_v63, %v1411_v62  ;;  %v1922_v10 = vshrl.u32 %v1595_v59, 16  ;;  %v1925_v11 = vshll.u32 %v1595_v59, 16  ;;  %v5848_v14 = vcombine.low %v2356_v1, %v2366_v8 }
  0xf0   : > { %v1077_v15 = vld [vmem:[#allocation2 + $0x114] sm:$0x1]  ;;  %v1407_v16 = vrot.slane %v1406_v2, 4  ;;  %v1918_v17 = vor.u32 %v1916_v5, %v1915_v4  ;;  %v1920_v18 = vrot.slane %v1915_v4, 4  ;;  %v2368_v23 = vshrl.u32 %v2193_v7, 16 }
  0xf1   : > { %v1417_v20 = vrot.slane %v1416_v9, 4  ;;  %v1419_v21 = vshll.u32 %v1077_v15, 16  ;;  %v1924_v22 = vrot.slane %v1922_v10, 7  ;;  %4938 = vmatprep.mubr.bf16.mxu0 %v5848_v14  ;;  %v2371_v27 = vshll.u32 %v2193_v7, 16  ;;  %v2197_v5 = vld [vmem:[#allocation2 + $0xac] sm:$0xf] }
  0xf2   : > { %v1412_v25 = vsel %vm7066_vm7, %v1407_v16, %v1411_v62  ;;  %v1919_v26 = vsel %vm6927_vm2, %v5809_v0, %v1918_v17  ;;  %v2377_v28 = vshll.u32 %v2194_v12, 16  ;;  %4939 = vmatmul.mubr.bf16.gmra.mrb[68].mxu0 %v6789_v3  ;;  %v2370_v32 = vrot.slane %v2368_v23, 4  ;;  %v6790_v62 = vld [vmem:[#allocation2 + $0x94] sm:$0xff]   ;;  %v2196_v0 = vld [vmem:[#allocation2 + $0xa8] sm:$0xf] }
  0xf3   : > { %v1421_v29 = vrot.slane %v1419_v21, 5  ;;  %v1927_v31 = vor.u32 %v1925_v11, %v1924_v22  ;;  %v2381_v33 = vshrl.u32 %v2194_v12, 16  ;;  %v2373_v35 = vrot.slane %v2371_v27, 5  ;;  %v2198_v12 = vld [vmem:[#allocation2 + $0xb0] sm:$0x1] }
  0xf4   : > { %v2379_v36 = vrot.slane %v2377_v28, 5  ;;  %v2387_v37 = vshll.u32 %v2195_v13, 16  ;;  %v322_v39 = vsel %vm7042_vm6, 0, %v321_v19  ;;  %v1424_v44 = vshrl.u32 %v1078_v24, 16 }
  0xf5   : > { %v1422_v41 = vsel %vm7066_vm7, %v1417_v20, %v1421_v29  ;;  %v1928_v42 = vsel %vm6927_vm2, %v1920_v18, %v1927_v31  ;;  %v2383_v43 = vrot.slane %v2381_v33, 4  ;;  %323 = vst [vmem:[#allocation2 + $0x128] sm:$0x1] %v322_v39  ;;  %v2374_v38 = vor.u32 %v2373_v35, %v2370_v32  ;;  %v328_v18 = vld [vmem:[#allocation2 + $0x13c] sm:$0x1] }
  0xf6   : > { %v5792_v46 = vcombine.low %v1412_v25, %v1422_v41  ;;  %v5825_v48 = vcombine.low %v1919_v26, %v1928_v42  ;;  %v2389_v49 = vrot.slane %v2387_v37, 5  ;;  %v1426_v51 = vrot.slane %v1424_v44, 4  ;;  %v1082_v29 = vld [vmem:[#allocation2 + $0x138] sm:$0xf] }
  0xf7   : > { %v2384_v50 = vor.u32 %v2383_v43, %v2379_v36  ;;  %v1427_v52 = vshll.u32 %v1078_v24, 16  ;;  %v1433_v53 = vshll.u32 %v1079_v34, 16  ;;  %v2375_v54 = vrot.slane %v2374_v38, 4  ;;  %v1081_v24 = vld [vmem:[#allocation2 + $0x134] sm:$0xf] }
  0xf8   : > { %4842 = vmatmul.mubr.bf16.gmra.mrb[68].mxu1 %v5792_v46  ;;  %v1437_v55 = vshrl.u32 %v1079_v34, 16  ;;  %v1930_v57 = vshrl.u32 %v1596_v40, 16  ;;  %v1935_v58 = vshrl.u32 %v1597_v45, 16  ;;  %v1938_v63 = vshll.u32 %v1597_v45, 16  ;;  %v2199_v45 = vld [vmem:[#allocation2 + $0xbc] sm:$0xf] }
  0xf9   : > { %4849 = vmatprep.mubr.bf16.mxu1 %v5825_v48  ;;  %v2385_v59 = vrot.slane %v2384_v50, 4  ;;  %v1429_v60 = vrot.slane %v1427_v52, 5  ;;  %v1435_v61 = vrot.slane %v1433_v53, 5  ;;  %v2380_v1 = vsel %vm7066_vm7, %v2375_v54, %v2379_v36  ;;  %v2200_v50 = vld [vmem:[#allocation2 + $0xc0] sm:$0xf] }
  0xfa   : > { %v1439_v2 = vrot.slane %v1437_v55, 4  ;;  %v5810_v3 = vrot.slane %v1930_v57, 11  ;;  %v1937_v4 = vrot.slane %v1935_v58, 7  ;;  %v1944_v10 = vshrl.u32 %v1598_v56, 16 }
  0xfb   : > { %v2390_v8 = vsel %vm7066_vm7, %v2385_v59, %v2389_v49  ;;  %v1430_v9 = vor.u32 %v1429_v60, %v1426_v51  ;;  %v1947_v11 = vshll.u32 %v1598_v56, 16  ;;  %v2392_v23 = vshrl.u32 %v2196_v0, 16  ;;  %v2201_v59 = vld [vmem:[#allocation2 + $0xc4] sm:$0x1] }
  0xfc   : > { %v5849_v13 = vcombine.low %v2380_v1, %v2390_v8  ;;  %v1080_v14 = vld [vmem:[#allocation2 + $0x128] sm:$0x1]  ;;  %v1440_v15 = vor.u32 %v1439_v2, %v1435_v61  ;;  %v1940_v16 = vor.u32 %v1938_v63, %v1937_v4  ;;  %v1942_v17 = vrot.slane %v1937_v4, 4  ;;  %v2688_v2 = vld [vmem:[#allocation2 + $0x2c] sm:$0x8] }
  0xfd   : > { %v1431_v20 = vrot.slane %v1430_v9, 4  ;;  %v1443_v21 = vshll.u32 %v1080_v14, 16  ;;  %v1946_v22 = vrot.slane %v1944_v10, 7  ;;  %v2395_v27 = vshll.u32 %v2196_v0, 16  ;;  %v6794_v8 = vld [vmem:[#allocation2 + $0xa8] sm:$0xff]  }
  0xfe   : > { %4946 = vmatprep.mubr.bf16.mxu0 %v5849_v13  ;;  %v1441_v25 = vrot.slane %v1440_v15, 4  ;;  %v1941_v26 = vsel %vm6927_vm2, %v5810_v3, %v1940_v16  ;;  %v2401_v28 = vshll.u32 %v2197_v5, 16  ;;  %v2394_v35 = vrot.slane %v2392_v23, 4  ;;  %v2689_v10 = vld [vmem:[#allocation2 + $0x30] sm:$0xf] }
  0xff   : > { %v1436_v32 = vsel %vm7066_vm7, %v1431_v20, %v1435_v61  ;;  %v1445_v33 = vrot.slane %v1443_v21, 5  ;;  %4947 = vmatmul.mubr.bf16.gmra.mrb[72].mxu0 %v6790_v62  ;;  %v1949_v34 = vor.u32 %v1947_v11, %v1946_v22  ;;  %v2397_v36 = vrot.slane %v2395_v27, 5  ;;  %v2690_v27 = vld [vmem:[#allocation2 + $0x34] sm:$0xf] }
 0x100   : > { %v2403_v37 = vrot.slane %v2401_v28, 5  ;;  %v2405_v39 = vshrl.u32 %v2197_v5, 16  ;;  %v2411_v40 = vshll.u32 %v2198_v12, 16  ;;  %v329_v43 = vsel %vm7042_vm6, 0, %v328_v18 }
 0x101   : > { %v7372_v7 = vpop.f32.mrb[0].mxu0  ;;  %v1446_v41 = vsel %vm7066_vm7, %v1441_v25, %v1445_v33  ;;  %v1950_v42 = vsel %vm6927_vm2, %v1942_v17, %v1949_v34  ;;  %v1448_v44 = vshrl.u32 %v1081_v24, 16  ;;  %v2398_v38 = vor.u32 %v2397_v36, %v2394_v35  ;;  %330 = vst [vmem:[#allocation2 + $0x13c] sm:$0x1] %v329_v43  ;;  %v2202_v34 = vld [vmem:[#allocation2 + $0xd0] sm:$0xf] }
 0x102   : > { %v7380_v31 = vpop.f32.mrb[1].mxu0  ;;  %v5793_v46 = vcombine.low %v1436_v32, %v1446_v41  ;;  %v5826_v48 = vcombine.low %v1941_v26, %v1950_v42  ;;  %v2407_v49 = vrot.slane %v2405_v39, 4  ;;  %v2413_v52 = vrot.slane %v2411_v40, 5  ;;  %v2203_v40 = vld [vmem:[#allocation2 + $0xd4] sm:$0xf] }
 0x103   : > { %v1450_v53 = vrot.slane %v1448_v44, 4  ;;  %v1451_v54 = vshll.u32 %v1081_v24, 16  ;;  %v1457_v55 = vshll.u32 %v1082_v29, 16  ;;  %v2399_v56 = vrot.slane %v2398_v38, 4  ;;  %v7392_v61 = vpop.f32.mrb[2].mxu0  ;;  %v6795_v42 = vld [vmem:[#allocation2 + $0x30] sm:$0xff]  }
 0x104   : > { %4850 = vmatmul.mubr.bf16.gmra.mrb[72].mxu1 %v5793_v46  ;;  %v2408_v57 = vor.u32 %v2407_v49, %v2403_v37  ;;  %v1461_v58 = vshrl.u32 %v1082_v29, 16  ;;  %v2416_v60 = vshrl.u32 %v2199_v45, 16  ;;  %v2419_v0 = vshll.u32 %v2199_v45, 16  ;;  %v7398_v16 = vpop.f32.mrb[3].mxu0  ;;  %v2204_v46 = vld [vmem:[#allocation2 + $0xd8] sm:$0x1] }
 0x105   : > { %4857 = vmatprep.mubr.bf16.mxu1 %v5826_v48  ;;  %v1453_v62 = vrot.slane %v1451_v54, 5  ;;  %v1459_v63 = vrot.slane %v1457_v55, 5  ;;  %v2425_v1 = vshll.u32 %v2200_v50, 16  ;;  %v2404_v3 = vsel %vm7066_vm7, %v2399_v56, %v2403_v37  ;;  %v6796_v55 = vld [vmem:[#allocation2 + $0xbc] sm:$0xff]  }
 0x106   : > { %v2409_v4 = vrot.slane %v2408_v57, 4  ;;  %v1463_v5 = vrot.slane %v1461_v58, 4  ;;  %v2418_v9 = vrot.slane %v2416_v60, 4  ;;  %v2421_v13 = vrot.slane %v2419_v0, 5 }
 0x107   : > { %v1454_v12 = vor.u32 %v1453_v62, %v1450_v53  ;;  %v2427_v14 = vrot.slane %v2425_v1, 5  ;;  %v2429_v15 = vshrl.u32 %v2200_v50, 16  ;;  %v2435_v20 = vshll.u32 %v2201_v59, 16  ;;  %v2692_v59 = vld [vmem:[#allocation2 + $0x44] sm:$0xf] }
 0x108   : > { %v2414_v17 = vsel %vm7066_vm7, %v2409_v4, %v2413_v52  ;;  %v1464_v18 = vor.u32 %v1463_v5, %v1459_v63  ;;  %v2737_v21 = vshrl.u32 %v2688_v2, 16  ;;  %v1083_v23 = vld [vmem:[#allocation2 + $0x13c] sm:$0x1]  ;;  %v2422_v25 = vor.u32 %v2421_v13, %v2418_v9  ;;  %v2691_v52 = vld [vmem:[#allocation2 + $0x40] sm:$0x8] }
 0x109   : > { %v5850_v22 = vcombine.low %v2404_v3, %v2414_v17  ;;  %v1455_v24 = vrot.slane %v1454_v12, 4  ;;  %v2431_v26 = vrot.slane %v2429_v15, 4  ;;  %v1467_v29 = vshll.u32 %v1083_v23, 16  ;;  %v2693_v2 = vld [vmem:[#allocation2 + $0x48] sm:$0xf] }
 0x10a   : > { %v1465_v28 = vrot.slane %v1464_v18, 4  ;;  %v2437_v32 = vrot.slane %v2435_v20, 5  ;;  %v5859_v33 = vrot.slane %v2737_v21, 11  ;;  %v2423_v36 = vrot.slane %v2422_v25, 4 }
 0x10b   : > { %4954 = vmatprep.mubr.bf16.mxu0 %v5850_v22  ;;  %v1460_v35 = vsel %vm7066_vm7, %v1455_v24, %v1459_v63  ;;  %v2432_v37 = vor.u32 %v2431_v26, %v2427_v14  ;;  %v2742_v39 = vshrl.u32 %v2689_v10, 16  ;;  %v1469_v41 = vrot.slane %v1467_v29, 5  ;;  %v2205_v22 = vld [vmem:[#allocation2 + $0xe4] sm:$0xf] }
 0x10c   : > { %4955 = vmatmul.mubr.bf16.gmra.mrb[76].mxu0 %v6794_v8  ;;  %v2745_v43 = vshll.u32 %v2689_v10, 16  ;;  %v2751_v44 = vshrl.u32 %v2690_v27, 16  ;;  %v2754_v45 = vshll.u32 %v2690_v27, 16  ;;  %v2428_v48 = vsel %vm7066_vm7, %v2423_v36, %v2427_v14  ;;  %v2206_v27 = vld [vmem:[#allocation2 + $0xe8] sm:$0xf] }
 0x10d   : > { %v2433_v38 = vrot.slane %v2432_v37, 4  ;;  %v2744_v49 = vrot.slane %v2742_v39, 7  ;;  %v2440_v50 = vshrl.u32 %v2202_v34, 16  ;;  %v1470_v54 = vsel %vm7066_vm7, %v1465_v28, %v1469_v41  ;;  %v2207_v36 = vld [vmem:[#allocation2 + $0xec] sm:$0x1] }
 0x10e   : > { %v7376_v19 = vpop.f32.mrb[0].mxu1  ;;  %v2753_v56 = vrot.slane %v2751_v44, 7  ;;  %v2443_v57 = vshll.u32 %v2202_v34, 16  ;;  %v2449_v58 = vshll.u32 %v2203_v40, 16  ;;  %v5794_v62 = vcombine.low %v1460_v35, %v1470_v54 }
 0x10f   : > { %v7390_v51 = vpop.f32.mrb[1].mxu1  ;;  %v2438_v63 = vsel %vm7066_vm7, %v2433_v38, %v2437_v32  ;;  %v2747_v0 = vor.u32 %v2745_v43, %v2744_v49  ;;  %v2749_v1 = vrot.slane %v2744_v49, 4  ;;  %v2442_v8 = vrot.slane %v2440_v50, 4  ;;  %v6798_v32 = vld [vmem:[#allocation2 + $0x44] sm:$0xff]   ;;  %v2695_v38 = vld [vmem:[#allocation2 + $0x58] sm:$0xf] }
 0x110   : > { %v7396_v11 = vpop.f32.mrb[2].mxu1  ;;  %v5851_v4 = vcombine.low %v2428_v48, %v2438_v63  ;;  %v2756_v5 = vor.u32 %v2754_v45, %v2753_v56  ;;  %v2445_v9 = vrot.slane %v2443_v57, 5  ;;  %4858 = vmatmul.mubr.bf16.gmra.mrb[76].mxu1 %v5794_v62  ;;  %v2451_v12 = vrot.slane %v2449_v58, 5  ;;  %v6799_v50 = vld [vmem:[#allocation2 + $0xd0] sm:$0xff]  }
 0x111   : > { %v7406_v53 = vpop.f32.mrb[3].mxu1  ;;  %v7410_v60 = vpop.f32.mrb[4].mxu0  ;;  %v2748_v10 = vsel %vm6927_vm2, %v5859_v33, %v2747_v0  ;;  %v2453_v13 = vshrl.u32 %v2203_v40, 16  ;;  %v2459_v14 = vshll.u32 %v2204_v46, 16  ;;  %5059 = vmatprep.mubr.bf16.mxu1 %v6795_v42  ;;  %v2759_v20 = vshrl.u32 %v2691_v52, 16 }
 0x112   : > { %v7418_v15 = vpop.f32.mrb[5].mxu0  ;;  %4962 = vmatprep.mubr.bf16.mxu0 %v5851_v4  ;;  %v2757_v17 = vsel %vm6927_vm2, %v2749_v1, %v2756_v5  ;;  %v2446_v18 = vor.u32 %v2445_v9, %v2442_v8  ;;  %v2764_v21 = vshrl.u32 %v2692_v59, 16  ;;  %v2767_v26 = vshll.u32 %v2692_v59, 16  ;;  %v2694_v42 = vld [vmem:[#allocation2 + $0x54] sm:$0x8] }
 0x113   : > { %v5875_v23 = vcombine.low %v2748_v10, %v2757_v17  ;;  %v2455_v24 = vrot.slane %v2453_v13, 4  ;;  %v2461_v25 = vrot.slane %v2459_v14, 5  ;;  %v5860_v33 = vrot.slane %v2759_v20, 11  ;;  %v7424_v43 = vpop.f32.mrb[6].mxu0  ;;  %v2696_v1 = vld [vmem:[#allocation2 + $0x5c] sm:$0xf] }
 0x114   : > { %4963 = vmatmul.mubr.bf16.gmra.mrb[80].mxu0 %v6796_v55  ;;  %v2447_v29 = vrot.slane %v2446_v18, 4  ;;  %v2766_v34 = vrot.slane %v2764_v21, 7  ;;  %v2773_v35 = vshrl.u32 %v2693_v2, 16  ;;  %v2776_v39 = vshll.u32 %v2693_v2, 16  ;;  %v2208_v4 = vld [vmem:[#allocation2 + $0xf8] sm:$0xf] }
 0x115   : > { %v2456_v37 = vor.u32 %v2455_v24, %v2451_v12  ;;  %v2464_v40 = vshrl.u32 %v2205_v22, 16  ;;  %v2467_v41 = vshll.u32 %v2205_v22, 16  ;;  %v2473_v55 = vshll.u32 %v2206_v27, 16  ;;  %v6800_v22 = vld [vmem:[#allocation2 + $0x58] sm:$0xff]  }
 0x116   : > { %v7414_v3 = vpop.f32.mrb[4].mxu1  ;;  %v2452_v44 = vsel %vm7066_vm7, %v2447_v29, %v2451_v12  ;;  %v2769_v45 = vor.u32 %v2767_v26, %v2766_v34  ;;  %v2771_v46 = vrot.slane %v2766_v34, 4  ;;  %v2775_v48 = vrot.slane %v2773_v35, 7  ;;  %v2209_v12 = vld [vmem:[#allocation2 + $0xfc] sm:$0xf] }
 0x117   : > { %v7422_v28 = vpop.f32.mrb[5].mxu1  ;;  %v2457_v49 = vrot.slane %v2456_v37, 4  ;;  %v2466_v52 = vrot.slane %v2464_v40, 4  ;;  %v2469_v54 = vrot.slane %v2467_v41, 5  ;;  %v2477_v58 = vshrl.u32 %v2206_v27, 16  ;;  %v7436_v27 = vpop.f32.mrb[7].mxu0 }
 0x118   : > { %v2770_v56 = vsel %vm6927_vm2, %v5860_v33, %v2769_v45  ;;  %v2778_v57 = vor.u32 %v2776_v39, %v2775_v48  ;;  %v2483_v59 = vshll.u32 %v2207_v36, 16  ;;  %5060 = vmatmul.mubr.bf16.vlgmr.msra.gmra.mrb[80].mxu1 %v5875_v23  ;;  %v2475_v0 = vrot.slane %v2473_v55, 5  ;;  %v7434_v20 = vpop.f32.mrb[6].mxu1  ;;  %v2210_v26 = vld [vmem:[#allocation2 + $0x100] sm:$0x1] }
 0x119   : > { %v2462_v62 = vsel %vm7066_vm7, %v2457_v49, %v2461_v25  ;;  %v2470_v63 = vor.u32 %v2469_v54, %v2466_v52  ;;  %v2781_v2 = vshrl.u32 %v2694_v42, 16  ;;  %5067 = vmatprep.mubr.bf16.mxu1 %v6798_v32  ;;  %v2479_v9 = vrot.slane %v2477_v58, 4  ;;  %v2697_v35 = vld [vmem:[#allocation2 + $0x68] sm:$0x8]  ;;  %v7440_v36 = vpop.f32.mrb[7].mxu1 }
 0x11a   : > { %v5852_v5 = vcombine.low %v2452_v44, %v2462_v62  ;;  %v2779_v8 = vsel %vm6927_vm2, %v2771_v46, %v2778_v57  ;;  %v2485_v10 = vrot.slane %v2483_v59, 5  ;;  %v2786_v18 = vshrl.u32 %v2695_v38, 16  ;;  %v2698_v42 = vld [vmem:[#allocation2 + $0x6c] sm:$0xf]  ;;  %v6801_v44 = vld [vmem:[#allocation2 + $0xe4] sm:$0xff]   ;;  %v7442_v49 = vpop.f32.mrb[8].mxu0 }
 0x11b   : > { %v5876_v13 = vcombine.low %v2770_v56, %v2779_v8  ;;  %v2471_v14 = vrot.slane %v2470_v63, 4  ;;  %v5861_v17 = vrot.slane %v2781_v2, 11  ;;  %v2480_v21 = vor.u32 %v2479_v9, %v2475_v0  ;;  %v2699_v62 = vld [vmem:[#allocation2 + $0x70] sm:$0xf] }
 0x11c   : > { %4970 = vmatprep.mubr.bf16.mxu0 %v5852_v5  ;;  %v2789_v23 = vshll.u32 %v2695_v38, 16  ;;  %v2795_v24 = vshrl.u32 %v2696_v1, 16  ;;  %v2798_v25 = vshll.u32 %v2696_v1, 16  ;;  %v2788_v32 = vrot.slane %v2786_v18, 7  ;;  %v2211_v5 = vld [vmem:[#allocation2 + $0x10c] sm:$0xf] }
 0x11d   : > { %4971 = vmatmul.mubr.bf16.gmra.mrb[84].mxu0 %v6799_v50  ;;  %v2476_v29 = vsel %vm7066_vm7, %v2471_v14, %v2475_v0  ;;  %v2488_v33 = vshrl.u32 %v2208_v4, 16  ;;  %v2491_v34 = vshll.u32 %v2208_v4, 16  ;;  %v2481_v37 = vrot.slane %v2480_v21, 4  ;;  %v2212_v8 = vld [vmem:[#allocation2 + $0x110] sm:$0xf] }
 0x11e   : > { %v2797_v39 = vrot.slane %v2795_v24, 7  ;;  %v2497_v40 = vshll.u32 %v2209_v12, 16  ;;  %v2501_v41 = vshrl.u32 %v2209_v12, 16  ;;  %v2791_v45 = vor.u32 %v2789_v23, %v2788_v32  ;;  %v7448_v63 = vpop.f32.mrb[8].mxu1  ;;  %v2213_v14 = vld [vmem:[#allocation2 + $0x114] sm:$0x1] }
 0x11f   : > { %v2793_v46 = vrot.slane %v2788_v32, 4  ;;  %v2490_v48 = vrot.slane %v2488_v33, 4  ;;  %v2493_v38 = vrot.slane %v2491_v34, 5  ;;  %v2486_v50 = vsel %vm7066_vm7, %v2481_v37, %v2485_v10  ;;  %v6803_v21 = vld [vmem:[#allocation2 + $0x6c] sm:$0xff]   ;;  %v2701_v34 = vld [vmem:[#allocation2 + $0x80] sm:$0xf] }
 0x120   : > { %v2800_v52 = vor.u32 %v2798_v25, %v2797_v39  ;;  %v2499_v54 = vrot.slane %v2497_v40, 5  ;;  %v2503_v55 = vrot.slane %v2501_v41, 4  ;;  %5068 = vmatmul.mubr.bf16.gmra.mrb[84].mxu1 %v5876_v13  ;;  %v5853_v56 = vcombine.low %v2476_v29, %v2486_v50  ;;  %v2700_v25 = vld [vmem:[#allocation2 + $0x7c] sm:$0x8] }
 0x121   : > { %v2792_v57 = vsel %vm6927_vm2, %v5861_v17, %v2791_v45  ;;  %v2494_v58 = vor.u32 %v2493_v38, %v2490_v48  ;;  %v2507_v59 = vshll.u32 %v2210_v26, 16  ;;  %5075 = vmatprep.mubr.bf16.mxu1 %v6800_v22  ;;  %v2803_v2 = vshrl.u32 %v2697_v35, 16  ;;  %v7452_v17 = vpop.f32.mrb[9].mxu0  ;;  %v7456_v35 = vpop.f32.mrb[9].mxu1  ;;  %v6804_v45 = vld [vmem:[#allocation2 + $0xf8] sm:$0xff]  }
 0x122   : > { %v2801_v0 = vsel %vm6927_vm2, %v2793_v46, %v2800_v52  ;;  %v2504_v1 = vor.u32 %v2503_v55, %v2499_v54  ;;  %v2808_v4 = vshrl.u32 %v2698_v42, 16  ;;  %4978 = vmatprep.mubr.bf16.mxu0 %v5853_v56  ;;  %v2811_v13 = vshll.u32 %v2698_v42, 16  ;;  %v2702_v38 = vld [vmem:[#allocation2 + $0x84] sm:$0xf]  ;;  %v7460_v50 = vpop.f32.mrb[10].mxu0 }
 0x123   : > { %v5877_v9 = vcombine.low %v2792_v57, %v2801_v0  ;;  %v2495_v10 = vrot.slane %v2494_v58, 4  ;;  %v2509_v12 = vrot.slane %v2507_v59, 5  ;;  %v5862_v23 = vrot.slane %v2803_v2, 11  ;;  %v2214_v57 = vld [vmem:[#allocation2 + $0x120] sm:$0xf]  ;;  %v7464_v2 = vpop.f32.mrb[10].mxu1 }
 0x124   : > { %v2505_v18 = vrot.slane %v2504_v1, 4  ;;  %v2810_v22 = vrot.slane %v2808_v4, 7  ;;  %v2817_v24 = vshrl.u32 %v2699_v62, 16  ;;  %v2820_v29 = vshll.u32 %v2699_v62, 16  ;;  %v2215_v1 = vld [vmem:[#allocation2 + $0x124] sm:$0xf] }
 0x125   : > { %4979 = vmatmul.mubr.bf16.gmra.mrb[88].mxu0 %v6801_v44  ;;  %v2500_v26 = vsel %vm7066_vm7, %v2495_v10, %v2499_v54  ;;  %v2512_v32 = vshrl.u32 %v2211_v5, 16  ;;  %v2515_v33 = vshll.u32 %v2211_v5, 16  ;;  %v2521_v44 = vshll.u32 %v2212_v8, 16 }
 0x126   : > { %v2510_v37 = vsel %vm7066_vm7, %v2505_v18, %v2509_v12  ;;  %v2813_v39 = vor.u32 %v2811_v13, %v2810_v22  ;;  %v2815_v40 = vrot.slane %v2810_v22, 4  ;;  %v2819_v41 = vrot.slane %v2817_v24, 7  ;;  %v2216_v13 = vld [vmem:[#allocation2 + $0x128] sm:$0x1]  ;;  %v7470_v22 = vpop.f32.mrb[11].mxu1 }
 0x127   : > { %v5854_v42 = vcombine.low %v2500_v26, %v2510_v37  ;;  %v2514_v46 = vrot.slane %v2512_v32, 4  ;;  %v2517_v48 = vrot.slane %v2515_v33, 5  ;;  %v2525_v55 = vshrl.u32 %v2212_v8, 16  ;;  %v7468_v8 = vpop.f32.mrb[11].mxu0 }
 0x128   : > { %v2814_v52 = vsel %vm6927_vm2, %v5862_v23, %v2813_v39  ;;  %v2822_v54 = vor.u32 %v2820_v29, %v2819_v41  ;;  %v2531_v56 = vshll.u32 %v2213_v14, 16  ;;  %5076 = vmatmul.mubr.bf16.gmra.mrb[88].mxu1 %v5877_v9  ;;  %v2523_v59 = vrot.slane %v2521_v44, 5  ;;  %v7472_v32 = vpop.f32.mrb[12].mxu0  ;;  %v2704_v41 = vld [vmem:[#allocation2 + $0x94] sm:$0xf] }
 0x129   : > { %4986 = vmatprep.mubr.bf16.mxu0 %v5854_v42  ;;  %v2518_v58 = vor.u32 %v2517_v48, %v2514_v46  ;;  %v2825_v62 = vshrl.u32 %v2700_v25, 16  ;;  %v2830_v0 = vshrl.u32 %v2701_v34, 16  ;;  %5083 = vmatprep.mubr.bf16.mxu1 %v6803_v21  ;;  %v2527_v5 = vrot.slane %v2525_v55, 4  ;;  %v6805_v25 = vld [vmem:[#allocation2 + $0x80] sm:$0xff]  }
 0x12a   : > { %v2823_v4 = vsel %vm6927_vm2, %v2815_v40, %v2822_v54  ;;  %v2533_v10 = vrot.slane %v2531_v56, 5  ;;  %v2833_v12 = vshll.u32 %v2701_v34, 16  ;;  %v2839_v26 = vshrl.u32 %v2702_v38, 16  ;;  %v2703_v40 = vld [vmem:[#allocation2 + $0x90] sm:$0x8] }
 0x12b   : > { %v5878_v14 = vcombine.low %v2814_v52, %v2823_v4  ;;  %v2519_v9 = vrot.slane %v2518_v58, 4  ;;  %v5863_v18 = vrot.slane %v2825_v62, 11  ;;  %v2832_v23 = vrot.slane %v2830_v0, 7  ;;  %v2705_v52 = vld [vmem:[#allocation2 + $0x98] sm:$0xf]  ;;  %v6806_v54 = vld [vmem:[#allocation2 + $0x10c] sm:$0xff]  }
 0x12c   : > { %v2528_v24 = vor.u32 %v2527_v5, %v2523_v59  ;;  %v2842_v29 = vshll.u32 %v2702_v38, 16  ;;  %v2536_v21 = vshrl.u32 %v2214_v57, 16  ;;  %v2539_v39 = vshll.u32 %v2214_v57, 16  ;;  %v7478_v58 = vpop.f32.mrb[12].mxu1 }
 0x12d   : > { %4987 = vmatmul.mubr.bf16.gmra.mrb[92].mxu0 %v6804_v45  ;;  %v2524_v33 = vsel %vm7066_vm7, %v2519_v9, %v2523_v59  ;;  %v2835_v34 = vor.u32 %v2833_v12, %v2832_v23  ;;  %v2837_v37 = vrot.slane %v2832_v23, 4  ;;  %v2841_v46 = vrot.slane %v2839_v26, 7  ;;  %v2217_v23 = vld [vmem:[#allocation2 + $0x134] sm:$0xf]  ;;  %v2218_v26 = vld [vmem:[#allocation2 + $0x138] sm:$0xf] }
 0x12e   : > { %v2529_v42 = vrot.slane %v2528_v24, 4  ;;  %v2538_v48 = vrot.slane %v2536_v21, 4  ;;  %v2545_v44 = vshll.u32 %v2215_v1, 16  ;;  %v2541_v55 = vrot.slane %v2539_v39, 5  ;;  %v7484_v21 = vpop.f32.mrb[13].mxu0  ;;  %v6808_v39 = vld [vmem:[#allocation2 + $0x94] sm:$0xff]  }
 0x12f   : > { %v2836_v38 = vsel %vm6927_vm2, %v5863_v18, %v2835_v34  ;;  %v2549_v56 = vshrl.u32 %v2215_v1, 16  ;;  %v2555_v45 = vshll.u32 %v2216_v13, 16  ;;  %v2844_v57 = vor.u32 %v2842_v29, %v2841_v46 }
 0x130   : > { %v2534_v59 = vsel %vm7066_vm7, %v2529_v42, %v2533_v10  ;;  %v2547_v62 = vrot.slane %v2545_v44, 5  ;;  %v2847_v0 = vshrl.u32 %v2703_v40, 16  ;;  %5084 = vmatmul.mubr.bf16.gmra.mrb[92].mxu1 %v5878_v14  ;;  %v2542_v5 = vor.u32 %v2541_v55, %v2538_v48  ;;  %v2706_v55 = vld [vmem:[#allocation2 + $0xa4] sm:$0x8] }
 0x131   : > { %v5855_v4 = vcombine.low %v2524_v33, %v2534_v59  ;;  %v2551_v12 = vrot.slane %v2549_v56, 4  ;;  %v2557_v9 = vrot.slane %v2555_v45, 5  ;;  %5091 = vmatprep.mubr.bf16.mxu1 %v6805_v25  ;;  %v2845_v18 = vsel %vm6927_vm2, %v2837_v37, %v2844_v57  ;;  %v2219_v33 = vld [vmem:[#allocation2 + $0x13c] sm:$0x1]  ;;  %v7488_v56 = vpop.f32.mrb[13].mxu1 }
 0x132   : > { %v5864_v1 = vrot.slane %v2847_v0, 11  ;;  %v2852_v13 = vshrl.u32 %v2704_v41, 16  ;;  %v2855_v24 = vshll.u32 %v2704_v41, 16  ;;  %v5879_v10 = vcombine.low %v2836_v38, %v2845_v18  ;;  %v2707_v0 = vld [vmem:[#allocation2 + $0xa8] sm:$0xf] }
 0x133   : > { %4994 = vmatprep.mubr.bf16.mxu0 %v5855_v4  ;;  %v2543_v29 = vrot.slane %v2542_v5, 4  ;;  %v2552_v34 = vor.u32 %v2551_v12, %v2547_v62  ;;  %v2861_v14 = vshrl.u32 %v2705_v52, 16  ;;  %v2864_v42 = vshll.u32 %v2705_v52, 16  ;;  %v7490_v4 = vpop.f32.mrb[14].mxu0 }
 0x134   : > { %v2854_v40 = vrot.slane %v2852_v13, 7  ;;  %v2560_v46 = vshrl.u32 %v2217_v23, 16  ;;  %v2563_v25 = vshll.u32 %v2217_v23, 16  ;;  %v2569_v44 = vshll.u32 %v2218_v26, 16 }
 0x135   : > { %4995 = vmatmul.mubr.bf16.gmra.mrb[96].mxu0 %v6806_v54  ;;  %v2548_v37 = vsel %vm7066_vm7, %v2543_v29, %v2547_v62  ;;  %v2553_v48 = vrot.slane %v2552_v34, 4  ;;  %v2863_v41 = vrot.slane %v2861_v14, 7  ;;  %v2573_v12 = vshrl.u32 %v2218_v26, 16  ;;  %v2708_v29 = vld [vmem:[#allocation2 + $0xac] sm:$0xf]  ;;  %v6809_v34 = vld [vmem:[#allocation2 + $0x120] sm:$0xff]  }
 0x136   : > { %v2857_v38 = vor.u32 %v2855_v24, %v2854_v40  ;;  %v2859_v45 = vrot.slane %v2854_v40, 4  ;;  %v2562_v59 = vrot.slane %v2560_v46, 4  ;;  %v2565_v57 = vrot.slane %v2563_v25, 5  ;;  %v7496_v24 = vpop.f32.mrb[14].mxu1 }
 0x137   : > { %v2558_v52 = vsel %vm7066_vm7, %v2553_v48, %v2557_v9  ;;  %v2866_v54 = vor.u32 %v2864_v42, %v2863_v41  ;;  %v2571_v5 = vrot.slane %v2569_v44, 5  ;;  %v2579_v13 = vshll.u32 %v2219_v33, 16  ;;  %v7500_v42 = vpop.f32.mrb[15].mxu0  ;;  %v335_v33 = vld [vmem:[#allocation2 + $0x150] sm:$0x1]  ;;  %v7502_v48 = vpop.f32.mrb[15].mxu1 }
 0x138   : > { %v5856_v62 = vcombine.low %v2548_v37, %v2558_v52  ;;  %v2858_v23 = vsel %vm6927_vm2, %v5864_v1, %v2857_v38  ;;  %v2566_v18 = vor.u32 %v2565_v57, %v2562_v59  ;;  %5092 = vmatmul.mubr.bf16.gmra.mrb[96].mxu1 %v5879_v10  ;;  %v2575_v40 = vrot.slane %v2573_v12, 4  ;;  %v2220_v59 = vld [vmem:[#allocation2 + $0x148] sm:$0xf] }
 0x139   : > { %v2867_v14 = vsel %vm6927_vm2, %v2859_v45, %v2866_v54  ;;  %v2869_v46 = vshrl.u32 %v2706_v55, 16  ;;  %v2874_v9 = vshrl.u32 %v2707_v0, 16  ;;  %5099 = vmatprep.mubr.bf16.mxu1 %v6808_v39  ;;  %v2581_v1 = vrot.slane %v2579_v13, 5  ;;  %v7504_v45 = vpop.f32.mrb[16].mxu0  ;;  %v6810_v57 = vld [vmem:[#allocation2 + $0xa8] sm:$0xff]   ;;  %v7516_v54 = vpop.f32.mrb[16].mxu1 }
 0x13a   : > { %5002 = vmatprep.mubr.bf16.mxu0 %v5856_v62  ;;  %v5880_v26 = vcombine.low %v2858_v23, %v2867_v14  ;;  %v2567_v25 = vrot.slane %v2566_v18, 4  ;;  %v2877_v37 = vshll.u32 %v2707_v0, 16  ;;  %v2576_v41 = vor.u32 %v2575_v40, %v2571_v5  ;;  %v2221_v13 = vld [vmem:[#allocation2 + $0x14c] sm:$0xf]  ;;  %v7518_v14 = vpop.f32.mrb[17].mxu0 }
 0x13b   : > { %v5865_v10 = vrot.slane %v2869_v46, 11  ;;  %v2876_v44 = vrot.slane %v2874_v9, 7  ;;  %v2883_v38 = vshrl.u32 %v2708_v29, 16  ;;  %v2886_v52 = vshll.u32 %v2708_v29, 16  ;;  %v2710_v29 = vld [vmem:[#allocation2 + $0xbc] sm:$0xf] }
 0x13c   : > { %v2572_v55 = vsel %vm7066_vm7, %v2567_v25, %v2571_v5  ;;  %v7510_v39 = vadd.f32 %v7380_v31, %v7372_v7  ;;  %v7514_v0 = vadd.f32 %v7390_v51, %v7376_v19  ;;  %v2577_v12 = vrot.slane %v2576_v41, 4  ;;  %v2709_v51 = vld [vmem:[#allocation2 + $0xb8] sm:$0x8] }
 0x13d   : > { %5003 = vmatmul.mubr.bf16.gmra.mrb[100].mxu0 %v6809_v34  ;;  %v2879_v62 = vor.u32 %v2877_v37, %v2876_v44  ;;  %v2881_v23 = vrot.slane %v2876_v44, 4  ;;  %v2885_v18 = vrot.slane %v2883_v38, 7  ;;  %v7522_v5 = vadd.f32 %v7398_v16, %v7392_v61  ;;  %v7534_v16 = vpop.f32.mrb[17].mxu1  ;;  %v2711_v37 = vld [vmem:[#allocation2 + $0xc0] sm:$0xf]  ;;  %v6811_v41 = vld [vmem:[#allocation2 + $0x134] sm:$0xff]  }
 0x13e   : > { %8320 = vst [vmem:[#allocation5_spill] sm:$0xff] %v7514_v0  ;;  %v7526_v7 = vadd.f32 %v7406_v53, %v7396_v11  ;;  %v336_v19 = vsel %vm7042_vm6, 0, %v335_v33  ;;  %v2584_v31 = vshrl.u32 %v2220_v59, 16  ;;  %v2582_v34 = vsel %vm7066_vm7, %v2577_v12, %v2581_v1  ;;  %v7536_v33 = vpop.f32.mrb[18].mxu0 }
 0x13f   : > { %v2880_v40 = vsel %vm6927_vm2, %v5865_v10, %v2879_v62  ;;  %v2888_v46 = vor.u32 %v2886_v52, %v2885_v18  ;;  %337 = vst [vmem:[#allocation2 + $0x150] sm:$0x1] %v336_v19  ;;  %v2587_v61 = vshll.u32 %v2220_v59, 16  ;;  %v5857_v9 = vcombine.low %v2572_v55, %v2582_v34  ;;  %v7540_v52 = vpop.f32.mrb[18].mxu1  ;;  %v3312_v18 = vld [vmem:[#allocation2 + $0x30] sm:$0xf] }
 0x140   : > { %8321 = vst [vmem:[#allocation6_spill] sm:$0xff] %v7526_v7  ;;  %v2586_v11 = vrot.slane %v2584_v31, 4  ;;  %v2593_v53 = vshll.u32 %v2221_v13, 16  ;;  %v2597_v25 = vshrl.u32 %v2221_v13, 16  ;;  %5100 = vmatmul.mubr.bf16.gmra.mrb[100].mxu1 %v5880_v26  ;;  %v2891_v38 = vshrl.u32 %v2709_v51, 16  ;;  %v7542_v13 = vpop.f32.mrb[19].mxu0 }
 0x141   : > { %v2889_v1 = vsel %vm6927_vm2, %v2881_v23, %v2888_v46  ;;  %v2589_v44 = vrot.slane %v2587_v61, 5  ;;  %v2896_v10 = vshrl.u32 %v2710_v29, 16  ;;  %5010 = vmatprep.mubr.bf16.mxu0 %v5857_v9  ;;  %5107 = vmatprep.mubr.bf16.mxu1 %v6810_v57  ;;  %v2899_v62 = vshll.u32 %v2710_v29, 16  ;;  %v3313_v7 = vld [vmem:[#allocation2 + $0x34] sm:$0xf]  ;;  %v7544_v23 = vpop.f32.mrb[19].mxu1 }
 0x142   : > { %v5881_v59 = vcombine.low %v2880_v40, %v2889_v1  ;;  %v2595_v55 = vrot.slane %v2593_v53, 5  ;;  %v2599_v12 = vrot.slane %v2597_v25, 4  ;;  %v5866_v26 = vrot.slane %v2891_v38, 11  ;;  %v6813_v46 = vld [vmem:[#allocation2 + $0xbc] sm:$0xff]   ;;  %v7554_v40 = vpop.f32.mrb[20].mxu0 }
 0x143   : > { %v2590_v19 = vor.u32 %v2589_v44, %v2586_v11  ;;  %v2898_v31 = vrot.slane %v2896_v10, 7  ;;  %v2905_v34 = vshrl.u32 %v2711_v37, 16  ;;  %v2908_v61 = vshll.u32 %v2711_v37, 16  ;;  %v3314_v1 = vld [vmem:[#allocation2 + $0x38] sm:$0x1]  ;;  %v7556_v44 = vpop.f32.mrb[20].mxu1 }
 0x144   : > { %v2600_v51 = vor.u32 %v2599_v12, %v2595_v55  ;;  %v7548_v57 = vadd.f32 %v7418_v15, %v7410_v60  ;;  %v7552_v29 = vadd.f32 %v7422_v28, %v7414_v3  ;;  %v7560_v60 = vadd.f32 %v7436_v27, %v7424_v43  ;;  %v2712_v28 = vld [vmem:[#allocation2 + $0xcc] sm:$0x8] }
 0x145   : > { %5011 = vmatmul.mubr.bf16.gmra.mrb[104].mxu0 %v6811_v41  ;;  %v2591_v9 = vrot.slane %v2590_v19, 4  ;;  %v2901_v11 = vor.u32 %v2899_v62, %v2898_v31  ;;  %v2903_v53 = vrot.slane %v2898_v31, 4  ;;  %v2907_v25 = vrot.slane %v2905_v34, 7  ;;  %v7570_v19 = vpop.f32.mrb[21].mxu0 }
 0x146   : > { %8322 = vst [vmem:[#allocation7_spill] sm:$0xff] %v7548_v57  ;;  %8323 = vst [vmem:[#allocation8_spill] sm:$0xff] %v7552_v29  ;;  %v2222_v38 = vld [vmem:[#allocation2 + $0x150] sm:$0x1]  ;;  %v2601_v37 = vrot.slane %v2600_v51, 4  ;;  %v7564_v3 = vadd.f32 %v7440_v36, %v7434_v20  ;;  %v3361_v15 = vshrl.u32 %v3312_v18, 16 }
 0x147   : > { %8324 = vst [vmem:[#allocation9_spill] sm:$0xff] %v7560_v60  ;;  %v2596_v41 = vsel %vm7066_vm7, %v2591_v9, %v2595_v55  ;;  %v2603_v10 = vshll.u32 %v2222_v38, 16  ;;  %v2902_v12 = vsel %vm6927_vm2, %v5866_v26, %v2901_v11  ;;  %v2910_v62 = vor.u32 %v2908_v61, %v2907_v25  ;;  %v2713_v51 = vld [vmem:[#allocation2 + $0xd0] sm:$0xf]  ;;  %v6814_v36 = vld [vmem:[#allocation2 + $0x148] sm:$0xff]   ;;  %v7574_v38 = vpop.f32.mrb[21].mxu1 }
 0x148   : > { %8325 = vst [vmem:[#allocation10_spill] sm:$0xff] %v7564_v3  ;;  %v3363_v31 = vrot.slane %v3361_v15, 4  ;;  %v3364_v34 = vshll.u32 %v3312_v18, 16  ;;  %v3370_v43 = vshll.u32 %v3313_v7, 16  ;;  %v3374_v27 = vshrl.u32 %v3313_v7, 16  ;;  %5108 = vmatmul.mubr.bf16.gmra.mrb[104].mxu1 %v5881_v59  ;;  %v7576_v15 = vpop.f32.mrb[22].mxu0 }
 0x149   : > { %v2605_v20 = vrot.slane %v2603_v10, 5  ;;  %v2911_v3 = vsel %vm6927_vm2, %v2903_v53, %v2910_v62  ;;  %v3380_v29 = vshll.u32 %v3314_v1, 16  ;;  %v2714_v55 = vld [vmem:[#allocation2 + $0xd4] sm:$0xf]  ;;  %v2913_v9 = vshrl.u32 %v2712_v28, 16  ;;  %5115 = vmatprep.mubr.bf16.mxu1 %v6813_v46  ;;  %8326 = vst [vmem:[#allocation11_spill] sm:$0xff] %v7576_v15 }
 0x14a   : > { %v5882_v26 = vcombine.low %v2902_v12, %v2911_v3  ;;  %v3366_v61 = vrot.slane %v3364_v34, 5  ;;  %v3372_v11 = vrot.slane %v3370_v43, 5  ;;  %v3376_v25 = vrot.slane %v3374_v27, 4  ;;  %v3315_v18 = vld [vmem:[#allocation2 + $0x44] sm:$0xf]  ;;  %v7580_v1 = vpop.f32.mrb[22].mxu1 }
 0x14b   : > { %v2606_v7 = vsel %vm7066_vm7, %v2601_v37, %v2605_v20  ;;  %v3382_v59 = vrot.slane %v3380_v29, 5  ;;  %v5867_v10 = vrot.slane %v2913_v9, 11  ;;  %v2918_v0 = vshrl.u32 %v2713_v51, 16  ;;  %v3316_v53 = vld [vmem:[#allocation2 + $0x48] sm:$0xf]  ;;  %8327 = vst [vmem:[#allocation12_spill] sm:$0xff] %v7580_v1 }
 0x14c   : > { %v5858_v28 = vcombine.low %v2596_v41, %v2606_v7  ;;  %v3367_v62 = vor.u32 %v3366_v61, %v3363_v31  ;;  %v3377_v6 = vor.u32 %v3376_v25, %v3372_v11  ;;  %v2921_v46 = vshll.u32 %v2713_v51, 16  ;;  %v7582_v3 = vpop.f32.mrb[23].mxu0  ;;  %v6815_v60 = vld [vmem:[#allocation2 + $0xd0] sm:$0xff]   ;;  %v3317_v41 = vld [vmem:[#allocation2 + $0x4c] sm:$0x1]  ;;  %v7584_v61 = vpop.f32.mrb[23].mxu1 }
 0x14d   : > { %v2920_v12 = vrot.slane %v2918_v0, 7  ;;  %v2927_v34 = vshrl.u32 %v2714_v55, 16  ;;  %v2930_v43 = vshll.u32 %v2714_v55, 16  ;;  %v3385_v27 = vshrl.u32 %v3315_v18, 16 }
 0x14e   : > { %5018 = vmatprep.mubr.bf16.mxu0 %v5858_v28  ;;  %v3368_v57 = vrot.slane %v3367_v62, 4  ;;  %v3378_v37 = vrot.slane %v3377_v6, 4  ;;  %v3388_v29 = vshll.u32 %v3315_v18, 16  ;;  %v3394_v20 = vshll.u32 %v3316_v53, 16  ;;  %v3318_v28 = vld [vmem:[#allocation2 + $0x58] sm:$0xf] }
 0x14f   : > { %5019 = vmatmul.mubr.bf16.gmra.mrb[108].mxu0 %v6814_v36  ;;  %v2923_v9 = vor.u32 %v2921_v46, %v2920_v12  ;;  %v2925_v15 = vrot.slane %v2920_v12, 4  ;;  %v2929_v1 = vrot.slane %v2927_v34, 7  ;;  %v3387_v31 = vrot.slane %v3385_v27, 4 }
 0x150   : > { %v3373_v0 = vsel %vm7066_vm7, %v3368_v57, %v3372_v11  ;;  %v3383_v51 = vsel %vm7066_vm7, %v3378_v37, %v3382_v59  ;;  %v3390_v55 = vrot.slane %v3388_v29, 5  ;;  %v3396_v25 = vrot.slane %v3394_v20, 5  ;;  %5116 = vmatmul.mubr.bf16.gmra.mrb[108].mxu1 %v5882_v26  ;;  %v3319_v11 = vld [vmem:[#allocation2 + $0x5c] sm:$0xf]  ;;  %v3320_v26 = vld [vmem:[#allocation2 + $0x60] sm:$0x1] }
 0x151   : > { %v5907_v6 = vcombine.low %v3373_v0, %v3383_v51  ;;  %v2924_v36 = vsel %vm6927_vm2, %v5867_v10, %v2923_v9  ;;  %v2932_v18 = vor.u32 %v2930_v43, %v2929_v1  ;;  %v3398_v7 = vshrl.u32 %v3316_v53, 16  ;;  %5123 = vmatprep.mubr.bf16.mxu1 %v6815_v60  ;;  %v7600_v59 = vpop.f32.mrb[24].mxu0  ;;  %v6816_v43 = vld [vmem:[#allocation2 + $0xe4] sm:$0xff]  }
 0x152   : > { %v3391_v62 = vor.u32 %v3390_v55, %v3387_v31  ;;  %v3404_v46 = vshll.u32 %v3317_v41, 16  ;;  %v7594_v12 = vadd.f32 %v7452_v17, %v7442_v49  ;;  %v7598_v57 = vadd.f32 %v7456_v35, %v7448_v63  ;;  %v2715_v17 = vld [vmem:[#allocation2 + $0xe0] sm:$0x8]  ;;  %v7612_v63 = vpop.f32.mrb[24].mxu1  ;;  %v7614_v37 = vpop.f32.mrb[25].mxu0 }
 0x153   : > { %6646 = vmatprep.mubr.bf16.mxu0 %v5907_v6  ;;  %v2933_v10 = vsel %vm6927_vm2, %v2925_v15, %v2932_v18  ;;  %v3400_v53 = vrot.slane %v3398_v7, 4  ;;  %v7606_v60 = vadd.f32 %v7468_v8, %v7460_v50  ;;  %v7610_v49 = vadd.f32 %v7470_v22, %v7464_v2  ;;  %v2716_v50 = vld [vmem:[#allocation2 + $0xe4] sm:$0xf]  ;;  %v7616_v8 = vpop.f32.mrb[25].mxu1  ;;  %v2717_v31 = vld [vmem:[#allocation2 + $0xe8] sm:$0xf] }
 0x154   : > { %8328 = vst [vmem:[#allocation13_spill] sm:$0xff] %v7598_v57  ;;  %v5883_v35 = vcombine.low %v2924_v36, %v2933_v10  ;;  %v3392_v1 = vrot.slane %v3391_v62, 4  ;;  %v3406_v34 = vrot.slane %v3404_v46, 5  ;;  %v3409_v27 = vshrl.u32 %v3318_v28, 16  ;;  %v7620_v51 = vpop.f32.mrb[26].mxu0 }
 0x155   : > { %8329 = vst [vmem:[#allocation14_spill] sm:$0xff] %v7610_v49  ;;  %v3401_v15 = vor.u32 %v3400_v53, %v3396_v25  ;;  %v3412_v29 = vshll.u32 %v3318_v28, 16  ;;  %v3418_v20 = vshll.u32 %v3319_v11, 16  ;;  %v3422_v9 = vshrl.u32 %v3319_v11, 16  ;;  %v3321_v7 = vld [vmem:[#allocation2 + $0x6c] sm:$0xf] }
 0x156   : > { %v3397_v2 = vsel %vm7066_vm7, %v3392_v1, %v3396_v25  ;;  %v3411_v22 = vrot.slane %v3409_v27, 4  ;;  %v3428_v41 = vshll.u32 %v3320_v26, 16  ;;  %v2935_v0 = vshrl.u32 %v2715_v17, 16  ;;  %v3322_v1 = vld [vmem:[#allocation2 + $0x70] sm:$0xf]  ;;  %v7624_v17 = vpop.f32.mrb[26].mxu1 }
 0x157   : > { %v3402_v55 = vrot.slane %v3401_v15, 4  ;;  %v3414_v6 = vrot.slane %v3412_v29, 5  ;;  %v3420_v36 = vrot.slane %v3418_v20, 5  ;;  %v3424_v18 = vrot.slane %v3422_v9, 4  ;;  %v7626_v9 = vpop.f32.mrb[27].mxu0 }
 0x158   : > { %v3430_v28 = vrot.slane %v3428_v41, 5  ;;  %v5868_v62 = vrot.slane %v2935_v0, 11  ;;  %v2940_v46 = vshrl.u32 %v2716_v50, 16  ;;  %v2943_v11 = vshll.u32 %v2716_v50, 16  ;;  %5124 = vmatmul.mubr.bf16.gmra.mrb[112].mxu1 %v5883_v35 }
 0x159   : > { %v3407_v10 = vsel %vm7066_vm7, %v3402_v55, %v3406_v34  ;;  %v3415_v25 = vor.u32 %v3414_v6, %v3411_v22  ;;  %v3425_v53 = vor.u32 %v3424_v18, %v3420_v36  ;;  %v2949_v26 = vshrl.u32 %v2717_v31, 16  ;;  %5131 = vmatprep.mubr.bf16.mxu1 %v6816_v43  ;;  %v3323_v22 = vld [vmem:[#allocation2 + $0x74] sm:$0x1]  ;;  %v7628_v18 = vpop.f32.mrb[27].mxu1 }
 0x15a   : > { %v5908_v27 = vcombine.low %v3397_v2, %v3407_v10  ;;  %v2942_v15 = vrot.slane %v2940_v46, 7  ;;  %v2952_v29 = vshll.u32 %v2717_v31, 16  ;;  %v3433_v20 = vshrl.u32 %v3321_v7, 16 }
 0x15b   : > { %v3416_v41 = vrot.slane %v3415_v25, 4  ;;  %v3426_v0 = vrot.slane %v3425_v53, 4  ;;  %v2951_v50 = vrot.slane %v2949_v26, 7  ;;  %v3436_v35 = vshll.u32 %v3321_v7, 16  ;;  %v3324_v53 = vld [vmem:[#allocation2 + $0x80] sm:$0xf] }
 0x15c   : > { %6647 = vmatmul.mubr.bf16.vlgmr.msra.gmra.mrb[112].mxu0 %v5908_v27  ;;  %v2945_v49 = vor.u32 %v2943_v11, %v2942_v15  ;;  %v2947_v34 = vrot.slane %v2942_v15, 4  ;;  %v3435_v55 = vrot.slane %v3433_v20, 4  ;;  %v3442_v6 = vshll.u32 %v3322_v1, 16  ;;  %v6817_v20 = vld [vmem:[#allocation2 + $0xf8] sm:$0xff]  }
 0x15d   : > { %v3421_v43 = vsel %vm7066_vm7, %v3416_v41, %v3420_v36  ;;  %v3431_v2 = vsel %vm7066_vm7, %v3426_v0, %v3430_v28  ;;  %v2954_v31 = vor.u32 %v2952_v29, %v2951_v50  ;;  %v3438_v46 = vrot.slane %v3436_v35, 5  ;;  %v3325_v28 = vld [vmem:[#allocation2 + $0x84] sm:$0xf]  ;;  %v7642_v29 = vpop.f32.mrb[28].mxu0  ;;  %v2718_v50 = vld [vmem:[#allocation2 + $0xf4] sm:$0x8] }
 0x15e   : > { %v5909_v10 = vcombine.low %v3421_v43, %v3431_v2  ;;  %v2946_v7 = vsel %vm6927_vm2, %v5868_v62, %v2945_v49  ;;  %v3444_v25 = vrot.slane %v3442_v6, 5  ;;  %v3446_v11 = vshrl.u32 %v3322_v1, 16  ;;  %v3326_v1 = vld [vmem:[#allocation2 + $0x88] sm:$0x1]  ;;  %v7652_v35 = vpop.f32.mrb[28].mxu1  ;;  %v7658_v6 = vpop.f32.mrb[29].mxu0 }
 0x15f   : > { %v2955_v26 = vsel %vm6927_vm2, %v2947_v34, %v2954_v31  ;;  %v3439_v27 = vor.u32 %v3438_v46, %v3435_v55  ;;  %v3452_v15 = vshll.u32 %v3323_v22, 16  ;;  %v7640_v36 = vadd.f32 %v7484_v21, %v7472_v32  ;;  %v2719_v55 = vld [vmem:[#allocation2 + $0xf8] sm:$0xf]  ;;  %v7660_v2 = vpop.f32.mrb[29].mxu1 }
 0x160   : > { %6650 = vmatprep.mubr.bf16.mxu0 %v5909_v10  ;;  %v5884_v41 = vcombine.low %v2946_v7, %v2955_v26  ;;  %v3448_v0 = vrot.slane %v3446_v11, 4  ;;  %v7646_v49 = vadd.f32 %v7488_v56, %v7478_v58  ;;  %v7650_v62 = vadd.f32 %v7500_v42, %v7490_v4  ;;  %v2720_v42 = vld [vmem:[#allocation2 + $0xfc] sm:$0xf]  ;;  %v7664_v7 = vpop.f32.mrb[30].mxu0 }
 0x161   : > { %8330 = vst [vmem:[#allocation15_spill] sm:$0xff] %v7640_v36  ;;  %v3440_v32 = vrot.slane %v3439_v27, 4  ;;  %v3454_v21 = vrot.slane %v3452_v15, 5  ;;  %v7656_v34 = vadd.f32 %v7502_v48, %v7496_v24  ;;  %v3457_v22 = vshrl.u32 %v3324_v53, 16  ;;  %v3327_v48 = vld [vmem:[#allocation2 + $0x94] sm:$0xf] }
 0x162   : > { %8331 = vst [vmem:[#allocation16_spill] sm:$0xff] %v7646_v49  ;;  %8332 = vst [vmem:[#allocation17_spill] sm:$0xff] %v7650_v62  ;;  %5132 = vmatmul.mubr.bf16.gmra.mrb[116].mxu1 %v5884_v41  ;;  %v3449_v58 = vor.u32 %v3448_v0, %v3444_v25  ;;  %v3460_v56 = vshll.u32 %v3324_v53, 16  ;;  %v3466_v43 = vshll.u32 %v3325_v28, 16  ;;  %v3470_v4 = vshrl.u32 %v3325_v28, 16  ;;  %v7666_v41 = vpop.f32.mrb[30].mxu1 }
 0x163   : > { %8333 = vst [vmem:[#allocation18_spill] sm:$0xff] %v7656_v34  ;;  %v3445_v31 = vsel %vm7066_vm7, %v3440_v32, %v3444_v25  ;;  %5139 = vmatprep.mubr.bf16.mxu1 %v6817_v20  ;;  %v3459_v46 = vrot.slane %v3457_v22, 4  ;;  %v3476_v10 = vshll.u32 %v3326_v1, 16  ;;  %v2957_v24 = vshrl.u32 %v2718_v50, 16  ;;  %v3328_v53 = vld [vmem:[#allocation2 + $0x98] sm:$0xf] }
 0x164   : > { %v3450_v11 = vrot.slane %v3449_v58, 4  ;;  %v3462_v26 = vrot.slane %v3460_v56, 5  ;;  %v3468_v27 = vrot.slane %v3466_v43, 5  ;;  %v3472_v15 = vrot.slane %v3470_v4, 4  ;;  %8334 = vst [vmem:[#allocation19_spill] sm:$0xff] %v7666_v41  ;;  %v7668_v28 = vpop.f32.mrb[31].mxu0 }
 0x165   : > { %8335 = vst [vmem:[#allocation20_spill] sm:$0xff] %v7668_v28  ;;  %v3478_v0 = vrot.slane %v3476_v10, 5  ;;  %v5869_v34 = vrot.slane %v2957_v24, 11  ;;  %v2962_v49 = vshrl.u32 %v2719_v55, 16  ;;  %v2965_v25 = vshll.u32 %v2719_v55, 16  ;;  %v7670_v20 = vpop.f32.mrb[31].mxu1 }
 0x166   : > { %8336 = vst [vmem:[#allocation21_spill] sm:$0xff] %v7670_v20  ;;  %v3455_v1 = vsel %vm7066_vm7, %v3450_v11, %v3454_v21  ;;  %v3463_v50 = vor.u32 %v3462_v26, %v3459_v46  ;;  %v3473_v32 = vor.u32 %v3472_v15, %v3468_v27  ;;  %v2971_v22 = vshrl.u32 %v2720_v42, 16  ;;  %v7674_v58 = vpop.f32.mrb[32].mxu0  ;;  %v7676_v62 = vpop.f32.mrb[32].mxu1  ;;  %v3329_v28 = vld [vmem:[#allocation2 + $0x9c] sm:$0x1] }
 0x167   : > { %v5910_v56 = vcombine.low %v3445_v31, %v3455_v1  ;;  %v2964_v43 = vrot.slane %v2962_v49, 7  ;;  %v2974_v4 = vshll.u32 %v2720_v42, 16  ;;  %v3481_v57 = vshrl.u32 %v3327_v48, 16  ;;  %v7678_v11 = vpop.f32.mrb[33].mxu0  ;;  %v7684_v15 = vpop.f32.mrb[33].mxu1 }
 0x168   : > { %v3464_v10 = vrot.slane %v3463_v50, 4  ;;  %v3474_v24 = vrot.slane %v3473_v32, 4  ;;  %v2973_v41 = vrot.slane %v2971_v22, 7  ;;  %v3484_v55 = vshll.u32 %v3327_v48, 16  ;;  %v3330_v32 = vld [vmem:[#allocation2 + $0xa8] sm:$0xf] }
 0x169   : > { %6651 = vmatmul.mubr.bf16.gmra.mrb[116].mxu0 %v5910_v56  ;;  %v2967_v20 = vor.u32 %v2965_v25, %v2964_v43  ;;  %v2969_v36 = vrot.slane %v2964_v43, 4  ;;  %v3483_v21 = vrot.slane %v3481_v57, 4  ;;  %v3490_v46 = vshll.u32 %v3328_v53, 16  ;;  %v6818_v57 = vld [vmem:[#allocation2 + $0x10c] sm:$0xff]  }
 0x16a   : > { %v3469_v31 = vsel %vm7066_vm7, %v3464_v10, %v3468_v27  ;;  %v3479_v49 = vsel %vm7066_vm7, %v3474_v24, %v3478_v0  ;;  %v2976_v42 = vor.u32 %v2974_v4, %v2973_v41  ;;  %v3486_v26 = vrot.slane %v3484_v55, 5  ;;  %v3331_v41 = vld [vmem:[#allocation2 + $0xac] sm:$0xf]  ;;  %v3332_v43 = vld [vmem:[#allocation2 + $0xb0] sm:$0x1]  ;;  %v7694_v4 = vpop.f32.mrb[34].mxu0 }
 0x16b   : > { %v5911_v1 = vcombine.low %v3469_v31, %v3479_v49  ;;  %v2968_v48 = vsel %vm6927_vm2, %v5869_v34, %v2967_v20  ;;  %v3492_v25 = vrot.slane %v3490_v46, 5  ;;  %v3494_v50 = vshrl.u32 %v3328_v53, 16  ;;  %v2722_v31 = vld [vmem:[#allocation2 + $0x10c] sm:$0xf] }
 0x16c   : > { %v2977_v22 = vsel %vm6927_vm2, %v2969_v36, %v2976_v42  ;;  %v3487_v56 = vor.u32 %v3486_v26, %v3483_v21  ;;  %v3500_v27 = vshll.u32 %v3329_v28, 16  ;;  %v7692_v0 = vadd.f32 %v7518_v14, %v7504_v45  ;;  %v7702_v36 = vpop.f32.mrb[34].mxu1  ;;  %v7704_v28 = vpop.f32.mrb[35].mxu0  ;;  %v2723_v26 = vld [vmem:[#allocation2 + $0x110] sm:$0xf] }
 0x16d   : > { %6654 = vmatprep.mubr.bf16.mxu0 %v5911_v1  ;;  %v5885_v10 = vcombine.low %v2968_v48, %v2977_v22  ;;  %v3496_v34 = vrot.slane %v3494_v50, 4  ;;  %v6288_v53 = vadd.f32 %v7534_v16, %v7516_v54  ;;  %v7700_v20 = vadd.f32 %v7542_v13, %v7536_v33  ;;  %v7708_v21 = vpop.f32.mrb[35].mxu1  ;;  %v2721_v13 = vld [vmem:[#allocation2 + $0x108] sm:$0x8] }
 0x16e   : > { %v3488_v45 = vrot.slane %v3487_v56, 4  ;;  %v3502_v14 = vrot.slane %v3500_v27, 5  ;;  %v6291_v24 = vadd.f32 %v7544_v23, %v7540_v52  ;;  %v3505_v55 = vshrl.u32 %v3330_v32, 16 }
 0x16f   : > { %5140 = vmatmul.mubr.bf16.gmra.mrb[120].mxu1 %v5885_v10  ;;  %v3497_v46 = vor.u32 %v3496_v34, %v3492_v25  ;;  %v7711_v54 = vadd.f32 %v6288_v53, %v7510_v39  ;;  %v3508_v16 = vshll.u32 %v3330_v32, 16  ;;  %v3514_v33 = vshll.u32 %v3331_v41, 16  ;;  %v3333_v10 = vld [vmem:[#allocation2 + $0xbc] sm:$0xf] }
 0x170   : > { %v3493_v49 = vsel %vm7066_vm7, %v3488_v45, %v3492_v25  ;;  %v7716_v42 = vadd.f32 %v6291_v24, %v7522_v5  ;;  %5147 = vmatprep.mubr.bf16.mxu1 %v6818_v57  ;;  %v3507_v52 = vrot.slane %v3505_v55, 4  ;;  %v3518_v23 = vshrl.u32 %v3331_v41, 16  ;;  %v3334_v45 = vld [vmem:[#allocation2 + $0xc0] sm:$0xf] }
 0x171   : > { %8337 = vst [vmem:[#allocation22_spill] sm:$0xff] %v7711_v54  ;;  %v3498_v1 = vrot.slane %v3497_v46, 4  ;;  %v3510_v48 = vrot.slane %v3508_v16, 5  ;;  %v3516_v50 = vrot.slane %v3514_v33, 5  ;;  %v3524_v22 = vshll.u32 %v3332_v43, 16  ;;  %v7720_v16 = vpop.f32.mrb[36].mxu0 }
 0x172   : > { %8338 = vst [vmem:[#allocation23_spill] sm:$0xff] %v7716_v42  ;;  %v3520_v39 = vrot.slane %v3518_v23, 4  ;;  %v2979_v56 = vshrl.u32 %v2721_v13, 16  ;;  %v2984_v32 = vshrl.u32 %v2722_v31, 16  ;;  %v2987_v27 = vshll.u32 %v2722_v31, 16  ;;  %v7722_v43 = vpop.f32.mrb[36].mxu1 }
 0x173   : > { %v3503_v34 = vsel %vm7066_vm7, %v3498_v1, %v3502_v14  ;;  %v3511_v25 = vor.u32 %v3510_v48, %v3507_v52  ;;  %v3526_v53 = vrot.slane %v3524_v22, 5  ;;  %v2993_v5 = vshrl.u32 %v2723_v26, 16  ;;  %v3335_v46 = vld [vmem:[#allocation2 + $0xc4] sm:$0x1]  ;;  %v7724_v42 = vpop.f32.mrb[37].mxu0  ;;  %v7726_v14 = vpop.f32.mrb[37].mxu1 }
 0x174   : > { %v5912_v57 = vcombine.low %v3493_v49, %v3503_v34  ;;  %v3521_v24 = vor.u32 %v3520_v39, %v3516_v50  ;;  %v5870_v41 = vrot.slane %v2979_v56, 11  ;;  %v2986_v55 = vrot.slane %v2984_v32, 7  ;;  %v7728_v22 = vpop.f32.mrb[38].mxu0  ;;  %v7730_v39 = vpop.f32.mrb[38].mxu1 }
 0x175   : > { %v3512_v33 = vrot.slane %v3511_v25, 4  ;;  %v2995_v13 = vrot.slane %v2993_v5, 7  ;;  %v2996_v31 = vshll.u32 %v2723_v26, 16  ;;  %v3529_v23 = vshrl.u32 %v3333_v10, 16  ;;  %8339 = vst [vmem:[#allocation24_spill] sm:$0xff] %v7730_v39  ;;  %v7734_v25 = vpop.f32.mrb[39].mxu0 }
 0x176   : > { %6655 = vmatmul.mubr.bf16.gmra.mrb[120].mxu0 %v5912_v57  ;;  %v3522_v52 = vrot.slane %v3521_v24, 4  ;;  %v2989_v1 = vor.u32 %v2987_v27, %v2986_v55  ;;  %v2991_v49 = vrot.slane %v2986_v55, 4  ;;  %v3532_v48 = vshll.u32 %v3333_v10, 16  ;;  %v7736_v5 = vpop.f32.mrb[39].mxu1  ;;  %v6819_v55 = vld [vmem:[#allocation2 + $0x120] sm:$0xff]   ;;  %v7742_v54 = vpop.f32.mrb[40].mxu0 }
 0x177   : > { %v3517_v56 = vsel %vm7066_vm7, %v3512_v33, %v3516_v50  ;;  %v2998_v32 = vor.u32 %v2996_v31, %v2995_v13  ;;  %v3531_v34 = vrot.slane %v3529_v23, 4  ;;  %v3538_v26 = vshll.u32 %v3334_v45, 16  ;;  %8340 = vst [vmem:[#allocation25_spill] sm:$0xff] %v7736_v5  ;;  %v7744_v39 = vpop.f32.mrb[40].mxu1  ;;  %v3336_v23 = vld [vmem:[#allocation2 + $0xd0] sm:$0xf] }
 0x178   : > { %v3527_v57 = vsel %vm7066_vm7, %v3522_v52, %v3526_v53  ;;  %v2990_v27 = vsel %vm6927_vm2, %v5870_v41, %v2989_v1  ;;  %v3534_v10 = vrot.slane %v3532_v48, 5  ;;  %v3542_v24 = vshrl.u32 %v3334_v45, 16  ;;  %8341 = vst [vmem:[#allocation26_spill] sm:$0xff] %v7744_v39  ;;  %v7748_v5 = vpop.f32.mrb[41].mxu0  ;;  %v7750_v53 = vpop.f32.mrb[41].mxu1 }
 0x179   : > { %v5913_v50 = vcombine.low %v3517_v56, %v3527_v57  ;;  %v2999_v33 = vsel %vm6927_vm2, %v2991_v49, %v2998_v32  ;;  %v3540_v13 = vrot.slane %v3538_v26, 5  ;;  %v3548_v31 = vshll.u32 %v3335_v46, 16  ;;  %8342 = vst [vmem:[#allocation27_spill] sm:$0xff] %v7750_v53  ;;  %v3337_v48 = vld [vmem:[#allocation2 + $0xd4] sm:$0xf]  ;;  %v7756_v39 = vpop.f32.mrb[42].mxu0 }
 0x17a   : > { %v5886_v52 = vcombine.low %v2990_v27, %v2999_v33  ;;  %v3535_v41 = vor.u32 %v3534_v10, %v3531_v34  ;;  %v3544_v1 = vrot.slane %v3542_v24, 4  ;;  %v7754_v45 = vadd.f32 %v7570_v19, %v7554_v40  ;;  %8344 = vst [vmem:[#allocation29_spill] sm:$0xff] %v7756_v39  ;;  %v7758_v56 = vpop.f32.mrb[42].mxu1  ;;  %v8346_v32 = vld [vmem:[#allocation11_spill] sm:$0xff]  ;;  %v8348_v34 = vld [vmem:[#allocation12_spill] sm:$0xff]  ;;  %v7768_v40 = vpop.f32.mrb[43].mxu0 }
 0x17b   : > { %8345 = vst [vmem:[#allocation30_spill] sm:$0xff] %v7758_v56  ;;  %6658 = vmatprep.mubr.bf16.mxu0 %v5913_v50  ;;  %v3550_v49 = vrot.slane %v3548_v31, 5  ;;  %v6294_v46 = vadd.f32 %v7574_v38, %v7556_v44  ;;  %v7764_v26 = vadd.f32 %v7582_v3, %v8346_v32  ;;  %v6297_v57 = vadd.f32 %v7584_v61, %v8348_v34  ;;  %v3338_v27 = vld [vmem:[#allocation2 + $0xd8] sm:$0x1]  ;;  %v7770_v19 = vpop.f32.mrb[43].mxu1  ;;  %v7772_v56 = vpop.f32.mrb[44].mxu0 }
 0x17c   : > { %8343 = vst [vmem:[#allocation28_spill] sm:$0xff] %v7754_v45  ;;  %8349 = vst [vmem:[#allocation12_spill] sm:$0xff] %v7768_v40  ;;  %5148 = vmatmul.mubr.bf16.gmra.mrb[124].mxu1 %v5886_v52  ;;  %v3536_v10 = vrot.slane %v3535_v41, 4  ;;  %v3545_v24 = vor.u32 %v3544_v1, %v3540_v13  ;;  %v3553_v50 = vshrl.u32 %v3336_v23, 16  ;;  %v3556_v33 = vshll.u32 %v3336_v23, 16  ;;  %v8352_v44 = vld [vmem:[#allocation7_spill] sm:$0xff] }
 0x17d   : > { %8347 = vst [vmem:[#allocation11_spill] sm:$0xff] %v7764_v26  ;;  %8350 = vst [vmem:[#allocation31_spill] sm:$0xff] %v7770_v19  ;;  %v2724_v31 = vld [vmem:[#allocation2 + $0x11c] sm:$0x8]  ;;  %v7775_v38 = vadd.f32 %v6294_v46, %v8352_v44  ;;  %v8354_v3 = vld [vmem:[#allocation9_spill] sm:$0xff]  ;;  %5155 = vmatprep.mubr.bf16.mxu1 %v6819_v55  ;;  %v3562_v61 = vshll.u32 %v3337_v48, 16 }
 0x17e   : > { %8351 = vst [vmem:[#allocation32_spill] sm:$0xff] %v7772_v56  ;;  %v7778_v32 = vadd.f32 %v6297_v57, %v8354_v3  ;;  %v3566_v34 = vshrl.u32 %v3337_v48, 16  ;;  %v2725_v26 = vld [vmem:[#allocation2 + $0x120] sm:$0xf]  ;;  %v7780_v40 = vpop.f32.mrb[45].mxu0  ;;  %v3541_v52 = vsel %vm7066_vm7, %v3536_v10, %v3540_v13  ;;  %v3546_v41 = vrot.slane %v3545_v24, 4 }
 0x17f   : > { %8353 = vst [vmem:[#allocation7_spill] sm:$0xff] %v7775_v38  ;;  %8356 = vst [vmem:[#allocation33_spill] sm:$0xff] %v7780_v40  ;;  %v3555_v23 = vrot.slane %v3553_v50, 4  ;;  %v3558_v1 = vrot.slane %v3556_v33, 5  ;;  %v2726_v19 = vld [vmem:[#allocation2 + $0x124] sm:$0xf] }
 0x180   : > { %8355 = vst [vmem:[#allocation9_spill] sm:$0xff] %v7778_v32  ;;  %v7784_v56 = vpop.f32.mrb[46].mxu0  ;;  %v3564_v46 = vrot.slane %v3562_v61, 5  ;;  %v3568_v44 = vrot.slane %v3566_v34, 4  ;;  %v3572_v38 = vshll.u32 %v3338_v27, 16  ;;  %v3001_v57 = vshrl.u32 %v2724_v31, 16 }
 0x181   : > { %8357 = vst [vmem:[#allocation34_spill] sm:$0xff] %v7784_v56  ;;  %v7786_v3 = vpop.f32.mrb[47].mxu0  ;;  %v3551_v55 = vsel %vm7066_vm7, %v3546_v41, %v3550_v49  ;;  %v3559_v48 = vor.u32 %v3558_v1, %v3555_v23  ;;  %v3006_v32 = vshrl.u32 %v2725_v26, 16  ;;  %v3009_v40 = vshll.u32 %v2725_v26, 16  ;;  %v3339_v39 = vld [vmem:[#allocation2 + $0xe4] sm:$0xf] }
 0x182   : > { %8358 = vst [vmem:[#allocation35_spill] sm:$0xff] %v7786_v3  ;;  %v3340_v13 = vld [vmem:[#allocation2 + $0xe8] sm:$0xf]  ;;  %v5914_v10 = vcombine.low %v3541_v52, %v3551_v55  ;;  %v3569_v24 = vor.u32 %v3568_v44, %v3564_v46  ;;  %v3574_v50 = vrot.slane %v3572_v38, 5  ;;  %v5871_v33 = vrot.slane %v3001_v57, 11  ;;  %v7790_v27 = vpop.f32.mrb[44].mxu1 }
 0x183   : > { %v3560_v53 = vrot.slane %v3559_v48, 4  ;;  %v3008_v56 = vrot.slane %v3006_v32, 7  ;;  %v3015_v61 = vshrl.u32 %v2726_v19, 16  ;;  %v3018_v34 = vshll.u32 %v2726_v19, 16  ;;  %v7792_v41 = vpop.f32.mrb[45].mxu1 }
 0x184   : > { %6659 = vmatmul.mubr.bf16.gmra.mrb[124].mxu0 %v5914_v10  ;;  %v3570_v31 = vrot.slane %v3569_v24, 4  ;;  %v3577_v3 = vshrl.u32 %v3339_v39, 16  ;;  %v3580_v45 = vshll.u32 %v3339_v39, 16  ;;  %v3586_v49 = vshll.u32 %v3340_v13, 16  ;;  %v3341_v1 = vld [vmem:[#allocation2 + $0xec] sm:$0x1] }
 0x185   : > { %v3565_v26 = vsel %vm7066_vm7, %v3560_v53, %v3564_v46  ;;  %v3011_v52 = vor.u32 %v3009_v40, %v3008_v56  ;;  %v3013_v23 = vrot.slane %v3008_v56, 4  ;;  %v3017_v38 = vrot.slane %v3015_v61, 7  ;;  %v7796_v44 = vpop.f32.mrb[46].mxu1 }
 0x186   : > { %v3575_v19 = vsel %vm7066_vm7, %v3570_v31, %v3574_v50  ;;  %v3579_v32 = vrot.slane %v3577_v3, 4  ;;  %v3582_v57 = vrot.slane %v3580_v45, 5  ;;  %v3588_v55 = vrot.slane %v3586_v49, 5  ;;  %v7800_v48 = vpop.f32.mrb[47].mxu1  ;;  %v3342_v3 = vld [vmem:[#allocation2 + $0xf8] sm:$0xf] }
 0x187   : > { %v5915_v39 = vcombine.low %v3565_v26, %v3575_v19  ;;  %v3012_v10 = vsel %vm6927_vm2, %v5871_v33, %v3011_v52  ;;  %v3020_v24 = vor.u32 %v3018_v34, %v3017_v38  ;;  %v3590_v53 = vshrl.u32 %v3340_v13, 16  ;;  %v6820_v34 = vld [vmem:[#allocation2 + $0x134] sm:$0xff]   ;;  %v3343_v31 = vld [vmem:[#allocation2 + $0xfc] sm:$0xf]  ;;  %v8403_v47 = vld [vmem:[#allocation7_spill] sm:$0xff] }
 0x188   : > { %v3583_v40 = vor.u32 %v3582_v57, %v3579_v32  ;;  %v3596_v56 = vshll.u32 %v3341_v1, 16  ;;  %v7806_v46 = vadd.f32 %v7614_v37, %v7600_v59  ;;  %v6300_v50 = vadd.f32 %v7616_v8, %v7612_v63  ;;  %v3344_v59 = vld [vmem:[#allocation2 + $0x100] sm:$0x1]  ;;  %v2727_v8 = vld [vmem:[#allocation2 + $0x130] sm:$0x8]  ;;  %v7821_v52 = vpop.f32.mrb[48].mxu0 }
 0x189   : > { %6662 = vmatprep.mubr.bf16.mxu0 %v5915_v39  ;;  %v3021_v45 = vsel %vm6927_vm2, %v3013_v23, %v3020_v24  ;;  %v3592_v61 = vrot.slane %v3590_v53, 4  ;;  %v7814_v33 = vadd.f32 %v7626_v9, %v7620_v51  ;;  %v6303_v13 = vadd.f32 %v7628_v18, %v7624_v17  ;;  %v2728_v1 = vld [vmem:[#allocation2 + $0x134] sm:$0xf]  ;;  %v7826_v17 = vpop.f32.mrb[49].mxu0  ;;  %v2729_v57 = vld [vmem:[#allocation2 + $0x138] sm:$0xf] }
 0x18a   : > { %v5887_v37 = vcombine.low %v3012_v10, %v3021_v45  ;;  %v3584_v49 = vrot.slane %v3583_v40, 4  ;;  %v3598_v26 = vrot.slane %v3596_v56, 5  ;;  %v7819_v63 = vadd.f32 %v6300_v50, %v7594_v12  ;;  %v7830_v39 = vpop.f32.mrb[50].mxu0 }
 0x18b   : > { %v3593_v23 = vor.u32 %v3592_v61, %v3588_v55  ;;  %v7824_v38 = vadd.f32 %v6303_v13, %v7606_v60  ;;  %v3601_v51 = vshrl.u32 %v3342_v3, 16  ;;  %v3604_v9 = vshll.u32 %v3342_v3, 16  ;;  %8361 = vst [vmem:[#allocation38_spill] sm:$0xff] %v7830_v39  ;;  %v7832_v40 = vpop.f32.mrb[51].mxu0  ;;  %v3345_v61 = vld [vmem:[#allocation2 + $0x10c] sm:$0xf] }
 0x18c   : > { %8359 = vst [vmem:[#allocation36_spill] sm:$0xff] %v7819_v63  ;;  %5156 = vmatmul.mubr.bf16.gmra.mrb[128].mxu1 %v5887_v37  ;;  %v3589_v18 = vsel %vm7066_vm7, %v3584_v49, %v3588_v55  ;;  %v3610_v19 = vshll.u32 %v3343_v31, 16  ;;  %v3614_v32 = vshrl.u32 %v3343_v31, 16  ;;  %v3620_v12 = vshll.u32 %v3344_v59, 16  ;;  %8362 = vst [vmem:[#allocation39_spill] sm:$0xff] %v7832_v40 }
 0x18d   : > { %8360 = vst [vmem:[#allocation37_spill] sm:$0xff] %v7824_v38  ;;  %v3594_v10 = vrot.slane %v3593_v23, 4  ;;  %5163 = vmatprep.mubr.bf16.mxu1 %v6820_v34  ;;  %v3603_v24 = vrot.slane %v3601_v51, 4  ;;  %v3606_v60 = vrot.slane %v3604_v9, 5  ;;  %v3023_v53 = vshrl.u32 %v2727_v8, 16 }
 0x18e   : > { %v3612_v56 = vrot.slane %v3610_v19, 5  ;;  %v3616_v50 = vrot.slane %v3614_v32, 4  ;;  %v3622_v3 = vrot.slane %v3620_v12, 5  ;;  %v3028_v45 = vshrl.u32 %v2728_v1, 16  ;;  %v3346_v51 = vld [vmem:[#allocation2 + $0x110] sm:$0xf] }
 0x18f   : > { %v3599_v55 = vsel %vm7066_vm7, %v3594_v10, %v3598_v26  ;;  %v3607_v13 = vor.u32 %v3606_v60, %v3603_v24  ;;  %v5872_v31 = vrot.slane %v3023_v53, 11  ;;  %v3031_v59 = vshll.u32 %v2728_v1, 16  ;;  %v7836_v9 = vpop.f32.mrb[48].mxu1  ;;  %v3347_v24 = vld [vmem:[#allocation2 + $0x114] sm:$0x1] }
 0x190   : > { %v5916_v37 = vcombine.low %v3589_v18, %v3599_v55  ;;  %v3617_v49 = vor.u32 %v3616_v50, %v3612_v56  ;;  %v3030_v23 = vrot.slane %v3028_v45, 7  ;;  %v3037_v34 = vshrl.u32 %v2729_v57, 16  ;;  %v7838_v12 = vpop.f32.mrb[49].mxu1 }
 0x191   : > { %v3608_v8 = vrot.slane %v3607_v13, 4  ;;  %v3040_v38 = vshll.u32 %v2729_v57, 16  ;;  %v3625_v19 = vshrl.u32 %v3345_v61, 16  ;;  %v3628_v32 = vshll.u32 %v3345_v61, 16  ;;  %v7840_v1 = vpop.f32.mrb[50].mxu1 }
 0x192   : > { %6663 = vmatmul.mubr.bf16.gmra.mrb[128].mxu0 %v5916_v37  ;;  %v3618_v63 = vrot.slane %v3617_v49, 4  ;;  %v3033_v40 = vor.u32 %v3031_v59, %v3030_v23  ;;  %v3035_v26 = vrot.slane %v3030_v23, 4  ;;  %v3039_v10 = vrot.slane %v3037_v34, 7  ;;  %v7844_v45 = vpop.f32.mrb[51].mxu1  ;;  %v3348_v34 = vld [vmem:[#allocation2 + $0x120] sm:$0xf] }
 0x193   : > { %v3613_v18 = vsel %vm7066_vm7, %v3608_v8, %v3612_v56  ;;  %v3627_v60 = vrot.slane %v3625_v19, 4  ;;  %v3630_v53 = vrot.slane %v3628_v32, 5  ;;  %v3634_v50 = vshll.u32 %v3346_v51, 16 }
 0x194   : > { %v3623_v57 = vsel %vm7066_vm7, %v3618_v63, %v3622_v3  ;;  %v3034_v61 = vsel %vm6927_vm2, %v5872_v31, %v3033_v40  ;;  %v3042_v55 = vor.u32 %v3040_v38, %v3039_v10  ;;  %v3638_v13 = vshrl.u32 %v3346_v51, 16  ;;  %v6821_v3 = vld [vmem:[#allocation2 + $0x148] sm:$0xff]   ;;  %v3349_v40 = vld [vmem:[#allocation2 + $0x124] sm:$0xf] }
 0x195   : > { %v5917_v59 = vcombine.low %v3613_v18, %v3623_v57  ;;  %v3631_v37 = vor.u32 %v3630_v53, %v3627_v60  ;;  %v3636_v49 = vrot.slane %v3634_v50, 5  ;;  %v3644_v23 = vshll.u32 %v3347_v24, 16  ;;  %v7858_v38 = vpop.f32.mrb[52].mxu0  ;;  %v8364_v10 = vld [vmem:[#allocation20_spill] sm:$0xff]  ;;  %v2730_v57 = vld [vmem:[#allocation2 + $0x144] sm:$0x8] }
 0x196   : > { %v3043_v56 = vsel %vm6927_vm2, %v3035_v26, %v3042_v55  ;;  %v3640_v8 = vrot.slane %v3638_v13, 4  ;;  %v7854_v19 = vadd.f32 %v7658_v6, %v7642_v29  ;;  %v6306_v63 = vadd.f32 %v7660_v2, %v7652_v35  ;;  %8363 = vst [vmem:[#allocation40_spill] sm:$0xff] %v7858_v38  ;;  %v3350_v26 = vld [vmem:[#allocation2 + $0x128] sm:$0x1]  ;;  %v7864_v18 = vpop.f32.mrb[53].mxu0  ;;  %v8366_v6 = vld [vmem:[#allocation15_spill] sm:$0xff] }
 0x197   : > { %6666 = vmatprep.mubr.bf16.mxu0 %v5917_v59  ;;  %v5888_v31 = vcombine.low %v3034_v61, %v3043_v56  ;;  %v3632_v51 = vrot.slane %v3631_v37, 4  ;;  %v3646_v32 = vrot.slane %v3644_v23, 5  ;;  %v7862_v24 = vadd.f32 %v8364_v10, %v7664_v7  ;;  %8365 = vst [vmem:[#allocation20_spill] sm:$0xff] %v7864_v18  ;;  %v8368_v35 = vld [vmem:[#allocation19_spill] sm:$0xff]  ;;  %v8369_v2 = vld [vmem:[#allocation21_spill] sm:$0xff]  ;;  %v7871_v61 = vpop.f32.mrb[54].mxu0 }
 0x198   : > { %v3641_v29 = vor.u32 %v3640_v8, %v3636_v49  ;;  %v7867_v60 = vadd.f32 %v6306_v63, %v8366_v6  ;;  %v6309_v53 = vadd.f32 %v8369_v2, %v8368_v35  ;;  %v3649_v50 = vshrl.u32 %v3348_v34, 16  ;;  %v2731_v55 = vld [vmem:[#allocation2 + $0x148] sm:$0xf]  ;;  %8370 = vst [vmem:[#allocation19_spill] sm:$0xff] %v7871_v61  ;;  %v2732_v23 = vld [vmem:[#allocation2 + $0x14c] sm:$0xf] }
 0x199   : > { %5164 = vmatmul.mubr.bf16.gmra.mrb[132].mxu1 %v5888_v31  ;;  %v3637_v7 = vsel %vm7066_vm7, %v3632_v51, %v3636_v49  ;;  %v3652_v13 = vshll.u32 %v3348_v34, 16  ;;  %v3658_v59 = vshll.u32 %v3349_v40, 16  ;;  %v3662_v37 = vshrl.u32 %v3349_v40, 16  ;;  %v7875_v56 = vpop.f32.mrb[55].mxu0  ;;  %v8372_v63 = vld [vmem:[#allocation17_spill] sm:$0xff] }
 0x19a   : > { %8367 = vst [vmem:[#allocation15_spill] sm:$0xff] %v7867_v60  ;;  %8371 = vst [vmem:[#allocation21_spill] sm:$0xff] %v7875_v56  ;;  %v3642_v8 = vrot.slane %v3641_v29, 4  ;;  %v7878_v10 = vadd.f32 %v6309_v53, %v8372_v63  ;;  %5171 = vmatprep.mubr.bf16.mxu1 %v6821_v3  ;;  %v3651_v6 = vrot.slane %v3649_v50, 4  ;;  %v3668_v35 = vshll.u32 %v3350_v26, 16  ;;  %v7880_v38 = vpop.f32.mrb[52].mxu1 }
 0x19b   : > { %v3351_v2 = vld [vmem:[#allocation2 + $0x134] sm:$0xf]  ;;  %v3654_v60 = vrot.slane %v3652_v13, 5  ;;  %v3660_v61 = vrot.slane %v3658_v59, 5  ;;  %v3664_v31 = vrot.slane %v3662_v37, 4  ;;  %v3045_v18 = vshrl.u32 %v2730_v57, 16 }
 0x19c   : > { %8373 = vst [vmem:[#allocation17_spill] sm:$0xff] %v7878_v10  ;;  %8374 = vst [vmem:[#allocation41_spill] sm:$0xff] %v7880_v38  ;;  %v3647_v49 = vsel %vm7066_vm7, %v3642_v8, %v3646_v32  ;;  %v3670_v34 = vrot.slane %v3668_v35, 5  ;;  %v3050_v40 = vshrl.u32 %v2731_v55, 16  ;;  %v3053_v51 = vshll.u32 %v2731_v55, 16  ;;  %v7884_v56 = vpop.f32.mrb[53].mxu1 }
 0x19d   : > { %v3352_v29 = vld [vmem:[#allocation2 + $0x138] sm:$0xf]  ;;  %8375 = vst [vmem:[#allocation42_spill] sm:$0xff] %v7884_v56  ;;  %v5918_v53 = vcombine.low %v3637_v7, %v3647_v49  ;;  %v3655_v3 = vor.u32 %v3654_v60, %v3651_v6  ;;  %v3665_v50 = vor.u32 %v3664_v31, %v3660_v61  ;;  %v5873_v26 = vrot.slane %v3045_v18, 11  ;;  %v7886_v63 = vpop.f32.mrb[54].mxu1 }
 0x19e   : > { %v3052_v13 = vrot.slane %v3050_v40, 7  ;;  %v3059_v59 = vshrl.u32 %v2732_v23, 16  ;;  %v3062_v57 = vshll.u32 %v2732_v23, 16  ;;  %v3673_v37 = vshrl.u32 %v3351_v2, 16  ;;  %v7888_v10 = vpop.f32.mrb[55].mxu1 }
 0x19f   : > { %6667 = vmatmul.mubr.bf16.gmra.mrb[132].mxu0 %v5918_v53  ;;  %v3656_v32 = vrot.slane %v3655_v3, 4  ;;  %v3666_v8 = vrot.slane %v3665_v50, 4  ;;  %v3676_v35 = vshll.u32 %v3351_v2, 16  ;;  %v3682_v55 = vshll.u32 %v3352_v29, 16  ;;  %v3353_v7 = vld [vmem:[#allocation2 + $0x13c] sm:$0x1] }
 0x1a0   : > { %v3055_v38 = vor.u32 %v3053_v51, %v3052_v13  ;;  %v3057_v39 = vrot.slane %v3052_v13, 4  ;;  %v3061_v56 = vrot.slane %v3059_v59, 7  ;;  %v3675_v60 = vrot.slane %v3673_v37, 4  ;;  %v3354_v59 = vld [vmem:[#allocation2 + $0x148] sm:$0xf] }
 0x1a1   : > { %v3661_v18 = vsel %vm7066_vm7, %v3656_v32, %v3660_v61  ;;  %v3671_v6 = vsel %vm7066_vm7, %v3666_v8, %v3670_v34  ;;  %v3678_v23 = vrot.slane %v3676_v35, 5  ;;  %v3684_v31 = vrot.slane %v3682_v55, 5  ;;  %v7896_v3 = vpop.f32.mrb[56].mxu0  ;;  %v6822_v34 = vld [vmem:[#allocation2 + $0x15c] sm:$0xff]   ;;  %v2733_v35 = vld [vmem:[#allocation2 + $0x158] sm:$0x8] }
 0x1a2   : > { %v5919_v49 = vcombine.low %v3661_v18, %v3671_v6  ;;  %v3056_v40 = vsel %vm6927_vm2, %v5873_v26, %v3055_v38  ;;  %v3064_v53 = vor.u32 %v3062_v57, %v3061_v56  ;;  %v3686_v2 = vshrl.u32 %v3352_v29, 16  ;;  %v7904_v37 = vpop.f32.mrb[57].mxu0  ;;  %v3356_v26 = vld [vmem:[#allocation2 + $0x150] sm:$0x1] }
 0x1a3   : > { %v3679_v51 = vor.u32 %v3678_v23, %v3675_v60  ;;  %v3692_v50 = vshll.u32 %v3353_v7, 16  ;;  %v7900_v13 = vadd.f32 %v7678_v11, %v7674_v58  ;;  %v6312_v61 = vadd.f32 %v7684_v15, %v7676_v62  ;;  %v3355_v11 = vld [vmem:[#allocation2 + $0x14c] sm:$0xf]  ;;  %v7914_v57 = vpop.f32.mrb[58].mxu0 }
 0x1a4   : > { %6670 = vmatprep.mubr.bf16.mxu0 %v5919_v49  ;;  %v3065_v38 = vsel %vm6927_vm2, %v3057_v39, %v3064_v53  ;;  %v3688_v56 = vrot.slane %v3686_v2, 4  ;;  %v7910_v29 = vadd.f32 %v7704_v28, %v7694_v4  ;;  %v6315_v58 = vadd.f32 %v7708_v21, %v7702_v36  ;;  %8376 = vst [vmem:[#allocation43_spill] sm:$0xff] %v7914_v57  ;;  %v7919_v39 = vpop.f32.mrb[59].mxu0  ;;  %v2734_v36 = vld [vmem:[#allocation2 + $0x15c] sm:$0xf] }
 0x1a5   : > { %v5889_v62 = vcombine.low %v3056_v40, %v3065_v38  ;;  %v3680_v15 = vrot.slane %v3679_v51, 4  ;;  %v3694_v32 = vrot.slane %v3692_v50, 5  ;;  %v7917_v8 = vadd.f32 %v6312_v61, %v7692_v0  ;;  %8378 = vst [vmem:[#allocation45_spill] sm:$0xff] %v7919_v39  ;;  %v2735_v21 = vld [vmem:[#allocation2 + $0x160] sm:$0xf] }
 0x1a6   : > { %v3689_v55 = vor.u32 %v3688_v56, %v3684_v31  ;;  %v7922_v4 = vadd.f32 %v6315_v58, %v7700_v20  ;;  %v3697_v28 = vshrl.u32 %v3354_v59, 16  ;;  %v3700_v7 = vshll.u32 %v3354_v59, 16  ;;  %v342_v0 = vld [vmem:[#allocation2 + $0x164] sm:$0x1]  ;;  %v3357_v49 = vld [vmem:[#allocation2 + $0x15c] sm:$0xf] }
 0x1a7   : > { %8377 = vst [vmem:[#allocation44_spill] sm:$0xff] %v7917_v8  ;;  %5172 = vmatmul.mubr.bf16.gmra.mrb[136].mxu1 %v5889_v62  ;;  %v3685_v60 = vsel %vm7066_vm7, %v3680_v15, %v3684_v31  ;;  %v3706_v18 = vshll.u32 %v3355_v11, 16  ;;  %v3710_v6 = vshrl.u32 %v3355_v11, 16  ;;  %v3716_v23 = vshll.u32 %v3356_v26, 16  ;;  %v7926_v40 = vpop.f32.mrb[56].mxu1 }
 0x1a8   : > { %8379 = vst [vmem:[#allocation46_spill] sm:$0xff] %v7922_v4  ;;  %v3690_v53 = vrot.slane %v3689_v55, 4  ;;  %5179 = vmatprep.mubr.bf16.mxu1 %v6822_v34  ;;  %v3699_v2 = vrot.slane %v3697_v28, 4  ;;  %v3702_v20 = vrot.slane %v3700_v7, 5  ;;  %v3067_v51 = vshrl.u32 %v2733_v35, 16  ;;  %v7928_v50 = vpop.f32.mrb[57].mxu1 }
 0x1a9   : > { %v3708_v61 = vrot.slane %v3706_v18, 5  ;;  %v3712_v59 = vrot.slane %v3710_v6, 4  ;;  %v3718_v38 = vrot.slane %v3716_v23, 5  ;;  %v3072_v56 = vshrl.u32 %v2734_v36, 16  ;;  %v7930_v58 = vpop.f32.mrb[58].mxu1 }
 0x1aa   : > { %v3695_v31 = vsel %vm7066_vm7, %v3690_v53, %v3694_v32  ;;  %v3703_v11 = vor.u32 %v3702_v20, %v3699_v2  ;;  %v5874_v26 = vrot.slane %v3067_v51, 11  ;;  %v3075_v62 = vshll.u32 %v2734_v36, 16  ;;  %v7934_v15 = vpop.f32.mrb[59].mxu1  ;;  %v3358_v7 = vld [vmem:[#allocation2 + $0x160] sm:$0xf] }
 0x1ab   : > { %v5920_v34 = vcombine.low %v3685_v60, %v3695_v31  ;;  %v3713_v55 = vor.u32 %v3712_v59, %v3708_v61  ;;  %v3074_v28 = vrot.slane %v3072_v56, 7  ;;  %v3081_v35 = vshrl.u32 %v2735_v21, 16 }
 0x1ac   : > { %v3704_v4 = vrot.slane %v3703_v11, 4  ;;  %v3084_v18 = vshll.u32 %v2735_v21, 16  ;;  %v343_v23 = vsel %vm7042_vm6, 0, %v342_v0  ;;  %v3721_v8 = vshrl.u32 %v3357_v49, 16 }
 0x1ad   : > { %6671 = vmatmul.mubr.bf16.gmra.mrb[136].mxu0 %v5920_v34  ;;  %v3714_v39 = vrot.slane %v3713_v55, 4  ;;  %v3077_v57 = vor.u32 %v3075_v62, %v3074_v28  ;;  %v3079_v32 = vrot.slane %v3074_v28, 4  ;;  %v3083_v53 = vrot.slane %v3081_v35, 7  ;;  %344 = vst [vmem:[#allocation2 + $0x164] sm:$0x1] %v343_v23  ;;  %v8381_v55 = vld [vmem:[#allocation24_spill] sm:$0xff] }
 0x1ae   : > { %v3709_v36 = vsel %vm7066_vm7, %v3704_v4, %v3708_v61  ;;  %v3723_v60 = vrot.slane %v3721_v8, 4  ;;  %v3724_v2 = vshll.u32 %v3357_v49, 16  ;;  %v3730_v20 = vshll.u32 %v3358_v7, 16  ;;  %v7944_v56 = vpop.f32.mrb[60].mxu0  ;;  %v8382_v28 = vld [vmem:[#allocation25_spill] sm:$0xff] }
 0x1af   : > { %v3719_v51 = vsel %vm7066_vm7, %v3714_v39, %v3718_v38  ;;  %v3078_v21 = vsel %vm6927_vm2, %v5874_v26, %v3077_v57  ;;  %v3086_v0 = vor.u32 %v3084_v18, %v3083_v53  ;;  %v3734_v59 = vshrl.u32 %v3358_v7, 16  ;;  %v7948_v4 = vpop.f32.mrb[61].mxu0  ;;  %v8383_v7 = vld [vmem:[#allocation28_spill] sm:$0xff] }
 0x1b0   : > { %v5921_v31 = vcombine.low %v3709_v36, %v3719_v51  ;;  %v3726_v11 = vrot.slane %v3724_v2, 5  ;;  %v3732_v62 = vrot.slane %v3730_v20, 5  ;;  %v6230_v34 = vadd.f32 %v7724_v42, %v7720_v16  ;;  %v7956_v61 = vpop.f32.mrb[62].mxu0  ;;  %v8388_v36 = vld [vmem:[#allocation11_spill] sm:$0xff]  ;;  %v8389_v2 = vld [vmem:[#allocation30_spill] sm:$0xff]  ;;  %v8392_v51 = vld [vmem:[#allocation33_spill] sm:$0xff] }
 0x1b1   : > { %v3087_v8 = vsel %vm6927_vm2, %v3079_v32, %v3086_v0  ;;  %v3736_v49 = vrot.slane %v3734_v59, 4  ;;  %v6318_v39 = vadd.f32 %v7726_v14, %v7722_v43  ;;  %v6233_v57 = vadd.f32 %v7734_v25, %v7728_v22  ;;  %v6420_v30 = vpop.f32.mrb[63].mxu0  ;;  %v8384_v43 = vld [vmem:[#allocation26_spill] sm:$0xff]  ;;  %v8385_v14 = vld [vmem:[#allocation27_spill] sm:$0xff]  ;;  %v8386_v22 = vld [vmem:[#allocation29_spill] sm:$0xff] }
 0x1b2   : > { %6674 = vmatprep.mubr.bf16.mxu0 %v5921_v31  ;;  %v5890_v38 = vcombine.low %v3078_v21, %v3087_v8  ;;  %v3727_v26 = vor.u32 %v3726_v11, %v3723_v60  ;;  %v6321_v42 = vadd.f32 %v8382_v28, %v8381_v55  ;;  %v6236_v16 = vadd.f32 %v7748_v5, %v7742_v54  ;;  %v8387_v25 = vld [vmem:[#allocation12_spill] sm:$0xff]  ;;  %v8390_v20 = vld [vmem:[#allocation31_spill] sm:$0xff] }
 0x1b3   : > { %v3737_v35 = vor.u32 %v3736_v49, %v3732_v62  ;;  %v7963_v18 = vadd.f32 %v6318_v39, %v8383_v7  ;;  %v6324_v6 = vadd.f32 %v8385_v14, %v8384_v43  ;;  %v6239_v23 = vadd.f32 %v8387_v25, %v8386_v22  ;;  %v8391_v5 = vld [vmem:[#allocation32_spill] sm:$0xff]  ;;  %v6352_v0 = vpop.f32.mrb[60].mxu1  ;;  %v8394_v55 = vld [vmem:[#allocation35_spill] sm:$0xff]  ;;  %v8395_v14 = vld [vmem:[#allocation38_spill] sm:$0xff] }
 0x1b4   : > { %5180 = vmatmul.mubr.bf16.gmra.mrb[140].mxu1 %v5890_v38  ;;  %v3359_v32 = vld [vmem:[#allocation2 + $0x164] sm:$0x1]  ;;  %v3728_v53 = vrot.slane %v3727_v26, 4  ;;  %v7970_v60 = vadd.f32 %v6321_v42, %v8388_v36  ;;  %v6327_v54 = vadd.f32 %v8390_v20, %v8389_v2  ;;  %v6242_v21 = vadd.f32 %v8392_v51, %v8391_v5  ;;  %v6353_v49 = vpop.f32.mrb[61].mxu1  ;;  %v8393_v26 = vld [vmem:[#allocation34_spill] sm:$0xff]  ;;  %v8405_v5 = vld [vmem:[#allocation21_spill] sm:$0xff] }
 0x1b5   : > { %v3738_v59 = vrot.slane %v3737_v35, 4  ;;  %v3740_v31 = vshll.u32 %v3359_v32, 16  ;;  %v7977_v11 = vadd.f32 %v6324_v6, %v7806_v46  ;;  %v6330_v8 = vadd.f32 %v7792_v41, %v7790_v27  ;;  %v6355_v35 = vpop.f32.mrb[62].mxu1  ;;  %v8397_v6 = vld [vmem:[#allocation41_spill] sm:$0xff]  ;;  %v8398_v22 = vld [vmem:[#allocation42_spill] sm:$0xff] }
 0x1b6   : > { %v3733_v39 = vsel %vm7066_vm7, %v3728_v53, %v3732_v62  ;;  %v7984_v38 = vadd.f32 %v6327_v54, %v7814_v33  ;;  %v6245_v28 = vadd.f32 %v8394_v55, %v8393_v26  ;;  %v6333_v42 = vadd.f32 %v7800_v48, %v7796_v44  ;;  %v6356_v62 = vpop.f32.mrb[63].mxu1  ;;  %v8396_v44 = vld [vmem:[#allocation39_spill] sm:$0xff] }
 0x1b7   : > { %v3742_v7 = vrot.slane %v3740_v31, 5  ;;  %v7991_v46 = vadd.f32 %v6330_v8, %v7854_v19  ;;  %v6336_v27 = vadd.f32 %v7838_v12, %v7836_v9  ;;  %v6400_v41 = vadd.f32 %v7826_v17, %v7821_v52  ;;  %v8399_v52 = vld [vmem:[#allocation22_spill] sm:$0xff]  ;;  %v8400_v12 = vld [vmem:[#allocation40_spill] sm:$0xff]  ;;  %v8404_v54 = vld [vmem:[#allocation19_spill] sm:$0xff] }
 0x1b8   : > { %v7998_v33 = vadd.f32 %v6333_v42, %v7862_v24  ;;  %v6339_v43 = vadd.f32 %v7844_v45, %v7840_v1  ;;  %v6403_v48 = vadd.f32 %v8396_v44, %v8395_v14  ;;  %v6342_v19 = vadd.f32 %v8398_v22, %v8397_v6  ;;  %v8401_v24 = vld [vmem:[#allocation20_spill] sm:$0xff]  ;;  %v8402_v45 = vld [vmem:[#allocation23_spill] sm:$0xff]  ;;  %v8412_v6 = vld [vmem:[#allocation17_spill] sm:$0xff] }
 0x1b9   : > { %v3743_v25 = vsel %vm7066_vm7, %v3738_v59, %v3742_v7  ;;  %v8009_v9 = vadd.f32 %v6336_v27, %v7900_v13  ;;  %v8012_v17 = vadd.f32 %v6400_v41, %v8399_v52  ;;  %v6406_v32 = vadd.f32 %v8401_v24, %v8400_v12  ;;  %v8406_v8 = vld [vmem:[#allocation43_spill] sm:$0xff]  ;;  %v8414_v12 = vld [vmem:[#allocation46_spill] sm:$0xff] }
 0x1ba   : > { %v5922_v53 = vcombine.low %v3733_v39, %v3743_v25  ;;  %v8017_v1 = vadd.f32 %v6339_v43, %v7910_v29  ;;  %v8020_v36 = vadd.f32 %v6403_v48, %v8402_v45  ;;  %v8022_v2 = vadd.f32 %v6342_v19, %v6230_v34  ;;  %v6422_v31 = vpop.f32.mrb[64].mxu0  ;;  %v8407_v39 = vld [vmem:[#allocation45_spill] sm:$0xff]  ;;  %v8413_v19 = vld [vmem:[#allocation44_spill] sm:$0xff] }
 0x1bb   : > { %v8025_v20 = vadd.f32 %v6406_v32, %v8403_v47  ;;  %v6345_v13 = vadd.f32 %v7888_v10, %v7886_v63  ;;  %v6409_v51 = vadd.f32 %v8405_v5, %v8404_v54  ;;  %v6348_v59 = vadd.f32 %v7928_v50, %v7926_v40  ;;  %v6423_v42 = vpop.f32.mrb[65].mxu0  ;;  %v8408_v63 = vld [vmem:[#allocation9_spill] sm:$0xff]  ;;  %v8416_v32 = vld [vmem:[#allocation6_spill] sm:$0xff] }
 0x1bc   : > { %6675 = vmatmul.mubr.bf16.gmra.mrb[140].mxu0 %v5922_v53  ;;  %v6412_v29 = vadd.f32 %v7904_v37, %v7896_v3  ;;  %v6351_v34 = vadd.f32 %v7934_v15, %v7930_v58  ;;  %v6415_v26 = vadd.f32 %v8407_v39, %v8406_v8  ;;  %v6354_v55 = vadd.f32 %v6353_v49, %v6352_v0  ;;  %v6425_v50 = vpop.f32.mrb[66].mxu0  ;;  %v8409_v3 = vld [vmem:[#allocation36_spill] sm:$0xff]  ;;  %v8410_v15 = vld [vmem:[#allocation37_spill] sm:$0xff]  ;;  %v8411_v49 = vld [vmem:[#allocation15_spill] sm:$0xff] }
 0x1bd   : > { %v8039_v10 = vadd.f32 %v6345_v13, %v6233_v57  ;;  %v8042_v7 = vadd.f32 %v6409_v51, %v8408_v63  ;;  %v8044_v27 = vadd.f32 %v6348_v59, %v6236_v16  ;;  %v6418_v40 = vadd.f32 %v7948_v4, %v7944_v56  ;;  %v6426_v57 = vpop.f32.mrb[67].mxu0  ;;  %v8418_v63 = vld [vmem:[#allocation10_spill] sm:$0xff] }
 0x1be   : > { %v8049_v37 = vadd.f32 %v6412_v29, %v8409_v3  ;;  %v8051_v58 = vadd.f32 %v6351_v34, %v6239_v23  ;;  %v8054_v41 = vadd.f32 %v6415_v26, %v8410_v15  ;;  %v8056_v0 = vadd.f32 %v6354_v55, %v6242_v21  ;;  %v8417_v26 = vld [vmem:[#allocation8_spill] sm:$0xff] }
 0x1bf   : > { %v8059_v43 = vadd.f32 %v6418_v40, %v8411_v49  ;;  %v6357_v16 = vadd.f32 %v6356_v62, %v6355_v35  ;;  %v6421_v14 = vadd.f32 %v6420_v30, %v7956_v61  ;;  %v6424_v44 = vadd.f32 %v6423_v42, %v6422_v31  ;;  %v6358_v56 = vpop.f32.mrb[64].mxu1  ;;  %v8415_v62 = vld [vmem:[#allocation5_spill] sm:$0xff] }
 0x1c0   : > { %v6427_v4 = vadd.f32 %v6426_v57, %v6425_v50  ;;  %v6359_v22 = vpop.f32.mrb[65].mxu1 }
 0x1c1   : > { %v8062_v48 = vadd.f32 %v6357_v16, %v6245_v28  ;;  %v8065_v23 = vadd.f32 %v6421_v14, %v8412_v6  ;;  %v8068_v25 = vadd.f32 %v6424_v44, %v8413_v19  ;;  %v6360_v21 = vadd.f32 %v6359_v22, %v6358_v56  ;;  %v6361_v52 = vpop.f32.mrb[66].mxu1  ;;  %v8419_v22 = vld [vmem:[#allocation13_spill] sm:$0xff] }
 0x1c2   : > { %v8071_v24 = vadd.f32 %v6427_v4, %v8414_v12  ;;  %v6362_v35 = vpop.f32.mrb[67].mxu1 }
 0x1c3   : > { %v8074_v61 = vadd.f32 %v6360_v21, %v8415_v62  ;;  %v6363_v30 = vadd.f32 %v6362_v35, %v6361_v52  ;;  %v8420_v52 = vld [vmem:[#allocation14_spill] sm:$0xff] }
 0x1c5   : > { %v8077_v28 = vadd.f32 %v6363_v30, %v8416_v32  ;;  %v6428_v53 = vpop.f32.mrb[68].mxu0 }
 0x1c6   : > { %v6429_v45 = vpop.f32.mrb[69].mxu0 }
 0x1c7   : > { %v6430_v47 = vadd.f32 %v6429_v45, %v6428_v53  ;;  %v6431_v13 = vpop.f32.mrb[70].mxu0 }
 0x1c8   : > { %v6432_v54 = vpop.f32.mrb[71].mxu0 }
 0x1c9   : > { %v8080_v5 = vadd.f32 %v6430_v47, %v7963_v18  ;;  %v6433_v51 = vadd.f32 %v6432_v54, %v6431_v13 }
 0x1cb   : > { %v6364_v59 = vpop.f32.mrb[68].mxu1  ;;  %v8083_v29 = vadd.f32 %v6433_v51, %v7970_v60 }
 0x1cc   : > { %v6365_v31 = vpop.f32.mrb[69].mxu1 }
 0x1cd   : > { %v6366_v34 = vadd.f32 %v6365_v31, %v6364_v59  ;;  %v6367_v8 = vpop.f32.mrb[70].mxu1 }
 0x1ce   : > { %v6368_v39 = vpop.f32.mrb[71].mxu1 }
 0x1cf   : > { %v8086_v55 = vadd.f32 %v6366_v34, %v8417_v26  ;;  %v6369_v42 = vadd.f32 %v6368_v39, %v6367_v8  ;;  %v8421_v34 = vld [vmem:[#allocation16_spill] sm:$0xff] }
 0x1d1   : > { %v8089_v40 = vadd.f32 %v6369_v42, %v8418_v63 }
 0x1d2   : > { %v6434_v50 = vpop.f32.mrb[72].mxu0 }
 0x1d3   : > { %v6435_v3 = vpop.f32.mrb[73].mxu0 }
 0x1d4   : > { %v6436_v18 = vadd.f32 %v6435_v3, %v6434_v50  ;;  %v6437_v15 = vpop.f32.mrb[74].mxu0  ;;  %v8422_v50 = vld [vmem:[#allocation18_spill] sm:$0xff] }
 0x1d5   : > { %v6438_v57 = vpop.f32.mrb[75].mxu0 }
 0x1d6   : > { %v8092_v49 = vadd.f32 %v6436_v18, %v7977_v11  ;;  %v6439_v60 = vadd.f32 %v6438_v57, %v6437_v15 }
 0x1d7   : > { %v6370_v16 = vpop.f32.mrb[72].mxu1 }
 0x1d8   : > { %v6371_v14 = vpop.f32.mrb[73].mxu1  ;;  %v8095_v44 = vadd.f32 %v6439_v60, %v7984_v38 }
 0x1d9   : > { %v6372_v56 = vadd.f32 %v6371_v14, %v6370_v16  ;;  %v6373_v4 = vpop.f32.mrb[74].mxu1 }
 0x1da   : > { %v6374_v6 = vpop.f32.mrb[75].mxu1 }
 0x1db   : > { %v8098_v19 = vadd.f32 %v6372_v56, %v8419_v22  ;;  %v6375_v21 = vadd.f32 %v6374_v6, %v6373_v4 }
 0x1dd   : > { %v8101_v12 = vadd.f32 %v6375_v21, %v8420_v52 }
 0x1df   : > { %v6440_v35 = vpop.f32.mrb[76].mxu0 }
 0x1e0   : > { %v6441_v62 = vpop.f32.mrb[77].mxu0 }
 0x1e1   : > { %v6442_v11 = vadd.f32 %v6441_v62, %v6440_v35  ;;  %v6443_v30 = vpop.f32.mrb[78].mxu0 }
 0x1e2   : > { %v6444_v32 = vpop.f32.mrb[79].mxu0 }
 0x1e3   : > { %v8104_v53 = vadd.f32 %v6442_v11, %v7991_v46  ;;  %v6445_v38 = vadd.f32 %v6444_v32, %v6443_v30  ;;  %v6376_v45 = vpop.f32.mrb[76].mxu1 }
 0x1e4   : > { %v6377_v47 = vpop.f32.mrb[77].mxu1 }
 0x1e5   : > { %v8107_v13 = vadd.f32 %v6445_v38, %v7998_v33  ;;  %v6378_v54 = vadd.f32 %v6377_v47, %v6376_v45  ;;  %v6379_v51 = vpop.f32.mrb[78].mxu1 }
 0x1e6   : > { %v6380_v59 = vpop.f32.mrb[79].mxu1 }
 0x1e7   : > { %v6446_v31 = vpop.f32.mrb[80].mxu0  ;;  %v8110_v8 = vadd.f32 %v6378_v54, %v8421_v34  ;;  %v6381_v39 = vadd.f32 %v6380_v59, %v6379_v51 }
 0x1e8   : > { %v6447_v26 = vpop.f32.mrb[81].mxu0 }
 0x1e9   : > { %v6448_v42 = vadd.f32 %v6447_v26, %v6446_v31  ;;  %v6449_v63 = vpop.f32.mrb[82].mxu0  ;;  %v8113_v46 = vadd.f32 %v6381_v39, %v8422_v50 }
 0x1ea   : > { %v6450_v3 = vpop.f32.mrb[83].mxu0 }
 0x1eb   : > { %v8116_v18 = vadd.f32 %v6448_v42, %v8009_v9  ;;  %v6451_v33 = vadd.f32 %v6450_v3, %v6449_v63  ;;  %v6510_v15 = vpop.f32.mrb[80].mxu1 }
 0x1ec   : > { %v6511_v57 = vpop.f32.mrb[81].mxu1 }
 0x1ed   : > { %v8119_v60 = vadd.f32 %v6451_v33, %v8017_v1  ;;  %v6512_v16 = vadd.f32 %v6511_v57, %v6510_v15  ;;  %v6513_v14 = vpop.f32.mrb[82].mxu1 }
 0x1ee   : > { %v6514_v56 = vpop.f32.mrb[83].mxu1 }
 0x1ef   : > { %v6515_v4 = vadd.f32 %v6514_v56, %v6513_v14  ;;  %v8122_v22 = vadd.f32 %v6512_v16, %v8012_v17 }
 0x1f0   : > { %v6452_v6 = vpop.f32.mrb[84].mxu0 }
 0x1f1   : > { %v6453_v21 = vpop.f32.mrb[85].mxu0  ;;  %v8125_v9 = vadd.f32 %v6515_v4, %v8020_v36 }
 0x1f2   : > { %v6454_v52 = vadd.f32 %v6453_v21, %v6452_v6  ;;  %v6455_v35 = vpop.f32.mrb[86].mxu0 }
 0x1f3   : > { %v6456_v62 = vpop.f32.mrb[87].mxu0  ;;  %v6516_v11 = vpop.f32.mrb[84].mxu1 }
 0x1f4   : > { %v8128_v30 = vadd.f32 %v6454_v52, %v8022_v2  ;;  %v6457_v1 = vadd.f32 %v6456_v62, %v6455_v35  ;;  %v6517_v32 = vpop.f32.mrb[85].mxu1 }
 0x1f5   : > { %v6518_v38 = vadd.f32 %v6517_v32, %v6516_v11  ;;  %v6519_v45 = vpop.f32.mrb[86].mxu1 }
 0x1f6   : > { %v8131_v47 = vadd.f32 %v6457_v1, %v8039_v10  ;;  %v6520_v17 = vpop.f32.mrb[87].mxu1 }
 0x1f7   : > { %v6521_v54 = vadd.f32 %v6520_v17, %v6519_v45  ;;  %v8134_v59 = vadd.f32 %v6518_v38, %v8025_v20 }
 0x1f8   : > { %v6458_v51 = vpop.f32.mrb[88].mxu0 }
 0x1f9   : > { %v6459_v36 = vpop.f32.mrb[89].mxu0  ;;  %v8137_v39 = vadd.f32 %v6521_v54, %v8042_v7 }
 0x1fa   : > { %v6460_v31 = vadd.f32 %v6459_v36, %v6458_v51  ;;  %v6461_v34 = vpop.f32.mrb[90].mxu0 }
 0x1fb   : > { %v6462_v2 = vpop.f32.mrb[91].mxu0  ;;  %v6522_v26 = vpop.f32.mrb[88].mxu1 }
 0x1fc   : > { %v8140_v42 = vadd.f32 %v6460_v31, %v8044_v27  ;;  %v6463_v63 = vadd.f32 %v6462_v2, %v6461_v34  ;;  %v6523_v10 = vpop.f32.mrb[89].mxu1 }
 0x1fd   : > { %v6524_v50 = vadd.f32 %v6523_v10, %v6522_v26  ;;  %v6525_v3 = vpop.f32.mrb[90].mxu1 }
 0x1fe   : > { %v8143_v33 = vadd.f32 %v6463_v63, %v8051_v58  ;;  %v6526_v20 = vpop.f32.mrb[91].mxu1 }
 0x1ff   : > { %v6527_v15 = vadd.f32 %v6526_v20, %v6525_v3  ;;  %v8146_v16 = vadd.f32 %v6524_v50, %v8049_v37 }
 0x200   : > { %v6464_v57 = vpop.f32.mrb[92].mxu0 }
 0x201   : > { %v6465_v7 = vpop.f32.mrb[93].mxu0  ;;  %v8149_v4 = vadd.f32 %v6527_v15, %v8054_v41 }
 0x202   : > { %v6466_v14 = vadd.f32 %v6465_v7, %v6464_v57  ;;  %v6467_v56 = vpop.f32.mrb[94].mxu0 }
 0x203   : > { %v6468_v27 = vpop.f32.mrb[95].mxu0  ;;  %v6528_v6 = vpop.f32.mrb[92].mxu1 }
 0x204   : > { %v8152_v21 = vadd.f32 %v6466_v14, %v8056_v0  ;;  %v6469_v52 = vadd.f32 %v6468_v27, %v6467_v56  ;;  %v6529_v58 = vpop.f32.mrb[93].mxu1 }
 0x205   : > { %v6530_v35 = vadd.f32 %v6529_v58, %v6528_v6  ;;  %v6531_v62 = vpop.f32.mrb[94].mxu1 }
 0x206   : > { %v8155_v11 = vadd.f32 %v6469_v52, %v8062_v48  ;;  %v6532_v37 = vpop.f32.mrb[95].mxu1 }
 0x207   : > { %v6533_v1 = vadd.f32 %v6532_v37, %v6531_v62  ;;  %v8158_v38 = vadd.f32 %v6530_v35, %v8059_v43 }
 0x208   : > { %v6470_v32 = vpop.f32.mrb[96].mxu0 }
 0x209   : > { %v6471_v41 = vpop.f32.mrb[97].mxu0  ;;  %v8161_v54 = vadd.f32 %v6533_v1, %v8065_v23 }
 0x20a   : > { %v6472_v45 = vadd.f32 %v6471_v41, %v6470_v32  ;;  %v6473_v17 = vpop.f32.mrb[98].mxu0 }
 0x20b   : > { %v6474_v0 = vpop.f32.mrb[99].mxu0  ;;  %v6534_v51 = vpop.f32.mrb[96].mxu1 }
 0x20c   : > { %v8164_v36 = vadd.f32 %v6472_v45, %v8074_v61  ;;  %v6475_v31 = vadd.f32 %v6474_v0, %v6473_v17  ;;  %v6535_v48 = vpop.f32.mrb[97].mxu1 }
 0x20d   : > { %v6536_v34 = vadd.f32 %v6535_v48, %v6534_v51  ;;  %v6537_v2 = vpop.f32.mrb[98].mxu1 }
 0x20e   : > { %v8167_v26 = vadd.f32 %v6475_v31, %v8077_v28  ;;  %v6538_v43 = vpop.f32.mrb[99].mxu1 }
 0x20f   : > { %v6539_v63 = vadd.f32 %v6538_v43, %v6537_v2  ;;  %v8170_v50 = vadd.f32 %v6536_v34, %v8068_v25 }
 0x210   : > { %v6476_v10 = vpop.f32.mrb[100].mxu0 }
 0x211   : > { %v6477_v23 = vpop.f32.mrb[101].mxu0  ;;  %v8173_v15 = vadd.f32 %v6539_v63, %v8071_v24 }
 0x212   : > { %v6478_v3 = vadd.f32 %v6477_v23, %v6476_v10  ;;  %v6479_v20 = vpop.f32.mrb[102].mxu0 }
 0x213   : > { %v6480_v61 = vpop.f32.mrb[103].mxu0  ;;  %v6540_v57 = vpop.f32.mrb[100].mxu1 }
 0x214   : > { %v8176_v7 = vadd.f32 %v6478_v3, %v8086_v55  ;;  %v6481_v14 = vadd.f32 %v6480_v61, %v6479_v20  ;;  %v6541_v28 = vpop.f32.mrb[101].mxu1 }
 0x215   : > { %v6542_v56 = vadd.f32 %v6541_v28, %v6540_v57  ;;  %v6543_v27 = vpop.f32.mrb[102].mxu1 }
 0x216   : > { %v8179_v6 = vadd.f32 %v6481_v14, %v8089_v40  ;;  %v6544_v25 = vpop.f32.mrb[103].mxu1 }
 0x217   : > { %v6545_v52 = vadd.f32 %v6544_v25, %v6543_v27  ;;  %v8182_v35 = vadd.f32 %v6542_v56, %v8080_v5 }
 0x218   : > { %v6482_v58 = vpop.f32.mrb[104].mxu0 }
 0x219   : > { %v6483_v24 = vpop.f32.mrb[105].mxu0  ;;  %v8185_v1 = vadd.f32 %v6545_v52, %v8083_v29 }
 0x21a   : > { %v6484_v62 = vadd.f32 %v6483_v24, %v6482_v58  ;;  %v6485_v37 = vpop.f32.mrb[106].mxu0 }
 0x21b   : > { %v6486_v55 = vpop.f32.mrb[107].mxu0  ;;  %v6546_v32 = vpop.f32.mrb[104].mxu1 }
 0x21c   : > { %v8188_v41 = vadd.f32 %v6484_v62, %v8098_v19  ;;  %v6487_v45 = vadd.f32 %v6486_v55, %v6485_v37  ;;  %v6547_v40 = vpop.f32.mrb[105].mxu1 }
 0x21d   : > { %v6548_v17 = vadd.f32 %v6547_v40, %v6546_v32  ;;  %v6549_v0 = vpop.f32.mrb[106].mxu1 }
 0x21e   : > { %v8191_v51 = vadd.f32 %v6487_v45, %v8101_v12  ;;  %v6550_v5 = vpop.f32.mrb[107].mxu1 }
 0x21f   : > { %v6551_v31 = vadd.f32 %v6550_v5, %v6549_v0  ;;  %v8194_v48 = vadd.f32 %v6548_v17, %v8092_v49 }
 0x221   : > { %v8197_v29 = vadd.f32 %v6551_v31, %v8095_v44 }
 0x222   : > { %v6488_v34 = vpop.f32.mrb[108].mxu0 }
 0x223   : > { %v6489_v2 = vpop.f32.mrb[109].mxu0  ;;  %v6552_v43 = vpop.f32.mrb[108].mxu1 }
 0x224   : > { %v6490_v19 = vadd.f32 %v6489_v2, %v6488_v34  ;;  %v6491_v63 = vpop.f32.mrb[110].mxu0  ;;  %v6553_v10 = vpop.f32.mrb[109].mxu1 }
 0x225   : > { %v6492_v23 = vpop.f32.mrb[111].mxu0  ;;  %v6554_v12 = vadd.f32 %v6553_v10, %v6552_v43  ;;  %v6555_v20 = vpop.f32.mrb[110].mxu1 }
 0x226   : > { %v8200_v3 = vadd.f32 %v6490_v19, %v8110_v8  ;;  %v6493_v61 = vadd.f32 %v6492_v23, %v6491_v63  ;;  %v6556_v57 = vpop.f32.mrb[111].mxu1 }
 0x227   : > { %v6557_v14 = vadd.f32 %v6556_v57, %v6555_v20  ;;  %v8206_v44 = vadd.f32 %v6554_v12, %v8104_v53 }
 0x228   : > { %v8203_v49 = vadd.f32 %v6493_v61, %v8113_v46 }
 0x229   : > { %v8209_v28 = vadd.f32 %v6557_v14, %v8107_v13 }
 0x22b   : > { %v6558_v56 = vpop.f32.mrb[112].mxu1 }
 0x22c   : > { %v6559_v27 = vpop.f32.mrb[113].mxu1 }
 0x22d   : > { %v6560_v25 = vadd.f32 %v6559_v27, %v6558_v56  ;;  %v6561_v8 = vpop.f32.mrb[114].mxu1 }
 0x22e   : > { %v6562_v58 = vpop.f32.mrb[115].mxu1 }
 0x22f   : > { %v6648_v52 = vpop.f32.mrb[112].mxu0  ;;  %v6563_v37 = vadd.f32 %v6562_v58, %v6561_v8  ;;  %v8213_v46 = vadd.f32 %v6560_v25, %v8116_v18 }
 0x230   : > { %v5231_v24 = vadd.f32 %v6648_v52, %v8134_v59  ;;  %v5222_v62 = vpop.f32.mrb[113].mxu0 }
 0x231   : > { %v5223_v53 = vadd.f32 %v5222_v62, %v8122_v22  ;;  %v6649_v55 = vpop.f32.mrb[114].mxu0  ;;  %v8218_v45 = vadd.f32 %v6563_v37, %v8119_v60 }
 0x232   : > { %v5234_v13 = vadd.f32 %v6649_v55, %v8137_v39  ;;  %v5225_v32 = vpop.f32.mrb[115].mxu0  ;;  %v5549_v60 = vmul.f32 %v5231_v24, %v5231_v24 }
 0x233   : > { %v5226_v18 = vadd.f32 %v5225_v32, %v8125_v9  ;;  %v5547_v40 = vmul.f32 %v5223_v53, %v5223_v53 }
 0x234   : > { %v6071_v59 = vpack.c.bf16 %v5234_v13, %v5231_v24  ;;  %v5550_v19 = vmul.f32 %v5234_v13, %v5234_v13 }
 0x235   : > { %v6066_v22 = vpack.c.bf16 %v5226_v18, %v5223_v53  ;;  %v5509_v17 = vadd.f32 %v5226_v18, %v5223_v53  ;;  %v5548_v0 = vmul.f32 %v5226_v18, %v5226_v18  ;;  %v6564_v39 = vpop.f32.mrb[116].mxu1 }
 0x236   : > { %6143 = vst [vmem:[%s8225_s6 + $0x8] sm:$0xff] %v6071_v59   ;;  %v6565_v5 = vpop.f32.mrb[117].mxu1 }
 0x237   : > { %6067 = vst [vmem:[%s8225_s6] sm:$0xff] %v6066_v22   ;;  %v5510_v31 = vadd.f32 %v5509_v17, %v5231_v24  ;;  %v5579_v34 = vadd.f32 %v5548_v0, %v5547_v40  ;;  %v6566_v2 = vadd.f32 %v6565_v5, %v6564_v39  ;;  %v6567_v43 = vpop.f32.mrb[118].mxu1 }
 0x238   : > { %v6568_v63 = vpop.f32.mrb[119].mxu1 }
 0x239   : > { %v5580_v10 = vadd.f32 %v5579_v34, %v5549_v60  ;;  %v5511_v23 = vadd.f32 %v5510_v31, %v5234_v13  ;;  %v6569_v12 = vadd.f32 %v6568_v63, %v6567_v43  ;;  %v8231_v9 = vadd.f32 %v6566_v2, %v8128_v30 }
 0x23b   : > { %v5581_v20 = vadd.f32 %v5580_v10, %v5550_v19  ;;  %v8234_v61 = vadd.f32 %v6569_v12, %v8131_v47 }
 0x23c   : > { %v6652_v57 = vpop.f32.mrb[116].mxu0 }
 0x23d   : > { %v5247_v14 = vadd.f32 %v6652_v57, %v8158_v38  ;;  %v5238_v56 = vpop.f32.mrb[117].mxu0 }
 0x23e   : > { %v5239_v27 = vadd.f32 %v5238_v56, %v8146_v16  ;;  %v6653_v25 = vpop.f32.mrb[118].mxu0 }
 0x23f   : > { %v5250_v8 = vadd.f32 %v6653_v25, %v8161_v54  ;;  %v5241_v52 = vpop.f32.mrb[119].mxu0  ;;  %v5553_v32 = vmul.f32 %v5247_v14, %v5247_v14 }
 0x240   : > { %v5512_v58 = vadd.f32 %v5511_v23, %v5239_v27  ;;  %v5551_v24 = vmul.f32 %v5239_v27, %v5239_v27  ;;  %v5242_v30 = vadd.f32 %v5241_v52, %v8149_v4 }
 0x241   : > { %v6081_v62 = vpack.c.bf16 %v5250_v8, %v5247_v14  ;;  %v5554_v54 = vmul.f32 %v5250_v8, %v5250_v8 }
 0x242   : > { %v5582_v37 = vadd.f32 %v5581_v20, %v5551_v24  ;;  %v6076_v47 = vpack.c.bf16 %v5242_v30, %v5239_v27  ;;  %v5513_v53 = vadd.f32 %v5512_v58, %v5242_v30  ;;  %v5552_v55 = vmul.f32 %v5242_v30, %v5242_v30  ;;  %v6570_v13 = vpop.f32.mrb[120].mxu1 }
 0x243   : > { %6145 = vst [vmem:[%s8225_s6 + $0x18] sm:$0xff] %v6081_v62   ;;  %v6571_v38 = vpop.f32.mrb[121].mxu1 }
 0x244   : > { %6144 = vst [vmem:[%s8225_s6 + $0x10] sm:$0xff] %v6076_v47   ;;  %v5514_v16 = vadd.f32 %v5513_v53, %v5247_v14  ;;  %v5583_v18 = vadd.f32 %v5582_v37, %v5552_v55  ;;  %v6572_v59 = vadd.f32 %v6571_v38, %v6570_v13  ;;  %v6573_v40 = vpop.f32.mrb[122].mxu1 }
 0x245   : > { %v6574_v22 = vpop.f32.mrb[123].mxu1 }
 0x246   : > { %v5584_v17 = vadd.f32 %v5583_v18, %v5553_v32  ;;  %v5515_v0 = vadd.f32 %v5514_v16, %v5250_v8  ;;  %v6575_v39 = vadd.f32 %v6574_v22, %v6573_v40  ;;  %v8243_v4 = vadd.f32 %v6572_v59, %v8140_v42 }
 0x248   : > { %v5585_v5 = vadd.f32 %v5584_v17, %v5554_v54  ;;  %v8246_v60 = vadd.f32 %v6575_v39, %v8143_v33 }
 0x249   : > { %v6656_v31 = vpop.f32.mrb[120].mxu0 }
 0x24a   : > { %v5263_v34 = vadd.f32 %v6656_v31, %v8182_v35  ;;  %v5254_v2 = vpop.f32.mrb[121].mxu0 }
 0x24b   : > { %v5255_v43 = vadd.f32 %v5254_v2, %v8170_v50  ;;  %v6657_v19 = vpop.f32.mrb[122].mxu0 }
 0x24c   : > { %v5266_v63 = vadd.f32 %v6657_v19, %v8185_v1  ;;  %v5257_v10 = vpop.f32.mrb[123].mxu0  ;;  %v5557_v25 = vmul.f32 %v5263_v34, %v5263_v34 }
 0x24d   : > { %v5516_v23 = vadd.f32 %v5515_v0, %v5255_v43  ;;  %v5555_v12 = vmul.f32 %v5255_v43, %v5255_v43  ;;  %v5258_v42 = vadd.f32 %v5257_v10, %v8173_v15 }
 0x24e   : > { %v6091_v20 = vpack.c.bf16 %v5266_v63, %v5263_v34  ;;  %v5558_v1 = vmul.f32 %v5266_v63, %v5266_v63 }
 0x24f   : > { %v5586_v57 = vadd.f32 %v5585_v5, %v5555_v12  ;;  %v6086_v33 = vpack.c.bf16 %v5258_v42, %v5255_v43  ;;  %v5517_v14 = vadd.f32 %v5516_v23, %v5258_v42  ;;  %v5556_v56 = vmul.f32 %v5258_v42, %v5258_v42  ;;  %v6576_v27 = vpop.f32.mrb[124].mxu1 }
 0x250   : > { %6147 = vst [vmem:[%s8225_s6 + $0x28] sm:$0xff] %v6091_v20   ;;  %v6577_v35 = vpop.f32.mrb[125].mxu1 }
 0x251   : > { %6146 = vst [vmem:[%s8225_s6 + $0x20] sm:$0xff] %v6086_v33   ;;  %v5518_v50 = vadd.f32 %v5517_v14, %v5263_v34  ;;  %v5587_v8 = vadd.f32 %v5586_v57, %v5556_v56  ;;  %v6578_v52 = vadd.f32 %v6577_v35, %v6576_v27  ;;  %v6579_v58 = vpop.f32.mrb[126].mxu1 }
 0x252   : > { %v6580_v24 = vpop.f32.mrb[127].mxu1 }
 0x253   : > { %v5588_v30 = vadd.f32 %v5587_v8, %v5557_v25  ;;  %v5519_v62 = vadd.f32 %v5518_v50, %v5266_v63  ;;  %v6581_v37 = vadd.f32 %v6580_v24, %v6579_v58  ;;  %v8255_v15 = vadd.f32 %v6578_v52, %v8152_v21 }
 0x255   : > { %v5589_v47 = vadd.f32 %v5588_v30, %v5558_v1  ;;  %v8258_v53 = vadd.f32 %v6581_v37, %v8155_v11 }
 0x257   : > { %v6660_v55 = vpop.f32.mrb[124].mxu0 }
 0x258   : > { %v5279_v13 = vadd.f32 %v6660_v55, %v8206_v44  ;;  %v5270_v38 = vpop.f32.mrb[125].mxu0 }
 0x259   : > { %v5271_v32 = vadd.f32 %v5270_v38, %v8194_v48  ;;  %v6661_v16 = vpop.f32.mrb[126].mxu0 }
 0x25a   : > { %v5282_v18 = vadd.f32 %v6661_v16, %v8209_v28  ;;  %v5273_v59 = vpop.f32.mrb[127].mxu0  ;;  %v5561_v5 = vmul.f32 %v5279_v13, %v5279_v13 }
 0x25b   : > { %v5520_v40 = vadd.f32 %v5519_v62, %v5271_v32  ;;  %v5559_v54 = vmul.f32 %v5271_v32, %v5271_v32  ;;  %v5274_v21 = vadd.f32 %v5273_v59, %v8197_v29 }
 0x25c   : > { %v6101_v22 = vpack.c.bf16 %v5282_v18, %v5279_v13  ;;  %v5562_v2 = vmul.f32 %v5282_v18, %v5282_v18 }
 0x25d   : > { %v5590_v17 = vadd.f32 %v5589_v47, %v5559_v54  ;;  %v6096_v11 = vpack.c.bf16 %v5274_v21, %v5271_v32  ;;  %v5521_v0 = vadd.f32 %v5520_v40, %v5274_v21  ;;  %v5560_v39 = vmul.f32 %v5274_v21, %v5274_v21 }
 0x25e   : > { %6149 = vst [vmem:[%s8225_s6 + $0x38] sm:$0xff] %v6101_v22  }
 0x25f   : > { %6148 = vst [vmem:[%s8225_s6 + $0x30] sm:$0xff] %v6096_v11   ;;  %v5522_v44 = vadd.f32 %v5521_v0, %v5279_v13  ;;  %v5591_v31 = vadd.f32 %v5590_v17, %v5560_v39  ;;  %v6582_v34 = vpop.f32.mrb[128].mxu1 }
 0x260   : > { %v6583_v48 = vpop.f32.mrb[129].mxu1 }
 0x261   : > { %v5592_v43 = vadd.f32 %v5591_v31, %v5561_v5  ;;  %v6584_v28 = vadd.f32 %v6583_v48, %v6582_v34  ;;  %v5523_v19 = vadd.f32 %v5522_v44, %v5282_v18  ;;  %v6585_v63 = vpop.f32.mrb[130].mxu1 }
 0x262   : > { %v6586_v10 = vpop.f32.mrb[131].mxu1 }
 0x263   : > { %v5593_v23 = vadd.f32 %v5592_v43, %v5562_v2  ;;  %v6587_v29 = vadd.f32 %v6586_v10, %v6585_v63  ;;  %v8267_v12 = vadd.f32 %v6584_v28, %v8164_v36 }
 0x265   : > { %v6664_v42 = vpop.f32.mrb[128].mxu0  ;;  %v8270_v20 = vadd.f32 %v6587_v29, %v8167_v26 }
 0x266   : > { %v5295_v57 = vadd.f32 %v6664_v42, %v8231_v9  ;;  %v5286_v33 = vpop.f32.mrb[129].mxu0 }
 0x267   : > { %v5287_v14 = vadd.f32 %v5286_v33, %v8213_v46  ;;  %v6665_v56 = vpop.f32.mrb[130].mxu0 }
 0x268   : > { %v5298_v27 = vadd.f32 %v6665_v56, %v8234_v61  ;;  %v5289_v35 = vpop.f32.mrb[131].mxu0  ;;  %v5565_v9 = vmul.f32 %v5295_v57, %v5295_v57 }
 0x269   : > { %v5524_v25 = vadd.f32 %v5523_v19, %v5287_v14  ;;  %v5563_v50 = vmul.f32 %v5287_v14, %v5287_v14  ;;  %v5290_v36 = vadd.f32 %v5289_v35, %v8218_v45 }
 0x26a   : > { %v6111_v8 = vpack.c.bf16 %v5298_v27, %v5295_v57  ;;  %v5566_v61 = vmul.f32 %v5298_v27, %v5298_v27 }
 0x26b   : > { %v5594_v52 = vadd.f32 %v5593_v23, %v5563_v50  ;;  %v6106_v58 = vpack.c.bf16 %v5290_v36, %v5287_v14  ;;  %v5525_v1 = vadd.f32 %v5524_v25, %v5290_v36  ;;  %v5564_v26 = vmul.f32 %v5290_v36, %v5290_v36 }
 0x26c   : > { %6151 = vst [vmem:[%s8225_s6 + $0x48] sm:$0xff] %v6111_v8   ;;  %v6588_v24 = vpop.f32.mrb[132].mxu1 }
 0x26d   : > { %6150 = vst [vmem:[%s8225_s6 + $0x40] sm:$0xff] %v6106_v58   ;;  %v5526_v30 = vadd.f32 %v5525_v1, %v5295_v57  ;;  %v5595_v62 = vadd.f32 %v5594_v52, %v5564_v26  ;;  %v6589_v46 = vpop.f32.mrb[133].mxu1 }
 0x26e   : > { %v6590_v37 = vadd.f32 %v6589_v46, %v6588_v24  ;;  %v6591_v47 = vpop.f32.mrb[134].mxu1 }
 0x26f   : > { %v5596_v55 = vadd.f32 %v5595_v62, %v5565_v9  ;;  %v5527_v13 = vadd.f32 %v5526_v30, %v5298_v27  ;;  %v6592_v38 = vpop.f32.mrb[135].mxu1 }
 0x270   : > { %v6593_v32 = vadd.f32 %v6592_v38, %v6591_v47  ;;  %v5166_v45 = vadd.f32 %v6590_v37, %v8176_v7 }
 0x271   : > { %v5597_v16 = vadd.f32 %v5596_v55, %v5566_v61 }
 0x272   : > { %v6668_v18 = vpop.f32.mrb[132].mxu0  ;;  %v5169_v59 = vadd.f32 %v6593_v32, %v8179_v6 }
 0x273   : > { %v5311_v40 = vadd.f32 %v6668_v18, %v8255_v15  ;;  %v5302_v54 = vpop.f32.mrb[133].mxu0 }
 0x274   : > { %v5303_v21 = vadd.f32 %v5302_v54, %v8243_v4  ;;  %v6669_v22 = vpop.f32.mrb[134].mxu0 }
 0x275   : > { %v5314_v17 = vadd.f32 %v6669_v22, %v8258_v53  ;;  %v5305_v11 = vpop.f32.mrb[135].mxu0  ;;  %v5569_v6 = vmul.f32 %v5311_v40, %v5311_v40 }
 0x276   : > { %v5528_v0 = vadd.f32 %v5527_v13, %v5303_v21  ;;  %v5567_v39 = vmul.f32 %v5303_v21, %v5303_v21  ;;  %v5306_v5 = vadd.f32 %v5305_v11, %v8246_v60 }
 0x277   : > { %v6121_v7 = vpack.c.bf16 %v5314_v17, %v5311_v40  ;;  %v5570_v28 = vmul.f32 %v5314_v17, %v5314_v17 }
 0x278   : > { %v5598_v44 = vadd.f32 %v5597_v16, %v5567_v39  ;;  %v6116_v31 = vpack.c.bf16 %v5306_v5, %v5303_v21  ;;  %v5529_v34 = vadd.f32 %v5528_v0, %v5306_v5  ;;  %v5568_v48 = vmul.f32 %v5306_v5, %v5306_v5 }
 0x279   : > { %6153 = vst [vmem:[%s8225_s6 + $0x58] sm:$0xff] %v6121_v7  }
 0x27a   : > { %6152 = vst [vmem:[%s8225_s6 + $0x50] sm:$0xff] %v6116_v31   ;;  %v5530_v15 = vadd.f32 %v5529_v34, %v5311_v40  ;;  %v5599_v2 = vadd.f32 %v5598_v44, %v5568_v48  ;;  %v6594_v43 = vpop.f32.mrb[136].mxu1 }
 0x27b   : > { %v6595_v4 = vpop.f32.mrb[137].mxu1 }
 0x27c   : > { %v5600_v19 = vadd.f32 %v5599_v2, %v5569_v6  ;;  %v6596_v53 = vadd.f32 %v6595_v4, %v6594_v43  ;;  %v5531_v63 = vadd.f32 %v5530_v15, %v5314_v17  ;;  %v6597_v10 = vpop.f32.mrb[138].mxu1 }
 0x27d   : > { %v6598_v23 = vpop.f32.mrb[139].mxu1 }
 0x27e   : > { %v5601_v29 = vadd.f32 %v5600_v19, %v5570_v28  ;;  %v6599_v60 = vadd.f32 %v6598_v23, %v6597_v10  ;;  %v5174_v42 = vadd.f32 %v6596_v53, %v8188_v41 }
 0x280   : > { %v6672_v57 = vpop.f32.mrb[136].mxu0  ;;  %v5177_v33 = vadd.f32 %v6599_v60, %v8191_v51 }
 0x281   : > { %v5327_v14 = vadd.f32 %v6672_v57, %v5166_v45  ;;  %v5318_v56 = vpop.f32.mrb[137].mxu0 }
 0x282   : > { %v5319_v27 = vadd.f32 %v5318_v56, %v8267_v12  ;;  %v6673_v35 = vpop.f32.mrb[138].mxu0 }
 0x283   : > { %v5330_v25 = vadd.f32 %v6673_v35, %v5169_v59  ;;  %v5321_v50 = vpop.f32.mrb[139].mxu0  ;;  %v5573_v51 = vmul.f32 %v5327_v14, %v5327_v14 }
 0x284   : > { %v5532_v36 = vadd.f32 %v5531_v63, %v5319_v27  ;;  %v5571_v8 = vmul.f32 %v5319_v27, %v5319_v27  ;;  %v5322_v52 = vadd.f32 %v5321_v50, %v8270_v20 }
 0x285   : > { %v6131_v58 = vpack.c.bf16 %v5330_v25, %v5327_v14  ;;  %v5574_v47 = vmul.f32 %v5330_v25, %v5330_v25 }
 0x286   : > { %v5602_v1 = vadd.f32 %v5601_v29, %v5571_v8  ;;  %v6126_v26 = vpack.c.bf16 %v5322_v52, %v5319_v27  ;;  %v5533_v41 = vadd.f32 %v5532_v36, %v5322_v52  ;;  %v5572_v24 = vmul.f32 %v5322_v52, %v5322_v52 }
 0x287   : > { %6155 = vst [vmem:[%s8225_s6 + $0x68] sm:$0xff] %v6131_v58   ;;  %v6600_v9 = vpop.f32.mrb[140].mxu1 }
 0x288   : > { %6154 = vst [vmem:[%s8225_s6 + $0x60] sm:$0xff] %v6126_v26   ;;  %v5534_v30 = vadd.f32 %v5533_v41, %v5327_v14  ;;  %v5603_v62 = vadd.f32 %v5602_v1, %v5572_v24  ;;  %v6601_v46 = vpop.f32.mrb[141].mxu1 }
 0x289   : > { %v6602_v12 = vadd.f32 %v6601_v46, %v6600_v9  ;;  %v6603_v37 = vpop.f32.mrb[142].mxu1 }
 0x28a   : > { %v5604_v61 = vadd.f32 %v5603_v62, %v5573_v51  ;;  %v5535_v55 = vadd.f32 %v5534_v30, %v5330_v25  ;;  %v6604_v13 = vpop.f32.mrb[143].mxu1 }
 0x28b   : > { %v5182_v20 = vadd.f32 %v6602_v12, %v8200_v3  ;;  %v6605_v38 = vadd.f32 %v6604_v13, %v6603_v37 }
 0x28c   : > { %v5605_v32 = vadd.f32 %v5604_v61, %v5574_v47 }
 0x28d   : > { %v5185_v45 = vadd.f32 %v6605_v38, %v8203_v49 }
 0x28f   : > { %v6676_v16 = vpop.f32.mrb[140].mxu0 }
 0x290   : > { %v5343_v18 = vadd.f32 %v6676_v16, %v5182_v20  ;;  %v5334_v59 = vpop.f32.mrb[141].mxu0 }
 0x291   : > { %v5335_v40 = vadd.f32 %v5334_v59, %v5174_v42  ;;  %v6677_v54 = vpop.f32.mrb[142].mxu0 }
 0x292   : > { %v5346_v21 = vadd.f32 %v6677_v54, %v5185_v45  ;;  %v5337_v22 = vpop.f32.mrb[143].mxu0  ;;  %v5577_v39 = vmul.f32 %v5343_v18, %v5343_v18 }
 0x293   : > { %v5536_v17 = vadd.f32 %v5535_v55, %v5335_v40  ;;  %v5575_v11 = vmul.f32 %v5335_v40, %v5335_v40  ;;  %v5338_v0 = vadd.f32 %v5337_v22, %v5177_v33 }
 0x294   : > { %v6141_v5 = vpack.c.bf16 %v5346_v21, %v5343_v18  ;;  %v5578_v49 = vmul.f32 %v5346_v21, %v5346_v21 }
 0x295   : > { %v5606_v7 = vadd.f32 %v5605_v32, %v5575_v11  ;;  %v6136_v3 = vpack.c.bf16 %v5338_v0, %v5335_v40  ;;  %v5537_v44 = vadd.f32 %v5536_v17, %v5338_v0  ;;  %v5576_v31 = vmul.f32 %v5338_v0, %v5338_v0 }
 0x296   : > { %6157 = vst [vmem:[%s8225_s6 + $0x78] sm:$0xff] %v6141_v5  }
 0x297   : > { %6156 = vst [vmem:[%s8225_s6 + $0x70] sm:$0xff] %v6136_v3   ;;  %v5538_v34 = vadd.f32 %v5537_v44, %v5343_v18  ;;  %v5607_v48 = vadd.f32 %v5606_v7, %v5576_v31 }
 0x299   : > { %v5539_v6 = vadd.f32 %v5538_v34, %v5346_v21  ;;  %v5608_v15 = vadd.f32 %v5607_v48, %v5577_v39 }
 0x29b   : > { %v5540_v2 = vrot.slane %v5539_v6, 4  ;;  %v5609_v43 = vadd.f32 %v5608_v15, %v5578_v49 }
 0x29d   : > { %v5541_v4 = vadd.f32 %v5540_v2, %v5539_v6  ;;  %v5610_v28 = vrot.slane %v5609_v43, 4 }
 0x29f   : > { %v5542_v19 = vrot.slane %v5541_v4, 2  ;;  %v5611_v53 = vadd.f32 %v5610_v28, %v5609_v43 }
 0x2a1   : > { %v5543_v63 = vadd.f32 %v5542_v19, %v5541_v4  ;;  %v5612_v10 = vrot.slane %v5611_v53, 2 }
 0x2a3   : > { %v5544_v23 = vrot.slane %v5543_v63, 1  ;;  %v5613_v29 = vadd.f32 %v5612_v10, %v5611_v53 }
 0x2a5   : > { %v5545_v60 = vadd.f32 %v5544_v23, %v5543_v63  ;;  %v5614_v42 = vrot.slane %v5613_v29, 1 }
 0x2a7   : > { %5546 = vst [vmem:[%s211_s9] sm:$0x1] %v5545_v60  ;;  %v5615_v57 = vadd.f32 %v5614_v42, %v5613_v29 }
 0x2a9   : > { %5616 = vst [vmem:[%s214_s12] sm:$0x1] %v5615_v57 }
 0x2aa PF: > { %s15_s15 = sadd.s32 1, %s6829_s15  }
 0x2ab   : > { %p12_p4 = scmp.ge.s32.totalorder %s15_s15, 4  }
 0x2ad   :  { %14 = sbr.rel (!%p12_p4) target bundleno = 1 (0x1), region = 84 }

// kernel: resblock_forward.4
= control target key start
LH: loop header
LB: loop body
LE: loop exit
PB: predicated region body
PF: predicated region fallthrough
CT: control target
= control target key end

     0   :  { %s7388_s21 = smov 0   ;;  %s9062_s0 = inlined_call_operand.vmem [shape: bf16[2,16,16,128], index: 0, kind: input, shape index: {}]   ;;  %s9063_s1 = inlined_call_operand.vmem [shape: f32[1,128], index: 1, kind: input, shape index: {}]   ;;  %s9064_s2 = inlined_call_operand.vmem [shape: f32[1,128], index: 2, kind: input, shape index: {}]   ;;  %s9065_s3 = inlined_call_operand.vmem [shape: bf16[1152,128], index: 3, kind: input, shape index: {}]   ;;  %s9066_s4 = inlined_call_operand.vmem [shape: bf16[2,16,16,128], index: 4, kind: output, shape index: {0}]   ;;  %s9067_s5 = inlined_call_operand.vmem [shape: f32[2,1,128], index: 5, kind: output, shape index: {1}]   ;;  %s9068_s6 = inlined_call_operand.vmem [shape: f32[2,1,128], index: 6, kind: output, shape index: {2}]  }
   0x1 LB: > { %s6046_s22 = sadd.s32 4294967295, %s7350_s21   ;;  %p6050_p0 = scmp.ge.s32.totalorder %s7350_s21, 1  ;;  %s7350_s21 = sphi %s7388_s21, %s17_s21  }
   0x2   : > { %p217_p1 = scmp.lt.s32.totalorder %s7350_s21, 3 }
   0x4   : > { %p218_p2 = pnand %p6050_p0, %p217_p1 }
   0x6   : > { %221 = sbr.rel (%p218_p2) target bundleno = 712 (0x2c8), region = 36 }
   0xd   : > { %v7220_v0 = vld [vmem:[%s9065_s3 + $0x40] sm:$0xff]   ;;  %v7352_v2 = vmov 0   ;;  %v7222_v3 = vld [vmem:[%s9065_s3 + $0x48] sm:$0xff]   ;;  %p253_p3 = scmp.lt.s32.totalorder %s6046_s22, 1  ;;  %v7224_v5 = vld [vmem:[%s9065_s3 + $0x50] sm:$0xff]   ;;  %vm274_vm3 = vcmask 1040384  }
   0xe   : > { %v7221_v1 = vld [vmem:[%s9065_s3] sm:$0xff]   ;;  %272 = vst [vmem:[#allocation2 + $0x8] sm:$0xf] %v7352_v2  ;;  %273 = vst [vmem:[#allocation2 + $0xc] sm:$0xf] %v7352_v2  ;;  %6675 = vmatprep.subr.bf16.mxu0 %v7220_v0  ;;  %7195 = vmatprep.subr.bf16.mxu1 %v7220_v0  ;;  %v7223_v4 = vld [vmem:[%s9065_s3 + $0x8] sm:$0xff]  }
   0xf   : > { %271 = vst [vmem:[#allocation2 + $0x4] sm:$0xf] %v7352_v2  ;;  %281 = vst [vmem:[#allocation2 + $0x18] sm:$0xf] %v7352_v2  ;;  %6676 = vmatpush3.bf16.msra.mxu0 %v7221_v1  ;;  %7203 = vmatpush3.bf16.msra.mxu1 %v7221_v1  ;;  %v7225_v6 = vld [vmem:[%s9065_s3 + $0x10] sm:$0xff]   ;;  %s9207_s22 = smov (!%p253_p3, %s6046_s22), 1 }
  0x10   : > { %282 = vst [vmem:[#allocation2 + $0x1c] sm:$0xf] %v7352_v2  ;;  %283 = vst [vmem:[#allocation2 + $0x20] sm:$0xf] %v7352_v2  ;;  %6677 = vmatprep.subr.bf16.mxu0 %v7222_v3  ;;  %7196 = vmatprep.subr.bf16.mxu1 %v7222_v3  ;;  %v7226_v7 = vld [vmem:[%s9065_s3 + $0x58] sm:$0xff]   ;;  %s6387_s15 = sshll.u32 %s9207_s22, 7  ;;  %s265_s20 = scalar_lea.vmem %s9067_s5, %s9207_s22 }
  0x11   : > { %288 = vst [vmem:[#allocation2 + $0x2c] sm:$0xf] %v7352_v2  ;;  %289 = vst [vmem:[#allocation2 + $0x30] sm:$0xf] %v7352_v2  ;;  %v7227_v8 = vld [vmem:[%s9065_s3 + $0x18] sm:$0xff]   ;;  %v7228_v9 = vld [vmem:[%s9065_s3 + $0x60] sm:$0xff]   ;;  %s7438_s24 = scalar_lea.vmem %s9062_s0, %s6387_s15  ;;  %s8980_s19 = scalar_lea.vmem %s9066_s4, %s6387_s15 }
  0x12   : > { %290 = vst [vmem:[#allocation2 + $0x34] sm:$0xf] %v7352_v2  ;;  %295 = vst [vmem:[#allocation2 + $0x40] sm:$0xf] %v7352_v2  ;;  %v7229_v10 = vld [vmem:[%s9065_s3 + $0x20] sm:$0xff]   ;;  %v7230_v11 = vld [vmem:[%s9065_s3 + $0x68] sm:$0xff]   ;;  %s268_s26 = scalar_lea.vmem %s9068_s6, %s9207_s22 }
  0x13   : > { %296 = vst [vmem:[#allocation2 + $0x44] sm:$0xf] %v7352_v2  ;;  %297 = vst [vmem:[#allocation2 + $0x48] sm:$0xf] %v7352_v2  ;;  %6678 = vmatpush3.bf16.msra.mxu0 %v7223_v4  ;;  %7204 = vmatpush3.bf16.msra.mxu1 %v7223_v4  ;;  %v7231_v13 = vld [vmem:[%s9065_s3 + $0x28] sm:$0xff]   ;;  %v6647_v14 = vld [vmem:[%s7438_s24 + $0x58] sm:$0xff]  }
  0x14   : > { %302 = vst [vmem:[#allocation2 + $0x54] sm:$0xf] %v7352_v2  ;;  %303 = vst [vmem:[#allocation2 + $0x58] sm:$0xf] %v7352_v2  ;;  %6679 = vmatprep.subr.bf16.mxu0 %v7224_v5  ;;  %7197 = vmatprep.subr.bf16.mxu1 %v7224_v5  ;;  %v7450_v15 = vld [vmem:[%s9063_s1] ss:$0 sm:$0xff]  ;;  %v6499_v16 = vunpack.c.l.bf16 %v6647_v14  ;;  %v6500_v17 = vunpack.c.h.bf16 %v6647_v14 }
  0x15   : > { %304 = vst [vmem:[#allocation2 + $0x5c] sm:$0xf] %v7352_v2  ;;  %309 = vst [vmem:[#allocation2 + $0x68] sm:$0xf] %v7352_v2  ;;  %v7236_v12 = vld [vmem:[#allocation2 + $0x8] sm:$0xff]   ;;  %v7232_v24 = vld [vmem:[%s9065_s3 + $0x70] sm:$0xff]  }
  0x16   : > { %310 = vst [vmem:[#allocation2 + $0x6c] sm:$0xf] %v7352_v2  ;;  %311 = vst [vmem:[#allocation2 + $0x70] sm:$0xf] %v7352_v2  ;;  %4900 = vmatprep.mubr.bf16.mxu0 %v7236_v12  ;;  %v7455_v18 = vld [vmem:[%s9064_s2] ss:$0 sm:$0xff]  ;;  %v492_v25 = vmul.f32 %v6499_v16, %v7450_v15  ;;  %v493_v26 = vmul.f32 %v6500_v17, %v7450_v15 }
  0x17   : > { %316 = vst [vmem:[#allocation2 + $0x7c] sm:$0xf] %v7352_v2  ;;  %317 = vst [vmem:[#allocation2 + $0x80] sm:$0xf] %v7352_v2  ;;  %6680 = vmatpush3.bf16.msra.mxu0 %v7225_v6  ;;  %7205 = vmatpush3.bf16.msra.mxu1 %v7225_v6  ;;  %v734_v19 = vld [vmem:[#allocation2 + $0x4] sm:$0x8] }
  0x18   : > { %318 = vst [vmem:[#allocation2 + $0x84] sm:$0xf] %v7352_v2  ;;  %323 = vst [vmem:[#allocation2 + $0x90] sm:$0xf] %v7352_v2  ;;  %6681 = vmatprep.subr.bf16.mxu0 %v7226_v7  ;;  %7198 = vmatprep.subr.bf16.mxu1 %v7226_v7  ;;  %v735_v20 = vld [vmem:[#allocation2 + $0x8] sm:$0xf]  ;;  %v531_v33 = vadd.f32 %v7455_v18, %v492_v25  ;;  %v532_v34 = vadd.f32 %v7455_v18, %v493_v26 }
  0x19   : > { %324 = vst [vmem:[#allocation2 + $0x94] sm:$0xf] %v7352_v2  ;;  %325 = vst [vmem:[#allocation2 + $0x98] sm:$0xf] %v7352_v2  ;;  %vm275_vm0 = vsmask.f32 256 }
  0x1a   : > { %330 = vst [vmem:[#allocation2 + $0xa4] sm:$0xf] %v7352_v2  ;;  %331 = vst [vmem:[#allocation2 + $0xa8] sm:$0xf] %v7352_v2  ;;  %v736_v21 = vld [vmem:[#allocation2 + $0xc] sm:$0xf] }
  0x1b   : > { %332 = vst [vmem:[#allocation2 + $0xac] sm:$0xf] %v7352_v2  ;;  %337 = vst [vmem:[#allocation2 + $0xb8] sm:$0xf] %v7352_v2  ;;  %6682 = vmatpush3.bf16.msra.mxu0 %v7227_v8  ;;  %7206 = vmatpush3.bf16.msra.mxu1 %v7227_v8  ;;  %v785_v22 = vshrl.u32 %v734_v19, 16  ;;  %v790_v23 = vshrl.u32 %v735_v20, 16 }
  0x1c   : > { %338 = vst [vmem:[#allocation2 + $0xbc] sm:$0xf] %v7352_v2  ;;  %339 = vst [vmem:[#allocation2 + $0xc0] sm:$0xf] %v7352_v2  ;;  %6683 = vmatprep.subr.bf16.mxu0 %v7228_v9  ;;  %7199 = vmatprep.subr.bf16.mxu1 %v7228_v9  ;;  %v793_v27 = vshll.u32 %v735_v20, 16  ;;  %v799_v28 = vshrl.u32 %v736_v21, 16 }
  0x1d   : > { %344 = vst [vmem:[#allocation2 + $0xcc] sm:$0xf] %v7352_v2  ;;  %345 = vst [vmem:[#allocation2 + $0xd0] sm:$0xf] %v7352_v2  ;;  %v7233_v29 = vld [vmem:[%s9065_s3 + $0x30] sm:$0xff]   ;;  %v792_v30 = vrot.slane %v790_v23, 7 }
  0x1e   : > { %346 = vst [vmem:[#allocation2 + $0xd4] sm:$0xf] %v7352_v2  ;;  %351 = vst [vmem:[#allocation2 + $0xe0] sm:$0xf] %v7352_v2  ;;  %vm782_vm1 = vsmask.f32 4368 }
  0x1f   : > { %352 = vst [vmem:[#allocation2 + $0xe4] sm:$0xf] %v7352_v2  ;;  %353 = vst [vmem:[#allocation2 + $0xe8] sm:$0xf] %v7352_v2  ;;  %6684 = vmatpush3.bf16.msra.mxu0 %v7229_v10  ;;  %7207 = vmatpush3.bf16.msra.mxu1 %v7229_v10  ;;  %v802_v31 = vshll.u32 %v736_v21, 16  ;;  %v7234_v32 = vld [vmem:[%s9065_s3 + $0x78] sm:$0xff]   ;;  %v795_v37 = vor.u32 %v793_v27, %v792_v30 }
  0x20   : > { %358 = vst [vmem:[#allocation2 + $0xf4] sm:$0xf] %v7352_v2  ;;  %359 = vst [vmem:[#allocation2 + $0xf8] sm:$0xf] %v7352_v2  ;;  %6685 = vmatprep.subr.bf16.mxu0 %v7230_v11  ;;  %7200 = vmatprep.subr.bf16.mxu1 %v7230_v11  ;;  %v801_v35 = vrot.slane %v799_v28, 7  ;;  %v6089_v36 = vrot.slane %v785_v22, 11 }
  0x21   : > { %360 = vst [vmem:[#allocation2 + $0xfc] sm:$0xf] %v7352_v2  ;;  %365 = vst [vmem:[#allocation2 + $0x108] sm:$0xf] %v7352_v2  ;;  %v797_v38 = vrot.slane %v792_v30, 4  ;;  %v563_v40 = vmax.f32 %v531_v33, 0.0 }
  0x22   : > { %366 = vst [vmem:[#allocation2 + $0x10c] sm:$0xf] %v7352_v2  ;;  %367 = vst [vmem:[#allocation2 + $0x110] sm:$0xf] %v7352_v2  ;;  %v564_v41 = vmax.f32 %v532_v34, 0.0  ;;  %v804_v43 = vor.u32 %v802_v31, %v801_v35  ;;  %v7235_v44 = vld [vmem:[%s9065_s3 + $0x38] sm:$0xff]  }
  0x23   : > { %372 = vst [vmem:[#allocation2 + $0x11c] sm:$0xf] %v7352_v2  ;;  %373 = vst [vmem:[#allocation2 + $0x120] sm:$0xf] %v7352_v2  ;;  %6686 = vmatpush3.bf16.msra.mxu0 %v7231_v13  ;;  %7208 = vmatpush3.bf16.msra.mxu1 %v7231_v13  ;;  %v7238_v46 = vld [vmem:[%s9065_s3 + $0xc0] sm:$0xff]   ;;  %v7249_v9 = vld [vmem:[%s9065_s3 + $0x148] sm:$0xff]  }
  0x24   : > { %374 = vst [vmem:[#allocation2 + $0x124] sm:$0xf] %v7352_v2  ;;  %379 = vst [vmem:[#allocation2 + $0x130] sm:$0xf] %v7352_v2  ;;  %6687 = vmatprep.subr.bf16.mxu0 %v7232_v24  ;;  %7201 = vmatprep.subr.bf16.mxu1 %v7232_v24  ;;  %v6545_v45 = vpack.c.bf16 %v564_v41, %v563_v40  ;;  %v7239_v50 = vld [vmem:[%s9065_s3 + $0x140] sm:$0xff]   ;;  %v7251_v13 = vld [vmem:[%s9065_s3 + $0x108] sm:$0xff]  }
  0x25   : > { %380 = vst [vmem:[#allocation2 + $0x134] sm:$0xf] %v7352_v2  ;;  %381 = vst [vmem:[#allocation2 + $0x138] sm:$0xf] %v7352_v2  ;;  %v6454_v51 = vld [vmem:[%s7438_s24] sm:$0xff]   ;;  %v6637_v23 = vld [vmem:[%s7438_s24 + $0x8] sm:$0xff]  }
  0x26   : > { %386 = vst [vmem:[#allocation2 + $0x144] sm:$0xf] %v7352_v2  ;;  %387 = vst [vmem:[#allocation2 + $0x148] sm:$0xf] %v7352_v2  ;;  %v6455_v52 = vunpack.c.l.bf16 %v6454_v51  ;;  %v6456_v53 = vunpack.c.h.bf16 %v6454_v51  ;;  %v6648_v54 = vld [vmem:[%s7438_s24 + $0x60] sm:$0xff]   ;;  %v6459_v30 = vunpack.c.l.bf16 %v6637_v23  ;;  %v6460_v31 = vunpack.c.h.bf16 %v6637_v23 }
  0x27   : > { %388 = vst [vmem:[#allocation2 + $0x14c] sm:$0xf] %v7352_v2  ;;  %393 = vst [vmem:[#allocation2 + $0x158] sm:$0xf] %v7352_v2  ;;  %v770_v39 = vld [vmem:[#allocation2 + $0xf4] sm:$0x8]  ;;  %6688 = vmatpush3.bf16.msra.mxu0 %v7233_v29  ;;  %7209 = vmatpush3.bf16.msra.mxu1 %v7233_v29  ;;  %v6503_v57 = vunpack.c.l.bf16 %v6648_v54  ;;  %v6504_v58 = vunpack.c.h.bf16 %v6648_v54 }
  0x28   : > { %394 = vst [vmem:[#allocation2 + $0x15c] sm:$0xf] %v7352_v2  ;;  %395 = vst [vmem:[#allocation2 + $0x160] sm:$0xf] %v7352_v2  ;;  %v1049_v49 = vshrl.u32 %v770_v39, 16  ;;  %6689 = vmatprep.subr.bf16.mxu0 %v7234_v32  ;;  %7202 = vmatprep.subr.bf16.mxu1 %v7234_v32  ;;  %v470_v61 = vmul.f32 %v6455_v52, %v7450_v15  ;;  %v471_v62 = vmul.f32 %v6456_v53, %v7450_v15  ;;  %v7241_v1 = vld [vmem:[%s9065_s3 + $0x100] sm:$0xff]  }
  0x29   : > { %vm7472_vm2 = vmor %vm275_vm0, %vm782_vm1  ;;  %6657 = vst [vmem:[#allocation2 + $0xf8] sm:$0xff] %v6545_v45   ;;  %v737_v55 = vld [vmem:[#allocation2 + $0x18] sm:$0x8]  ;;  %v773_v56 = vld [vmem:[#allocation2 + $0x108] sm:$0x8]  ;;  %v494_v2 = vmul.f32 %v6503_v57, %v7450_v15  ;;  %v495_v3 = vmul.f32 %v6504_v58, %v7450_v15  ;;  %v472_v39 = vmul.f32 %v6459_v30, %v7450_v15  ;;  %v473_v40 = vmul.f32 %v6460_v31, %v7450_v15 }
  0x2a   : > { %v796_v47 = vsel %vm7472_vm2, %v6089_v36, %v795_v37  ;;  %v805_v48 = vsel %vm7472_vm2, %v797_v38, %v804_v43  ;;  %v807_v59 = vshrl.u32 %v737_v55, 16  ;;  %v1071_v63 = vshrl.u32 %v773_v56, 16  ;;  %v6649_v32 = vld [vmem:[%s7438_s24 + $0x68] sm:$0xff]   ;;  %v776_v34 = vld [vmem:[#allocation2 + $0x11c] sm:$0x8]  ;;  %v6638_v57 = vld [vmem:[%s7438_s24 + $0x10] sm:$0xff]  }
  0x2b   : > { %v6105_v60 = vcombine.low %v796_v47, %v805_v48  ;;  %6690 = vmatpush3.bf16.msra.mxu0 %v7235_v44  ;;  %7210 = vmatpush3.bf16.msra.mxu1 %v7235_v44  ;;  %v7493_v0 = vrot.slane %v1049_v49, 11  ;;  %v509_v4 = vadd.f32 %v7455_v18, %v470_v61  ;;  %v510_v5 = vadd.f32 %v7455_v18, %v471_v62  ;;  %v740_v33 = vld [vmem:[#allocation2 + $0x2c] sm:$0x8]  ;;  %v7240_v48 = vld [vmem:[%s9065_s3 + $0x80] sm:$0xff]   ;;  %v6650_v58 = vld [vmem:[%s7438_s24 + $0x70] sm:$0xff]  }
  0x2c   : > { %6787 = vmatprep.subr.bf16.mxu1 %v7238_v46  ;;  %6899 = vmatprep.subr.bf16.mxu0 %v7239_v50  ;;  %v533_v6 = vadd.f32 %v7455_v18, %v494_v2  ;;  %v534_v7 = vadd.f32 %v7455_v18, %v495_v3  ;;  %v7504_v8 = vrot.slane %v807_v59, 11  ;;  %v7509_v12 = vrot.slane %v1071_v63, 11  ;;  %vm7652_vm4 = vmand %vm274_vm3, %vm275_vm0 }
  0x2d   : > { %v541_v10 = vmax.f32 %v509_v4, 0.0  ;;  %v542_v11 = vmax.f32 %v510_v5, 0.0  ;;  %v6507_v37 = vunpack.c.l.bf16 %v6649_v32  ;;  %v6508_v38 = vunpack.c.h.bf16 %v6649_v32  ;;  %v7247_v32 = vld [vmem:[%s9065_s3 + $0x90] sm:$0xff]  }
  0x2e   : > { %4901 = vmatmul.mubr.bf16.vlgmr.msra.gmra.mrb[0].mxu0 %v6105_v60  ;;  %v565_v16 = vmax.f32 %v533_v6, 0.0  ;;  %v566_v22 = vmax.f32 %v534_v7, 0.0  ;;  %v829_v41 = vshrl.u32 %v740_v33, 16  ;;  %v1093_v43 = vshrl.u32 %v776_v34, 16  ;;  %v7242_v60 = vld [vmem:[%s9065_s3 + $0xc8] sm:$0xff]   ;;  %v7261_v34 = vld [vmem:[%s9065_s3 + $0x150] sm:$0xff]  }
  0x2f   : > { %6900 = vmatpush3.bf16.msra.mxu0 %v7241_v1  ;;  %v6389_v20 = vpack.c.bf16 %v541_v10, %v541_v10  ;;  %v6390_v21 = vpack.c.bf16 %v542_v11, %v542_v11  ;;  %v496_v47 = vmul.f32 %v6507_v37, %v7450_v15  ;;  %v511_v49 = vadd.f32 %v7455_v18, %v472_v39  ;;  %v7541_v1 = vld [vmem:[#allocation2 + $0x40] sm:$0x8] }
  0x30   : > { %v7237_v14 = vld [vmem:[#allocation2 + $0xf8] sm:$0xff]   ;;  %6901 = vmatprep.subr.bf16.mxu0 %v7249_v9  ;;  %v6413_v28 = vpack.c.bf16 %v565_v16, %v565_v16  ;;  %v6414_v29 = vpack.c.bf16 %v566_v22, %v566_v22  ;;  %v512_v50 = vadd.f32 %v7455_v18, %v473_v40  ;;  %v497_v51 = vmul.f32 %v6508_v38, %v7450_v15 }
  0x31   : > { %v771_v17 = vld [vmem:[#allocation2 + $0xf8] sm:$0xf]  ;;  %v772_v19 = vld [vmem:[#allocation2 + $0xfc] sm:$0xf]  ;;  %4996 = vmatprep.mubr.bf16.mxu1 %v7237_v14  ;;  %702 = vst [vmem:[#allocation2 + $0x1c] sm:$0xf] %v6389_v20  ;;  %v535_v55 = vadd.f32 %v7455_v18, %v496_v47  ;;  %v6463_v4 = vunpack.c.l.bf16 %v6638_v57  ;;  %v6464_v5 = vunpack.c.h.bf16 %v6638_v57  ;;  %v6511_v6 = vunpack.c.l.bf16 %v6650_v58 }
  0x32   : > { %v1054_v24 = vshrl.u32 %v771_v17, 16  ;;  %v1057_v25 = vshll.u32 %v771_v17, 16  ;;  %v1063_v26 = vshrl.u32 %v772_v19, 16  ;;  %v1066_v27 = vshll.u32 %v772_v19, 16  ;;  %703 = vst [vmem:[#allocation2 + $0x20] sm:$0xf] %v6390_v21 }
  0x33   : > { %6902 = vmatpush3.bf16.msra.mxu0 %v7251_v13  ;;  %726 = vst [vmem:[#allocation2 + $0x10c] sm:$0xf] %v6413_v28  ;;  %727 = vst [vmem:[#allocation2 + $0x110] sm:$0xf] %v6414_v29  ;;  %v7525_v52 = vrot.slane %v829_v41, 11  ;;  %v7533_v56 = vrot.slane %v1093_v43, 11  ;;  %v536_v63 = vadd.f32 %v7455_v18, %v497_v51  ;;  %v6512_v13 = vunpack.c.h.bf16 %v6650_v58 }
  0x34   : > { %v1056_v35 = vrot.slane %v1054_v24, 7  ;;  %v1065_v36 = vrot.slane %v1063_v26, 7  ;;  %v543_v61 = vmax.f32 %v511_v49, 0.0  ;;  %v544_v62 = vmax.f32 %v512_v50, 0.0  ;;  %v7246_v26 = vld [vmem:[%s9065_s3 + $0xd0] sm:$0xff]   ;;  %v7248_v38 = vld [vmem:[%s9065_s3 + $0xd8] sm:$0xff]   ;;  %6903 = vmatprep.subr.bf16.mxu0 %v7261_v34 }
  0x35   : > { %v567_v3 = vmax.f32 %v535_v55, 0.0  ;;  %v568_v11 = vmax.f32 %v536_v63, 0.0  ;;  %v851_v14 = vshrl.u32 %v7541_v1, 16  ;;  %v474_v19 = vmul.f32 %v6463_v4, %v7450_v15  ;;  %v7254_v1 = vld [vmem:[%s9065_s3 + $0xe0] sm:$0xff]  }
  0x36   : > { %v1059_v44 = vor.u32 %v1057_v25, %v1056_v35  ;;  %v1061_v45 = vrot.slane %v1056_v35, 4  ;;  %v1068_v46 = vor.u32 %v1066_v27, %v1065_v36  ;;  %v6520_v10 = vpack.c.bf16 %v544_v62, %v543_v61 }
  0x37   : > { %v475_v20 = vmul.f32 %v6464_v5, %v7450_v15  ;;  %v498_v21 = vmul.f32 %v6511_v6, %v7450_v15  ;;  %v6550_v27 = vpack.c.bf16 %v568_v11, %v567_v3  ;;  %v513_v33 = vadd.f32 %v7455_v18, %v474_v19 }
  0x38   : > { %v1060_v53 = vsel %vm7472_vm2, %v7493_v0, %v1059_v44  ;;  %v1069_v54 = vsel %vm7472_vm2, %v1061_v45, %v1068_v46  ;;  %v7243_v0 = vld [vmem:[%s9065_s3 + $0x88] sm:$0xff]   ;;  %v738_v7 = vld [vmem:[#allocation2 + $0x1c] sm:$0xf]  ;;  %6652 = vst [vmem:[#allocation2 + $0x30] sm:$0xff] %v6520_v10   ;;  %v7564_v45 = vld [vmem:[#allocation2 + $0x130] sm:$0x8]  ;;  %v499_v50 = vmul.f32 %v6512_v13, %v7450_v15 }
  0x39   : > { %v6117_v59 = vcombine.low %v1060_v53, %v1069_v54  ;;  %v7244_v2 = vld [vmem:[#allocation2 + $0x1c] sm:$0xff]   ;;  %v812_v17 = vshrl.u32 %v738_v7, 16  ;;  %v815_v22 = vshll.u32 %v738_v7, 16  ;;  %6658 = vst [vmem:[#allocation2 + $0x120] sm:$0xff] %v6550_v27   ;;  %v514_v39 = vadd.f32 %v7455_v18, %v475_v20  ;;  %v7263_v46 = vld [vmem:[%s9065_s3 + $0x110] sm:$0xff]  }
  0x3a   : > { %v739_v9 = vld [vmem:[#allocation2 + $0x20] sm:$0xf]  ;;  %4908 = vmatprep.mubr.bf16.mxu0 %v7244_v2  ;;  %v7245_v16 = vld [vmem:[#allocation2 + $0x10c] sm:$0xff]   ;;  %v545_v44 = vmax.f32 %v513_v33, 0.0  ;;  %6904 = vmatpush3.bf16.msra.mxu0 %v7263_v46  ;;  %v537_v61 = vadd.f32 %v7455_v18, %v498_v21  ;;  %v7586_v2 = vrot.slane %v851_v14, 11 }
  0x3b   : > { %4997 = vmatmul.mubr.bf16.vlgmr.msra.gmra.mrb[0].mxu1 %v6117_v59  ;;  %v821_v23 = vshrl.u32 %v739_v9, 16  ;;  %v824_v24 = vshll.u32 %v739_v9, 16  ;;  %v774_v25 = vld [vmem:[#allocation2 + $0x10c] sm:$0xf]  ;;  %v814_v28 = vrot.slane %v812_v17, 7  ;;  %v546_v49 = vmax.f32 %v514_v39, 0.0 }
  0x3c   : > { %6788 = vmatpush3.bf16.msra.mxu1 %v7240_v48  ;;  %5004 = vmatprep.mubr.bf16.mxu1 %v7245_v16  ;;  %v775_v29 = vld [vmem:[#allocation2 + $0x110] sm:$0xf]  ;;  %v1076_v30 = vshrl.u32 %v774_v25, 16  ;;  %v1079_v31 = vshll.u32 %v774_v25, 16  ;;  %v6393_v55 = vpack.c.bf16 %v545_v44, %v545_v44  ;;  %v7250_v59 = vld [vmem:[%s9065_s3 + $0x98] sm:$0xff]   ;;  %v569_v6 = vmax.f32 %v537_v61, 0.0 }
  0x3d   : > { %6789 = vmatprep.subr.bf16.mxu1 %v7242_v60  ;;  %v823_v35 = vrot.slane %v821_v23, 7  ;;  %v1085_v36 = vshrl.u32 %v775_v29, 16  ;;  %v1088_v37 = vshll.u32 %v775_v29, 16  ;;  %v817_v40 = vor.u32 %v815_v22, %v814_v28  ;;  %v7255_v23 = vld [vmem:[%s9065_s3 + $0xa0] sm:$0xff]   ;;  %v6639_v29 = vld [vmem:[%s7438_s24 + $0x18] sm:$0xff]   ;;  %v7256_v33 = vld [vmem:[%s9065_s3 + $0xe8] sm:$0xff]  }
  0x3e   : > { %v819_v41 = vrot.slane %v814_v28, 4  ;;  %v1078_v43 = vrot.slane %v1076_v30, 7  ;;  %v6394_v60 = vpack.c.bf16 %v546_v49, %v546_v49  ;;  %706 = vst [vmem:[#allocation2 + $0x44] sm:$0xf] %v6393_v55  ;;  %v6467_v39 = vunpack.c.l.bf16 %v6639_v29 }
  0x3f   : > { %v826_v47 = vor.u32 %v824_v24, %v823_v35  ;;  %v1087_v48 = vrot.slane %v1085_v36, 7  ;;  %v818_v51 = vsel %vm7472_vm2, %v7504_v8, %v817_v40  ;;  %v7252_v63 = vld [vmem:[#allocation2 + $0x30] sm:$0xff]   ;;  %v6417_v24 = vpack.c.bf16 %v569_v6, %v569_v6 }
  0x40   : > { %6790 = vmatpush3.bf16.msra.mxu1 %v7243_v0  ;;  %v1081_v53 = vor.u32 %v1079_v31, %v1078_v43  ;;  %v1083_v54 = vrot.slane %v1078_v43, 4  ;;  %v538_v0 = vadd.f32 %v7455_v18, %v499_v50  ;;  %v741_v4 = vld [vmem:[#allocation2 + $0x30] sm:$0xf]  ;;  %v742_v5 = vld [vmem:[#allocation2 + $0x34] sm:$0xf]  ;;  %v7253_v9 = vld [vmem:[#allocation2 + $0x120] sm:$0xff]   ;;  %v6468_v40 = vunpack.c.h.bf16 %v6639_v29 }
  0x41   : > { %6791 = vmatprep.subr.bf16.mxu1 %v7246_v26  ;;  %v827_v57 = vsel %vm7472_vm2, %v819_v41, %v826_v47  ;;  %v1090_v58 = vor.u32 %v1088_v37, %v1087_v48  ;;  %707 = vst [vmem:[#allocation2 + $0x48] sm:$0xf] %v6394_v60  ;;  %v834_v10 = vshrl.u32 %v741_v4, 16  ;;  %v837_v11 = vshll.u32 %v741_v4, 16  ;;  %v777_v14 = vld [vmem:[#allocation2 + $0x120] sm:$0xf] }
  0x42   : > { %v6106_v62 = vcombine.low %v818_v51, %v827_v57  ;;  %v1082_v8 = vsel %vm7472_vm2, %v7509_v12, %v1081_v53  ;;  %v1115_v12 = vshrl.u32 %v7564_v45, 16  ;;  %v843_v13 = vshrl.u32 %v742_v5, 16  ;;  %v778_v20 = vld [vmem:[#allocation2 + $0x124] sm:$0xf]  ;;  %730 = vst [vmem:[#allocation2 + $0x134] sm:$0xf] %v6417_v24 }
  0x43   : > { %v1091_v3 = vsel %vm7472_vm2, %v1083_v54, %v1090_v58  ;;  %v846_v16 = vshll.u32 %v742_v5, 16  ;;  %v570_v17 = vmax.f32 %v538_v0, 0.0  ;;  %v836_v19 = vrot.slane %v834_v10, 7  ;;  %v7257_v37 = vld [vmem:[%s9065_s3 + $0xa8] sm:$0xff]   ;;  %v1875_v51 = vld [vmem:[#allocation2 + $0x18] sm:$0x8] }
  0x44   : > { %6792 = vmatpush3.bf16.msra.mxu1 %v7247_v32  ;;  %4909 = vmatmul.mubr.bf16.gmra.mrb[4].mxu0 %v6106_v62  ;;  %v6118_v7 = vcombine.low %v1082_v8, %v1091_v3  ;;  %v1098_v21 = vshrl.u32 %v777_v14, 16  ;;  %v1101_v22 = vshll.u32 %v777_v14, 16  ;;  %v845_v25 = vrot.slane %v843_v13, 7  ;;  %v7260_v57 = vld [vmem:[%s9065_s3 + $0xf0] sm:$0xff]   ;;  %v7614_v58 = vld [vmem:[#allocation2 + $0x1c] sm:$0xf] }
  0x45   : > { %6793 = vmatprep.subr.bf16.mxu1 %v7248_v38  ;;  %4916 = vmatprep.mubr.bf16.mxu0 %v7252_v63  ;;  %v1107_v26 = vshrl.u32 %v778_v20, 16  ;;  %v1110_v27 = vshll.u32 %v778_v20, 16  ;;  %v6418_v28 = vpack.c.bf16 %v570_v17, %v570_v17  ;;  %v839_v30 = vor.u32 %v837_v11, %v836_v19  ;;  %v744_v38 = vld [vmem:[#allocation2 + $0x44] sm:$0xf]  ;;  %v7264_v0 = vld [vmem:[%s9065_s3 + $0xf8] sm:$0xff]  }
  0x46   : > { %5005 = vmatmul.mubr.bf16.gmra.mrb[4].mxu1 %v6118_v7  ;;  %v841_v31 = vrot.slane %v836_v19, 4  ;;  %v1100_v32 = vrot.slane %v1098_v21, 7  ;;  %v7598_v34 = vrot.slane %v1115_v12, 11  ;;  %v848_v35 = vor.u32 %v846_v16, %v845_v25  ;;  %v7270_v5 = vld [vmem:[%s9065_s3 + $0x118] sm:$0xff]   ;;  %v7636_v11 = vld [vmem:[%s7438_s24 + $0x20] sm:$0xff]  }
  0x47   : > { %5012 = vmatprep.mubr.bf16.mxu1 %v7253_v9  ;;  %v1109_v36 = vrot.slane %v1107_v26, 7  ;;  %731 = vst [vmem:[#allocation2 + $0x138] sm:$0xf] %v6418_v28  ;;  %v840_v41 = vsel %vm7472_vm2, %v7525_v52, %v839_v30  ;;  %v856_v49 = vshrl.u32 %v744_v38, 16  ;;  %v859_v50 = vshll.u32 %v744_v38, 16  ;;  %v7265_v25 = vld [vmem:[%s9065_s3 + $0xb8] sm:$0xff]  }
  0x48   : > { %6794 = vmatpush3.bf16.msra.mxu1 %v7250_v59  ;;  %v1103_v43 = vor.u32 %v1101_v22, %v1100_v32  ;;  %v1105_v44 = vrot.slane %v1100_v32, 4  ;;  %v7258_v45 = vld [vmem:[#allocation2 + $0x44] sm:$0xff]   ;;  %v849_v47 = vsel %vm7472_vm2, %v841_v31, %v848_v35  ;;  %v476_v61 = vmul.f32 %v6467_v39, %v7450_v15  ;;  %v1877_v19 = vld [vmem:[#allocation2 + $0x20] sm:$0xf]  ;;  %v277_v26 = vld [vmem:[#allocation2 + $0x10] sm:$0x1] }
  0x49   : > { %6795 = vmatprep.subr.bf16.mxu1 %v7254_v1  ;;  %v745_v46 = vld [vmem:[#allocation2 + $0x48] sm:$0xf]  ;;  %v1112_v48 = vor.u32 %v1110_v27, %v1109_v36  ;;  %v6107_v53 = vcombine.low %v840_v41, %v849_v47  ;;  %v858_v60 = vrot.slane %v856_v49, 7  ;;  %v477_v62 = vmul.f32 %v6468_v40, %v7450_v15  ;;  %v7262_v1 = vld [vmem:[%s9065_s3 + $0xb0] sm:$0xff]   ;;  %v7267_v39 = vld [vmem:[%s9065_s3 + $0x1c0] sm:$0xff]  }
  0x4a   : > { %v1104_v54 = vsel %vm7472_vm2, %v7533_v56, %v1103_v43  ;;  %v865_v55 = vshrl.u32 %v745_v46, 16  ;;  %v868_v52 = vshll.u32 %v745_v46, 16  ;;  %v7269_v56 = vld [vmem:[%s9065_s3 + $0x158] sm:$0xff]   ;;  %v1924_v3 = vshrl.u32 %v1875_v51, 16  ;;  %v780_v7 = vld [vmem:[#allocation2 + $0x134] sm:$0xf] }
  0x4b   : > { %v1113_v59 = vsel %vm7472_vm2, %v1105_v44, %v1112_v48  ;;  %v1929_v4 = vshrl.u32 %v7614_v58, 16  ;;  %v861_v6 = vor.u32 %v859_v50, %v858_v60  ;;  %v863_v12 = vrot.slane %v858_v60, 4  ;;  %6905 = vmatprep.subr.bf16.mxu0 %v7269_v56  ;;  %v746_v31 = vld [vmem:[#allocation2 + $0x54] sm:$0x8]  ;;  %v1360_v32 = vld [vmem:[#allocation2 + $0x8] sm:$0xf] }
  0x4c   : > { %6796 = vmatpush3.bf16.msra.mxu1 %v7255_v23  ;;  %4917 = vmatmul.mubr.bf16.gmra.mrb[8].mxu0 %v6107_v53  ;;  %v6119_v8 = vcombine.low %v1104_v54, %v1113_v59  ;;  %v867_v63 = vrot.slane %v865_v55, 7  ;;  %v515_v9 = vadd.f32 %v7455_v18, %v476_v61  ;;  %v516_v10 = vadd.f32 %v7455_v18, %v477_v62  ;;  %v7275_v50 = vld [vmem:[%s9065_s3 + $0x120] sm:$0xff]   ;;  %v1878_v62 = vld [vmem:[#allocation2 + $0x2c] sm:$0x8] }
  0x4d   : > { %6797 = vmatprep.subr.bf16.mxu1 %v7256_v33  ;;  %4924 = vmatprep.mubr.bf16.mxu0 %v7258_v45  ;;  %v1120_v17 = vshrl.u32 %v780_v7, 16  ;;  %v6471_v20 = vunpack.c.l.bf16 %v7636_v11  ;;  %v862_v21 = vsel %vm7472_vm2, %v7586_v2, %v861_v6  ;;  %v1123_v22 = vshll.u32 %v780_v7, 16  ;;  %v7273_v2 = vld [vmem:[%s9065_s3 + $0x160] sm:$0xff]   ;;  %v1361_v45 = vld [vmem:[#allocation2 + $0xc] sm:$0xf] }
  0x4e   : > { %5013 = vmatmul.mubr.bf16.gmra.mrb[8].mxu1 %v6119_v8  ;;  %v7259_v13 = vld [vmem:[#allocation2 + $0x134] sm:$0xff]   ;;  %v870_v16 = vor.u32 %v868_v52, %v867_v63  ;;  %v547_v29 = vmax.f32 %v515_v9, 0.0  ;;  %v548_v30 = vmax.f32 %v516_v10, 0.0  ;;  %6906 = vmatpush3.bf16.msra.mxu0 %v7270_v5  ;;  %v6153_v36 = vrot.slane %v1924_v3, 11 }
  0x4f   : > { %v781_v14 = vld [vmem:[#allocation2 + $0x138] sm:$0xf]  ;;  %5020 = vmatprep.mubr.bf16.mxu1 %v7259_v13  ;;  %v1122_v28 = vrot.slane %v1120_v17, 7  ;;  %v9072_v38 = vmov 0  ;;  %v1932_v44 = vshll.u32 %v7614_v58, 16  ;;  %6907 = vmatprep.subr.bf16.mxu0 %v7273_v2  ;;  %v1938_v47 = vshrl.u32 %v1877_v19, 16 }
  0x50   : > { %6798 = vmatpush3.bf16.msra.mxu1 %v7257_v37  ;;  %v1129_v23 = vshrl.u32 %v781_v14, 16  ;;  %v1132_v24 = vshll.u32 %v781_v14, 16  ;;  %v871_v27 = vsel %vm7472_vm2, %v863_v12, %v870_v16  ;;  %v1931_v37 = vrot.slane %v1929_v4, 7  ;;  %v7682_v13 = vld [vmem:[%s7438_s24 + $0x28] sm:$0xff]   ;;  %v7685_v16 = vld [vmem:[%s7438_s24 + $0x30] sm:$0xff]  }
  0x51   : > { %6799 = vmatprep.subr.bf16.mxu1 %v7260_v57  ;;  %v6108_v33 = vcombine.low %v862_v21, %v871_v27  ;;  %v9073_v38 = vsel %vm7652_vm4, 4294967295, %v9072_v38  ;;  %v1125_v40 = vor.u32 %v1123_v22, %v1122_v28  ;;  %v1127_v41 = vrot.slane %v1122_v28, 4 }
  0x52   : > { %v1131_v35 = vrot.slane %v1129_v23, 7  ;;  %9074 = vst [vmem:[#allocation4_spill] sm:$0xff] %v9073_v38  ;;  %v6525_v43 = vpack.c.bf16 %v548_v30, %v547_v29  ;;  %vm1408_vm5 = vsmask.f32 3328  ;;  %v1941_v48 = vshll.u32 %v1877_v19, 16  ;;  %6908 = vmatpush3.bf16.msra.mxu0 %v7275_v50 }
  0x53   : > { %v6472_v49 = vunpack.c.h.bf16 %v7636_v11  ;;  %v1126_v51 = vsel %vm7472_vm2, %v7598_v34, %v1125_v40  ;;  %v1934_v53 = vor.u32 %v1932_v44, %v1931_v37  ;;  %v1936_v54 = vrot.slane %v1931_v37, 4 }
  0x54   : > { %6800 = vmatpush3.bf16.msra.mxu1 %v7262_v1  ;;  %v1134_v46 = vor.u32 %v1132_v24, %v1131_v35  ;;  %4925 = vmatmul.mubr.bf16.gmra.mrb[12].mxu0 %v6108_v33  ;;  %6653 = vst [vmem:[#allocation2 + $0x58] sm:$0xff] %v6525_v43   ;;  %v278_v55 = vsel %vm7652_vm4, 0, %v277_v26  ;;  %v1940_v57 = vrot.slane %v1938_v47, 7  ;;  %v873_v58 = vshrl.u32 %v746_v31, 16 }
  0x55   : > { %6801 = vmatprep.subr.bf16.mxu1 %v7264_v0  ;;  %279 = vst [vmem:[#allocation2 + $0x10] sm:$0x1] %v278_v55  ;;  %v1412_v59 = vshrl.u32 %v1360_v32, 16  ;;  %v1935_v61 = vsel %vm7472_vm2, %v6153_v36, %v1934_v53  ;;  %vm1409_vm6 = vsmask.f32 7440  ;;  %v1415_v34 = vshll.u32 %v1360_v32, 16 }
  0x56   : > { %v1135_v52 = vsel %vm7472_vm2, %v1127_v41, %v1134_v46  ;;  %v1943_v56 = vor.u32 %v1941_v48, %v1940_v57  ;;  %v1421_v63 = vshll.u32 %v1361_v45, 16  ;;  %v1425_v1 = vshrl.u32 %v1361_v45, 16  ;;  %v1879_v0 = vld [vmem:[#allocation2 + $0x30] sm:$0xf]  ;;  %vm7697_vm7 = vmor %vm1408_vm5, %vm1409_vm6  ;;  %v749_v45 = vld [vmem:[#allocation2 + $0x68] sm:$0x8] }
  0x57   : > { %v6120_v60 = vcombine.low %v1126_v51, %v1135_v52  ;;  %v1414_v8 = vrot.slane %v1412_v59, 4  ;;  %v1417_v3 = vrot.slane %v1415_v34, 5  ;;  %v478_v4 = vmul.f32 %v6471_v20, %v7450_v15  ;;  %v7268_v48 = vld [vmem:[%s9065_s3 + $0x180] sm:$0xff]   ;;  %v1363_v53 = vld [vmem:[#allocation2 + $0x1c] sm:$0xf]  ;;  %v7274_v59 = vld [vmem:[%s9065_s3 + $0x1c8] sm:$0xff]  }
  0x58   : > { %6802 = vmatpush3.bf16.msra.mxu1 %v7265_v25  ;;  %v479_v5 = vmul.f32 %v6472_v49, %v7450_v15  ;;  %v1946_v6 = vshrl.u32 %v1878_v62, 16  ;;  %v1944_v12 = vsel %vm7472_vm2, %v1936_v54, %v1943_v56  ;;  %v7679_v7 = vrot.slane %v873_v58, 11  ;;  %v284_v51 = vld [vmem:[#allocation2 + $0x24] sm:$0x1]  ;;  %v1364_v54 = vld [vmem:[#allocation2 + $0x20] sm:$0xf] }
  0x59   : > { %7011 = vmatprep.subr.bf16.mxu1 %v7267_v39  ;;  %5021 = vmatmul.mubr.bf16.gmra.mrb[12].mxu1 %v6120_v60  ;;  %v1423_v9 = vrot.slane %v1421_v63, 5  ;;  %v1427_v10 = vrot.slane %v1425_v1, 4  ;;  %v6169_v14 = vcombine.low %v1935_v61, %v1944_v12  ;;  %v1418_v17 = vor.u32 %v1417_v3, %v1414_v8  ;;  %v1880_v39 = vld [vmem:[#allocation2 + $0x34] sm:$0xf]  ;;  %v7278_v60 = vld [vmem:[%s9065_s3 + $0x168] sm:$0xff]  }
  0x5a   : > { %v517_v19 = vadd.f32 %v7455_v18, %v478_v4  ;;  %v1951_v11 = vshrl.u32 %v1879_v0, 16  ;;  %v518_v15 = vadd.f32 %v7455_v18, %v479_v5  ;;  %v7689_v22 = vrot.slane %v1946_v6, 11  ;;  %6909 = vmatprep.subr.bf16.mxu0 %v7278_v60  ;;  %v7279_v3 = vld [vmem:[%s9065_s3 + $0x128] sm:$0xff]  }
  0x5b   : > { %v7266_v20 = vld [vmem:[#allocation2 + $0x58] sm:$0xff]   ;;  %v1428_v21 = vor.u32 %v1427_v10, %v1423_v9  ;;  %5061 = vmatprep.mubr.bf16.mxu1 %v6169_v14  ;;  %v6475_v26 = vunpack.c.l.bf16 %v7682_v13  ;;  %v6476_v27 = vunpack.c.h.bf16 %v7682_v13  ;;  %v6479_v28 = vunpack.c.l.bf16 %v7685_v16  ;;  %6910 = vmatpush3.bf16.msra.mxu0 %v7279_v3 }
  0x5c   : > { %v747_v23 = vld [vmem:[#allocation2 + $0x58] sm:$0xf]  ;;  %v748_v24 = vld [vmem:[#allocation2 + $0x5c] sm:$0xf]  ;;  %v1362_v25 = vld [vmem:[#allocation2 + $0x10] sm:$0x1]  ;;  %v6480_v29 = vunpack.c.h.bf16 %v7685_v16  ;;  %4932 = vmatprep.mubr.bf16.mxu0 %v7266_v20 }
  0x5d   : > { %v878_v30 = vshrl.u32 %v747_v23, 16  ;;  %v881_v31 = vshll.u32 %v747_v23, 16  ;;  %v887_v32 = vshrl.u32 %v748_v24, 16  ;;  %v890_v2 = vshll.u32 %v748_v24, 16  ;;  %v7276_v23 = vld [vmem:[%s9065_s3 + $0x188] sm:$0xff]  }
  0x5e   : > { %v1419_v33 = vrot.slane %v1418_v17, 4  ;;  %v1429_v35 = vrot.slane %v1428_v21, 4  ;;  %v1431_v36 = vshll.u32 %v1362_v25, 16  ;;  %v549_v37 = vmax.f32 %v517_v19, 0.0  ;;  %v1881_v17 = vld [vmem:[#allocation2 + $0x40] sm:$0x8] }
  0x5f   : > { %v880_v40 = vrot.slane %v878_v30, 7  ;;  %v889_v41 = vrot.slane %v887_v32, 7  ;;  %v550_v43 = vmax.f32 %v518_v15, 0.0  ;;  %v1953_v44 = vrot.slane %v1951_v11, 7  ;;  %v7732_v21 = vld [vmem:[%s9063_s1] ss:$0 sm:$0xff] }
  0x60   : > { %v1424_v46 = vsel %vm7697_vm7, %v1419_v33, %v1423_v9  ;;  %v1433_v47 = vrot.slane %v1431_v36, 5  ;;  %v6397_v49 = vpack.c.bf16 %v549_v37, %v549_v37  ;;  %v1954_v50 = vshll.u32 %v1879_v0, 16 }
  0x61   : > { %v883_v55 = vor.u32 %v881_v31, %v880_v40  ;;  %v885_v52 = vrot.slane %v880_v40, 4  ;;  %v892_v57 = vor.u32 %v890_v2, %v889_v41  ;;  %v6398_v58 = vpack.c.bf16 %v550_v43, %v550_v43  ;;  %v7281_v40 = vld [vmem:[%s9065_s3 + $0x1d0] sm:$0xff]  }
  0x62   : > { %v1434_v61 = vsel %vm7697_vm7, %v1429_v35, %v1433_v47  ;;  %710 = vst [vmem:[#allocation2 + $0x6c] sm:$0xf] %v6397_v49  ;;  %v1956_v34 = vor.u32 %v1954_v50, %v1953_v44  ;;  %v1958_v62 = vrot.slane %v1953_v44, 4  ;;  %v1960_v56 = vshrl.u32 %v1880_v39, 16 }
  0x63   : > { %v884_v8 = vsel %vm7472_vm2, %v7679_v7, %v883_v55  ;;  %v893_v63 = vsel %vm7472_vm2, %v885_v52, %v892_v57  ;;  %v6137_v1 = vcombine.low %v1424_v46, %v1434_v61  ;;  %711 = vst [vmem:[#allocation2 + $0x70] sm:$0xf] %v6398_v58  ;;  %v1963_v0 = vshll.u32 %v1880_v39, 16  ;;  %v1883_v46 = vld [vmem:[#allocation2 + $0x48] sm:$0xf] }
  0x64   : > { %v6109_v4 = vcombine.low %v884_v8, %v893_v63  ;;  %v1957_v5 = vsel %vm7472_vm2, %v7689_v22, %v1956_v34  ;;  %v1962_v6 = vrot.slane %v1960_v56, 7  ;;  %v895_v12 = vshrl.u32 %v749_v45, 16  ;;  %v7737_v22 = vld [vmem:[#allocation2 + $0x44] sm:$0xf]  ;;  %v1366_v34 = vld [vmem:[#allocation2 + $0x30] sm:$0xf] }
  0x65   : > { %5062 = vmatmul.mubr.bf16.vlgmr.msra.gmra.mrb[16].mxu1 %v6137_v1  ;;  %v285_v7 = vsel %vm7652_vm4, 0, %v284_v51  ;;  %v1436_v9 = vshrl.u32 %v1363_v53, 16  ;;  %v1439_v10 = vshll.u32 %v1363_v53, 16  ;;  %v1445_v14 = vshll.u32 %v1364_v54, 16 }
  0x66   : > { %4933 = vmatmul.mubr.bf16.gmra.mrb[16].mxu0 %v6109_v4  ;;  %7012 = vmatpush3.bf16.msra.mxu1 %v7268_v48  ;;  %v1965_v19 = vor.u32 %v1963_v0, %v1962_v6  ;;  %v7727_v11 = vrot.slane %v895_v12, 11  ;;  %286 = vst [vmem:[#allocation2 + $0x24] sm:$0x1] %v285_v7  ;;  %v1449_v20 = vshrl.u32 %v1364_v54, 16  ;;  %v480_v15 = vmul.f32 %v7732_v21, %v6475_v26  ;;  %v7752_v26 = vld [vmem:[%s9064_s2] ss:$0 sm:$0xff] }
  0x67   : > { %v1438_v24 = vrot.slane %v1436_v9, 4  ;;  %v1441_v25 = vrot.slane %v1439_v10, 5  ;;  %v7742_v30 = vrot.slane %v1445_v14, 5  ;;  %v481_v31 = vmul.f32 %v7732_v21, %v6476_v27  ;;  %7013 = vmatprep.subr.bf16.mxu1 %v7274_v59  ;;  %v752_v54 = vld [vmem:[#allocation2 + $0x7c] sm:$0x8]  ;;  %v7284_v10 = vld [vmem:[%s9065_s3 + $0x170] sm:$0xff]  }
  0x68   : > { %v1966_v32 = vsel %vm7472_vm2, %v1958_v62, %v1965_v19  ;;  %v1451_v2 = vrot.slane %v1449_v20, 4  ;;  %v519_v33 = vadd.f32 %v7752_v26, %v480_v15  ;;  %v1968_v35 = vshrl.u32 %v1881_v17, 16  ;;  %v291_v59 = vld [vmem:[#allocation2 + $0x38] sm:$0x1]  ;;  %v7282_v62 = vld [vmem:[%s9065_s3 + $0x190] sm:$0xff]   ;;  %6911 = vmatprep.subr.bf16.mxu0 %v7284_v10 }
  0x69   : > { %v6170_v36 = vcombine.low %v1957_v5, %v1966_v32  ;;  %v750_v37 = vld [vmem:[#allocation2 + $0x6c] sm:$0xf]  ;;  %v1442_v39 = vor.u32 %v1441_v25, %v1438_v24  ;;  %v520_v13 = vadd.f32 %v7752_v26, %v481_v31  ;;  %v1973_v27 = vshrl.u32 %v7737_v22, 16  ;;  %v1367_v15 = vld [vmem:[#allocation2 + $0x34] sm:$0xf] }
  0x6a   : > { %v7271_v41 = vld [vmem:[#allocation2 + $0x6c] sm:$0xff]   ;;  %v900_v44 = vshrl.u32 %v750_v37, 16  ;;  %v1452_v45 = vor.u32 %v1451_v2, %v7742_v30  ;;  %7014 = vmatpush3.bf16.msra.mxu1 %v7276_v23  ;;  %v482_v47 = vmul.f32 %v7732_v21, %v6479_v28  ;;  %v7767_v48 = vmul.f32 %v7732_v21, %v6480_v29  ;;  %v1884_v25 = vld [vmem:[#allocation2 + $0x54] sm:$0x8] }
  0x6b   : > { %v751_v43 = vld [vmem:[#allocation2 + $0x70] sm:$0xf]  ;;  %5069 = vmatprep.mubr.bf16.mxu1 %v6170_v36  ;;  %v903_v49 = vshll.u32 %v750_v37, 16  ;;  %v1443_v53 = vrot.slane %v1442_v39, 4  ;;  %7015 = vmatprep.subr.bf16.mxu1 %v7281_v40  ;;  %v551_v57 = vmax.f32 %v519_v33, 0.0  ;;  %v552_v58 = vmax.f32 %v520_v13, 0.0 }
  0x6c   : > { %v909_v50 = vshrl.u32 %v751_v43, 16  ;;  %v912_v51 = vshll.u32 %v751_v43, 16  ;;  %4940 = vmatprep.mubr.bf16.mxu0 %v7271_v41  ;;  %v902_v55 = vrot.slane %v900_v44, 7  ;;  %v1453_v52 = vrot.slane %v1452_v45, 4  ;;  %v1885_v33 = vld [vmem:[#allocation2 + $0x58] sm:$0xf] }
  0x6d   : > { %v1365_v28 = vld [vmem:[#allocation2 + $0x24] sm:$0x1]  ;;  %v1448_v16 = vsel %vm7697_vm7, %v1443_v53, %v7742_v30  ;;  %v6155_v29 = vrot.slane %v1968_v35, 11  ;;  %v1975_v61 = vrot.slane %v1973_v27, 7  ;;  %v6530_v1 = vpack.c.bf16 %v552_v58, %v551_v57  ;;  %v7285_v35 = vld [vmem:[%s9065_s3 + $0x130] sm:$0xff]   ;;  %v7797_v27 = vld [vmem:[%s7438_s24 + $0x38] sm:$0xff]  }
  0x6e   : > { %v911_v60 = vrot.slane %v909_v50, 7  ;;  %v905_v56 = vor.u32 %v903_v49, %v902_v55  ;;  %v907_v8 = vrot.slane %v902_v55, 4  ;;  %v1455_v63 = vshll.u32 %v1365_v28, 16  ;;  %7016 = vmatpush3.bf16.msra.mxu1 %v7282_v62  ;;  %6912 = vmatpush3.bf16.msra.mxu0 %v7285_v35  ;;  %v1886_v55 = vld [vmem:[#allocation2 + $0x5c] sm:$0xf] }
  0x6f   : > { %v1976_v3 = vshll.u32 %v7737_v22, 16  ;;  %v1980_v4 = vrot.slane %v1975_v61, 4  ;;  %v1982_v5 = vshrl.u32 %v1883_v46, 16  ;;  %6654 = vst [vmem:[#allocation2 + $0x80] sm:$0xff] %v6530_v1   ;;  %v1985_v7 = vshll.u32 %v1883_v46, 16 }
  0x70   : > { %v914_v0 = vor.u32 %v912_v51, %v911_v60  ;;  %v906_v6 = vsel %vm7472_vm2, %v7727_v11, %v905_v56  ;;  %v1457_v12 = vrot.slane %v1455_v63, 5  ;;  %v917_v9 = vshrl.u32 %v752_v54, 16 }
  0x71   : > { %v1978_v17 = vor.u32 %v1976_v3, %v1975_v61  ;;  %v1984_v19 = vrot.slane %v1982_v5, 7  ;;  %v292_v20 = vsel %vm7652_vm4, 0, %v291_v59  ;;  %v1460_v24 = vshrl.u32 %v1366_v34, 16  ;;  %v7288_v3 = vld [vmem:[%s9065_s3 + $0x198] sm:$0xff]  }
  0x72   : > { %v915_v14 = vsel %vm7472_vm2, %v907_v8, %v914_v0  ;;  %v1458_v11 = vsel %vm7697_vm7, %v1453_v52, %v1457_v12  ;;  %v7788_v23 = vrot.slane %v917_v9, 11  ;;  %293 = vst [vmem:[#allocation2 + $0x38] sm:$0x1] %v292_v20  ;;  %v1463_v2 = vshll.u32 %v1366_v34, 16 }
  0x73   : > { %v6110_v22 = vcombine.low %v906_v6, %v915_v14  ;;  %v6138_v30 = vcombine.low %v1448_v16, %v1458_v11  ;;  %v1979_v31 = vsel %vm7472_vm2, %v6155_v29, %v1978_v17  ;;  %v1987_v32 = vor.u32 %v1985_v7, %v1984_v19  ;;  %v755_v7 = vld [vmem:[#allocation2 + $0x90] sm:$0x8]  ;;  %v7289_v19 = vld [vmem:[%s9065_s3 + $0x178] sm:$0xff]  }
  0x74   : > { %v1462_v36 = vrot.slane %v1460_v24, 4  ;;  %v1469_v37 = vshll.u32 %v1367_v15, 16  ;;  %v1473_v39 = vshrl.u32 %v1367_v15, 16  ;;  %v521_v13 = vadd.f32 %v7752_v26, %v482_v47  ;;  %v7287_v47 = vld [vmem:[%s9065_s3 + $0x1d8] sm:$0xff]   ;;  %v298_v24 = vld [vmem:[#allocation2 + $0x4c] sm:$0x1]  ;;  %6913 = vmatprep.subr.bf16.mxu0 %v7289_v19 }
  0x75   : > { %4941 = vmatmul.mubr.bf16.gmra.mrb[20].mxu0 %v6110_v22  ;;  %5070 = vmatmul.mubr.bf16.gmra.mrb[20].mxu1 %v6138_v30  ;;  %v1988_v40 = vsel %vm7472_vm2, %v1980_v4, %v1987_v32  ;;  %v1465_v41 = vrot.slane %v1463_v2, 5  ;;  %v522_v43 = vadd.f32 %v7752_v26, %v7767_v48  ;;  %v1990_v44 = vshrl.u32 %v1884_v25, 16  ;;  %v7290_v25 = vld [vmem:[%s9065_s3 + $0x138] sm:$0xff]  }
  0x76   : > { %v6171_v45 = vcombine.low %v1979_v31, %v1988_v40  ;;  %v1471_v46 = vrot.slane %v1469_v37, 5  ;;  %v1475_v49 = vrot.slane %v1473_v39, 4  ;;  %v553_v50 = vmax.f32 %v521_v13, 0.0  ;;  %v7272_v51 = vld [vmem:[#allocation2 + $0x80] sm:$0xff]   ;;  %7017 = vmatprep.subr.bf16.mxu1 %v7287_v47  ;;  %v1370_v13 = vld [vmem:[#allocation2 + $0x48] sm:$0xf]  ;;  %6914 = vmatpush3.bf16.msra.mxu0 %v7290_v25 }
  0x77   : > { %v1466_v53 = vor.u32 %v1465_v41, %v1462_v36  ;;  %v554_v54 = vmax.f32 %v522_v43, 0.0  ;;  %v6483_v52 = vunpack.c.l.bf16 %v7797_v27  ;;  %v6484_v57 = vunpack.c.h.bf16 %v7797_v27  ;;  %v753_v48 = vld [vmem:[#allocation2 + $0x80] sm:$0xf]  ;;  %v754_v58 = vld [vmem:[#allocation2 + $0x84] sm:$0xf]  ;;  %4948 = vmatprep.mubr.bf16.mxu0 %v7272_v51  ;;  %7018 = vmatpush3.bf16.msra.mxu1 %v7288_v3 }
  0x78   : > { %5077 = vmatprep.mubr.bf16.mxu1 %v6171_v45  ;;  %v1476_v59 = vor.u32 %v1475_v49, %v1471_v46  ;;  %v6401_v60 = vpack.c.bf16 %v553_v50, %v553_v50  ;;  %v7808_v28 = vrot.slane %v1990_v44, 11  ;;  %v1995_v16 = vshrl.u32 %v1885_v33, 16 }
  0x79   : > { %v922_v29 = vshrl.u32 %v753_v48, 16  ;;  %v925_v61 = vshll.u32 %v753_v48, 16  ;;  %v931_v34 = vshrl.u32 %v754_v58, 16  ;;  %v934_v62 = vshll.u32 %v754_v58, 16  ;;  %v1368_v56 = vld [vmem:[#allocation2 + $0x38] sm:$0x1] }
  0x7a   : > { %v1467_v8 = vrot.slane %v1466_v53, 4  ;;  %v1477_v63 = vrot.slane %v1476_v59, 4  ;;  %v1479_v1 = vshll.u32 %v1368_v56, 16  ;;  %v6402_v0 = vpack.c.bf16 %v554_v54, %v554_v54  ;;  %714 = vst [vmem:[#allocation2 + $0x94] sm:$0xf] %v6401_v60 }
  0x7b   : > { %v924_v4 = vrot.slane %v922_v29, 7  ;;  %v933_v5 = vrot.slane %v931_v34, 7  ;;  %v1997_v6 = vrot.slane %v1995_v16, 7  ;;  %v1998_v12 = vshll.u32 %v1885_v33, 16  ;;  %v1369_v33 = vld [vmem:[#allocation2 + $0x44] sm:$0xf] }
  0x7c   : > { %v1472_v9 = vsel %vm7697_vm7, %v1467_v8, %v1471_v46  ;;  %v1481_v10 = vrot.slane %v1479_v1, 5  ;;  %715 = vst [vmem:[#allocation2 + $0x98] sm:$0xf] %v6402_v0  ;;  %v2004_v14 = vshrl.u32 %v1886_v55, 16  ;;  %v2007_v17 = vshll.u32 %v1886_v55, 16 }
  0x7d   : > { %v927_v20 = vor.u32 %v925_v61, %v924_v4  ;;  %v929_v15 = vrot.slane %v924_v4, 4  ;;  %v936_v22 = vor.u32 %v934_v62, %v933_v5  ;;  %v2000_v11 = vor.u32 %v1998_v12, %v1997_v6  ;;  %v1887_v54 = vld [vmem:[#allocation2 + $0x68] sm:$0x8]  ;;  %v1888_v61 = vld [vmem:[#allocation2 + $0x6c] sm:$0xf] }
  0x7e   : > { %v1482_v30 = vsel %vm7697_vm7, %v1477_v63, %v1481_v10  ;;  %v2002_v31 = vrot.slane %v1997_v6, 4  ;;  %v2006_v32 = vrot.slane %v2004_v14, 7  ;;  %v939_v2 = vshrl.u32 %v755_v7, 16  ;;  %v1889_v4 = vld [vmem:[#allocation2 + $0x70] sm:$0xf]  ;;  %v7293_v14 = vld [vmem:[%s9065_s3 + $0x1e0] sm:$0xff]  }
  0x7f   : > { %v928_v35 = vsel %vm7472_vm2, %v7788_v23, %v927_v20  ;;  %v937_v36 = vsel %vm7472_vm2, %v929_v15, %v936_v22  ;;  %v6139_v37 = vcombine.low %v1472_v9, %v1482_v30  ;;  %v2001_v39 = vsel %vm7472_vm2, %v7808_v28, %v2000_v11  ;;  %v758_v9 = vld [vmem:[#allocation2 + $0xa4] sm:$0x8]  ;;  %v305_v10 = vld [vmem:[#allocation2 + $0x60] sm:$0x1]  ;;  %v1372_v11 = vld [vmem:[#allocation2 + $0x58] sm:$0xf]  ;;  %7019 = vmatprep.subr.bf16.mxu1 %v7293_v14 }
  0x80   : > { %v6111_v27 = vcombine.low %v928_v35, %v937_v36  ;;  %v2009_v40 = vor.u32 %v2007_v17, %v2006_v32  ;;  %v7831_v41 = vrot.slane %v939_v2, 11  ;;  %v299_v43 = vsel %vm7652_vm4, 0, %v298_v24  ;;  %v1373_v32 = vld [vmem:[#allocation2 + $0x5c] sm:$0xf]  ;;  %v7850_v2 = vld [vmem:[%s9065_s3 + $0x200] sm:$0xff]  }
  0x81   : > { %5078 = vmatmul.mubr.bf16.gmra.mrb[24].mxu1 %v6139_v37  ;;  %v756_v44 = vld [vmem:[#allocation2 + $0x94] sm:$0xf]  ;;  %300 = vst [vmem:[#allocation2 + $0x4c] sm:$0x1] %v299_v43  ;;  %v1484_v23 = vshrl.u32 %v1369_v33, 16  ;;  %v1487_v45 = vshll.u32 %v1369_v33, 16  ;;  %v484_v46 = vmul.f32 %v7732_v21, %v6483_v52  ;;  %v485_v49 = vmul.f32 %v7732_v21, %v6484_v57  ;;  %7147 = vmatprep.subr.bf16.mxu0 %v7850_v2 }
  0x82   : > { %4949 = vmatmul.mubr.bf16.gmra.mrb[24].mxu0 %v6111_v27  ;;  %v2010_v50 = vsel %vm7472_vm2, %v2002_v31, %v2009_v40  ;;  %v944_v47 = vshrl.u32 %v756_v44, 16  ;;  %v947_v51 = vshll.u32 %v756_v44, 16  ;;  %v1493_v53 = vshll.u32 %v1370_v13, 16  ;;  %v7858_v43 = vld [vmem:[%s7438_s24 + $0x48] sm:$0xff]  }
  0x83   : > { %v7277_v55 = vld [vmem:[#allocation2 + $0x94] sm:$0xff]   ;;  %v6172_v48 = vcombine.low %v2001_v39, %v2010_v50  ;;  %v1486_v59 = vrot.slane %v1484_v23, 4  ;;  %v523_v60 = vadd.f32 %v7752_v26, %v484_v46  ;;  %v524_v28 = vadd.f32 %v7752_v26, %v485_v49  ;;  %v6644_v39 = vld [vmem:[%s7438_s24 + $0x40] sm:$0xff]  }
  0x84   : > { %v757_v58 = vld [vmem:[#allocation2 + $0x98] sm:$0xf]  ;;  %v946_v16 = vrot.slane %v944_v47, 7  ;;  %v1489_v57 = vrot.slane %v1487_v45, 5  ;;  %4956 = vmatprep.mubr.bf16.mxu0 %v7277_v55  ;;  %v1495_v34 = vrot.slane %v1493_v53, 5  ;;  %v1497_v62 = vshrl.u32 %v1370_v13, 16 }
  0x85   : > { %v953_v52 = vshrl.u32 %v757_v58, 16  ;;  %v956_v29 = vshll.u32 %v757_v58, 16  ;;  %5085 = vmatprep.mubr.bf16.mxu1 %v6172_v48  ;;  %v555_v56 = vmax.f32 %v523_v60, 0.0  ;;  %v556_v8 = vmax.f32 %v524_v28, 0.0 }
  0x86   : > { %v949_v63 = vor.u32 %v947_v51, %v946_v16  ;;  %v951_v1 = vrot.slane %v946_v16, 4  ;;  %v1490_v3 = vor.u32 %v1489_v57, %v1486_v59  ;;  %v1499_v5 = vrot.slane %v1497_v62, 4  ;;  %v1890_v16 = vld [vmem:[#allocation2 + $0x7c] sm:$0x8] }
  0x87   : > { %v955_v0 = vrot.slane %v953_v52, 7  ;;  %v6535_v6 = vpack.c.bf16 %v556_v8, %v555_v56  ;;  %v2012_v12 = vshrl.u32 %v1887_v54, 16  ;;  %v2017_v7 = vshrl.u32 %v1888_v61, 16  ;;  %v1891_v52 = vld [vmem:[#allocation2 + $0x80] sm:$0xf] }
  0x88   : > { %v950_v17 = vsel %vm7472_vm2, %v7831_v41, %v949_v63  ;;  %v1371_v20 = vld [vmem:[#allocation2 + $0x4c] sm:$0x1]  ;;  %v1491_v15 = vrot.slane %v1490_v3, 4  ;;  %v2020_v22 = vshll.u32 %v1888_v61, 16  ;;  %v1500_v24 = vor.u32 %v1499_v5, %v1495_v34 }
  0x89   : > { %v958_v19 = vor.u32 %v956_v29, %v955_v0  ;;  %v1503_v25 = vshll.u32 %v1371_v20, 16  ;;  %6655 = vst [vmem:[#allocation2 + $0xa8] sm:$0xff] %v6535_v6   ;;  %v6157_v30 = vrot.slane %v2012_v12, 11  ;;  %v2019_v31 = vrot.slane %v2017_v7, 7  ;;  %v7295_v29 = vld [vmem:[%s9065_s3 + $0x1a0] sm:$0xff]  }
  0x8a   : > { %v1496_v35 = vsel %vm7697_vm7, %v1491_v15, %v1495_v34  ;;  %v2026_v36 = vshrl.u32 %v1889_v4, 16  ;;  %v2029_v37 = vshll.u32 %v1889_v4, 16  ;;  %v1501_v27 = vrot.slane %v1500_v24, 4  ;;  %7020 = vmatpush3.bf16.msra.mxu1 %v7295_v29 }
  0x8b   : > { %v959_v33 = vsel %vm7472_vm2, %v951_v1, %v958_v19  ;;  %v1505_v40 = vrot.slane %v1503_v25, 5  ;;  %v2022_v41 = vor.u32 %v2020_v22, %v2019_v31  ;;  %v2024_v44 = vrot.slane %v2019_v31, 4 }
  0x8c   : > { %v6112_v13 = vcombine.low %v950_v17, %v959_v33  ;;  %v2028_v23 = vrot.slane %v2026_v36, 7  ;;  %v961_v45 = vshrl.u32 %v758_v9, 16  ;;  %v306_v46 = vsel %vm7652_vm4, 0, %v305_v10 }
  0x8d   : > { %v1506_v49 = vsel %vm7697_vm7, %v1501_v27, %v1505_v40  ;;  %v2023_v50 = vsel %vm7472_vm2, %v6157_v30, %v2022_v41  ;;  %307 = vst [vmem:[#allocation2 + $0x60] sm:$0x1] %v306_v46  ;;  %v1508_v47 = vshrl.u32 %v1372_v11, 16  ;;  %v1511_v51 = vshll.u32 %v1372_v11, 16  ;;  %v761_v41 = vld [vmem:[#allocation2 + $0xb8] sm:$0x8] }
  0x8e   : > { %4957 = vmatmul.mubr.bf16.gmra.mrb[28].mxu0 %v6112_v13  ;;  %v6140_v53 = vcombine.low %v1496_v35, %v1506_v49  ;;  %v2031_v54 = vor.u32 %v2029_v37, %v2028_v23  ;;  %v6097_v55 = vrot.slane %v961_v45, 11  ;;  %v1517_v48 = vshll.u32 %v1373_v32, 16  ;;  %v1892_v37 = vld [vmem:[#allocation2 + $0x84] sm:$0xf]  ;;  %v312_v49 = vld [vmem:[#allocation2 + $0x74] sm:$0x1] }
  0x8f   : > { %v1510_v58 = vrot.slane %v1508_v47, 4  ;;  %v1513_v59 = vrot.slane %v1511_v51, 5  ;;  %v1521_v60 = vshrl.u32 %v1373_v32, 16  ;;  %v6487_v28 = vunpack.c.l.bf16 %v6644_v39  ;;  %v7298_v47 = vld [vmem:[%s9065_s3 + $0x1e8] sm:$0xff]  }
  0x90   : > { %5086 = vmatmul.mubr.bf16.gmra.mrb[28].mxu1 %v6140_v53  ;;  %v7280_v57 = vld [vmem:[#allocation2 + $0xa8] sm:$0xff]   ;;  %v2032_v61 = vsel %vm7472_vm2, %v2024_v44, %v2031_v54  ;;  %v1519_v34 = vrot.slane %v1517_v48, 5  ;;  %v6488_v62 = vunpack.c.h.bf16 %v6644_v39  ;;  %v6491_v56 = vunpack.c.l.bf16 %v7858_v43  ;;  %7021 = vmatprep.subr.bf16.mxu1 %v7298_v47 }
  0x91   : > { %v6173_v8 = vcombine.low %v2023_v50, %v2032_v61  ;;  %v759_v63 = vld [vmem:[#allocation2 + $0xa8] sm:$0xf]  ;;  %v760_v1 = vld [vmem:[#allocation2 + $0xac] sm:$0xf]  ;;  %v1514_v0 = vor.u32 %v1513_v59, %v1510_v58  ;;  %v1523_v3 = vrot.slane %v1521_v60, 4  ;;  %v486_v4 = vmul.f32 %v7732_v21, %v6487_v28  ;;  %4964 = vmatprep.mubr.bf16.mxu0 %v7280_v57 }
  0x92   : > { %v966_v5 = vshrl.u32 %v759_v63, 16  ;;  %v969_v6 = vshll.u32 %v759_v63, 16  ;;  %v975_v12 = vshrl.u32 %v760_v1, 16  ;;  %v978_v7 = vshll.u32 %v760_v1, 16  ;;  %v1375_v50 = vld [vmem:[#allocation2 + $0x6c] sm:$0xf] }
  0x93   : > { %5093 = vmatprep.mubr.bf16.mxu1 %v6173_v8  ;;  %v1515_v9 = vrot.slane %v1514_v0, 4  ;;  %v1524_v10 = vor.u32 %v1523_v3, %v1519_v34  ;;  %v487_v14 = vmul.f32 %v7732_v21, %v6488_v62  ;;  %v525_v17 = vadd.f32 %v7752_v26, %v486_v4  ;;  %v1376_v58 = vld [vmem:[#allocation2 + $0x70] sm:$0xf]  ;;  %v7300_v0 = vld [vmem:[%s9065_s3 + $0x1a8] sm:$0xff]  }
  0x94   : > { %v968_v19 = vrot.slane %v966_v5, 7  ;;  %v977_v20 = vrot.slane %v975_v12, 7  ;;  %v1374_v15 = vld [vmem:[#allocation2 + $0x60] sm:$0x1]  ;;  %v2034_v22 = vshrl.u32 %v1890_v16, 16  ;;  %v2039_v11 = vshrl.u32 %v1891_v52, 16  ;;  %7022 = vmatpush3.bf16.msra.mxu1 %v7300_v0 }
  0x95   : > { %v1520_v24 = vsel %vm7697_vm7, %v1515_v9, %v1519_v34  ;;  %v1525_v25 = vrot.slane %v1524_v10, 4  ;;  %v1527_v30 = vshll.u32 %v1374_v15, 16  ;;  %v526_v31 = vadd.f32 %v7752_v26, %v487_v14  ;;  %v1893_v16 = vld [vmem:[#allocation2 + $0x90] sm:$0x8] }
  0x96   : > { %v971_v32 = vor.u32 %v969_v6, %v968_v19  ;;  %v973_v33 = vrot.slane %v968_v19, 4  ;;  %v980_v35 = vor.u32 %v978_v7, %v977_v20  ;;  %v557_v36 = vmax.f32 %v525_v17, 0.0  ;;  %v7906_v15 = vld [vmem:[%s7438_s24 + $0x50] sm:$0xff]  }
  0x97   : > { %v1529_v39 = vrot.slane %v1527_v30, 5  ;;  %v558_v13 = vmax.f32 %v526_v31, 0.0  ;;  %v6158_v27 = vrot.slane %v2034_v22, 11  ;;  %v2041_v40 = vrot.slane %v2039_v11, 7 }
  0x98   : > { %v972_v44 = vsel %vm7472_vm2, %v6097_v55, %v971_v32  ;;  %v981_v23 = vsel %vm7472_vm2, %v973_v33, %v980_v35  ;;  %v6405_v45 = vpack.c.bf16 %v557_v36, %v557_v36  ;;  %v2042_v46 = vshll.u32 %v1891_v52, 16  ;;  %v7888_v52 = vld [vmem:[#allocation2 + $0x94] sm:$0xf] }
  0x99   : > { %v6113_v51 = vcombine.low %v972_v44, %v981_v23  ;;  %v1530_v53 = vsel %vm7697_vm7, %v1525_v25, %v1529_v39  ;;  %v6406_v54 = vpack.c.bf16 %v558_v13, %v558_v13  ;;  %v2046_v48 = vrot.slane %v2041_v40, 4  ;;  %v1895_v25 = vld [vmem:[#allocation2 + $0x98] sm:$0xf] }
  0x9a   : > { %v6141_v59 = vcombine.low %v1520_v24, %v1530_v53  ;;  %718 = vst [vmem:[#allocation2 + $0xbc] sm:$0xf] %v6405_v45  ;;  %v2044_v55 = vor.u32 %v2042_v46, %v2041_v40  ;;  %v2048_v60 = vshrl.u32 %v1892_v37, 16  ;;  %v2051_v28 = vshll.u32 %v1892_v37, 16  ;;  %v7303_v45 = vld [vmem:[%s9065_s3 + $0x1f0] sm:$0xff]  }
  0x9b   : > { %4965 = vmatmul.mubr.bf16.gmra.mrb[32].mxu0 %v6113_v51  ;;  %719 = vst [vmem:[#allocation2 + $0xc0] sm:$0xf] %v6406_v54  ;;  %v983_v29 = vshrl.u32 %v761_v41, 16  ;;  %v313_v57 = vsel %vm7652_vm4, 0, %v312_v49  ;;  %v1532_v61 = vshrl.u32 %v1375_v50, 16  ;;  %v1535_v34 = vshll.u32 %v1375_v50, 16  ;;  %7023 = vmatprep.subr.bf16.mxu1 %v7303_v45 }
  0x9c   : > { %5094 = vmatmul.mubr.bf16.gmra.mrb[32].mxu1 %v6141_v59  ;;  %v2045_v62 = vsel %vm7472_vm2, %v6158_v27, %v2044_v55  ;;  %v2050_v8 = vrot.slane %v2048_v60, 7  ;;  %314 = vst [vmem:[#allocation2 + $0x74] sm:$0x1] %v313_v57  ;;  %v1541_v63 = vshll.u32 %v1376_v58, 16  ;;  %v1545_v1 = vshrl.u32 %v1376_v58, 16 }
  0x9d   : > { %v7897_v3 = vrot.slane %v983_v29, 11  ;;  %v1534_v4 = vrot.slane %v1532_v61, 4  ;;  %v1537_v5 = vrot.slane %v1535_v34, 5  ;;  %v6492_v6 = vunpack.c.h.bf16 %v7858_v43  ;;  %v764_v58 = vld [vmem:[#allocation2 + $0xcc] sm:$0x8] }
  0x9e   : > { %v2053_v12 = vor.u32 %v2051_v28, %v2050_v8  ;;  %v1543_v7 = vrot.slane %v1541_v63, 5  ;;  %v1547_v9 = vrot.slane %v1545_v1, 4  ;;  %v488_v10 = vmul.f32 %v7732_v21, %v6491_v56  ;;  %v1378_v34 = vld [vmem:[#allocation2 + $0x80] sm:$0xf]  ;;  %v7305_v8 = vld [vmem:[%s9065_s3 + $0x1b0] sm:$0xff]  }
  0x9f   : > { %v1538_v14 = vor.u32 %v1537_v5, %v1534_v4  ;;  %v489_v17 = vmul.f32 %v7732_v21, %v6492_v6  ;;  %v2056_v19 = vshrl.u32 %v1893_v16, 16  ;;  %v2061_v20 = vshrl.u32 %v7888_v52, 16  ;;  %v319_v16 = vld [vmem:[#allocation2 + $0x88] sm:$0x1]  ;;  %7024 = vmatpush3.bf16.msra.mxu1 %v7305_v8 }
  0xa0   : > { %v2054_v22 = vsel %vm7472_vm2, %v2046_v48, %v2053_v12  ;;  %v1548_v11 = vor.u32 %v1547_v9, %v1543_v7  ;;  %v527_v24 = vadd.f32 %v7752_v26, %v488_v10  ;;  %v2064_v43 = vshll.u32 %v7888_v52, 16  ;;  %v1896_v9 = vld [vmem:[#allocation2 + $0xa4] sm:$0x8] }
  0xa1   : > { %v6174_v30 = vcombine.low %v2045_v62, %v2054_v22  ;;  %v762_v56 = vld [vmem:[#allocation2 + $0xbc] sm:$0xf]  ;;  %v1539_v31 = vrot.slane %v1538_v14, 4  ;;  %v528_v32 = vadd.f32 %v7752_v26, %v489_v17  ;;  %v7913_v33 = vrot.slane %v2056_v19, 11  ;;  %v1379_v62 = vld [vmem:[#allocation2 + $0x84] sm:$0xf] }
  0xa2   : > { %v7283_v35 = vld [vmem:[#allocation2 + $0xbc] sm:$0xff]   ;;  %v988_v37 = vshrl.u32 %v762_v56, 16  ;;  %v6495_v39 = vunpack.c.l.bf16 %v7906_v15  ;;  %v6496_v13 = vunpack.c.h.bf16 %v7906_v15  ;;  %v991_v27 = vshll.u32 %v762_v56, 16  ;;  %v1897_v19 = vld [vmem:[#allocation2 + $0xa8] sm:$0xf] }
  0xa3   : > { %v763_v36 = vld [vmem:[#allocation2 + $0xc0] sm:$0xf]  ;;  %5101 = vmatprep.mubr.bf16.mxu1 %v6174_v30  ;;  %v1377_v44 = vld [vmem:[#allocation2 + $0x74] sm:$0x1]  ;;  %v1544_v23 = vsel %vm7697_vm7, %v1539_v31, %v1543_v7  ;;  %4972 = vmatprep.mubr.bf16.mxu0 %v7283_v35  ;;  %v1549_v49 = vrot.slane %v1548_v11, 4  ;;  %v559_v47 = vmax.f32 %v527_v24, 0.0 }
  0xa4   : > { %v997_v40 = vshrl.u32 %v763_v36, 16  ;;  %v1000_v41 = vshll.u32 %v763_v36, 16  ;;  %v990_v46 = vrot.slane %v988_v37, 7  ;;  %v1551_v50 = vshll.u32 %v1377_v44, 16  ;;  %v7940_v24 = vld [vmem:[#allocation2 + $0xac] sm:$0xf] }
  0xa5   : > { %v560_v53 = vmax.f32 %v528_v32, 0.0  ;;  %v2063_v54 = vrot.slane %v2061_v20, 7  ;;  %v2070_v48 = vshrl.u32 %v1895_v25, 16  ;;  %v2073_v28 = vshll.u32 %v1895_v25, 16  ;;  %v7308_v36 = vld [vmem:[%s9065_s3 + $0x1f8] sm:$0xff]  }
  0xa6   : > { %v999_v51 = vrot.slane %v997_v40, 7  ;;  %v993_v59 = vor.u32 %v991_v27, %v990_v46  ;;  %v995_v55 = vrot.slane %v990_v46, 4  ;;  %v1553_v60 = vrot.slane %v1551_v50, 5  ;;  %7025 = vmatprep.subr.bf16.mxu1 %v7308_v36 }
  0xa7   : > { %v6540_v29 = vpack.c.bf16 %v560_v53, %v559_v47  ;;  %v2066_v57 = vor.u32 %v2064_v43, %v2063_v54  ;;  %v2068_v61 = vrot.slane %v2063_v54, 4  ;;  %v2072_v0 = vrot.slane %v2070_v48, 7 }
  0xa8   : > { %v1002_v52 = vor.u32 %v1000_v41, %v999_v51  ;;  %v994_v63 = vsel %vm7472_vm2, %v7897_v3, %v993_v59  ;;  %v1554_v1 = vsel %vm7697_vm7, %v1549_v49, %v1553_v60  ;;  %v1005_v4 = vshrl.u32 %v764_v58, 16 }
  0xa9   : > { %v6142_v6 = vcombine.low %v1544_v23, %v1554_v1  ;;  %6656 = vst [vmem:[#allocation2 + $0xd0] sm:$0xff] %v6540_v29   ;;  %v2067_v12 = vsel %vm7472_vm2, %v7913_v33, %v2066_v57  ;;  %v320_v7 = vsel %vm7652_vm4, 0, %v319_v16  ;;  %v2075_v10 = vor.u32 %v2073_v28, %v2072_v0  ;;  %v326_v0 = vld [vmem:[#allocation2 + $0x9c] sm:$0x1] }
  0xaa   : > { %v1003_v5 = vsel %vm7472_vm2, %v995_v55, %v1002_v52  ;;  %v7937_v14 = vrot.slane %v1005_v4, 11  ;;  %321 = vst [vmem:[#allocation2 + $0x88] sm:$0x1] %v320_v7  ;;  %v1556_v17 = vshrl.u32 %v1378_v34, 16  ;;  %v1559_v20 = vshll.u32 %v1378_v34, 16 }
  0xab   : > { %v6114_v3 = vcombine.low %v994_v63, %v1003_v5  ;;  %5102 = vmatmul.mubr.bf16.gmra.mrb[36].mxu1 %v6142_v6  ;;  %v1565_v15 = vshll.u32 %v1379_v62, 16  ;;  %v1569_v22 = vshrl.u32 %v1379_v62, 16  ;;  %v490_v11 = vmul.f32 %v7732_v21, %v6495_v39  ;;  %v767_v52 = vld [vmem:[#allocation2 + $0xe0] sm:$0x8]  ;;  %v1381_v4 = vld [vmem:[#allocation2 + $0x94] sm:$0xf] }
  0xac   : > { %v2076_v25 = vsel %vm7472_vm2, %v2068_v61, %v2075_v10  ;;  %v1558_v43 = vrot.slane %v1556_v17, 4  ;;  %v491_v30 = vmul.f32 %v7732_v21, %v6496_v13  ;;  %v2078_v56 = vshrl.u32 %v1896_v9, 16  ;;  %v7310_v5 = vld [vmem:[%s9065_s3 + $0x1b8] sm:$0xff]  }
  0xad   : > { %4973 = vmatmul.mubr.bf16.gmra.mrb[36].mxu0 %v6114_v3  ;;  %v6175_v31 = vcombine.low %v2067_v12, %v2076_v25  ;;  %v1561_v32 = vrot.slane %v1559_v20, 5  ;;  %v1567_v33 = vrot.slane %v1565_v15, 5  ;;  %v1571_v35 = vrot.slane %v1569_v22, 4  ;;  %v1382_v3 = vld [vmem:[#allocation2 + $0x98] sm:$0xf]  ;;  %7026 = vmatpush3.bf16.msra.mxu1 %v7310_v5 }
  0xae   : > { %v529_v37 = vadd.f32 %v7752_v26, %v490_v11  ;;  %v530_v39 = vadd.f32 %v7752_v26, %v491_v30  ;;  %v7950_v27 = vrot.slane %v2078_v56, 11  ;;  %v2083_v40 = vshrl.u32 %v1897_v19, 16  ;;  %v1899_v15 = vld [vmem:[#allocation2 + $0xb8] sm:$0x8]  ;;  %v1900_v22 = vld [vmem:[#allocation2 + $0xbc] sm:$0xf] }
  0xaf   : > { %5109 = vmatprep.mubr.bf16.mxu1 %v6175_v31  ;;  %v1562_v41 = vor.u32 %v1561_v32, %v1558_v43  ;;  %v1572_v44 = vor.u32 %v1571_v35, %v1567_v33  ;;  %v2086_v21 = vshll.u32 %v1897_v19, 16  ;;  %v2092_v13 = vshrl.u32 %v7940_v24, 16 }
  0xb0   : > { %v7286_v23 = vld [vmem:[#allocation2 + $0xd0] sm:$0xff]   ;;  %v561_v45 = vmax.f32 %v529_v37, 0.0  ;;  %v562_v59 = vmax.f32 %v530_v39, 0.0  ;;  %v2085_v16 = vrot.slane %v2083_v40, 7  ;;  %v2095_v7 = vshll.u32 %v7940_v24, 16  ;;  %v7976_v37 = vld [vmem:[%s7438_s24 + $0x78] sm:$0xff]  }
  0xb1   : > { %v765_v46 = vld [vmem:[#allocation2 + $0xd0] sm:$0xf]  ;;  %v766_v49 = vld [vmem:[#allocation2 + $0xd4] sm:$0xf]  ;;  %v1380_v50 = vld [vmem:[#allocation2 + $0x88] sm:$0x1]  ;;  %4980 = vmatprep.mubr.bf16.mxu0 %v7286_v23 }
  0xb2   : > { %v1010_v47 = vshrl.u32 %v765_v46, 16  ;;  %v1013_v51 = vshll.u32 %v765_v46, 16  ;;  %v1019_v53 = vshrl.u32 %v766_v49, 16  ;;  %v1022_v26 = vshll.u32 %v766_v49, 16 }
  0xb3   : > { %v1563_v54 = vrot.slane %v1562_v41, 4  ;;  %v1573_v48 = vrot.slane %v1572_v44, 4  ;;  %v1575_v58 = vshll.u32 %v1380_v50, 16  ;;  %v6409_v28 = vpack.c.bf16 %v561_v45, %v561_v45  ;;  %v1901_v44 = vld [vmem:[#allocation2 + $0xc0] sm:$0xf] }
  0xb4   : > { %v1012_v55 = vrot.slane %v1010_v47, 7  ;;  %v1021_v60 = vrot.slane %v1019_v53, 7  ;;  %v6410_v61 = vpack.c.bf16 %v562_v59, %v562_v59  ;;  %v2094_v34 = vrot.slane %v2092_v13, 7 }
  0xb5   : > { %v1568_v29 = vsel %vm7697_vm7, %v1563_v54, %v1567_v33  ;;  %v1577_v57 = vrot.slane %v1575_v58, 5  ;;  %722 = vst [vmem:[#allocation2 + $0xe4] sm:$0xf] %v6409_v28  ;;  %v2088_v1 = vor.u32 %v2086_v21, %v2085_v16  ;;  %v2090_v12 = vrot.slane %v2085_v16, 4  ;;  %v2499_v21 = vld [vmem:[#allocation2 + $0x1c] sm:$0xf] }
  0xb6   : > { %v1015_v62 = vor.u32 %v1013_v51, %v1012_v55  ;;  %v1017_v8 = vrot.slane %v1012_v55, 4  ;;  %v1024_v63 = vor.u32 %v1022_v26, %v1021_v60  ;;  %723 = vst [vmem:[#allocation2 + $0xe8] sm:$0xf] %v6410_v61  ;;  %v1027_v9 = vshrl.u32 %v767_v52, 16 }
  0xb7   : > { %v1578_v6 = vsel %vm7697_vm7, %v1573_v48, %v1577_v57  ;;  %v2089_v20 = vsel %vm7472_vm2, %v7950_v27, %v2088_v1  ;;  %v2097_v24 = vor.u32 %v2095_v7, %v2094_v34  ;;  %v327_v43 = vsel %vm7652_vm4, 0, %v326_v0  ;;  %v2500_v1 = vld [vmem:[#allocation2 + $0x20] sm:$0xf] }
  0xb8   : > { %v1016_v10 = vsel %vm7472_vm2, %v7937_v14, %v1015_v62  ;;  %v1025_v17 = vsel %vm7472_vm2, %v1017_v8, %v1024_v63  ;;  %v6143_v19 = vcombine.low %v1568_v29, %v1578_v6  ;;  %v7969_v25 = vrot.slane %v1027_v9, 11  ;;  %328 = vst [vmem:[#allocation2 + $0x9c] sm:$0x1] %v327_v43 }
  0xb9   : > { %v6115_v11 = vcombine.low %v1016_v10, %v1025_v17  ;;  %v1580_v14 = vshrl.u32 %v1381_v4, 16  ;;  %v1583_v30 = vshll.u32 %v1381_v4, 16  ;;  %v1589_v56 = vshll.u32 %v1382_v3, 16  ;;  %v333_v17 = vld [vmem:[#allocation2 + $0xb0] sm:$0x1] }
  0xba   : > { %5110 = vmatmul.mubr.bf16.gmra.mrb[40].mxu1 %v6143_v19  ;;  %v1593_v31 = vshrl.u32 %v1382_v3, 16  ;;  %v2098_v32 = vsel %vm7472_vm2, %v2090_v12, %v2097_v24  ;;  %v2100_v33 = vshrl.u32 %v1899_v15, 16  ;;  %v2105_v35 = vshrl.u32 %v1900_v22, 16  ;;  %v2501_v12 = vld [vmem:[#allocation2 + $0x24] sm:$0x1] }
  0xbb   : > { %4981 = vmatmul.mubr.bf16.gmra.mrb[40].mxu0 %v6115_v11  ;;  %v2108_v36 = vshll.u32 %v1900_v22, 16  ;;  %v6176_v39 = vcombine.low %v2089_v20, %v2098_v32  ;;  %v1582_v27 = vrot.slane %v1580_v14, 4  ;;  %v1585_v40 = vrot.slane %v1583_v30, 5  ;;  %v1384_v11 = vld [vmem:[#allocation2 + $0xa8] sm:$0xf] }
  0xbc   : > { %v1591_v41 = vrot.slane %v1589_v56, 5  ;;  %v768_v13 = vld [vmem:[#allocation2 + $0xe4] sm:$0xf]  ;;  %v1595_v23 = vrot.slane %v1593_v31, 4  ;;  %v6161_v45 = vrot.slane %v2100_v33, 11  ;;  %v6515_v51 = vunpack.c.l.bf16 %v7976_v37 }
  0xbd   : > { %v7291_v46 = vld [vmem:[#allocation2 + $0xe4] sm:$0xff]   ;;  %5117 = vmatprep.mubr.bf16.mxu1 %v6176_v39  ;;  %v1032_v50 = vshrl.u32 %v768_v13, 16  ;;  %v1586_v47 = vor.u32 %v1585_v40, %v1582_v27  ;;  %v6516_v53 = vunpack.c.h.bf16 %v7976_v37  ;;  %v1035_v26 = vshll.u32 %v768_v13, 16  ;;  %v1385_v24 = vld [vmem:[#allocation2 + $0xac] sm:$0xf] }
  0xbe   : > { %v769_v49 = vld [vmem:[#allocation2 + $0xe8] sm:$0xf]  ;;  %v1596_v58 = vor.u32 %v1595_v23, %v1591_v41  ;;  %4988 = vmatprep.mubr.bf16.mxu0 %v7291_v46  ;;  %v2107_v60 = vrot.slane %v2105_v35, 7  ;;  %v2114_v28 = vshrl.u32 %v1901_v44, 16  ;;  %v2117_v57 = vshll.u32 %v1901_v44, 16 }
  0xbf   : > { %v1041_v54 = vshrl.u32 %v769_v49, 16  ;;  %v1044_v48 = vshll.u32 %v769_v49, 16  ;;  %v1034_v59 = vrot.slane %v1032_v50, 7  ;;  %v1587_v55 = vrot.slane %v1586_v47, 4  ;;  %v1383_v52 = vld [vmem:[#allocation2 + $0x9c] sm:$0x1] }
  0xc0   : > { %v1597_v29 = vrot.slane %v1596_v58, 4  ;;  %v2548_v61 = vshrl.u32 %v2499_v21, 16  ;;  %v1599_v63 = vshll.u32 %v1383_v52, 16  ;;  %v2110_v4 = vor.u32 %v2108_v36, %v2107_v60  ;;  %v1902_v56 = vld [vmem:[#allocation2 + $0xcc] sm:$0x8] }
  0xc1   : > { %v1043_v16 = vrot.slane %v1041_v54, 7  ;;  %v1037_v34 = vor.u32 %v1035_v26, %v1034_v59  ;;  %v1039_v62 = vrot.slane %v1034_v59, 4  ;;  %v1592_v8 = vsel %vm7697_vm7, %v1587_v55, %v1591_v41  ;;  %v1903_v31 = vld [vmem:[#allocation2 + $0xd0] sm:$0xf]  ;;  %v1904_v44 = vld [vmem:[#allocation2 + $0xd4] sm:$0xf] }
  0xc2   : > { %v2112_v5 = vrot.slane %v2107_v60, 4  ;;  %v2116_v6 = vrot.slane %v2114_v28, 7  ;;  %v1601_v9 = vrot.slane %v1599_v63, 5  ;;  %v2550_v3 = vrot.slane %v2548_v61, 4  ;;  %v2502_v46 = vld [vmem:[#allocation2 + $0x30] sm:$0xf] }
  0xc3   : > { %v1046_v0 = vor.u32 %v1044_v48, %v1043_v16  ;;  %v1038_v7 = vsel %vm7472_vm2, %v7969_v25, %v1037_v34  ;;  %v2551_v10 = vshll.u32 %v2499_v21, 16  ;;  %v2111_v20 = vsel %vm7472_vm2, %v6161_v45, %v2110_v4 }
  0xc4   : > { %v2119_v15 = vor.u32 %v2117_v57, %v2116_v6  ;;  %v2557_v22 = vshll.u32 %v2500_v1, 16  ;;  %v1602_v14 = vsel %vm7697_vm7, %v1597_v29, %v1601_v9  ;;  %v2561_v25 = vshrl.u32 %v2500_v1, 16  ;;  %v7292_v29 = vld [vmem:[#allocation2 + $0x1c] sm:$0xff]   ;;  %v2503_v1 = vld [vmem:[#allocation2 + $0x34] sm:$0xf] }
  0xc5   : > { %v1047_v19 = vsel %vm7472_vm2, %v1039_v62, %v1046_v0  ;;  %v2553_v30 = vrot.slane %v2551_v10, 5  ;;  %v6144_v32 = vcombine.low %v1592_v8, %v1602_v14  ;;  %v2567_v36 = vshll.u32 %v2501_v12, 16  ;;  %v2504_v0 = vld [vmem:[#allocation2 + $0x38] sm:$0x1]  ;;  %v1387_v10 = vld [vmem:[#allocation2 + $0xbc] sm:$0xf] }
  0xc6   : > { %v6116_v43 = vcombine.low %v1038_v7, %v1047_v19  ;;  %v2120_v33 = vsel %vm7472_vm2, %v2112_v5, %v2119_v15  ;;  %v2559_v35 = vrot.slane %v2557_v22, 5  ;;  %v2563_v40 = vrot.slane %v2561_v25, 4  ;;  %v7299_v5 = vld [vmem:[%s9065_s3 + $0x208] sm:$0xff]  }
  0xc7   : > { %v6177_v39 = vcombine.low %v2111_v20, %v2120_v33  ;;  %v2554_v27 = vor.u32 %v2553_v30, %v2550_v3  ;;  %v334_v41 = vsel %vm7652_vm4, 0, %v333_v17  ;;  %5118 = vmatmul.mubr.bf16.gmra.mrb[44].mxu1 %v6144_v32  ;;  %v2569_v21 = vrot.slane %v2567_v36, 5  ;;  %v340_v3 = vld [vmem:[#allocation2 + $0xc4] sm:$0x1]  ;;  %v1388_v30 = vld [vmem:[#allocation2 + $0xc0] sm:$0xf] }
  0xc8   : > { %4989 = vmatmul.mubr.bf16.gmra.mrb[44].mxu0 %v6116_v43  ;;  %335 = vst [vmem:[#allocation2 + $0xb0] sm:$0x1] %v334_v41  ;;  %v1604_v13 = vshrl.u32 %v1384_v11, 16  ;;  %v1607_v23 = vshll.u32 %v1384_v11, 16  ;;  %v1613_v45 = vshll.u32 %v1385_v24, 16  ;;  %v2564_v50 = vor.u32 %v2563_v40, %v2559_v35 }
  0xc9   : > { %5125 = vmatprep.mubr.bf16.mxu1 %v6177_v39  ;;  %v2555_v49 = vrot.slane %v2554_v27, 4  ;;  %v1617_v47 = vshrl.u32 %v1385_v24, 16  ;;  %v2122_v26 = vshrl.u32 %v1902_v56, 16  ;;  %v2127_v59 = vshrl.u32 %v1903_v31, 16  ;;  %v1905_v33 = vld [vmem:[#allocation2 + $0xe0] sm:$0x8] }
  0xca   : > { %v1606_v54 = vrot.slane %v1604_v13, 4  ;;  %v1609_v48 = vrot.slane %v1607_v23, 5  ;;  %v1615_v58 = vrot.slane %v1613_v45, 5  ;;  %v2565_v60 = vrot.slane %v2564_v50, 4  ;;  %v1906_v41 = vld [vmem:[#allocation2 + $0xe4] sm:$0xf] }
  0xcb   : > { %v2560_v55 = vsel %vm7697_vm7, %v2555_v49, %v2559_v35  ;;  %v1619_v28 = vrot.slane %v1617_v47, 4  ;;  %v6162_v16 = vrot.slane %v2122_v26, 11  ;;  %v2129_v57 = vrot.slane %v2127_v59, 7  ;;  %v7304_v35 = vld [vmem:[%s9065_s3 + $0x210] sm:$0xff]  }
  0xcc   : > { %v1610_v52 = vor.u32 %v1609_v48, %v1606_v54  ;;  %v2130_v61 = vshll.u32 %v1903_v31, 16  ;;  %v2136_v34 = vshrl.u32 %v1904_v44, 16  ;;  %v2570_v62 = vsel %vm7697_vm7, %v2565_v60, %v2569_v21  ;;  %v2505_v48 = vld [vmem:[#allocation2 + $0x44] sm:$0xf] }
  0xcd   : > { %v1620_v8 = vor.u32 %v1619_v28, %v1615_v58  ;;  %v2139_v63 = vshll.u32 %v1904_v44, 16  ;;  %v2572_v4 = vshrl.u32 %v2502_v46, 16  ;;  %v6201_v6 = vcombine.low %v2560_v55, %v2570_v62  ;;  %v1907_v55 = vld [vmem:[#allocation2 + $0xe8] sm:$0xf] }
  0xce   : > { %v1611_v12 = vrot.slane %v1610_v52, 4  ;;  %v2132_v7 = vor.u32 %v2130_v61, %v2129_v57  ;;  %v2134_v9 = vrot.slane %v2129_v57, 4  ;;  %v2138_v20 = vrot.slane %v2136_v34, 7  ;;  %v7309_v61 = vld [vmem:[%s9065_s3 + $0x218] sm:$0xff]  }
  0xcf   : > { %v1386_v17 = vld [vmem:[#allocation2 + $0xb0] sm:$0x1]  ;;  %v1621_v19 = vrot.slane %v1620_v8, 4  ;;  %v2574_v15 = vrot.slane %v2572_v4, 4  ;;  %v2575_v22 = vshll.u32 %v2502_v46, 16  ;;  %5222 = vmatprep.mubr.bf16.mxu0 %v6201_v6  ;;  %v2581_v14 = vshll.u32 %v2503_v1, 16 }
  0xd0   : > { %v1616_v11 = vsel %vm7697_vm7, %v1611_v12, %v1615_v58  ;;  %v1623_v24 = vshll.u32 %v1386_v17, 16  ;;  %v2133_v43 = vsel %vm7472_vm2, %v6162_v16, %v2132_v7  ;;  %5223 = vmatmul.mubr.bf16.vlgmr.msra.gmra.mrb[48].mxu0 %v7292_v29  ;;  %v2141_v25 = vor.u32 %v2139_v63, %v2138_v20  ;;  %v7296_v4 = vld [vmem:[#allocation2 + $0x30] sm:$0xff]   ;;  %v2507_v12 = vld [vmem:[#allocation2 + $0x4c] sm:$0x1] }
  0xd1   : > { %v2577_v56 = vrot.slane %v2575_v22, 5  ;;  %v2585_v31 = vshrl.u32 %v2503_v1, 16  ;;  %v2591_v32 = vshll.u32 %v2504_v0, 16  ;;  %7148 = vmatpush3.bf16.msra.mxu0 %v7850_v2  ;;  %v2583_v39 = vrot.slane %v2581_v14, 5  ;;  %v2506_v1 = vld [vmem:[#allocation2 + $0x48] sm:$0xf] }
  0xd2   : > { %v1625_v36 = vrot.slane %v1623_v24, 5  ;;  %v341_v27 = vsel %vm7652_vm4, 0, %v340_v3  ;;  %v1628_v40 = vshrl.u32 %v1387_v10, 16  ;;  %v2142_v44 = vsel %vm7472_vm2, %v2134_v9, %v2141_v25  ;;  %7149 = vmatprep.subr.bf16.mxu0 %v7299_v5  ;;  %v347_v9 = vld [vmem:[#allocation2 + $0xd8] sm:$0x1]  ;;  %v7314_v22 = vld [vmem:[%s9065_s3 + $0x220] sm:$0xff]  }
  0xd3   : > { %v2578_v21 = vor.u32 %v2577_v56, %v2574_v15  ;;  %v2587_v13 = vrot.slane %v2585_v31, 4  ;;  %v2593_v23 = vrot.slane %v2591_v32, 5  ;;  %342 = vst [vmem:[#allocation2 + $0xc4] sm:$0x1] %v341_v27  ;;  %v6178_v46 = vcombine.low %v2133_v43, %v2142_v44  ;;  %v1390_v15 = vld [vmem:[#allocation2 + $0xd0] sm:$0xf] }
  0xd4   : > { %v1626_v45 = vsel %vm7697_vm7, %v1621_v19, %v1625_v36  ;;  %v1630_v49 = vrot.slane %v1628_v40, 4  ;;  %v1631_v2 = vshll.u32 %v1387_v10, 16  ;;  %v1637_v54 = vshll.u32 %v1388_v30, 16  ;;  %v1391_v32 = vld [vmem:[#allocation2 + $0xd4] sm:$0xf] }
  0xd5   : > { %v6145_v50 = vcombine.low %v1616_v11, %v1626_v45  ;;  %v2579_v47 = vrot.slane %v2578_v21, 4  ;;  %v2588_v26 = vor.u32 %v2587_v13, %v2583_v39  ;;  %v1641_v59 = vshrl.u32 %v1388_v30, 16  ;;  %7150 = vmatpush3.bf16.msra.mxu0 %v7299_v5  ;;  %v1908_v27 = vld [vmem:[#allocation2 + $0xf4] sm:$0x8]  ;;  %v1909_v40 = vld [vmem:[#allocation2 + $0xf8] sm:$0xf] }
  0xd6   : > { %v1633_v58 = vrot.slane %v1631_v2, 5  ;;  %v2144_v60 = vshrl.u32 %v1905_v33, 16  ;;  %v2149_v28 = vshrl.u32 %v1906_v41, 16  ;;  %v1639_v29 = vrot.slane %v1637_v54, 5  ;;  %7151 = vmatprep.subr.bf16.mxu0 %v7304_v35 }
  0xd7   : > { %5126 = vmatmul.mubr.bf16.gmra.mrb[48].mxu1 %v6145_v50  ;;  %v2584_v16 = vsel %vm7697_vm7, %v2579_v47, %v2583_v39  ;;  %v2589_v52 = vrot.slane %v2588_v26, 4  ;;  %v2152_v57 = vshll.u32 %v1906_v41, 16  ;;  %v1643_v62 = vrot.slane %v1641_v59, 4  ;;  %v7319_v41 = vld [vmem:[%s9065_s3 + $0x228] sm:$0xff]  }
  0xd8   : > { %5133 = vmatprep.mubr.bf16.mxu1 %v6178_v46  ;;  %v1634_v34 = vor.u32 %v1633_v58, %v1630_v49  ;;  %v6163_v8 = vrot.slane %v2144_v60, 11  ;;  %v2151_v63 = vrot.slane %v2149_v28, 7  ;;  %v2158_v5 = vshrl.u32 %v1907_v55, 16 }
  0xd9   : > { %v2594_v0 = vsel %vm7697_vm7, %v2589_v52, %v2593_v23  ;;  %v2161_v6 = vshll.u32 %v1907_v55, 16  ;;  %v2596_v7 = vshrl.u32 %v2505_v48, 16  ;;  %v1644_v19 = vor.u32 %v1643_v62, %v1639_v29  ;;  %7152 = vmatpush3.bf16.msra.mxu0 %v7304_v35 }
  0xda   : > { %v6202_v3 = vcombine.low %v2584_v16, %v2594_v0  ;;  %v1389_v10 = vld [vmem:[#allocation2 + $0xc4] sm:$0x1]  ;;  %v1635_v17 = vrot.slane %v1634_v34, 4  ;;  %v2154_v20 = vor.u32 %v2152_v57, %v2151_v63  ;;  %v2156_v24 = vrot.slane %v2151_v63, 4  ;;  %7153 = vmatprep.subr.bf16.mxu0 %v7309_v61  ;;  %v1910_v16 = vld [vmem:[#allocation2 + $0xfc] sm:$0xf] }
  0xdb   : > { %v1647_v11 = vshll.u32 %v1389_v10, 16  ;;  %v2160_v43 = vrot.slane %v2158_v5, 7  ;;  %v2598_v14 = vrot.slane %v2596_v7, 4  ;;  %v1645_v25 = vrot.slane %v1644_v19, 4  ;;  %v7297_v0 = vld [vmem:[#allocation2 + $0x44] sm:$0xff]  }
  0xdc   : > { %5230 = vmatprep.mubr.bf16.mxu0 %v6202_v3  ;;  %v1640_v30 = vsel %vm7697_vm7, %v1635_v17, %v1639_v29  ;;  %v2155_v56 = vsel %vm7472_vm2, %v6163_v8, %v2154_v20  ;;  %v2599_v31 = vshll.u32 %v2505_v48, 16  ;;  %v2605_v36 = vshll.u32 %v2506_v1, 16  ;;  %v7324_v8 = vld [vmem:[%s9065_s3 + $0x230] sm:$0xff]   ;;  %v2509_v10 = vld [vmem:[#allocation2 + $0x5c] sm:$0xf] }
  0xdd   : > { %v1649_v33 = vrot.slane %v1647_v11, 5  ;;  %5231 = vmatmul.mubr.bf16.gmra.mrb[52].mxu0 %v7296_v4  ;;  %v2163_v35 = vor.u32 %v2161_v6, %v2160_v43  ;;  %v2609_v39 = vshrl.u32 %v2506_v1, 16  ;;  %v2615_v21 = vshll.u32 %v2507_v12, 16  ;;  %v2508_v6 = vld [vmem:[#allocation2 + $0x58] sm:$0xf] }
  0xde   : > { %v2601_v44 = vrot.slane %v2599_v31, 5  ;;  %v348_v13 = vsel %vm7652_vm4, 0, %v347_v9  ;;  %v1652_v23 = vshrl.u32 %v1390_v15, 16  ;;  %7154 = vmatpush3.bf16.msra.mxu0 %v7309_v61  ;;  %v2607_v49 = vrot.slane %v2605_v36, 5  ;;  %v2510_v17 = vld [vmem:[#allocation2 + $0x60] sm:$0x1] }
  0xdf   : > { %v1650_v45 = vsel %vm7697_vm7, %v1645_v25, %v1649_v33  ;;  %v2164_v46 = vsel %vm7472_vm2, %v2156_v24, %v2163_v35  ;;  %v2611_v2 = vrot.slane %v2609_v39, 4  ;;  %349 = vst [vmem:[#allocation2 + $0xd8] sm:$0x1] %v348_v13  ;;  %7155 = vmatprep.subr.bf16.mxu0 %v7314_v22  ;;  %v2617_v54 = vrot.slane %v2615_v21, 5  ;;  %v354_v24 = vld [vmem:[#allocation2 + $0xec] sm:$0x1] }
  0xe0   : > { %v6146_v50 = vcombine.low %v1640_v30, %v1650_v45  ;;  %v6179_v47 = vcombine.low %v2155_v56, %v2164_v46  ;;  %v2602_v26 = vor.u32 %v2601_v44, %v2598_v14  ;;  %v1654_v58 = vrot.slane %v1652_v23, 4  ;;  %v1393_v35 = vld [vmem:[#allocation2 + $0xe4] sm:$0xf]  ;;  %v7329_v36 = vld [vmem:[%s9065_s3 + $0x238] sm:$0xff]   ;;  %v1394_v44 = vld [vmem:[#allocation2 + $0xe8] sm:$0xf] }
  0xe1   : > { %v2612_v48 = vor.u32 %v2611_v2, %v2607_v49  ;;  %v1655_v59 = vshll.u32 %v1390_v15, 16  ;;  %v1661_v55 = vshll.u32 %v1391_v32, 16  ;;  %v1665_v28 = vshrl.u32 %v1391_v32, 16  ;;  %v1911_v21 = vld [vmem:[#allocation2 + $0x108] sm:$0x8] }
  0xe2   : > { %5134 = vmatmul.mubr.bf16.gmra.mrb[52].mxu1 %v6146_v50  ;;  %v2603_v60 = vrot.slane %v2602_v26, 4  ;;  %v2166_v52 = vshrl.u32 %v1908_v27, 16  ;;  %v2171_v29 = vshrl.u32 %v1909_v40, 16  ;;  %7156 = vmatpush3.bf16.msra.mxu0 %v7314_v22  ;;  %v2174_v62 = vshll.u32 %v1909_v40, 16 }
  0xe3   : > { %5141 = vmatprep.mubr.bf16.mxu1 %v6179_v47  ;;  %v2613_v57 = vrot.slane %v2612_v48, 4  ;;  %v1657_v61 = vrot.slane %v1655_v59, 5  ;;  %v1663_v34 = vrot.slane %v1661_v55, 5  ;;  %7157 = vmatprep.subr.bf16.mxu0 %v7319_v41  ;;  %v1667_v1 = vrot.slane %v1665_v28, 4  ;;  %v1912_v59 = vld [vmem:[#allocation2 + $0x10c] sm:$0xf] }
  0xe4   : > { %v2608_v63 = vsel %vm7697_vm7, %v2603_v60, %v2607_v49  ;;  %v6164_v4 = vrot.slane %v2166_v52, 11  ;;  %v2173_v5 = vrot.slane %v2171_v29, 7  ;;  %v2180_v9 = vshrl.u32 %v1910_v16, 16  ;;  %v1913_v52 = vld [vmem:[#allocation2 + $0x110] sm:$0xf] }
  0xe5   : > { %v2618_v12 = vsel %vm7697_vm7, %v2613_v57, %v2617_v54  ;;  %v1658_v7 = vor.u32 %v1657_v61, %v1654_v58  ;;  %v2183_v3 = vshll.u32 %v1910_v16, 16  ;;  %v1668_v15 = vor.u32 %v1667_v1, %v1663_v34 }
  0xe6   : > { %v6203_v19 = vcombine.low %v2608_v63, %v2618_v12  ;;  %v1392_v20 = vld [vmem:[#allocation2 + $0xd8] sm:$0x1]  ;;  %v2176_v22 = vor.u32 %v2174_v62, %v2173_v5  ;;  %v2178_v11 = vrot.slane %v2173_v5, 4  ;;  %7158 = vmatpush3.bf16.msra.mxu0 %v7319_v41  ;;  %v2182_v30 = vrot.slane %v2180_v9, 7  ;;  %v2511_v62 = vld [vmem:[#allocation2 + $0x6c] sm:$0xf] }
  0xe7   : > { %v1659_v43 = vrot.slane %v1658_v7, 4  ;;  %v1671_v14 = vshll.u32 %v1392_v20, 16  ;;  %v2620_v25 = vshrl.u32 %v2508_v6, 16  ;;  %7159 = vmatprep.subr.bf16.mxu0 %v7324_v8  ;;  %v1669_v56 = vrot.slane %v1668_v15, 4  ;;  %v2512_v7 = vld [vmem:[#allocation2 + $0x70] sm:$0xf] }
  0xe8   : > { %5238 = vmatprep.mubr.bf16.mxu0 %v6203_v19  ;;  %v2177_v31 = vsel %vm7472_vm2, %v6164_v4, %v2176_v22  ;;  %v2623_v32 = vshll.u32 %v2508_v6, 16  ;;  %v2629_v33 = vshll.u32 %v2509_v10, 16  ;;  %v2185_v40 = vor.u32 %v2183_v3, %v2182_v30  ;;  %v7301_v3 = vld [vmem:[#allocation2 + $0x58] sm:$0xff]   ;;  %v2513_v20 = vld [vmem:[#allocation2 + $0x74] sm:$0x1] }
  0xe9   : > { %v1664_v39 = vsel %vm7697_vm7, %v1659_v43, %v1663_v34  ;;  %v1673_v27 = vrot.slane %v1671_v14, 5  ;;  %5239 = vmatmul.mubr.bf16.gmra.mrb[56].mxu0 %v7297_v0  ;;  %v2622_v41 = vrot.slane %v2620_v25, 4  ;;  %v2633_v45 = vshrl.u32 %v2509_v10, 16  ;;  %v361_v43 = vld [vmem:[#allocation2 + $0x100] sm:$0x1] }
  0xea   : > { %v2625_v13 = vrot.slane %v2623_v32, 5  ;;  %v2631_v23 = vrot.slane %v2629_v33, 5  ;;  %v2639_v46 = vshll.u32 %v2510_v17, 16  ;;  %7160 = vmatpush3.bf16.msra.mxu0 %v7324_v8  ;;  %v2186_v2 = vsel %vm7472_vm2, %v2178_v11, %v2185_v40  ;;  %v1396_v14 = vld [vmem:[#allocation2 + $0xf8] sm:$0xf] }
  0xeb   : > { %v1674_v49 = vsel %vm7697_vm7, %v1669_v56, %v1673_v27  ;;  %v355_v50 = vsel %vm7652_vm4, 0, %v354_v24  ;;  %v1676_v47 = vshrl.u32 %v1393_v35, 16  ;;  %7161 = vmatprep.subr.bf16.mxu0 %v7329_v36  ;;  %v6180_v54 = vcombine.low %v2177_v31, %v2186_v2 }
  0xec   : > { %v6147_v26 = vcombine.low %v1664_v39, %v1674_v49  ;;  %v2626_v48 = vor.u32 %v2625_v13, %v2622_v41  ;;  %v2635_v58 = vrot.slane %v2633_v45, 4  ;;  %356 = vst [vmem:[#allocation2 + $0xec] sm:$0x1] %v355_v50  ;;  %v2641_v55 = vrot.slane %v2639_v46, 5  ;;  %v1397_v50 = vld [vmem:[#allocation2 + $0xfc] sm:$0xf] }
  0xed   : > { %v1678_v60 = vrot.slane %v1676_v47, 4  ;;  %v1679_v28 = vshll.u32 %v1393_v35, 16  ;;  %v1685_v16 = vshll.u32 %v1394_v44, 16  ;;  %v1689_v61 = vshrl.u32 %v1394_v44, 16 }
  0xee   : > { %5142 = vmatmul.mubr.bf16.gmra.mrb[56].mxu1 %v6147_v26  ;;  %v2627_v29 = vrot.slane %v2626_v48, 4  ;;  %v2636_v57 = vor.u32 %v2635_v58, %v2631_v23  ;;  %v2188_v34 = vshrl.u32 %v1911_v21, 16  ;;  %7162 = vmatpush3.bf16.msra.mxu0 %v7329_v36  ;;  %v2193_v1 = vshrl.u32 %v1912_v59, 16 }
  0xef   : > { %5149 = vmatprep.mubr.bf16.mxu1 %v6180_v54  ;;  %v1681_v8 = vrot.slane %v1679_v28, 5  ;;  %v1687_v63 = vrot.slane %v1685_v16, 5  ;;  %v2196_v0 = vshll.u32 %v1912_v59, 16  ;;  %v1691_v6 = vrot.slane %v1689_v61, 4  ;;  %v1914_v59 = vld [vmem:[#allocation2 + $0x11c] sm:$0x8] }
  0xf0   : > { %v2632_v4 = vsel %vm7697_vm7, %v2627_v29, %v2631_v23  ;;  %v2637_v5 = vrot.slane %v2636_v57, 4  ;;  %v6165_v12 = vrot.slane %v2188_v34, 11  ;;  %v2195_v10 = vrot.slane %v2193_v1, 7  ;;  %v1916_v29 = vld [vmem:[#allocation2 + $0x124] sm:$0xf] }
  0xf1   : > { %v1682_v9 = vor.u32 %v1681_v8, %v1678_v60  ;;  %v2202_v17 = vshrl.u32 %v1913_v52, 16  ;;  %v2205_v19 = vshll.u32 %v1913_v52, 16  ;;  %v1692_v22 = vor.u32 %v1691_v6, %v1687_v63  ;;  %v2514_v57 = vld [vmem:[#allocation2 + $0x80] sm:$0xf] }
  0xf2   : > { %v2642_v15 = vsel %vm7697_vm7, %v2637_v5, %v2641_v55  ;;  %v2644_v11 = vshrl.u32 %v2511_v62, 16  ;;  %v2647_v24 = vshll.u32 %v2511_v62, 16  ;;  %v2198_v31 = vor.u32 %v2196_v0, %v2195_v10  ;;  %v1915_v55 = vld [vmem:[#allocation2 + $0x120] sm:$0xf] }
  0xf3   : > { %v6204_v30 = vcombine.low %v2632_v4, %v2642_v15  ;;  %v1395_v25 = vld [vmem:[#allocation2 + $0xec] sm:$0x1]  ;;  %v1683_v56 = vrot.slane %v1682_v9, 4  ;;  %v2200_v32 = vrot.slane %v2195_v10, 4  ;;  %v1693_v33 = vrot.slane %v1692_v22, 4 }
  0xf4   : > { %v1695_v35 = vshll.u32 %v1395_v25, 16  ;;  %v2204_v36 = vrot.slane %v2202_v17, 7  ;;  %v2646_v39 = vrot.slane %v2644_v11, 4  ;;  %v2199_v40 = vsel %vm7472_vm2, %v6165_v12, %v2198_v31  ;;  %v7302_v9 = vld [vmem:[#allocation2 + $0x6c] sm:$0xff]   ;;  %v2515_v11 = vld [vmem:[#allocation2 + $0x84] sm:$0xf] }
  0xf5   : > { %5246 = vmatprep.mubr.bf16.mxu0 %v6204_v30  ;;  %v1688_v27 = vsel %vm7697_vm7, %v1683_v56, %v1687_v63  ;;  %v2649_v41 = vrot.slane %v2647_v24, 5  ;;  %v2653_v44 = vshll.u32 %v2512_v7, 16  ;;  %v2657_v23 = vshrl.u32 %v2512_v7, 16  ;;  %v2516_v24 = vld [vmem:[#allocation2 + $0x88] sm:$0x1] }
  0xf6   : > { %v1697_v21 = vrot.slane %v1695_v35, 5  ;;  %5247 = vmatmul.mubr.bf16.gmra.mrb[60].mxu0 %v7301_v3  ;;  %v2207_v13 = vor.u32 %v2205_v19, %v2204_v36  ;;  %v2663_v45 = vshll.u32 %v2513_v20, 16  ;;  %v362_v2 = vsel %vm7652_vm4, 0, %v361_v43 }
  0xf7   : > { %v2650_v46 = vor.u32 %v2649_v41, %v2646_v39  ;;  %v2655_v49 = vrot.slane %v2653_v44, 5  ;;  %v1700_v47 = vshrl.u32 %v1396_v14, 16  ;;  %v2659_v48 = vrot.slane %v2657_v23, 4  ;;  %363 = vst [vmem:[#allocation2 + $0x100] sm:$0x1] %v362_v2 }
  0xf8   : > { %v1698_v26 = vsel %vm7697_vm7, %v1693_v33, %v1697_v21  ;;  %v2208_v54 = vsel %vm7472_vm2, %v2200_v32, %v2207_v13  ;;  %v2665_v58 = vrot.slane %v2663_v45, 5  ;;  %v1703_v34 = vshll.u32 %v1396_v14, 16  ;;  %v368_v33 = vld [vmem:[#allocation2 + $0x114] sm:$0x1]  ;;  %v1400_v23 = vld [vmem:[#allocation2 + $0x110] sm:$0xf] }
  0xf9   : > { %v6148_v60 = vcombine.low %v1688_v27, %v1698_v26  ;;  %v6181_v28 = vcombine.low %v2199_v40, %v2208_v54  ;;  %v2651_v16 = vrot.slane %v2650_v46, 4  ;;  %v1702_v52 = vrot.slane %v1700_v47, 4  ;;  %v1399_v40 = vld [vmem:[#allocation2 + $0x10c] sm:$0xf] }
  0xfa   : > { %v2660_v61 = vor.u32 %v2659_v48, %v2655_v49  ;;  %v1709_v62 = vshll.u32 %v1397_v50, 16  ;;  %v1713_v8 = vshrl.u32 %v1397_v50, 16  ;;  %v2210_v1 = vshrl.u32 %v1914_v59, 16  ;;  %v1917_v50 = vld [vmem:[#allocation2 + $0x130] sm:$0x8] }
  0xfb   : > { %5150 = vmatmul.mubr.bf16.gmra.mrb[60].mxu1 %v6148_v60  ;;  %v2656_v63 = vsel %vm7697_vm7, %v2651_v16, %v2655_v49  ;;  %v2215_v0 = vshrl.u32 %v1915_v55, 16  ;;  %v2218_v4 = vshll.u32 %v1915_v55, 16  ;;  %v1705_v6 = vrot.slane %v1703_v34, 5  ;;  %v1918_v59 = vld [vmem:[#allocation2 + $0x134] sm:$0xf] }
  0xfc   : > { %5157 = vmatprep.mubr.bf16.mxu1 %v6181_v28  ;;  %v2661_v5 = vrot.slane %v2660_v61, 4  ;;  %v1711_v12 = vrot.slane %v1709_v62, 5  ;;  %v1715_v7 = vrot.slane %v1713_v8, 4  ;;  %v6166_v3 = vrot.slane %v2210_v1, 11 }
  0xfd   : > { %v2217_v10 = vrot.slane %v2215_v0, 7  ;;  %v2224_v17 = vshrl.u32 %v1916_v29, 16  ;;  %v2227_v19 = vshll.u32 %v1916_v29, 16  ;;  %v1706_v15 = vor.u32 %v1705_v6, %v1702_v52 }
  0xfe   : > { %v2666_v20 = vsel %vm7697_vm7, %v2661_v5, %v2665_v58  ;;  %v1716_v22 = vor.u32 %v1715_v7, %v1711_v12  ;;  %v2668_v43 = vshrl.u32 %v2514_v57, 16  ;;  %v1398_v25 = vld [vmem:[#allocation2 + $0x100] sm:$0x1]  ;;  %v2671_v21 = vshll.u32 %v2514_v57, 16 }
  0xff   : > { %v6205_v30 = vcombine.low %v2656_v63, %v2666_v20  ;;  %v2220_v56 = vor.u32 %v2218_v4, %v2217_v10  ;;  %v2222_v31 = vrot.slane %v2217_v10, 4  ;;  %v2226_v32 = vrot.slane %v2224_v17, 7  ;;  %v7306_v17 = vld [vmem:[#allocation2 + $0x80] sm:$0xff]  }
 0x100   : > { %v1707_v35 = vrot.slane %v1706_v15, 4  ;;  %v1717_v36 = vrot.slane %v1716_v22, 4  ;;  %v1719_v39 = vshll.u32 %v1398_v25, 16  ;;  %v2670_v27 = vrot.slane %v2668_v43, 4  ;;  %v2518_v43 = vld [vmem:[#allocation2 + $0x98] sm:$0xf] }
 0x101   : > { %v8077_v14 = vpop.f32.mrb[0].mxu0  ;;  %5254 = vmatprep.mubr.bf16.mxu0 %v6205_v30  ;;  %v2221_v41 = vsel %vm7472_vm2, %v6166_v3, %v2220_v56  ;;  %v2229_v44 = vor.u32 %v2227_v19, %v2226_v32  ;;  %v2677_v13 = vshll.u32 %v2515_v11, 16  ;;  %v2681_v49 = vshrl.u32 %v2515_v11, 16  ;;  %v2519_v32 = vld [vmem:[#allocation2 + $0x9c] sm:$0x1] }
 0x102   : > { %v1712_v45 = vsel %vm7697_vm7, %v1707_v35, %v1711_v12  ;;  %v1721_v46 = vrot.slane %v1719_v39, 5  ;;  %5255 = vmatmul.mubr.bf16.gmra.mrb[64].mxu0 %v7302_v9  ;;  %v2687_v2 = vshll.u32 %v2516_v24, 16  ;;  %v8083_v47 = vpop.f32.mrb[1].mxu0  ;;  %v2673_v54 = vrot.slane %v2671_v21, 5  ;;  %v1919_v12 = vld [vmem:[#allocation2 + $0x138] sm:$0xf] }
 0x103   : > { %v2230_v26 = vsel %vm7472_vm2, %v2222_v31, %v2229_v44  ;;  %v2679_v48 = vrot.slane %v2677_v13, 5  ;;  %v369_v58 = vsel %vm7652_vm4, 0, %v368_v33  ;;  %v8089_v55 = vpop.f32.mrb[2].mxu0  ;;  %v2683_v16 = vrot.slane %v2681_v49, 4  ;;  %v2517_v24 = vld [vmem:[#allocation2 + $0x94] sm:$0xf] }
 0x104   : > { %v1722_v60 = vsel %vm7697_vm7, %v1717_v36, %v1721_v46  ;;  %v6182_v28 = vcombine.low %v2221_v41, %v2230_v26  ;;  %v2689_v52 = vrot.slane %v2687_v2, 5  ;;  %370 = vst [vmem:[#allocation2 + $0x114] sm:$0x1] %v369_v58  ;;  %v2674_v57 = vor.u32 %v2673_v54, %v2670_v27  ;;  %v8093_v0 = vpop.f32.mrb[3].mxu0  ;;  %v1402_v2 = vld [vmem:[#allocation2 + $0x120] sm:$0xf] }
 0x105   : > { %v6149_v29 = vcombine.low %v1712_v45, %v1722_v60  ;;  %v1724_v61 = vshrl.u32 %v1399_v40, 16  ;;  %v1727_v34 = vshll.u32 %v1399_v40, 16  ;;  %v2684_v62 = vor.u32 %v2683_v16, %v2679_v48  ;;  %v375_v40 = vld [vmem:[#allocation2 + $0x128] sm:$0x1] }
 0x106   : > { %v1733_v8 = vshll.u32 %v1400_v23, 16  ;;  %v1737_v63 = vshrl.u32 %v1400_v23, 16  ;;  %v2232_v1 = vshrl.u32 %v1917_v50, 16  ;;  %v2675_v4 = vrot.slane %v2674_v57, 4 }
 0x107   : > { %5158 = vmatmul.mubr.bf16.gmra.mrb[64].mxu1 %v6149_v29  ;;  %v1726_v5 = vrot.slane %v1724_v61, 4  ;;  %v1729_v6 = vrot.slane %v1727_v34, 5  ;;  %v2237_v7 = vshrl.u32 %v1918_v59, 16  ;;  %v2685_v9 = vrot.slane %v2684_v62, 4 }
 0x108   : > { %5165 = vmatprep.mubr.bf16.mxu1 %v6182_v28  ;;  %v1735_v3 = vrot.slane %v1733_v8, 5  ;;  %v1739_v10 = vrot.slane %v1737_v63, 4  ;;  %v6167_v19 = vrot.slane %v2232_v1, 11  ;;  %v2680_v20 = vsel %vm7697_vm7, %v2675_v4, %v2679_v48  ;;  %v1920_v4 = vld [vmem:[#allocation2 + $0x144] sm:$0x8] }
 0x109   : > { %v1730_v15 = vor.u32 %v1729_v6, %v1726_v5  ;;  %v2239_v22 = vrot.slane %v2237_v7, 7  ;;  %v2240_v11 = vshll.u32 %v1918_v59, 16  ;;  %v2690_v30 = vsel %vm7697_vm7, %v2685_v9, %v2689_v52  ;;  %v1403_v52 = vld [vmem:[#allocation2 + $0x124] sm:$0xf]  ;;  %v2520_v5 = vld [vmem:[#allocation2 + $0xa8] sm:$0xf] }
 0x10a   : > { %v1740_v25 = vor.u32 %v1739_v10, %v1735_v3  ;;  %v2246_v56 = vshrl.u32 %v1919_v12, 16  ;;  %v2249_v31 = vshll.u32 %v1919_v12, 16  ;;  %v6206_v33 = vcombine.low %v2680_v20, %v2690_v30  ;;  %v7342_v20 = vld [vmem:[%s9063_s1] ss:$0 sm:$0xff] }
 0x10b   : > { %v1401_v35 = vld [vmem:[#allocation2 + $0x114] sm:$0x1]  ;;  %v1731_v36 = vrot.slane %v1730_v15, 4  ;;  %v2242_v39 = vor.u32 %v2240_v11, %v2239_v22  ;;  %v2244_v27 = vrot.slane %v2239_v22, 4  ;;  %v2692_v13 = vshrl.u32 %v2517_v24, 16 }
 0x10c   : > { %v1741_v41 = vrot.slane %v1740_v25, 4  ;;  %v1743_v44 = vshll.u32 %v1401_v35, 16  ;;  %v2248_v21 = vrot.slane %v2246_v56, 7  ;;  %5262 = vmatprep.mubr.bf16.mxu0 %v6206_v33  ;;  %v2695_v46 = vshll.u32 %v2517_v24, 16 }
 0x10d   : > { %v1736_v23 = vsel %vm7697_vm7, %v1731_v36, %v1735_v3  ;;  %v2243_v45 = vsel %vm7472_vm2, %v6167_v19, %v2242_v39  ;;  %v2701_v49 = vshll.u32 %v2518_v43, 16  ;;  %5263 = vmatmul.mubr.bf16.gmra.mrb[68].mxu0 %v7306_v17  ;;  %v2694_v54 = vrot.slane %v2692_v13, 4 }
 0x10e   : > { %v1745_v50 = vrot.slane %v1743_v44, 5  ;;  %v2251_v26 = vor.u32 %v2249_v31, %v2248_v21  ;;  %v2705_v48 = vshrl.u32 %v2518_v43, 16  ;;  %v8103_v58 = vpop.f32.mrb[0].mxu1  ;;  %v2697_v59 = vrot.slane %v2695_v46, 5  ;;  %v7307_v31 = vld [vmem:[#allocation2 + $0x94] sm:$0xff]  }
 0x10f   : > { %v2703_v60 = vrot.slane %v2701_v49, 5  ;;  %v2711_v28 = vshll.u32 %v2519_v32, 16  ;;  %v376_v16 = vsel %vm7652_vm4, 0, %v375_v40  ;;  %v1748_v34 = vshrl.u32 %v1402_v2, 16  ;;  %v8111_v6 = vpop.f32.mrb[1].mxu1 }
 0x110   : > { %v1746_v29 = vsel %vm7697_vm7, %v1741_v41, %v1745_v50  ;;  %v2252_v57 = vsel %vm7472_vm2, %v2244_v27, %v2251_v26  ;;  %v2707_v61 = vrot.slane %v2705_v48, 4  ;;  %377 = vst [vmem:[#allocation2 + $0x128] sm:$0x1] %v376_v16  ;;  %v2698_v63 = vor.u32 %v2697_v59, %v2694_v54  ;;  %v8113_v10 = vpop.f32.mrb[2].mxu1  ;;  %v7343_v32 = vld [vmem:[%s9064_s2] ss:$0 sm:$0xff] }
 0x111   : > { %v6150_v62 = vcombine.low %v1736_v23, %v1746_v29  ;;  %v6183_v8 = vcombine.low %v2243_v45, %v2252_v57  ;;  %v2713_v1 = vrot.slane %v2711_v28, 5  ;;  %v1750_v7 = vrot.slane %v1748_v34, 4  ;;  %v8127_v36 = vpop.f32.mrb[3].mxu1  ;;  %v2522_v27 = vld [vmem:[#allocation2 + $0xb0] sm:$0x1] }
 0x112   : > { %v2708_v12 = vor.u32 %v2707_v61, %v2703_v60  ;;  %v1751_v9 = vshll.u32 %v1402_v2, 16  ;;  %v1757_v3 = vshll.u32 %v1403_v52, 16  ;;  %v2699_v17 = vrot.slane %v2698_v63, 4  ;;  %v382_v41 = vld [vmem:[#allocation2 + $0x13c] sm:$0x1] }
 0x113   : > { %5166 = vmatmul.mubr.bf16.gmra.mrb[68].mxu1 %v6150_v62  ;;  %v1761_v19 = vshrl.u32 %v1403_v52, 16  ;;  %v500_v15 = vmul.f32 %v7342_v20, %v6515_v51  ;;  %v501_v22 = vmul.f32 %v7342_v20, %v6516_v53  ;;  %v2254_v30 = vshrl.u32 %v1920_v4, 16  ;;  %v2521_v51 = vld [vmem:[#allocation2 + $0xac] sm:$0xf]  ;;  %v1405_v46 = vld [vmem:[#allocation2 + $0x134] sm:$0xf] }
 0x114   : > { %5173 = vmatprep.mubr.bf16.mxu1 %v6183_v8  ;;  %v2709_v11 = vrot.slane %v2708_v12, 4  ;;  %v1753_v24 = vrot.slane %v1751_v9, 5  ;;  %v1759_v43 = vrot.slane %v1757_v3, 5  ;;  %v2704_v25 = vsel %vm7697_vm7, %v2699_v17, %v2703_v60  ;;  %v1406_v54 = vld [vmem:[#allocation2 + $0x138] sm:$0xf] }
 0x115   : > { %v1763_v56 = vrot.slane %v1761_v19, 4  ;;  %v539_v33 = vadd.f32 %v7343_v32, %v500_v15  ;;  %v540_v35 = vadd.f32 %v7343_v32, %v501_v22  ;;  %v8131_v39 = vrot.slane %v2254_v30, 11  ;;  %v2523_v16 = vld [vmem:[#allocation2 + $0xbc] sm:$0xf]  ;;  %v2524_v3 = vld [vmem:[#allocation2 + $0xc0] sm:$0xf] }
 0x116   : > { %v2714_v37 = vsel %vm7697_vm7, %v2709_v11, %v2713_v1  ;;  %v1754_v53 = vor.u32 %v1753_v24, %v1750_v7  ;;  %v2716_v40 = vshrl.u32 %v2520_v5, 16  ;;  %v2719_v26 = vshll.u32 %v2520_v5, 16  ;;  %v2525_v22 = vld [vmem:[#allocation2 + $0xc4] sm:$0x1] }
 0x117   : > { %v6207_v44 = vcombine.low %v2704_v25, %v2714_v37  ;;  %v1404_v21 = vld [vmem:[#allocation2 + $0x128] sm:$0x1]  ;;  %v1764_v13 = vor.u32 %v1763_v56, %v1759_v43  ;;  %v571_v23 = vmax.f32 %v539_v33, 0.0  ;;  %v572_v45 = vmax.f32 %v540_v35, 0.0  ;;  %v8133_v52 = vpop.f32.mrb[4].mxu0 }
 0x118   : > { %v1755_v49 = vrot.slane %v1754_v53, 4  ;;  %v1767_v2 = vshll.u32 %v1404_v21, 16  ;;  %v2718_v50 = vrot.slane %v2716_v40, 4  ;;  %v2725_v60 = vshll.u32 %v2521_v51, 16  ;;  %v7311_v37 = vld [vmem:[#allocation2 + $0xa8] sm:$0xff]  }
 0x119   : > { %5270 = vmatprep.mubr.bf16.mxu0 %v6207_v44  ;;  %v1765_v48 = vrot.slane %v1764_v13, 4  ;;  %v6555_v59 = vpack.c.bf16 %v572_v45, %v571_v23  ;;  %v2729_v28 = vshrl.u32 %v2521_v51, 16  ;;  %v2721_v61 = vrot.slane %v2719_v26, 5  ;;  %v8137_v62 = vpop.f32.mrb[4].mxu1  ;;  %v3012_v21 = vld [vmem:[#allocation2 + $0x2c] sm:$0x8] }
 0x11a   : > { %v1760_v29 = vsel %vm7697_vm7, %v1755_v49, %v1759_v43  ;;  %v1769_v57 = vrot.slane %v1767_v2, 5  ;;  %5271 = vmatmul.mubr.bf16.gmra.mrb[72].mxu0 %v7307_v31  ;;  %v2735_v34 = vshll.u32 %v2522_v27, 16  ;;  %v2727_v8 = vrot.slane %v2725_v60, 5  ;;  %v3013_v13 = vld [vmem:[#allocation2 + $0x30] sm:$0xf]  ;;  %v8149_v23 = vpop.f32.mrb[5].mxu0 }
 0x11b   : > { %6659 = vst [vmem:[#allocation2 + $0x148] sm:$0xff] %v6555_v59   ;;  %v2731_v63 = vrot.slane %v2729_v28, 4  ;;  %v383_v1 = vsel %vm7652_vm4, 0, %v382_v41  ;;  %v1772_v4 = vshrl.u32 %v1405_v46, 16  ;;  %v2722_v12 = vor.u32 %v2721_v61, %v2718_v50 }
 0x11c   : > { %v1770_v5 = vsel %vm7697_vm7, %v1765_v48, %v1769_v57  ;;  %v2737_v7 = vrot.slane %v2735_v34, 5  ;;  %384 = vst [vmem:[#allocation2 + $0x13c] sm:$0x1] %v383_v1  ;;  %v1775_v9 = vshll.u32 %v1405_v46, 16  ;;  %v1781_v15 = vshll.u32 %v1406_v54, 16 }
 0x11d   : > { %v6151_v17 = vcombine.low %v1760_v29, %v1770_v5  ;;  %v2732_v19 = vor.u32 %v2731_v63, %v2727_v8  ;;  %v1774_v20 = vrot.slane %v1772_v4, 4  ;;  %v2723_v11 = vrot.slane %v2722_v12, 4  ;;  %v3014_v4 = vld [vmem:[#allocation2 + $0x34] sm:$0xf] }
 0x11e   : > { %v1777_v24 = vrot.slane %v1775_v9, 5  ;;  %v1785_v43 = vshrl.u32 %v1406_v54, 16  ;;  %v2740_v30 = vshrl.u32 %v2523_v16, 16  ;;  %v1783_v56 = vrot.slane %v1781_v15, 5  ;;  %v2526_v15 = vld [vmem:[#allocation2 + $0xd0] sm:$0xf] }
 0x11f   : > { %5174 = vmatmul.mubr.bf16.gmra.mrb[72].mxu1 %v6151_v17  ;;  %v2733_v25 = vrot.slane %v2732_v19, 4  ;;  %v2743_v31 = vshll.u32 %v2523_v16, 16  ;;  %v2749_v32 = vshll.u32 %v2524_v3, 16  ;;  %v2728_v33 = vsel %vm7697_vm7, %v2723_v11, %v2727_v8 }
 0x120   : > { %v1778_v35 = vor.u32 %v1777_v24, %v1774_v20  ;;  %v1787_v51 = vrot.slane %v1785_v43, 4  ;;  %v2742_v53 = vrot.slane %v2740_v30, 4  ;;  %v2753_v44 = vshrl.u32 %v2524_v3, 16  ;;  %v2527_v30 = vld [vmem:[#allocation2 + $0xd4] sm:$0xf] }
 0x121   : > { %v2738_v27 = vsel %vm7697_vm7, %v2733_v25, %v2737_v7  ;;  %v2745_v40 = vrot.slane %v2743_v31, 5  ;;  %v8147_v41 = vrot.slane %v2749_v32, 5  ;;  %v2759_v26 = vshll.u32 %v2525_v22, 16  ;;  %v2528_v25 = vld [vmem:[#allocation2 + $0xd8] sm:$0x1] }
 0x122   : > { %v1921_v45 = vld [vmem:[#allocation2 + $0x148] sm:$0xf]  ;;  %v1922_v46 = vld [vmem:[#allocation2 + $0x14c] sm:$0xf]  ;;  %v6208_v49 = vcombine.low %v2728_v33, %v2738_v27  ;;  %v1779_v2 = vrot.slane %v1778_v35, 4  ;;  %v1788_v50 = vor.u32 %v1787_v51, %v1783_v56  ;;  %v2755_v63 = vrot.slane %v2753_v44, 4 }
 0x123   : > { %v2259_v54 = vshrl.u32 %v1921_v45, 16  ;;  %v2262_v48 = vshll.u32 %v1921_v45, 16  ;;  %v2268_v59 = vshrl.u32 %v1922_v46, 16  ;;  %v2271_v60 = vshll.u32 %v1922_v46, 16  ;;  %v1407_v28 = vld [vmem:[#allocation2 + $0x13c] sm:$0x1] }
 0x124   : > { %5278 = vmatprep.mubr.bf16.mxu0 %v6208_v49  ;;  %v1784_v16 = vsel %vm7697_vm7, %v1779_v2, %v1783_v56  ;;  %v1789_v29 = vrot.slane %v1788_v50, 4  ;;  %v1791_v57 = vshll.u32 %v1407_v28, 16  ;;  %v2746_v61 = vor.u32 %v2745_v40, %v2742_v53  ;;  %v7312_v35 = vld [vmem:[#allocation2 + $0x30] sm:$0xff]   ;;  %v3015_v51 = vld [vmem:[#allocation2 + $0x40] sm:$0x8]  ;;  %v8166_v53 = vpop.f32.mrb[6].mxu0 }
 0x125   : > { %v2261_v34 = vrot.slane %v2259_v54, 7  ;;  %v2270_v8 = vrot.slane %v2268_v59, 7  ;;  %5279 = vmatmul.mubr.bf16.gmra.mrb[76].mxu0 %v7311_v37  ;;  %v2761_v1 = vrot.slane %v2759_v26, 5  ;;  %v3061_v7 = vshrl.u32 %v3012_v21, 16  ;;  %v8164_v37 = vpop.f32.mrb[5].mxu1  ;;  %v7313_v40 = vld [vmem:[#allocation2 + $0xbc] sm:$0xff]  }
 0x126   : > { %v1793_v5 = vrot.slane %v1791_v57, 5  ;;  %v2747_v12 = vrot.slane %v2746_v61, 4  ;;  %v3066_v9 = vshrl.u32 %v3013_v13, 16  ;;  %v2756_v20 = vor.u32 %v2755_v63, %v8147_v41  ;;  %v8168_v45 = vpop.f32.mrb[6].mxu1  ;;  %v8170_v46 = vpop.f32.mrb[7].mxu0 }
 0x127   : > { %v2264_v3 = vor.u32 %v2262_v48, %v2261_v34  ;;  %v2266_v17 = vrot.slane %v2261_v34, 4  ;;  %v2273_v19 = vor.u32 %v2271_v60, %v2270_v8  ;;  %v6217_v24 = vrot.slane %v3061_v7, 11  ;;  %v8174_v26 = vpop.f32.mrb[7].mxu1  ;;  %v3017_v61 = vld [vmem:[#allocation2 + $0x48] sm:$0xf] }
 0x128   : > { %v1794_v22 = vsel %vm7697_vm7, %v1789_v29, %v1793_v5  ;;  %v2752_v11 = vsel %vm7697_vm7, %v2747_v12, %v8147_v41  ;;  %v3068_v43 = vrot.slane %v3066_v9, 7  ;;  %v2757_v33 = vrot.slane %v2756_v20, 4  ;;  %v2529_v9 = vld [vmem:[#allocation2 + $0xe4] sm:$0xf] }
 0x129   : > { %v2265_v56 = vsel %vm7472_vm2, %v8131_v39, %v2264_v3  ;;  %v2274_v31 = vsel %vm7472_vm2, %v2266_v17, %v2273_v19  ;;  %v6152_v32 = vcombine.low %v1784_v16, %v1794_v22  ;;  %v3069_v41 = vshll.u32 %v3013_v13, 16  ;;  %v3016_v13 = vld [vmem:[#allocation2 + $0x44] sm:$0xf]  ;;  %v8178_v3 = vpop.f32.mrb[8].mxu0 }
 0x12a   : > { %v6184_v27 = vcombine.low %v2265_v56, %v2274_v31  ;;  %v3073_v44 = vrot.slane %v3068_v43, 4  ;;  %v3075_v21 = vshrl.u32 %v3014_v4, 16  ;;  %v2762_v39 = vsel %vm7697_vm7, %v2757_v33, %v2761_v1  ;;  %v7315_v19 = vld [vmem:[#allocation2 + $0x44] sm:$0xff]   ;;  %v2531_v31 = vld [vmem:[#allocation2 + $0xec] sm:$0x1] }
 0x12b   : > { %v3078_v49 = vshll.u32 %v3014_v4, 16  ;;  %v2764_v2 = vshrl.u32 %v2526_v15, 16  ;;  %v2767_v50 = vshll.u32 %v2526_v15, 16  ;;  %v6209_v54 = vcombine.low %v2752_v11, %v2762_v39  ;;  %v8182_v11 = vpop.f32.mrb[8].mxu1  ;;  %v2530_v56 = vld [vmem:[#allocation2 + $0xe8] sm:$0xf] }
 0x12c   : > { %5181 = vmatprep.mubr.bf16.mxu1 %v6184_v27  ;;  %v3071_v48 = vor.u32 %v3069_v41, %v3068_v43  ;;  %v3077_v59 = vrot.slane %v3075_v21, 7  ;;  %v2773_v60 = vshll.u32 %v2527_v30, 16  ;;  %v2777_v29 = vshrl.u32 %v2527_v30, 16  ;;  %v3018_v27 = vld [vmem:[#allocation2 + $0x54] sm:$0x8]  ;;  %v8186_v41 = vpop.f32.mrb[9].mxu1 }
 0x12d   : > { %5182 = vmatmul.mubr.bf16.gmra.mrb[76].mxu1 %v6152_v32  ;;  %v2766_v28 = vrot.slane %v2764_v2, 4  ;;  %v2769_v16 = vrot.slane %v2767_v50, 5  ;;  %v2783_v57 = vshll.u32 %v2528_v25, 16  ;;  %5286 = vmatprep.mubr.bf16.mxu0 %v6209_v54  ;;  %v3083_v1 = vshrl.u32 %v3015_v51, 16  ;;  %v3019_v2 = vld [vmem:[#allocation2 + $0x58] sm:$0xf] }
 0x12e   : > { %5383 = vmatprep.mubr.bf16.mxu1 %v7312_v35  ;;  %v3072_v34 = vsel %vm7472_vm2, %v6217_v24, %v3071_v48  ;;  %v3080_v8 = vor.u32 %v3078_v49, %v3077_v59  ;;  %v2775_v63 = vrot.slane %v2773_v60, 5  ;;  %5287 = vmatmul.mubr.bf16.gmra.mrb[80].mxu0 %v7313_v40  ;;  %v2779_v5 = vrot.slane %v2777_v29, 4  ;;  %v8184_v40 = vpop.f32.mrb[9].mxu0  ;;  %v8192_v54 = vpop.f32.mrb[10].mxu1  ;;  %v7316_v48 = vld [vmem:[#allocation2 + $0xd0] sm:$0xff]  }
 0x12f   : > { %v2770_v4 = vor.u32 %v2769_v16, %v2766_v28  ;;  %v2785_v12 = vrot.slane %v2783_v57, 5  ;;  %v3088_v7 = vshrl.u32 %v3016_v13, 16  ;;  %v6218_v20 = vrot.slane %v3083_v1, 11  ;;  %v8190_v50 = vpop.f32.mrb[10].mxu0  ;;  %v8196_v29 = vpop.f32.mrb[11].mxu1 }
 0x130   : > { %v3081_v17 = vsel %vm7472_vm2, %v3073_v44, %v3080_v8  ;;  %v3091_v15 = vshll.u32 %v3016_v13, 16  ;;  %v3097_v22 = vshrl.u32 %v3017_v61, 16  ;;  %v2780_v30 = vor.u32 %v2779_v5, %v2775_v63  ;;  %v8194_v16 = vpop.f32.mrb[11].mxu0 }
 0x131   : > { %v6233_v24 = vcombine.low %v3072_v34, %v3081_v17  ;;  %v2771_v43 = vrot.slane %v2770_v4, 4  ;;  %v3090_v25 = vrot.slane %v3088_v7, 7  ;;  %v3100_v33 = vshll.u32 %v3017_v61, 16  ;;  %v8204_v17 = vpop.f32.mrb[12].mxu0 }
 0x132   : > { %v3099_v32 = vrot.slane %v3097_v22, 7  ;;  %v2788_v35 = vshrl.u32 %v2529_v9, 16  ;;  %v2791_v51 = vshll.u32 %v2529_v9, 16  ;;  %v2781_v21 = vrot.slane %v2780_v30, 4  ;;  %v2532_v9 = vld [vmem:[#allocation2 + $0xf8] sm:$0xf] }
 0x133   : > { %v2776_v44 = vsel %vm7697_vm7, %v2771_v43, %v2775_v63  ;;  %v3093_v39 = vor.u32 %v3091_v15, %v3090_v25  ;;  %v3095_v49 = vrot.slane %v3090_v25, 4  ;;  %v2797_v28 = vshll.u32 %v2530_v56, 16  ;;  %v3020_v63 = vld [vmem:[#allocation2 + $0x5c] sm:$0xf]  ;;  %v8206_v43 = vpop.f32.mrb[12].mxu1 }
 0x134   : > { %v3102_v59 = vor.u32 %v3100_v33, %v3099_v32  ;;  %v2790_v60 = vrot.slane %v2788_v35, 4  ;;  %v2793_v13 = vrot.slane %v2791_v51, 5  ;;  %v2786_v57 = vsel %vm7697_vm7, %v2781_v21, %v2785_v12  ;;  %v7317_v30 = vld [vmem:[#allocation2 + $0x58] sm:$0xff]   ;;  %v2534_v51 = vld [vmem:[#allocation2 + $0x100] sm:$0x1]  ;;  %v8208_v21 = vpop.f32.mrb[13].mxu0 }
 0x135   : > { %5384 = vmatmul.mubr.bf16.vlgmr.msra.gmra.mrb[80].mxu1 %v6233_v24  ;;  %v3094_v61 = vsel %vm7472_vm2, %v6218_v20, %v3093_v39  ;;  %v2801_v34 = vshrl.u32 %v2530_v56, 16  ;;  %v2807_v8 = vshll.u32 %v2531_v31, 16  ;;  %v6210_v1 = vcombine.low %v2776_v44, %v2786_v57  ;;  %v2533_v31 = vld [vmem:[#allocation2 + $0xfc] sm:$0xf] }
 0x136   : > { %5391 = vmatprep.mubr.bf16.mxu1 %v7315_v19  ;;  %v3103_v4 = vsel %vm7472_vm2, %v3095_v49, %v3102_v59  ;;  %v2794_v5 = vor.u32 %v2793_v13, %v2790_v60  ;;  %v2799_v7 = vrot.slane %v2797_v28, 5  ;;  %v3105_v12 = vshrl.u32 %v3018_v27, 16  ;;  %v3021_v60 = vld [vmem:[#allocation2 + $0x68] sm:$0x8]  ;;  %v8212_v13 = vpop.f32.mrb[13].mxu1 }
 0x137   : > { %v6234_v15 = vcombine.low %v3094_v61, %v3103_v4  ;;  %v2803_v22 = vrot.slane %v2801_v34, 4  ;;  %v2809_v24 = vrot.slane %v2807_v8, 5  ;;  %5294 = vmatprep.mubr.bf16.mxu0 %v6210_v1  ;;  %v3110_v25 = vshrl.u32 %v3019_v2, 16  ;;  %v3022_v61 = vld [vmem:[#allocation2 + $0x6c] sm:$0xf] }
 0x138   : > { %v2795_v20 = vrot.slane %v2794_v5, 4  ;;  %v3113_v56 = vshll.u32 %v3019_v2, 16  ;;  %v3119_v19 = vshrl.u32 %v3020_v63, 16  ;;  %5295 = vmatmul.mubr.bf16.gmra.mrb[84].mxu0 %v7316_v48  ;;  %v6219_v33 = vrot.slane %v3105_v12, 11  ;;  %v3023_v4 = vld [vmem:[#allocation2 + $0x70] sm:$0xf] }
 0x139   : > { %v2804_v32 = vor.u32 %v2803_v22, %v2799_v7  ;;  %v3122_v35 = vshll.u32 %v3020_v63, 16  ;;  %v2812_v44 = vshrl.u32 %v2532_v9, 16  ;;  %v3112_v39 = vrot.slane %v3110_v25, 7  ;;  %v8214_v5 = vpop.f32.mrb[14].mxu0  ;;  %v8216_v22 = vpop.f32.mrb[14].mxu1 }
 0x13a   : > { %v2800_v27 = vsel %vm7697_vm7, %v2795_v20, %v2799_v7  ;;  %v3121_v49 = vrot.slane %v3119_v19, 7  ;;  %v2815_v59 = vshll.u32 %v2532_v9, 16  ;;  %v2821_v57 = vshll.u32 %v2533_v31, 16  ;;  %9077 = vst [vmem:[#allocation5_spill] sm:$0xff] %v8216_v22  ;;  %v7318_v9 = vld [vmem:[#allocation2 + $0xe4] sm:$0xff]   ;;  %v8220_v19 = vpop.f32.mrb[15].mxu0 }
 0x13b   : > { %v2805_v2 = vrot.slane %v2804_v32, 4  ;;  %v2814_v28 = vrot.slane %v2812_v44, 4  ;;  %v2825_v48 = vshrl.u32 %v2533_v31, 16  ;;  %v3115_v34 = vor.u32 %v3113_v56, %v3112_v39  ;;  %9078 = vst [vmem:[#allocation6_spill] sm:$0xff] %v8220_v19  ;;  %v8222_v31 = vpop.f32.mrb[15].mxu1 }
 0x13c   : > { %v3117_v8 = vrot.slane %v3112_v39, 4  ;;  %v3124_v63 = vor.u32 %v3122_v35, %v3121_v49  ;;  %v2817_v1 = vrot.slane %v2815_v59, 5  ;;  %v2823_v12 = vrot.slane %v2821_v57, 5  ;;  %9079 = vst [vmem:[#allocation7_spill] sm:$0xff] %v8222_v31  ;;  %v2535_v44 = vld [vmem:[#allocation2 + $0x10c] sm:$0xf] }
 0x13d   : > { %5392 = vmatmul.mubr.bf16.gmra.mrb[84].mxu1 %v6234_v15  ;;  %v2810_v7 = vsel %vm7697_vm7, %v2805_v2, %v2809_v24  ;;  %v2827_v20 = vrot.slane %v2825_v48, 4  ;;  %v2831_v25 = vshll.u32 %v2534_v51, 16  ;;  %v3116_v32 = vsel %vm7472_vm2, %v6219_v33, %v3115_v34  ;;  %v7320_v2 = vld [vmem:[#allocation2 + $0x6c] sm:$0xff]   ;;  %v2537_v34 = vld [vmem:[#allocation2 + $0x114] sm:$0x1] }
 0x13e   : > { %v6211_v56 = vcombine.low %v2800_v27, %v2810_v7  ;;  %5399 = vmatprep.mubr.bf16.mxu1 %v7317_v30  ;;  %v3125_v35 = vsel %vm7472_vm2, %v3117_v8, %v3124_v63  ;;  %v2818_v15 = vor.u32 %v2817_v1, %v2814_v28  ;;  %v3127_v59 = vshrl.u32 %v3021_v60, 16  ;;  %v2536_v27 = vld [vmem:[#allocation2 + $0x110] sm:$0xf]  ;;  %v3024_v60 = vld [vmem:[#allocation2 + $0x7c] sm:$0x8] }
 0x13f   : > { %v6235_v39 = vcombine.low %v3116_v32, %v3125_v35  ;;  %v2828_v24 = vor.u32 %v2827_v20, %v2823_v12  ;;  %v2833_v49 = vrot.slane %v2831_v25, 5  ;;  %v3132_v57 = vshrl.u32 %v3022_v61, 16  ;;  %v8230_v20 = vpop.f32.mrb[16].mxu0  ;;  %v7321_v25 = vld [vmem:[#allocation2 + $0xf8] sm:$0xff]   ;;  %v3025_v35 = vld [vmem:[#allocation2 + $0x80] sm:$0xf] }
 0x140   : > { %5302 = vmatprep.mubr.bf16.mxu0 %v6211_v56  ;;  %v2819_v51 = vrot.slane %v2818_v15, 4  ;;  %v3135_v48 = vshll.u32 %v3022_v61, 16  ;;  %v3141_v31 = vshrl.u32 %v3023_v4, 16  ;;  %v6220_v7 = vrot.slane %v3127_v59, 11  ;;  %9080 = vst [vmem:[#allocation8_spill] sm:$0xff] %v8230_v20 }
 0x141   : > { %5303 = vmatmul.mubr.bf16.gmra.mrb[88].mxu0 %v7318_v9  ;;  %v2829_v30 = vrot.slane %v2828_v24, 4  ;;  %v3144_v33 = vshll.u32 %v3023_v4, 16  ;;  %v2836_v22 = vshrl.u32 %v2535_v44, 16  ;;  %v3134_v8 = vrot.slane %v3132_v57, 7  ;;  %v8234_v4 = vpop.f32.mrb[16].mxu1 }
 0x142   : > { %v2824_v28 = vsel %vm7697_vm7, %v2819_v51, %v2823_v12  ;;  %v3143_v63 = vrot.slane %v3141_v31, 7  ;;  %v2839_v1 = vshll.u32 %v2535_v44, 16  ;;  %v2845_v9 = vshll.u32 %v2536_v27, 16  ;;  %9081 = vst [vmem:[#allocation9_spill] sm:$0xff] %v8234_v4  ;;  %v3026_v51 = vld [vmem:[#allocation2 + $0x84] sm:$0xf] }
 0x143   : > { %v2834_v61 = vsel %vm7697_vm7, %v2829_v30, %v2833_v49  ;;  %v2838_v56 = vrot.slane %v2836_v22, 4  ;;  %v2849_v32 = vshrl.u32 %v2536_v27, 16  ;;  %v3137_v24 = vor.u32 %v3135_v48, %v3134_v8  ;;  %v2538_v31 = vld [vmem:[#allocation2 + $0x120] sm:$0xf]  ;;  %v8236_v44 = vpop.f32.mrb[17].mxu0  ;;  %v8238_v30 = vpop.f32.mrb[17].mxu1 }
 0x144   : > { %v6212_v15 = vcombine.low %v2824_v28, %v2834_v61  ;;  %v3139_v59 = vrot.slane %v3134_v8, 4  ;;  %v3146_v12 = vor.u32 %v3144_v33, %v3143_v63  ;;  %9082 = vst [vmem:[#allocation10_spill] sm:$0xff] %v8236_v44  ;;  %v2841_v57 = vrot.slane %v2839_v1, 5  ;;  %9083 = vst [vmem:[#allocation11_spill] sm:$0xff] %v8238_v30  ;;  %v8240_v22 = vpop.f32.mrb[18].mxu0  ;;  %v8246_v8 = vpop.f32.mrb[18].mxu1 }
 0x145   : > { %5400 = vmatmul.mubr.bf16.gmra.mrb[88].mxu1 %v6235_v39  ;;  %v2847_v20 = vrot.slane %v2845_v9, 5  ;;  %v2851_v19 = vrot.slane %v2849_v32, 4  ;;  %v2855_v49 = vshll.u32 %v2537_v34, 16  ;;  %9084 = vst [vmem:[#allocation12_spill] sm:$0xff] %v8240_v22  ;;  %v3138_v48 = vsel %vm7472_vm2, %v6220_v7, %v3137_v24  ;;  %9085 = vst [vmem:[#allocation13_spill] sm:$0xff] %v8246_v8  ;;  %v8248_v39 = vpop.f32.mrb[19].mxu0 }
 0x146   : > { %5310 = vmatprep.mubr.bf16.mxu0 %v6212_v15  ;;  %5407 = vmatprep.mubr.bf16.mxu1 %v7320_v2  ;;  %v3147_v27 = vsel %vm7472_vm2, %v3139_v59, %v3146_v12  ;;  %v3149_v33 = vshrl.u32 %v3024_v60, 16  ;;  %v3154_v28 = vshrl.u32 %v3025_v35, 16  ;;  %9086 = vst [vmem:[#allocation14_spill] sm:$0xff] %v8248_v39  ;;  %v2842_v34 = vor.u32 %v2841_v57, %v2838_v56  ;;  %v8250_v9 = vpop.f32.mrb[19].mxu1  ;;  %v7322_v32 = vld [vmem:[#allocation2 + $0x80] sm:$0xff]  }
 0x147   : > { %v6236_v63 = vcombine.low %v3138_v48, %v3147_v27  ;;  %v2852_v1 = vor.u32 %v2851_v19, %v2847_v20  ;;  %v2857_v61 = vrot.slane %v2855_v49, 5  ;;  %9087 = vst [vmem:[#allocation15_spill] sm:$0xff] %v8250_v9  ;;  %v3157_v22 = vshll.u32 %v3025_v35, 16  ;;  %v2539_v24 = vld [vmem:[#allocation2 + $0x124] sm:$0xf]  ;;  %v7323_v27 = vld [vmem:[#allocation2 + $0x10c] sm:$0xff]  }
 0x148   : > { %v6221_v2 = vrot.slane %v3149_v33, 11  ;;  %v3156_v15 = vrot.slane %v3154_v28, 7  ;;  %v3163_v7 = vshrl.u32 %v3026_v51, 16  ;;  %v2843_v59 = vrot.slane %v2842_v34, 4  ;;  %v3027_v8 = vld [vmem:[#allocation2 + $0x90] sm:$0x8] }
 0x149   : > { %5311 = vmatmul.mubr.bf16.gmra.mrb[92].mxu0 %v7321_v25  ;;  %v2853_v60 = vrot.slane %v2852_v1, 4  ;;  %v3166_v12 = vshll.u32 %v3026_v51, 16  ;;  %v2860_v30 = vshrl.u32 %v2538_v31, 16  ;;  %v2540_v56 = vld [vmem:[#allocation2 + $0x128] sm:$0x1]  ;;  %v2863_v19 = vshll.u32 %v2538_v31, 16 }
 0x14a   : > { %v3159_v4 = vor.u32 %v3157_v22, %v3156_v15  ;;  %v3161_v39 = vrot.slane %v3156_v15, 4  ;;  %v3165_v48 = vrot.slane %v3163_v7, 7  ;;  %v8252_v57 = vpop.f32.mrb[20].mxu0  ;;  %v2848_v49 = vsel %vm7697_vm7, %v2843_v59, %v2847_v20  ;;  %v3028_v28 = vld [vmem:[#allocation2 + $0x94] sm:$0xf]  ;;  %v8260_v7 = vpop.f32.mrb[20].mxu1 }
 0x14b   : > { %9088 = vst [vmem:[#allocation16_spill] sm:$0xff] %v8252_v57  ;;  %v2858_v35 = vsel %vm7697_vm7, %v2853_v60, %v2857_v61  ;;  %v2862_v25 = vrot.slane %v2860_v30, 4  ;;  %v2869_v33 = vshll.u32 %v2539_v24, 16  ;;  %v2865_v1 = vrot.slane %v2863_v19, 5  ;;  %v3029_v15 = vld [vmem:[#allocation2 + $0x98] sm:$0xf] }
 0x14c   : > { %v6213_v51 = vcombine.low %v2848_v49, %v2858_v35  ;;  %v3160_v22 = vsel %vm7472_vm2, %v6221_v2, %v3159_v4  ;;  %v3168_v34 = vor.u32 %v3166_v12, %v3165_v48  ;;  %v2541_v31 = vld [vmem:[#allocation2 + $0x134] sm:$0xf]  ;;  %9089 = vst [vmem:[#allocation17_spill] sm:$0xff] %v8260_v7  ;;  %v2873_v20 = vshrl.u32 %v2539_v24, 16  ;;  %v2542_v61 = vld [vmem:[#allocation2 + $0x138] sm:$0xf] }
 0x14d   : > { %5408 = vmatmul.mubr.bf16.gmra.mrb[92].mxu1 %v6236_v63  ;;  %v2871_v57 = vrot.slane %v2869_v33, 5  ;;  %v2879_v59 = vshll.u32 %v2540_v56, 16  ;;  %v3171_v9 = vshrl.u32 %v3027_v8, 16  ;;  %v2866_v60 = vor.u32 %v2865_v1, %v2862_v25  ;;  %v8264_v2 = vpop.f32.mrb[21].mxu0  ;;  %v8266_v12 = vpop.f32.mrb[21].mxu1  ;;  %v7325_v1 = vld [vmem:[#allocation2 + $0x94] sm:$0xff]  }
 0x14e   : > { %5318 = vmatprep.mubr.bf16.mxu0 %v6213_v51  ;;  %5415 = vmatprep.mubr.bf16.mxu1 %v7322_v32  ;;  %v3169_v30 = vsel %vm7472_vm2, %v3161_v39, %v3168_v34  ;;  %v3176_v49 = vshrl.u32 %v3028_v28, 16  ;;  %v3179_v4 = vshll.u32 %v3028_v28, 16  ;;  %9090 = vst [vmem:[#allocation18_spill] sm:$0xff] %v8264_v2  ;;  %9091 = vst [vmem:[#allocation19_spill] sm:$0xff] %v8266_v12  ;;  %v2875_v19 = vrot.slane %v2873_v20, 4  ;;  %v8268_v56 = vpop.f32.mrb[22].mxu0 }
 0x14f   : > { %v6237_v48 = vcombine.low %v3160_v22, %v3169_v30  ;;  %v2881_v63 = vrot.slane %v2879_v59, 5  ;;  %v6222_v35 = vrot.slane %v3171_v9, 11  ;;  %v2543_v24 = vld [vmem:[#allocation2 + $0x13c] sm:$0x1]  ;;  %9092 = vst [vmem:[#allocation20_spill] sm:$0xff] %v8268_v56  ;;  %v8270_v8 = vpop.f32.mrb[22].mxu1 }
 0x150   : > { %9093 = vst [vmem:[#allocation21_spill] sm:$0xff] %v8270_v8  ;;  %v2867_v32 = vrot.slane %v2866_v60, 4  ;;  %v3178_v33 = vrot.slane %v3176_v49, 7  ;;  %v3185_v51 = vshrl.u32 %v3029_v15, 16  ;;  %v3188_v39 = vshll.u32 %v3029_v15, 16  ;;  %v8272_v25 = vpop.f32.mrb[23].mxu0 }
 0x151   : > { %9094 = vst [vmem:[#allocation22_spill] sm:$0xff] %v8272_v25  ;;  %v8274_v28 = vpop.f32.mrb[23].mxu1  ;;  %5319 = vmatmul.mubr.bf16.gmra.mrb[96].mxu0 %v7323_v27  ;;  %v2876_v34 = vor.u32 %v2875_v19, %v2871_v57  ;;  %v2884_v22 = vshrl.u32 %v2541_v31, 16  ;;  %v2887_v20 = vshll.u32 %v2541_v31, 16  ;;  %v2893_v59 = vshll.u32 %v2542_v61, 16 }
 0x152   : > { %9095 = vst [vmem:[#allocation23_spill] sm:$0xff] %v8274_v28  ;;  %v2872_v9 = vsel %vm7697_vm7, %v2867_v32, %v2871_v57  ;;  %v3181_v30 = vor.u32 %v3179_v4, %v3178_v33  ;;  %v3183_v56 = vrot.slane %v3178_v33, 4  ;;  %v3187_v8 = vrot.slane %v3185_v51, 7  ;;  %v3030_v60 = vld [vmem:[#allocation2 + $0xa4] sm:$0x8] }
 0x153   : > { %v3031_v49 = vld [vmem:[#allocation2 + $0xa8] sm:$0xf]  ;;  %v2877_v12 = vrot.slane %v2876_v34, 4  ;;  %v2886_v15 = vrot.slane %v2884_v22, 4  ;;  %v2889_v7 = vrot.slane %v2887_v20, 5  ;;  %v2895_v25 = vrot.slane %v2893_v59, 5 }
 0x154   : > { %v3182_v27 = vsel %vm7472_vm2, %v6222_v35, %v3181_v30  ;;  %v3190_v19 = vor.u32 %v3188_v39, %v3187_v8  ;;  %v2897_v28 = vshrl.u32 %v2542_v61, 16  ;;  %v2903_v2 = vshll.u32 %v2543_v24, 16  ;;  %v7326_v57 = vld [vmem:[#allocation2 + $0x120] sm:$0xff]   ;;  %v3032_v32 = vld [vmem:[#allocation2 + $0xac] sm:$0xf] }
 0x155   : > { %5416 = vmatmul.mubr.bf16.gmra.mrb[96].mxu1 %v6237_v48  ;;  %v2882_v31 = vsel %vm7697_vm7, %v2877_v12, %v2881_v63  ;;  %v2890_v4 = vor.u32 %v2889_v7, %v2886_v15  ;;  %v3193_v33 = vshrl.u32 %v3030_v60, 16  ;;  %v3198_v51 = vshrl.u32 %v3031_v49, 16  ;;  %v389_v35 = vld [vmem:[#allocation2 + $0x150] sm:$0x1]  ;;  %v2544_v8 = vld [vmem:[#allocation2 + $0x148] sm:$0xf] }
 0x156   : > { %v6214_v44 = vcombine.low %v2872_v9, %v2882_v31  ;;  %5423 = vmatprep.mubr.bf16.mxu1 %v7325_v1  ;;  %v3191_v34 = vsel %vm7472_vm2, %v3183_v56, %v3190_v19  ;;  %v2899_v22 = vrot.slane %v2897_v28, 4  ;;  %v2905_v20 = vrot.slane %v2903_v2, 5  ;;  %v2545_v59 = vld [vmem:[#allocation2 + $0x14c] sm:$0xf]  ;;  %v8284_v12 = vpop.f32.mrb[24].mxu0  ;;  %v8286_v7 = vpop.f32.mrb[24].mxu1 }
 0x157   : > { %v6238_v61 = vcombine.low %v3182_v27, %v3191_v34  ;;  %v2891_v24 = vrot.slane %v2890_v4, 4  ;;  %v6223_v48 = vrot.slane %v3193_v33, 11  ;;  %v3200_v39 = vrot.slane %v3198_v51, 7  ;;  %v8288_v60 = vpop.f32.mrb[25].mxu0  ;;  %v8290_v56 = vpop.f32.mrb[25].mxu1  ;;  %v7327_v28 = vld [vmem:[#allocation2 + $0xa8] sm:$0xff]  }
 0x158   : > { %5326 = vmatprep.mubr.bf16.mxu0 %v6214_v44  ;;  %v2900_v63 = vor.u32 %v2899_v22, %v2895_v25  ;;  %v3201_v9 = vshll.u32 %v3031_v49, 16  ;;  %v3207_v1 = vshrl.u32 %v3032_v32, 16  ;;  %v3210_v30 = vshll.u32 %v3032_v32, 16  ;;  %v3033_v49 = vld [vmem:[#allocation2 + $0xb8] sm:$0x8]  ;;  %v8302_v19 = vpop.f32.mrb[26].mxu0 }
 0x159   : > { %5327 = vmatmul.mubr.bf16.gmra.mrb[100].mxu0 %v7326_v57  ;;  %v2896_v2 = vsel %vm7697_vm7, %v2891_v24, %v2895_v25  ;;  %v3205_v15 = vrot.slane %v3200_v39, 4  ;;  %v8296_v27 = vadd.f32 %v8083_v47, %v8077_v14  ;;  %v8300_v44 = vadd.f32 %v8111_v6, %v8103_v58  ;;  %v8304_v31 = vpop.f32.mrb[26].mxu1  ;;  %v8310_v33 = vpop.f32.mrb[27].mxu0  ;;  %v3034_v34 = vld [vmem:[#allocation2 + $0xbc] sm:$0xf] }
 0x15a   : > { %v2901_v4 = vrot.slane %v2900_v63, 4  ;;  %v3203_v57 = vor.u32 %v3201_v9, %v3200_v39  ;;  %v3209_v32 = vrot.slane %v3207_v1, 7  ;;  %v8308_v25 = vadd.f32 %v8093_v0, %v8089_v55  ;;  %v8312_v14 = vpop.f32.mrb[27].mxu1  ;;  %v7328_v63 = vld [vmem:[#allocation2 + $0x134] sm:$0xff]   ;;  %v3035_v1 = vld [vmem:[#allocation2 + $0xc0] sm:$0xf] }
 0x15b   : > { %9096 = vst [vmem:[#allocation24_spill] sm:$0xff] %v8300_v44  ;;  %v8316_v47 = vadd.f32 %v8127_v36, %v8113_v10  ;;  %v390_v58 = vsel %vm7652_vm4, 0, %v389_v35  ;;  %v2908_v6 = vshrl.u32 %v2544_v8, 16  ;;  %v2911_v51 = vshll.u32 %v2544_v8, 16  ;;  %v3639_v44 = vld [vmem:[#allocation2 + $0x44] sm:$0xf] }
 0x15c   : > { %v2906_v22 = vsel %vm7697_vm7, %v2901_v4, %v2905_v20  ;;  %v3204_v55 = vsel %vm7472_vm2, %v6223_v48, %v3203_v57  ;;  %v3212_v0 = vor.u32 %v3210_v30, %v3209_v32  ;;  %391 = vst [vmem:[#allocation2 + $0x150] sm:$0x1] %v390_v58  ;;  %v2917_v24 = vshll.u32 %v2545_v59, 16 }
 0x15d   : > { %9097 = vst [vmem:[#allocation25_spill] sm:$0xff] %v8316_v47  ;;  %5424 = vmatmul.mubr.bf16.gmra.mrb[100].mxu1 %v6238_v61  ;;  %v6215_v39 = vcombine.low %v2896_v2, %v2906_v22  ;;  %v2910_v10 = vrot.slane %v2908_v6, 4  ;;  %v2913_v36 = vrot.slane %v2911_v51, 5  ;;  %v2921_v9 = vshrl.u32 %v2545_v59, 16  ;;  %v3636_v61 = vld [vmem:[#allocation2 + $0x30] sm:$0xf] }
 0x15e   : > { %5431 = vmatprep.mubr.bf16.mxu1 %v7327_v28  ;;  %v3213_v35 = vsel %vm7472_vm2, %v3205_v15, %v3212_v0  ;;  %v8326_v8 = vrot.slane %v2917_v24, 5  ;;  %v3215_v20 = vshrl.u32 %v3033_v49, 16  ;;  %v3220_v4 = vshrl.u32 %v3034_v34, 16  ;;  %v7330_v2 = vld [vmem:[#allocation2 + $0xbc] sm:$0xff]   ;;  %v3637_v22 = vld [vmem:[#allocation2 + $0x34] sm:$0xf] }
 0x15f   : > { %5334 = vmatprep.mubr.bf16.mxu0 %v6215_v39  ;;  %v6239_v48 = vcombine.low %v3204_v55, %v3213_v35  ;;  %v2914_v30 = vor.u32 %v2913_v36, %v2910_v10  ;;  %v2923_v57 = vrot.slane %v2921_v9, 4  ;;  %v3223_v32 = vshll.u32 %v3034_v34, 16  ;;  %v3638_v28 = vld [vmem:[#allocation2 + $0x38] sm:$0x1]  ;;  %v3036_v34 = vld [vmem:[#allocation2 + $0xcc] sm:$0x8] }
 0x160   : > { %v6224_v58 = vrot.slane %v3215_v20, 11  ;;  %v3222_v6 = vrot.slane %v3220_v4, 7  ;;  %v3229_v51 = vshrl.u32 %v3035_v1, 16  ;;  %v3232_v59 = vshll.u32 %v3035_v1, 16 }
 0x161   : > { %5335 = vmatmul.mubr.bf16.gmra.mrb[104].mxu0 %v7328_v63  ;;  %v2915_v47 = vrot.slane %v2914_v30, 4  ;;  %v2924_v15 = vor.u32 %v2923_v57, %v8326_v8  ;;  %v8331_v49 = vadd.f32 %v8149_v23, %v8133_v52  ;;  %v8335_v55 = vadd.f32 %v8164_v37, %v8137_v62  ;;  %v8337_v0 = vpop.f32.mrb[28].mxu0  ;;  %v3037_v57 = vld [vmem:[#allocation2 + $0xd0] sm:$0xf] }
 0x162   : > { %v3225_v24 = vor.u32 %v3223_v32, %v3222_v6  ;;  %v3227_v39 = vrot.slane %v3222_v6, 4  ;;  %v3231_v10 = vrot.slane %v3229_v51, 7  ;;  %v8341_v63 = vadd.f32 %v8170_v46, %v8166_v53  ;;  %v8345_v9 = vpop.f32.mrb[29].mxu0 }
 0x163   : > { %9098 = vst [vmem:[#allocation26_spill] sm:$0xff] %v8335_v55  ;;  %v8343_v36 = vpop.f32.mrb[28].mxu1  ;;  %v2546_v52 = vld [vmem:[#allocation2 + $0x150] sm:$0x1]  ;;  %v2920_v62 = vsel %vm7697_vm7, %v2915_v47, %v8326_v8  ;;  %v2925_v23 = vrot.slane %v2924_v15, 4  ;;  %v8352_v37 = vadd.f32 %v8174_v26, %v8168_v45  ;;  %v3685_v1 = vshrl.u32 %v3636_v61, 16 }
 0x164   : > { %v8354_v35 = vpop.f32.mrb[29].mxu1  ;;  %v8356_v20 = vpop.f32.mrb[30].mxu0  ;;  %v2927_v53 = vshll.u32 %v2546_v52, 16  ;;  %v3226_v46 = vsel %vm7472_vm2, %v6224_v58, %v3225_v24  ;;  %v3234_v4 = vor.u32 %v3232_v59, %v3231_v10  ;;  %v3688_v30 = vshll.u32 %v3636_v61, 16  ;;  %v3038_v59 = vld [vmem:[#allocation2 + $0xd4] sm:$0xf] }
 0x165   : > { %9099 = vst [vmem:[#allocation27_spill] sm:$0xff] %v8352_v37  ;;  %v8360_v32 = vpop.f32.mrb[30].mxu1  ;;  %v8362_v47 = vpop.f32.mrb[31].mxu0  ;;  %5432 = vmatmul.mubr.bf16.gmra.mrb[104].mxu1 %v6239_v48  ;;  %v3687_v8 = vrot.slane %v3685_v1, 4  ;;  %v3694_v45 = vshll.u32 %v3637_v22, 16  ;;  %v3698_v26 = vshrl.u32 %v3637_v22, 16 }
 0x166   : > { %9100 = vst [vmem:[#allocation28_spill] sm:$0xff] %v8360_v32  ;;  %9101 = vst [vmem:[#allocation29_spill] sm:$0xff] %v8362_v47  ;;  %v3704_v6 = vshll.u32 %v3638_v28, 16  ;;  %v8364_v51 = vpop.f32.mrb[31].mxu1  ;;  %v2929_v15 = vrot.slane %v2927_v53, 5  ;;  %5439 = vmatprep.mubr.bf16.mxu1 %v7330_v2  ;;  %v3235_v52 = vsel %vm7472_vm2, %v3227_v39, %v3234_v4  ;;  %v3690_v58 = vrot.slane %v3688_v30, 5 }
 0x167   : > { %9102 = vst [vmem:[#allocation30_spill] sm:$0xff] %v8364_v51  ;;  %v3237_v61 = vshrl.u32 %v3036_v34, 16  ;;  %v6240_v24 = vcombine.low %v3226_v46, %v3235_v52  ;;  %v3696_v10 = vrot.slane %v3694_v45, 5  ;;  %v3700_v37 = vrot.slane %v3698_v26, 4  ;;  %v7331_v22 = vld [vmem:[#allocation2 + $0x148] sm:$0xff]   ;;  %v7332_v4 = vld [vmem:[#allocation2 + $0xd0] sm:$0xff]  }
 0x168   : > { %v3706_v55 = vrot.slane %v3704_v6, 5  ;;  %v2930_v48 = vsel %vm7697_vm7, %v2925_v23, %v2929_v15  ;;  %v3691_v28 = vor.u32 %v3690_v58, %v3687_v8  ;;  %v3242_v38 = vshrl.u32 %v3037_v57, 16  ;;  %v3640_v53 = vld [vmem:[#allocation2 + $0x48] sm:$0xf]  ;;  %v3641_v52 = vld [vmem:[#allocation2 + $0x4c] sm:$0x1] }
 0x169   : > { %v6225_v1 = vrot.slane %v3237_v61, 11  ;;  %v6216_v2 = vcombine.low %v2920_v62, %v2930_v48  ;;  %v3701_v51 = vor.u32 %v3700_v37, %v3696_v10  ;;  %v3245_v32 = vshll.u32 %v3037_v57, 16 }
 0x16a   : > { %v3251_v39 = vshrl.u32 %v3038_v59, 16  ;;  %v3692_v30 = vrot.slane %v3691_v28, 4  ;;  %v3244_v34 = vrot.slane %v3242_v38, 7  ;;  %v3254_v46 = vshll.u32 %v3038_v59, 16 }
 0x16b   : > { %v3709_v45 = vshrl.u32 %v3639_v44, 16  ;;  %5342 = vmatprep.mubr.bf16.mxu0 %v6216_v2  ;;  %v3702_v26 = vrot.slane %v3701_v51, 4  ;;  %v3712_v47 = vshll.u32 %v3639_v44, 16  ;;  %v3718_v23 = vshll.u32 %v3640_v53, 16 }
 0x16c   : > { %v3253_v6 = vrot.slane %v3251_v39, 7  ;;  %5343 = vmatmul.mubr.bf16.gmra.mrb[108].mxu0 %v7331_v22  ;;  %v3697_v8 = vsel %vm7697_vm7, %v3692_v30, %v3696_v10  ;;  %v3247_v15 = vor.u32 %v3245_v32, %v3244_v34  ;;  %v3249_v62 = vrot.slane %v3244_v34, 4  ;;  %v3642_v10 = vld [vmem:[#allocation2 + $0x58] sm:$0xf] }
 0x16d   : > { %v3711_v37 = vrot.slane %v3709_v45, 4  ;;  %5440 = vmatmul.mubr.bf16.gmra.mrb[108].mxu1 %v6240_v24  ;;  %v3707_v57 = vsel %vm7697_vm7, %v3702_v26, %v3706_v55  ;;  %v3714_v58 = vrot.slane %v3712_v47, 5  ;;  %v3720_v59 = vrot.slane %v3718_v23, 5 }
 0x16e   : > { %v3256_v38 = vor.u32 %v3254_v46, %v3253_v6  ;;  %v8374_v61 = vpop.f32.mrb[32].mxu0  ;;  %5447 = vmatprep.mubr.bf16.mxu1 %v7332_v4  ;;  %v6265_v51 = vcombine.low %v3697_v8, %v3707_v57  ;;  %v3248_v44 = vsel %vm7472_vm2, %v6225_v1, %v3247_v15  ;;  %v3722_v48 = vshrl.u32 %v3640_v53, 16  ;;  %v3643_v1 = vld [vmem:[#allocation2 + $0x5c] sm:$0xf]  ;;  %v3644_v53 = vld [vmem:[#allocation2 + $0x60] sm:$0x1] }
 0x16f   : > { %v3728_v22 = vshll.u32 %v3641_v52, 16  ;;  %v8378_v32 = vpop.f32.mrb[32].mxu1  ;;  %v8380_v28 = vpop.f32.mrb[33].mxu0  ;;  %v3715_v24 = vor.u32 %v3714_v58, %v3711_v37  ;;  %v8386_v47 = vadd.f32 %v8184_v40, %v8178_v3  ;;  %v8390_v2 = vadd.f32 %v8186_v41, %v8182_v11  ;;  %v3039_v3 = vld [vmem:[#allocation2 + $0xe0] sm:$0x8]  ;;  %v7333_v15 = vld [vmem:[#allocation2 + $0xe4] sm:$0xff]  }
 0x170   : > { %v3257_v55 = vsel %vm7472_vm2, %v3249_v62, %v3256_v38  ;;  %v8392_v39 = vpop.f32.mrb[33].mxu1  ;;  %v8394_v4 = vpop.f32.mrb[34].mxu0  ;;  %7163 = vmatprep.mubr.bf16.mxu0 %v6265_v51  ;;  %v3724_v34 = vrot.slane %v3722_v48, 4  ;;  %v8398_v45 = vadd.f32 %v8194_v16, %v8190_v50  ;;  %v8406_v41 = vadd.f32 %v8196_v29, %v8192_v54  ;;  %v3040_v16 = vld [vmem:[#allocation2 + $0xe4] sm:$0xf] }
 0x171   : > { %9103 = vst [vmem:[#allocation31_spill] sm:$0xff] %v8390_v2  ;;  %v6241_v30 = vcombine.low %v3248_v44, %v3257_v55  ;;  %v3730_v46 = vrot.slane %v3728_v22, 5  ;;  %v8400_v40 = vpop.f32.mrb[34].mxu1  ;;  %v8402_v26 = vpop.f32.mrb[35].mxu0  ;;  %v3716_v11 = vrot.slane %v3715_v24, 4  ;;  %v3733_v6 = vshrl.u32 %v3642_v10, 16 }
 0x172   : > { %9104 = vst [vmem:[#allocation32_spill] sm:$0xff] %v8406_v41  ;;  %v3736_v52 = vshll.u32 %v3642_v10, 16  ;;  %v8408_v23 = vpop.f32.mrb[35].mxu1  ;;  %v3725_v8 = vor.u32 %v3724_v34, %v3720_v59  ;;  %v3742_v62 = vshll.u32 %v3643_v1, 16  ;;  %v3746_v37 = vshrl.u32 %v3643_v1, 16 }
 0x173   : > { %v3752_v50 = vshll.u32 %v3644_v53, 16  ;;  %v3721_v57 = vsel %vm7697_vm7, %v3716_v11, %v3720_v59  ;;  %v3735_v38 = vrot.slane %v3733_v6, 4  ;;  %v3041_v51 = vld [vmem:[#allocation2 + $0xe8] sm:$0xf]  ;;  %v3259_v44 = vshrl.u32 %v3039_v3, 16 }
 0x174   : > { %v3738_v58 = vrot.slane %v3736_v52, 5  ;;  %v3726_v48 = vrot.slane %v3725_v8, 4  ;;  %v3744_v54 = vrot.slane %v3742_v62, 5  ;;  %v3748_v29 = vrot.slane %v3746_v37, 4  ;;  %v3645_v10 = vld [vmem:[#allocation2 + $0x6c] sm:$0xf] }
 0x175   : > { %v3754_v22 = vrot.slane %v3752_v50, 5  ;;  %5448 = vmatmul.mubr.bf16.gmra.mrb[112].mxu1 %v6241_v30  ;;  %v6226_v24 = vrot.slane %v3259_v44, 11  ;;  %v3264_v34 = vshrl.u32 %v3040_v16, 16  ;;  %v3267_v41 = vshll.u32 %v3040_v16, 16  ;;  %v3646_v1 = vld [vmem:[#allocation2 + $0x70] sm:$0xf] }
 0x176   : > { %v3739_v55 = vor.u32 %v3738_v58, %v3735_v38  ;;  %v3731_v53 = vsel %vm7697_vm7, %v3726_v48, %v3730_v46  ;;  %5455 = vmatprep.mubr.bf16.mxu1 %v7333_v15  ;;  %v3749_v59 = vor.u32 %v3748_v29, %v3744_v54  ;;  %v3273_v11 = vshrl.u32 %v3041_v51, 16  ;;  %v3647_v2 = vld [vmem:[#allocation2 + $0x74] sm:$0x1] }
 0x177   : > { %v3276_v6 = vshll.u32 %v3041_v51, 16  ;;  %v6266_v52 = vcombine.low %v3721_v57, %v3731_v53  ;;  %v3266_v8 = vrot.slane %v3264_v34, 7  ;;  %v3757_v62 = vshrl.u32 %v3645_v10, 16  ;;  %v7334_v53 = vld [vmem:[#allocation2 + $0xf8] sm:$0xff]  }
 0x178   : > { %v3740_v3 = vrot.slane %v3739_v55, 4  ;;  %v3750_v37 = vrot.slane %v3749_v59, 4  ;;  %v3275_v50 = vrot.slane %v3273_v11, 7  ;;  %v3760_v30 = vshll.u32 %v3645_v10, 16  ;;  %v3648_v59 = vld [vmem:[#allocation2 + $0x80] sm:$0xf] }
 0x179   : > { %v3766_v38 = vshll.u32 %v3646_v1, 16  ;;  %7164 = vmatmul.mubr.bf16.vlgmr.msra.gmra.mrb[112].mxu0 %v6266_v52  ;;  %v3269_v58 = vor.u32 %v3267_v41, %v3266_v8  ;;  %v3271_v44 = vrot.slane %v3266_v8, 4  ;;  %v3759_v46 = vrot.slane %v3757_v62, 4  ;;  %v3650_v52 = vld [vmem:[#allocation2 + $0x88] sm:$0x1]  ;;  %v9106_v8 = vld [vmem:[#allocation6_spill] sm:$0xff] }
 0x17a   : > { %v3745_v16 = vsel %vm7697_vm7, %v3740_v3, %v3744_v54  ;;  %v3755_v15 = vsel %vm7697_vm7, %v3750_v37, %v3754_v22  ;;  %v3278_v51 = vor.u32 %v3276_v6, %v3275_v50  ;;  %v3762_v57 = vrot.slane %v3760_v30, 5  ;;  %v3649_v6 = vld [vmem:[#allocation2 + $0x84] sm:$0xf]  ;;  %v3042_v3 = vld [vmem:[#allocation2 + $0xf4] sm:$0x8] }
 0x17b   : > { %v3768_v48 = vrot.slane %v3766_v38, 5  ;;  %v6267_v29 = vcombine.low %v3745_v16, %v3755_v15  ;;  %v3270_v55 = vsel %vm7472_vm2, %v6226_v24, %v3269_v58  ;;  %v3770_v34 = vshrl.u32 %v3646_v1, 16  ;;  %v3043_v37 = vld [vmem:[#allocation2 + $0xf8] sm:$0xf]  ;;  %v9109_v30 = vld [vmem:[#allocation7_spill] sm:$0xff] }
 0x17c   : > { %v3776_v10 = vshll.u32 %v3647_v2, 16  ;;  %v3279_v54 = vsel %vm7472_vm2, %v3271_v44, %v3278_v51  ;;  %v3763_v41 = vor.u32 %v3762_v57, %v3759_v46  ;;  %v8424_v11 = vadd.f32 %v8208_v21, %v8204_v17  ;;  %v9108_v21 = vld [vmem:[#allocation5_spill] sm:$0xff]  ;;  %v3044_v16 = vld [vmem:[#allocation2 + $0xfc] sm:$0xf] }
 0x17d   : > { %v8428_v22 = vadd.f32 %v8212_v13, %v8206_v43  ;;  %7167 = vmatprep.mubr.bf16.mxu0 %v6267_v29  ;;  %v6242_v24 = vcombine.low %v3270_v55, %v3279_v54  ;;  %v3772_v2 = vrot.slane %v3770_v34, 4  ;;  %v8432_v62 = vadd.f32 %v9106_v8, %v8214_v5  ;;  %v3651_v57 = vld [vmem:[#allocation2 + $0x94] sm:$0xf] }
 0x17e   : > { %v3778_v1 = vrot.slane %v3776_v10, 5  ;;  %v8434_v50 = vpop.f32.mrb[36].mxu1  ;;  %v3764_v17 = vrot.slane %v3763_v41, 4  ;;  %v8438_v38 = vadd.f32 %v9109_v30, %v9108_v21  ;;  %v3781_v43 = vshrl.u32 %v3648_v59, 16 }
 0x17f   : > { %9105 = vst [vmem:[#allocation33_spill] sm:$0xff] %v8428_v22  ;;  %9107 = vst [vmem:[#allocation6_spill] sm:$0xff] %v8434_v50  ;;  %v3784_v13 = vshll.u32 %v3648_v59, 16  ;;  %v8442_v44 = vpop.f32.mrb[37].mxu1  ;;  %5456 = vmatmul.mubr.bf16.gmra.mrb[116].mxu1 %v6242_v24  ;;  %v3773_v46 = vor.u32 %v3772_v2, %v3768_v48  ;;  %v3790_v15 = vshll.u32 %v3649_v6, 16  ;;  %v3794_v5 = vshrl.u32 %v3649_v6, 16 }
 0x180   : > { %9110 = vst [vmem:[#allocation5_spill] sm:$0xff] %v8438_v38  ;;  %v8440_v58 = vpop.f32.mrb[36].mxu0  ;;  %9111 = vst [vmem:[#allocation7_spill] sm:$0xff] %v8442_v44  ;;  %v3800_v51 = vshll.u32 %v3650_v52, 16  ;;  %v8446_v55 = vpop.f32.mrb[38].mxu1  ;;  %v3769_v34 = vsel %vm7697_vm7, %v3764_v17, %v3768_v48  ;;  %5463 = vmatprep.mubr.bf16.mxu1 %v7334_v53  ;;  %v3783_v10 = vrot.slane %v3781_v43, 4 }
 0x181   : > { %v8444_v29 = vpop.f32.mrb[37].mxu0  ;;  %9112 = vst [vmem:[#allocation34_spill] sm:$0xff] %v8446_v55  ;;  %v3786_v59 = vrot.slane %v3784_v13, 5  ;;  %v3281_v54 = vshrl.u32 %v3042_v3, 16  ;;  %v8452_v8 = vpop.f32.mrb[39].mxu1  ;;  %v3774_v24 = vrot.slane %v3773_v46, 4 }
 0x182   : > { %v8450_v41 = vpop.f32.mrb[38].mxu0  ;;  %9114 = vst [vmem:[#allocation36_spill] sm:$0xff] %v8452_v8  ;;  %v3792_v2 = vrot.slane %v3790_v15, 5  ;;  %v3796_v6 = vrot.slane %v3794_v5, 4  ;;  %v3802_v52 = vrot.slane %v3800_v51, 5  ;;  %v3286_v22 = vshrl.u32 %v3043_v37, 16 }
 0x183   : > { %9113 = vst [vmem:[#allocation35_spill] sm:$0xff] %v8450_v41  ;;  %v8454_v21 = vpop.f32.mrb[39].mxu0  ;;  %v3787_v30 = vor.u32 %v3786_v59, %v3783_v10  ;;  %v6227_v38 = vrot.slane %v3281_v54, 11  ;;  %v3289_v55 = vshll.u32 %v3043_v37, 16  ;;  %v3652_v44 = vld [vmem:[#allocation2 + $0x98] sm:$0xf]  ;;  %v3779_v48 = vsel %vm7697_vm7, %v3774_v24, %v3778_v1 }
 0x184   : > { %9115 = vst [vmem:[#allocation37_spill] sm:$0xff] %v8454_v21  ;;  %v3797_v53 = vor.u32 %v3796_v6, %v3792_v2  ;;  %v3295_v3 = vshrl.u32 %v3044_v16, 16  ;;  %v3298_v17 = vshll.u32 %v3044_v16, 16  ;;  %v6268_v43 = vcombine.low %v3769_v34, %v3779_v48  ;;  %v3653_v51 = vld [vmem:[#allocation2 + $0x9c] sm:$0x1] }
 0x185   : > { %v3788_v13 = vrot.slane %v3787_v30, 4  ;;  %v3288_v8 = vrot.slane %v3286_v22, 7  ;;  %v3805_v46 = vshrl.u32 %v3651_v57, 16  ;;  %v3808_v41 = vshll.u32 %v3651_v57, 16  ;;  %v3654_v48 = vld [vmem:[#allocation2 + $0xa8] sm:$0xf] }
 0x186   : > { %v3798_v15 = vrot.slane %v3797_v53, 4  ;;  %v3297_v5 = vrot.slane %v3295_v3, 7  ;;  %v3814_v21 = vshll.u32 %v3652_v44, 16  ;;  %7168 = vmatmul.mubr.bf16.gmra.mrb[116].mxu0 %v6268_v43  ;;  %v3818_v30 = vshrl.u32 %v3652_v44, 16  ;;  %v9118_v43 = vld [vmem:[#allocation9_spill] sm:$0xff]  ;;  %v9120_v44 = vld [vmem:[#allocation12_spill] sm:$0xff] }
 0x187   : > { %v3793_v37 = vsel %vm7697_vm7, %v3788_v13, %v3792_v2  ;;  %v3291_v10 = vor.u32 %v3289_v55, %v3288_v8  ;;  %v3293_v59 = vrot.slane %v3288_v8, 4  ;;  %v3807_v54 = vrot.slane %v3805_v46, 4  ;;  %v9116_v55 = vld [vmem:[#allocation8_spill] sm:$0xff]  ;;  %v9117_v8 = vld [vmem:[#allocation10_spill] sm:$0xff] }
 0x188   : > { %v3803_v1 = vsel %vm7697_vm7, %v3798_v15, %v3802_v52  ;;  %v3300_v16 = vor.u32 %v3298_v17, %v3297_v5  ;;  %v3810_v34 = vrot.slane %v3808_v41, 5  ;;  %v3816_v24 = vrot.slane %v3814_v21, 5  ;;  %v9119_v52 = vld [vmem:[#allocation11_spill] sm:$0xff]  ;;  %v7335_v41 = vld [vmem:[#allocation2 + $0x10c] sm:$0xff]   ;;  %v9121_v15 = vld [vmem:[#allocation14_spill] sm:$0xff] }
 0x189   : > { %v6269_v22 = vcombine.low %v3793_v37, %v3803_v1  ;;  %v3292_v6 = vsel %vm7472_vm2, %v6227_v38, %v3291_v10  ;;  %v3824_v57 = vshll.u32 %v3653_v51, 16  ;;  %v8468_v3 = vadd.f32 %v9117_v8, %v9116_v55  ;;  %v3655_v21 = vld [vmem:[#allocation2 + $0xac] sm:$0xf]  ;;  %v3656_v51 = vld [vmem:[#allocation2 + $0xb0] sm:$0x1] }
 0x18a   : > { %v3301_v53 = vsel %vm7472_vm2, %v3293_v59, %v3300_v16  ;;  %v3811_v2 = vor.u32 %v3810_v34, %v3807_v54  ;;  %v6805_v17 = vadd.f32 %v9119_v52, %v9118_v43  ;;  %v3820_v46 = vrot.slane %v3818_v30, 4  ;;  %v9123_v59 = vld [vmem:[#allocation13_spill] sm:$0xff]  ;;  %v9124_v54 = vld [vmem:[#allocation15_spill] sm:$0xff]  ;;  %v3045_v34 = vld [vmem:[#allocation2 + $0x108] sm:$0x8] }
 0x18b   : > { %7171 = vmatprep.mubr.bf16.mxu0 %v6269_v22  ;;  %v6243_v13 = vcombine.low %v3292_v6, %v3301_v53  ;;  %v3826_v38 = vrot.slane %v3824_v57, 5  ;;  %v8474_v5 = vadd.f32 %v9121_v15, %v9120_v44  ;;  %v6808_v1 = vadd.f32 %v9124_v54, %v9123_v59  ;;  %v3046_v55 = vld [vmem:[#allocation2 + $0x10c] sm:$0xf]  ;;  %v3047_v53 = vld [vmem:[#allocation2 + $0x110] sm:$0xf] }
 0x18c   : > { %v3812_v37 = vrot.slane %v3811_v2, 4  ;;  %v8477_v10 = vadd.f32 %v6805_v17, %v8296_v27  ;;  %v3829_v16 = vshrl.u32 %v3654_v48, 16  ;;  %v3821_v22 = vor.u32 %v3820_v46, %v3816_v24  ;;  %v3657_v17 = vld [vmem:[#allocation2 + $0xbc] sm:$0xf] }
 0x18d   : > { %5464 = vmatmul.mubr.bf16.gmra.mrb[120].mxu1 %v6243_v13  ;;  %v3832_v6 = vshll.u32 %v3654_v48, 16  ;;  %v3838_v30 = vshll.u32 %v3655_v21, 16  ;;  %v3842_v57 = vshrl.u32 %v3655_v21, 16  ;;  %v8481_v8 = vpop.f32.mrb[40].mxu1  ;;  %v8486_v27 = vadd.f32 %v6808_v1, %v8308_v25 }
 0x18e   : > { %9122 = vst [vmem:[#allocation8_spill] sm:$0xff] %v8477_v10  ;;  %9125 = vst [vmem:[#allocation10_spill] sm:$0xff] %v8481_v8  ;;  %v3817_v2 = vsel %vm7697_vm7, %v3812_v37, %v3816_v24  ;;  %5471 = vmatprep.mubr.bf16.mxu1 %v7335_v41  ;;  %v3831_v43 = vrot.slane %v3829_v16, 4  ;;  %v3848_v52 = vshll.u32 %v3656_v51, 16  ;;  %v8488_v44 = vpop.f32.mrb[40].mxu0  ;;  %v8490_v13 = vpop.f32.mrb[41].mxu1 }
 0x18f   : > { %9126 = vst [vmem:[#allocation9_spill] sm:$0xff] %v8486_v27  ;;  %9127 = vst [vmem:[#allocation11_spill] sm:$0xff] %v8488_v44  ;;  %v3822_v48 = vrot.slane %v3821_v22, 4  ;;  %v3834_v46 = vrot.slane %v3832_v6, 5  ;;  %v3840_v21 = vrot.slane %v3838_v30, 5  ;;  %v3844_v15 = vrot.slane %v3842_v57, 4 }
 0x190   : > { %9128 = vst [vmem:[#allocation12_spill] sm:$0xff] %v8490_v13  ;;  %v8492_v59 = vpop.f32.mrb[41].mxu0  ;;  %v8494_v54 = vpop.f32.mrb[42].mxu1  ;;  %v3850_v24 = vrot.slane %v3848_v52, 5  ;;  %v3303_v37 = vshrl.u32 %v3045_v34, 16  ;;  %v3308_v25 = vshrl.u32 %v3046_v55, 16 }
 0x191   : > { %9129 = vst [vmem:[#allocation14_spill] sm:$0xff] %v8492_v59  ;;  %9130 = vst [vmem:[#allocation13_spill] sm:$0xff] %v8494_v54  ;;  %v3311_v1 = vshll.u32 %v3046_v55, 16  ;;  %v8496_v41 = vpop.f32.mrb[42].mxu0  ;;  %v8498_v51 = vpop.f32.mrb[43].mxu1  ;;  %v3827_v16 = vsel %vm7697_vm7, %v3822_v48, %v3826_v38  ;;  %v3835_v27 = vor.u32 %v3834_v46, %v3831_v43  ;;  %v3845_v22 = vor.u32 %v3844_v15, %v3840_v21 }
 0x192   : > { %9131 = vst [vmem:[#allocation15_spill] sm:$0xff] %v8496_v41  ;;  %9132 = vst [vmem:[#allocation38_spill] sm:$0xff] %v8498_v51  ;;  %v3317_v6 = vshrl.u32 %v3047_v53, 16  ;;  %v3658_v30 = vld [vmem:[#allocation2 + $0xc0] sm:$0xf]  ;;  %v8502_v57 = vpop.f32.mrb[43].mxu0  ;;  %v6270_v10 = vcombine.low %v3817_v2, %v3827_v16 }
 0x193   : > { %v6228_v13 = vrot.slane %v3303_v37, 11  ;;  %v3310_v54 = vrot.slane %v3308_v25, 7  ;;  %v3320_v52 = vshll.u32 %v3047_v53, 16  ;;  %v3836_v34 = vrot.slane %v3835_v27, 4  ;;  %v3659_v44 = vld [vmem:[#allocation2 + $0xc4] sm:$0x1] }
 0x194   : > { %v3846_v8 = vrot.slane %v3845_v22, 4  ;;  %v3319_v55 = vrot.slane %v3317_v6, 7  ;;  %v3853_v59 = vshrl.u32 %v3657_v17, 16  ;;  %7172 = vmatmul.mubr.bf16.gmra.mrb[120].mxu0 %v6270_v10  ;;  %v3856_v50 = vshll.u32 %v3657_v17, 16  ;;  %v3660_v10 = vld [vmem:[#allocation2 + $0xd0] sm:$0xf] }
 0x195   : > { %v3313_v41 = vor.u32 %v3311_v1, %v3310_v54  ;;  %v3315_v51 = vrot.slane %v3310_v54, 4  ;;  %v3862_v38 = vshll.u32 %v3658_v30, 16  ;;  %v3841_v43 = vsel %vm7697_vm7, %v3836_v34, %v3840_v21  ;;  %v9133_v1 = vld [vmem:[#allocation16_spill] sm:$0xff]  ;;  %v9134_v16 = vld [vmem:[#allocation18_spill] sm:$0xff]  ;;  %v7336_v22 = vld [vmem:[#allocation2 + $0x120] sm:$0xff]  }
 0x196   : > { %v3851_v48 = vsel %vm7697_vm7, %v3846_v8, %v3850_v24  ;;  %v3322_v2 = vor.u32 %v3320_v52, %v3319_v55  ;;  %v3855_v46 = vrot.slane %v3853_v59, 4  ;;  %v3858_v27 = vrot.slane %v3856_v50, 5  ;;  %v3661_v8 = vld [vmem:[#allocation2 + $0xd4] sm:$0xf]  ;;  %v9136_v52 = vld [vmem:[#allocation19_spill] sm:$0xff]  ;;  %v9137_v50 = vld [vmem:[#allocation20_spill] sm:$0xff] }
 0x197   : > { %v6271_v15 = vcombine.low %v3841_v43, %v3851_v48  ;;  %v3314_v53 = vsel %vm7472_vm2, %v6228_v13, %v3313_v41  ;;  %v3864_v37 = vrot.slane %v3862_v38, 5  ;;  %v3866_v17 = vshrl.u32 %v3658_v30, 16  ;;  %v9135_v6 = vld [vmem:[#allocation17_spill] sm:$0xff]  ;;  %v9138_v41 = vld [vmem:[#allocation22_spill] sm:$0xff]  ;;  %v9140_v38 = vld [vmem:[#allocation23_spill] sm:$0xff] }
 0x198   : > { %v3323_v54 = vsel %vm7472_vm2, %v3315_v51, %v3322_v2  ;;  %v3872_v25 = vshll.u32 %v3659_v44, 16  ;;  %v8514_v21 = vadd.f32 %v9134_v16, %v9133_v1  ;;  %v3859_v24 = vor.u32 %v3858_v27, %v3855_v46  ;;  %v3662_v55 = vld [vmem:[#allocation2 + $0xd8] sm:$0x1]  ;;  %v9139_v44 = vld [vmem:[#allocation21_spill] sm:$0xff]  ;;  %v3048_v2 = vld [vmem:[#allocation2 + $0x11c] sm:$0x8] }
 0x199   : > { %7175 = vmatprep.mubr.bf16.mxu0 %v6271_v15  ;;  %v6244_v59 = vcombine.low %v3314_v53, %v3323_v54  ;;  %v6811_v13 = vadd.f32 %v9136_v52, %v9135_v6  ;;  %v8520_v34 = vadd.f32 %v9138_v41, %v9137_v50  ;;  %v3868_v51 = vrot.slane %v3866_v17, 4  ;;  %v3049_v27 = vld [vmem:[#allocation2 + $0x120] sm:$0xf]  ;;  %v3050_v6 = vld [vmem:[#allocation2 + $0x124] sm:$0xf] }
 0x19a   : > { %v3874_v30 = vrot.slane %v3872_v25, 5  ;;  %v6814_v43 = vadd.f32 %v9140_v38, %v9139_v44  ;;  %v3877_v48 = vshrl.u32 %v3660_v10, 16  ;;  %v3860_v1 = vrot.slane %v3859_v24, 4 }
 0x19b   : > { %5472 = vmatmul.mubr.bf16.gmra.mrb[124].mxu1 %v6244_v59  ;;  %v8525_v15 = vadd.f32 %v6811_v13, %v8331_v49  ;;  %v3880_v46 = vshll.u32 %v3660_v10, 16  ;;  %v3886_v53 = vshll.u32 %v3661_v8, 16  ;;  %v3869_v54 = vor.u32 %v3868_v51, %v3864_v37  ;;  %v8530_v52 = vpop.f32.mrb[44].mxu0  ;;  %v3663_v13 = vld [vmem:[#allocation2 + $0xe4] sm:$0xf]  ;;  %v8534_v10 = vpop.f32.mrb[44].mxu1 }
 0x19c   : > { %v8528_v16 = vadd.f32 %v6814_v43, %v8341_v63  ;;  %5479 = vmatprep.mubr.bf16.mxu1 %v7336_v22  ;;  %v3879_v17 = vrot.slane %v3877_v48, 4  ;;  %v3890_v25 = vshrl.u32 %v3661_v8, 16  ;;  %v3865_v59 = vsel %vm7697_vm7, %v3860_v1, %v3864_v37  ;;  %9143 = vst [vmem:[#allocation17_spill] sm:$0xff] %v8534_v10  ;;  %v8536_v41 = vpop.f32.mrb[45].mxu0  ;;  %v8538_v38 = vpop.f32.mrb[45].mxu1 }
 0x19d   : > { %9141 = vst [vmem:[#allocation16_spill] sm:$0xff] %v8525_v15  ;;  %v3882_v24 = vrot.slane %v3880_v46, 5  ;;  %v3888_v50 = vrot.slane %v3886_v53, 5  ;;  %v3896_v49 = vshll.u32 %v3662_v55, 16  ;;  %9144 = vst [vmem:[#allocation19_spill] sm:$0xff] %v8536_v41  ;;  %v3870_v51 = vrot.slane %v3869_v54, 4 }
 0x19e   : > { %9142 = vst [vmem:[#allocation18_spill] sm:$0xff] %v8528_v16  ;;  %v3892_v63 = vrot.slane %v3890_v25, 4  ;;  %v3325_v44 = vshrl.u32 %v3048_v2, 16  ;;  %v3330_v22 = vshrl.u32 %v3049_v27, 16  ;;  %9145 = vst [vmem:[#allocation20_spill] sm:$0xff] %v8538_v38  ;;  %v8540_v8 = vpop.f32.mrb[46].mxu0 }
 0x19f   : > { %9146 = vst [vmem:[#allocation22_spill] sm:$0xff] %v8540_v8  ;;  %v3883_v43 = vor.u32 %v3882_v24, %v3879_v17  ;;  %v3898_v48 = vrot.slane %v3896_v49, 5  ;;  %v3333_v16 = vshll.u32 %v3049_v27, 16  ;;  %v3339_v37 = vshrl.u32 %v3050_v6, 16  ;;  %v8542_v1 = vpop.f32.mrb[46].mxu1  ;;  %v8544_v55 = vpop.f32.mrb[47].mxu0 }
 0x1a0   : > { %9147 = vst [vmem:[#allocation21_spill] sm:$0xff] %v8542_v1  ;;  %9148 = vst [vmem:[#allocation23_spill] sm:$0xff] %v8544_v55  ;;  %v3875_v46 = vsel %vm7697_vm7, %v3870_v51, %v3874_v30  ;;  %v3893_v53 = vor.u32 %v3892_v63, %v3888_v50  ;;  %v6229_v54 = vrot.slane %v3325_v44, 11  ;;  %v3332_v25 = vrot.slane %v3330_v22, 7  ;;  %v3664_v2 = vld [vmem:[#allocation2 + $0xe8] sm:$0xf] }
 0x1a1   : > { %v8548_v15 = vpop.f32.mrb[47].mxu1  ;;  %v6272_v38 = vcombine.low %v3865_v59, %v3875_v46  ;;  %v3884_v10 = vrot.slane %v3883_v43, 4  ;;  %v3341_v8 = vrot.slane %v3339_v37, 7  ;;  %v3342_v17 = vshll.u32 %v3050_v6, 16  ;;  %v3665_v30 = vld [vmem:[#allocation2 + $0xec] sm:$0x1] }
 0x1a2   : > { %v3894_v24 = vrot.slane %v3893_v53, 4  ;;  %v3335_v27 = vor.u32 %v3333_v16, %v3332_v25  ;;  %v3337_v49 = vrot.slane %v3332_v25, 4  ;;  %v3901_v41 = vshrl.u32 %v3663_v13, 16  ;;  %v7337_v46 = vld [vmem:[#allocation2 + $0x134] sm:$0xff]  }
 0x1a3   : > { %7176 = vmatmul.mubr.bf16.gmra.mrb[124].mxu0 %v6272_v38  ;;  %v3889_v1 = vsel %vm7697_vm7, %v3884_v10, %v3888_v50  ;;  %v3344_v55 = vor.u32 %v3342_v17, %v3341_v8  ;;  %v3904_v51 = vshll.u32 %v3663_v13, 16  ;;  %v3910_v63 = vshll.u32 %v3664_v2, 16  ;;  %v3666_v50 = vld [vmem:[#allocation2 + $0xf8] sm:$0xf]  ;;  %v8562_v25 = vpop.f32.mrb[48].mxu0 }
 0x1a4   : > { %v3899_v44 = vsel %vm7697_vm7, %v3894_v24, %v3898_v48  ;;  %v3336_v59 = vsel %vm7472_vm2, %v6229_v54, %v3335_v27  ;;  %v3903_v22 = vrot.slane %v3901_v41, 4  ;;  %v3914_v6 = vshrl.u32 %v3664_v2, 16  ;;  %v3667_v48 = vld [vmem:[#allocation2 + $0xfc] sm:$0xf]  ;;  %v3668_v2 = vld [vmem:[#allocation2 + $0x100] sm:$0x1] }
 0x1a5   : > { %v6273_v43 = vcombine.low %v3889_v1, %v3899_v44  ;;  %v3345_v16 = vsel %vm7472_vm2, %v3337_v49, %v3344_v55  ;;  %v3906_v38 = vrot.slane %v3904_v51, 5  ;;  %v3912_v37 = vrot.slane %v3910_v63, 5  ;;  %v8572_v17 = vpop.f32.mrb[49].mxu0  ;;  %v3051_v49 = vld [vmem:[#allocation2 + $0x130] sm:$0x8] }
 0x1a6   : > { %v6245_v10 = vcombine.low %v3336_v59, %v3345_v16  ;;  %v3916_v8 = vrot.slane %v3914_v6, 4  ;;  %v3920_v13 = vshll.u32 %v3665_v30, 16  ;;  %v8560_v53 = vadd.f32 %v8288_v60, %v8284_v12  ;;  %v8574_v30 = vpop.f32.mrb[50].mxu0 }
 0x1a7   : > { %7179 = vmatprep.mubr.bf16.mxu0 %v6273_v43  ;;  %v3907_v41 = vor.u32 %v3906_v38, %v3903_v22  ;;  %v6817_v1 = vadd.f32 %v8290_v56, %v8286_v7  ;;  %v8568_v55 = vadd.f32 %v8310_v33, %v8302_v19  ;;  %v6820_v54 = vadd.f32 %v8312_v14, %v8304_v31  ;;  %v3052_v31 = vld [vmem:[#allocation2 + $0x134] sm:$0xf]  ;;  %v8582_v33 = vpop.f32.mrb[51].mxu0  ;;  %v3053_v22 = vld [vmem:[#allocation2 + $0x138] sm:$0xf] }
 0x1a8   : > { %5480 = vmatmul.mubr.bf16.gmra.mrb[128].mxu1 %v6245_v10  ;;  %v3917_v12 = vor.u32 %v3916_v8, %v3912_v37  ;;  %v3922_v60 = vrot.slane %v3920_v13, 5  ;;  %v3925_v24 = vshrl.u32 %v3666_v50, 16  ;;  %v3928_v27 = vshll.u32 %v3666_v50, 16  ;;  %9151 = vst [vmem:[#allocation41_spill] sm:$0xff] %v8582_v33  ;;  %v3669_v38 = vld [vmem:[#allocation2 + $0x10c] sm:$0xf] }
 0x1a9   : > { %v3908_v51 = vrot.slane %v3907_v41, 4  ;;  %v8577_v7 = vadd.f32 %v6817_v1, %v8386_v47  ;;  %v8580_v56 = vadd.f32 %v6820_v54, %v8398_v45  ;;  %5487 = vmatprep.mubr.bf16.mxu1 %v7337_v46  ;;  %v3934_v19 = vshll.u32 %v3667_v48, 16  ;;  %v3670_v8 = vld [vmem:[#allocation2 + $0x110] sm:$0xf] }
 0x1aa   : > { %v3918_v14 = vrot.slane %v3917_v12, 4  ;;  %v3927_v63 = vrot.slane %v3925_v24, 4  ;;  %v3930_v44 = vrot.slane %v3928_v27, 5  ;;  %v3938_v59 = vshrl.u32 %v3667_v48, 16  ;;  %v8588_v13 = vpop.f32.mrb[48].mxu1 }
 0x1ab   : > { %9149 = vst [vmem:[#allocation39_spill] sm:$0xff] %v8577_v7  ;;  %9150 = vst [vmem:[#allocation40_spill] sm:$0xff] %v8580_v56  ;;  %v3913_v6 = vsel %vm7697_vm7, %v3908_v51, %v3912_v37  ;;  %v3936_v43 = vrot.slane %v3934_v19, 5  ;;  %v3944_v16 = vshll.u32 %v3668_v2, 16  ;;  %v3347_v47 = vshrl.u32 %v3051_v49, 16  ;;  %v8590_v12 = vpop.f32.mrb[49].mxu1 }
 0x1ac   : > { %v3923_v45 = vsel %vm7697_vm7, %v3918_v14, %v3922_v60  ;;  %v3931_v46 = vor.u32 %v3930_v44, %v3927_v63  ;;  %v3940_v50 = vrot.slane %v3938_v59, 4  ;;  %v3352_v10 = vshrl.u32 %v3052_v31, 16  ;;  %v3671_v49 = vld [vmem:[#allocation2 + $0x114] sm:$0x1]  ;;  %v8592_v51 = vpop.f32.mrb[50].mxu1 }
 0x1ad   : > { %v6274_v41 = vcombine.low %v3913_v6, %v3923_v45  ;;  %v3946_v1 = vrot.slane %v3944_v16, 5  ;;  %v6230_v48 = vrot.slane %v3347_v47, 11  ;;  %v3355_v54 = vshll.u32 %v3052_v31, 16  ;;  %v8594_v44 = vpop.f32.mrb[51].mxu1  ;;  %v3672_v56 = vld [vmem:[#allocation2 + $0x120] sm:$0xf] }
 0x1ae   : > { %v3932_v37 = vrot.slane %v3931_v46, 4  ;;  %v3941_v24 = vor.u32 %v3940_v50, %v3936_v43  ;;  %v3354_v2 = vrot.slane %v3352_v10, 7  ;;  %v3361_v27 = vshrl.u32 %v3053_v22, 16 }
 0x1af   : > { %7180 = vmatmul.mubr.bf16.gmra.mrb[128].mxu0 %v6274_v41  ;;  %v3364_v60 = vshll.u32 %v3053_v22, 16  ;;  %v3949_v19 = vshrl.u32 %v3669_v38, 16  ;;  %v3952_v14 = vshll.u32 %v3669_v38, 16  ;;  %v3958_v63 = vshll.u32 %v3670_v8, 16 }
 0x1b0   : > { %v3937_v59 = vsel %vm7697_vm7, %v3932_v37, %v3936_v43  ;;  %v3942_v31 = vrot.slane %v3941_v24, 4  ;;  %v3357_v6 = vor.u32 %v3355_v54, %v3354_v2  ;;  %v3359_v16 = vrot.slane %v3354_v2, 4  ;;  %v8602_v7 = vpop.f32.mrb[52].mxu0  ;;  %v3673_v24 = vld [vmem:[#allocation2 + $0x124] sm:$0xf] }
 0x1b1   : > { %v3363_v47 = vrot.slane %v3361_v27, 7  ;;  %v3951_v45 = vrot.slane %v3949_v19, 4  ;;  %v3954_v46 = vrot.slane %v3952_v14, 5  ;;  %v3960_v50 = vrot.slane %v3958_v63, 5  ;;  %v8608_v2 = vpop.f32.mrb[53].mxu0  ;;  %v9156_v63 = vld [vmem:[#allocation30_spill] sm:$0xff] }
 0x1b2   : > { %v3947_v10 = vsel %vm7697_vm7, %v3942_v31, %v3946_v1  ;;  %v3358_v22 = vsel %vm7472_vm2, %v6230_v48, %v3357_v6  ;;  %v3962_v38 = vshrl.u32 %v3670_v8, 16  ;;  %v3968_v41 = vshll.u32 %v3671_v49, 16  ;;  %9152 = vst [vmem:[#allocation42_spill] sm:$0xff] %v8608_v2  ;;  %v9153_v8 = vld [vmem:[#allocation29_spill] sm:$0xff]  ;;  %v3674_v19 = vld [vmem:[#allocation2 + $0x128] sm:$0x1] }
 0x1b3   : > { %v6275_v33 = vcombine.low %v3937_v59, %v3947_v10  ;;  %v3366_v43 = vor.u32 %v3364_v60, %v3363_v47  ;;  %v3955_v37 = vor.u32 %v3954_v46, %v3951_v45  ;;  %v8606_v54 = vadd.f32 %v8345_v9, %v8337_v0  ;;  %v8616_v14 = vpop.f32.mrb[54].mxu0  ;;  %v9155_v60 = vld [vmem:[#allocation28_spill] sm:$0xff]  ;;  %v3054_v47 = vld [vmem:[#allocation2 + $0x144] sm:$0x8]  ;;  %v3677_v2 = vld [vmem:[#allocation2 + $0x13c] sm:$0x1] }
 0x1b4   : > { %v3964_v27 = vrot.slane %v3962_v38, 4  ;;  %v3970_v1 = vrot.slane %v3968_v41, 5  ;;  %v6823_v48 = vadd.f32 %v8354_v35, %v8343_v36  ;;  %v8614_v49 = vadd.f32 %v9153_v8, %v8356_v20  ;;  %9154 = vst [vmem:[#allocation29_spill] sm:$0xff] %v8616_v14  ;;  %v7338_v31 = vld [vmem:[#allocation2 + $0x148] sm:$0xff]   ;;  %v8622_v45 = vpop.f32.mrb[55].mxu0 }
 0x1b5   : > { %7183 = vmatprep.mubr.bf16.mxu0 %v6275_v33  ;;  %v3367_v0 = vsel %vm7472_vm2, %v3359_v16, %v3366_v43  ;;  %v3956_v9 = vrot.slane %v3955_v37, 4  ;;  %v6826_v59 = vadd.f32 %v9156_v63, %v9155_v60  ;;  %v3973_v6 = vshrl.u32 %v3672_v56, 16  ;;  %9157 = vst [vmem:[#allocation28_spill] sm:$0xff] %v8622_v45  ;;  %v3055_v10 = vld [vmem:[#allocation2 + $0x148] sm:$0xf]  ;;  %v8632_v8 = vpop.f32.mrb[52].mxu1 }
 0x1b6   : > { %v6246_v36 = vcombine.low %v3358_v22, %v3367_v0  ;;  %v3965_v35 = vor.u32 %v3964_v27, %v3960_v50  ;;  %v8625_v20 = vadd.f32 %v6823_v48, %v8424_v11  ;;  %v3976_v46 = vshll.u32 %v3672_v56, 16  ;;  %v3056_v33 = vld [vmem:[#allocation2 + $0x14c] sm:$0xf]  ;;  %v3675_v37 = vld [vmem:[#allocation2 + $0x134] sm:$0xf]  ;;  %v8634_v48 = vpop.f32.mrb[53].mxu1 }
 0x1b7   : > { %v3961_v16 = vsel %vm7697_vm7, %v3956_v9, %v3960_v50  ;;  %v8630_v38 = vadd.f32 %v6826_v59, %v8432_v62  ;;  %v3975_v41 = vrot.slane %v3973_v6, 4  ;;  %v3982_v43 = vshll.u32 %v3673_v24, 16  ;;  %v8636_v9 = vpop.f32.mrb[54].mxu1 }
 0x1b8   : > { %9158 = vst [vmem:[#allocation30_spill] sm:$0xff] %v8625_v20  ;;  %5488 = vmatmul.mubr.bf16.gmra.mrb[132].mxu1 %v6246_v36  ;;  %v3966_v22 = vrot.slane %v3965_v35, 4  ;;  %v3978_v27 = vrot.slane %v3976_v46, 5  ;;  %v3986_v0 = vshrl.u32 %v3673_v24, 16  ;;  %v3992_v11 = vshll.u32 %v3674_v19, 16  ;;  %9160 = vst [vmem:[#allocation44_spill] sm:$0xff] %v8636_v9 }
 0x1b9   : > { %9159 = vst [vmem:[#allocation43_spill] sm:$0xff] %v8630_v38  ;;  %5495 = vmatprep.mubr.bf16.mxu1 %v7338_v31  ;;  %v3984_v56 = vrot.slane %v3982_v43, 5  ;;  %v3369_v60 = vshrl.u32 %v3054_v47, 16  ;;  %v3374_v63 = vshrl.u32 %v3055_v10, 16  ;;  %v3377_v50 = vshll.u32 %v3055_v10, 16  ;;  %v8640_v36 = vpop.f32.mrb[55].mxu1 }
 0x1ba   : > { %v3971_v62 = vsel %vm7697_vm7, %v3966_v22, %v3970_v1  ;;  %v3979_v59 = vor.u32 %v3978_v27, %v3975_v41  ;;  %v3988_v6 = vrot.slane %v3986_v0, 4  ;;  %v3994_v38 = vrot.slane %v3992_v11, 5  ;;  %v3676_v20 = vld [vmem:[#allocation2 + $0x138] sm:$0xf] }
 0x1bb   : > { %v6276_v35 = vcombine.low %v3961_v16, %v3971_v62  ;;  %v6231_v24 = vrot.slane %v3369_v60, 11  ;;  %v3376_v19 = vrot.slane %v3374_v63, 7  ;;  %v3383_v46 = vshrl.u32 %v3056_v33, 16 }
 0x1bc   : > { %v3980_v31 = vrot.slane %v3979_v59, 4  ;;  %v3989_v43 = vor.u32 %v3988_v6, %v3984_v56  ;;  %v3386_v47 = vshll.u32 %v3056_v33, 16  ;;  %v3997_v45 = vshrl.u32 %v3675_v37, 16  ;;  %v8644_v0 = vpop.f32.mrb[56].mxu0 }
 0x1bd   : > { %7184 = vmatmul.mubr.bf16.gmra.mrb[132].mxu0 %v6276_v35  ;;  %v3379_v10 = vor.u32 %v3377_v50, %v3376_v19  ;;  %v3381_v14 = vrot.slane %v3376_v19, 4  ;;  %v3385_v9 = vrot.slane %v3383_v46, 7  ;;  %v4000_v1 = vshll.u32 %v3675_v37, 16  ;;  %v8648_v62 = vpop.f32.mrb[57].mxu0  ;;  %v7339_v19 = vld [vmem:[#allocation2 + $0x15c] sm:$0xff]  }
 0x1be   : > { %v3985_v41 = vsel %vm7697_vm7, %v3980_v31, %v3984_v56  ;;  %v3990_v22 = vrot.slane %v3989_v43, 4  ;;  %v3999_v27 = vrot.slane %v3997_v45, 4  ;;  %v4006_v16 = vshll.u32 %v3676_v20, 16  ;;  %v3678_v45 = vld [vmem:[#allocation2 + $0x148] sm:$0xf]  ;;  %v8656_v6 = vpop.f32.mrb[58].mxu0 }
 0x1bf   : > { %v3380_v11 = vsel %vm7472_vm2, %v6231_v24, %v3379_v10  ;;  %v3388_v60 = vor.u32 %v3386_v47, %v3385_v9  ;;  %v4002_v33 = vrot.slane %v4000_v1, 5  ;;  %v4010_v63 = vshrl.u32 %v3676_v20, 16  ;;  %v3679_v46 = vld [vmem:[#allocation2 + $0x14c] sm:$0xf]  ;;  %v8660_v31 = vpop.f32.mrb[59].mxu0 }
 0x1c0   : > { %v3995_v50 = vsel %vm7697_vm7, %v3990_v22, %v3994_v38  ;;  %v4008_v37 = vrot.slane %v4006_v16, 5  ;;  %v4016_v59 = vshll.u32 %v3677_v2, 16  ;;  %v8654_v56 = vadd.f32 %v8380_v28, %v8374_v61  ;;  %v3680_v28 = vld [vmem:[#allocation2 + $0x150] sm:$0x1]  ;;  %v3057_v47 = vld [vmem:[#allocation2 + $0x158] sm:$0x8] }
 0x1c1   : > { %v6277_v35 = vcombine.low %v3985_v41, %v3995_v50  ;;  %v3389_v9 = vsel %vm7472_vm2, %v3381_v14, %v3388_v60  ;;  %v4003_v24 = vor.u32 %v4002_v33, %v3999_v27  ;;  %v4012_v20 = vrot.slane %v4010_v63, 4  ;;  %v3058_v22 = vld [vmem:[#allocation2 + $0x15c] sm:$0xf]  ;;  %v8670_v27 = vpop.f32.mrb[56].mxu1  ;;  %v396_v63 = vld [vmem:[#allocation2 + $0x164] sm:$0x1] }
 0x1c2   : > { %v6247_v38 = vcombine.low %v3380_v11, %v3389_v9  ;;  %v4018_v43 = vrot.slane %v4016_v59, 5  ;;  %v6829_v2 = vadd.f32 %v8392_v39, %v8378_v32  ;;  %v8666_v61 = vadd.f32 %v8402_v26, %v8394_v4  ;;  %v3059_v26 = vld [vmem:[#allocation2 + $0x160] sm:$0xf]  ;;  %v8675_v11 = vpop.f32.mrb[57].mxu1 }
 0x1c3   : > { %7187 = vmatprep.mubr.bf16.mxu0 %v6277_v35  ;;  %v4004_v10 = vrot.slane %v4003_v24, 4  ;;  %v4013_v14 = vor.u32 %v4012_v20, %v4008_v37  ;;  %v6832_v1 = vadd.f32 %v8408_v23, %v8400_v40  ;;  %v4021_v41 = vshrl.u32 %v3678_v45, 16  ;;  %v8682_v50 = vpop.f32.mrb[58].mxu1 }
 0x1c4   : > { %5496 = vmatmul.mubr.bf16.gmra.mrb[136].mxu1 %v6247_v38  ;;  %v8673_v16 = vadd.f32 %v6829_v2, %v8468_v3  ;;  %v4024_v32 = vshll.u32 %v3678_v45, 16  ;;  %v4030_v39 = vshll.u32 %v3679_v46, 16  ;;  %v4034_v4 = vshrl.u32 %v3679_v46, 16  ;;  %v8684_v9 = vpop.f32.mrb[59].mxu1  ;;  %v3681_v38 = vld [vmem:[#allocation2 + $0x15c] sm:$0xf] }
 0x1c5   : > { %v4009_v60 = vsel %vm7697_vm7, %v4004_v10, %v4008_v37  ;;  %v4014_v33 = vrot.slane %v4013_v14, 4  ;;  %v8680_v40 = vadd.f32 %v6832_v1, %v8474_v5  ;;  %5503 = vmatprep.mubr.bf16.mxu1 %v7339_v19  ;;  %v4023_v23 = vrot.slane %v4021_v41, 4 }
 0x1c6   : > { %9161 = vst [vmem:[#allocation45_spill] sm:$0xff] %v8673_v16  ;;  %v4026_v3 = vrot.slane %v4024_v32, 5  ;;  %v4032_v59 = vrot.slane %v4030_v39, 5  ;;  %v4036_v45 = vrot.slane %v4034_v4, 4  ;;  %v4040_v35 = vshll.u32 %v3680_v28, 16 }
 0x1c7   : > { %9162 = vst [vmem:[#allocation46_spill] sm:$0xff] %v8680_v40  ;;  %v4019_v24 = vsel %vm7697_vm7, %v4014_v33, %v4018_v43  ;;  %v3391_v20 = vshrl.u32 %v3057_v47, 16  ;;  %v3396_v37 = vshrl.u32 %v3058_v22, 16  ;;  %v3399_v46 = vshll.u32 %v3058_v22, 16  ;;  %v3682_v39 = vld [vmem:[#allocation2 + $0x160] sm:$0xf] }
 0x1c8   : > { %v6278_v5 = vcombine.low %v4009_v60, %v4019_v24  ;;  %v4027_v2 = vor.u32 %v4026_v3, %v4023_v23  ;;  %v4037_v19 = vor.u32 %v4036_v45, %v4032_v59  ;;  %v4042_v10 = vrot.slane %v4040_v35, 5 }
 0x1c9   : > { %v6232_v14 = vrot.slane %v3391_v20, 11  ;;  %v3398_v1 = vrot.slane %v3396_v37, 7  ;;  %v3405_v41 = vshrl.u32 %v3059_v26, 16  ;;  %v3408_v32 = vshll.u32 %v3059_v26, 16  ;;  %v8690_v23 = vpop.f32.mrb[60].mxu0 }
 0x1ca   : > { %7188 = vmatmul.mubr.bf16.gmra.mrb[136].mxu0 %v6278_v5  ;;  %v4028_v28 = vrot.slane %v4027_v2, 4  ;;  %v4038_v4 = vrot.slane %v4037_v19, 4  ;;  %v397_v16 = vsel %vm7652_vm4, 0, %v396_v63  ;;  %v4045_v43 = vshrl.u32 %v3681_v38, 16  ;;  %v8696_v24 = vpop.f32.mrb[61].mxu0  ;;  %v9164_v5 = vld [vmem:[#allocation6_spill] sm:$0xff] }
 0x1cb   : > { %v3401_v47 = vor.u32 %v3399_v46, %v3398_v1  ;;  %v3403_v33 = vrot.slane %v3398_v1, 4  ;;  %v3407_v22 = vrot.slane %v3405_v41, 7  ;;  %398 = vst [vmem:[#allocation2 + $0x164] sm:$0x1] %v397_v16  ;;  %v4048_v60 = vshll.u32 %v3681_v38, 16  ;;  %v8700_v16 = vpop.f32.mrb[62].mxu0 }
 0x1cc   : > { %v4033_v3 = vsel %vm7697_vm7, %v4028_v28, %v4032_v59  ;;  %v4043_v26 = vsel %vm7697_vm7, %v4038_v4, %v4042_v10  ;;  %v4047_v45 = vrot.slane %v4045_v43, 4  ;;  %v4054_v35 = vshll.u32 %v3682_v39, 16  ;;  %v9165_v2 = vld [vmem:[#allocation7_spill] sm:$0xff]  ;;  %v8706_v10 = vpop.f32.mrb[63].mxu0  ;;  %v9168_v4 = vld [vmem:[#allocation34_spill] sm:$0xff]  ;;  %v9169_v43 = vld [vmem:[#allocation36_spill] sm:$0xff] }
 0x1cd   : > { %v6279_v40 = vcombine.low %v4033_v3, %v4043_v26  ;;  %v3402_v63 = vsel %vm7472_vm2, %v6232_v14, %v3401_v47  ;;  %v3410_v20 = vor.u32 %v3408_v32, %v3407_v22  ;;  %v4050_v37 = vrot.slane %v4048_v60, 5  ;;  %v9166_v14 = vld [vmem:[#allocation35_spill] sm:$0xff]  ;;  %v9167_v32 = vld [vmem:[#allocation37_spill] sm:$0xff]  ;;  %v9171_v60 = vld [vmem:[#allocation14_spill] sm:$0xff] }
 0x1ce   : > { %v4056_v46 = vrot.slane %v4054_v35, 5  ;;  %v4058_v38 = vshrl.u32 %v3682_v39, 16  ;;  %v6747_v59 = vadd.f32 %v8444_v29, %v8440_v58  ;;  %v6835_v19 = vadd.f32 %v9165_v2, %v9164_v5  ;;  %v9170_v29 = vld [vmem:[#allocation11_spill] sm:$0xff]  ;;  %v6869_v26 = vpop.f32.mrb[60].mxu1  ;;  %v9176_v2 = vld [vmem:[#allocation38_spill] sm:$0xff] }
 0x1cf   : > { %7191 = vmatprep.mubr.bf16.mxu0 %v6279_v40  ;;  %v3411_v1 = vsel %vm7472_vm2, %v3403_v33, %v3410_v20  ;;  %v4051_v41 = vor.u32 %v4050_v37, %v4047_v45  ;;  %v6750_v28 = vadd.f32 %v9167_v32, %v9166_v14  ;;  %v6838_v47 = vadd.f32 %v9169_v43, %v9168_v4  ;;  %v9172_v33 = vld [vmem:[#allocation10_spill] sm:$0xff]  ;;  %v9173_v45 = vld [vmem:[#allocation12_spill] sm:$0xff]  ;;  %v9174_v20 = vld [vmem:[#allocation15_spill] sm:$0xff]  ;;  %v6870_v5 = vpop.f32.mrb[61].mxu1 }
 0x1d0   : > { %v6248_v39 = vcombine.low %v3402_v63, %v3411_v1  ;;  %v4060_v22 = vrot.slane %v4058_v38, 4  ;;  %v8715_v58 = vadd.f32 %v6835_v19, %v8514_v21  ;;  %v6753_v3 = vadd.f32 %v9171_v60, %v9170_v29  ;;  %v9175_v21 = vld [vmem:[#allocation13_spill] sm:$0xff]  ;;  %v9177_v1 = vld [vmem:[#allocation19_spill] sm:$0xff]  ;;  %v9179_v32 = vld [vmem:[#allocation20_spill] sm:$0xff]  ;;  %v6872_v4 = vpop.f32.mrb[62].mxu1 }
 0x1d1   : > { %v4052_v35 = vrot.slane %v4051_v41, 4  ;;  %v8720_v42 = vadd.f32 %v6838_v47, %v8520_v34  ;;  %v6841_v40 = vadd.f32 %v9173_v45, %v9172_v33  ;;  %v6756_v37 = vadd.f32 %v8502_v57, %v9174_v20  ;;  %v9178_v41 = vld [vmem:[#allocation17_spill] sm:$0xff]  ;;  %v9181_v29 = vld [vmem:[#allocation23_spill] sm:$0xff]  ;;  %v6873_v60 = vpop.f32.mrb[63].mxu1 }
 0x1d2   : > { %5504 = vmatmul.mubr.bf16.gmra.mrb[140].mxu1 %v6248_v39  ;;  %v3683_v63 = vld [vmem:[#allocation2 + $0x164] sm:$0x1]  ;;  %v4061_v38 = vor.u32 %v4060_v22, %v4056_v46  ;;  %v6844_v19 = vadd.f32 %v9176_v2, %v9175_v21  ;;  %v6759_v14 = vadd.f32 %v9177_v1, %v8530_v52  ;;  %v6847_v34 = vadd.f32 %v9179_v32, %v9178_v41  ;;  %v9180_v39 = vld [vmem:[#allocation22_spill] sm:$0xff]  ;;  %v9182_v20 = vld [vmem:[#allocation21_spill] sm:$0xff] }
 0x1d3   : > { %v4057_v43 = vsel %vm7697_vm7, %v4052_v35, %v4056_v46  ;;  %v4064_v47 = vshll.u32 %v3683_v63, 16  ;;  %v8735_v57 = vadd.f32 %v6841_v40, %v8560_v53  ;;  %v6762_v22 = vadd.f32 %v9181_v29, %v9180_v39  ;;  %v9188_v1 = vld [vmem:[#allocation44_spill] sm:$0xff]  ;;  %v9189_v41 = vld [vmem:[#allocation29_spill] sm:$0xff] }
 0x1d4   : > { %v4062_v33 = vrot.slane %v4061_v38, 4  ;;  %v8740_v45 = vadd.f32 %v6844_v19, %v8568_v55  ;;  %v8743_v52 = vadd.f32 %v6847_v34, %v8606_v54  ;;  %v6850_v21 = vadd.f32 %v8548_v15, %v9182_v20  ;;  %v9183_v55 = vld [vmem:[#allocation41_spill] sm:$0xff]  ;;  %v9184_v15 = vld [vmem:[#allocation42_spill] sm:$0xff]  ;;  %v9190_v32 = vld [vmem:[#allocation28_spill] sm:$0xff] }
 0x1d5   : > { %v4066_v2 = vrot.slane %v4064_v47, 5  ;;  %v6853_v46 = vadd.f32 %v8590_v12, %v8588_v13  ;;  %v6917_v53 = vadd.f32 %v8572_v17, %v8562_v25  ;;  %v6856_v35 = vadd.f32 %v8594_v44, %v8592_v51  ;;  %v9185_v17 = vld [vmem:[#allocation8_spill] sm:$0xff]  ;;  %v6939_v44 = vpop.f32.mrb[64].mxu0 }
 0x1d6   : > { %v8754_v40 = vadd.f32 %v6850_v21, %v8614_v49  ;;  %v6920_v54 = vadd.f32 %v9183_v55, %v8574_v30  ;;  %v6859_v63 = vadd.f32 %v8634_v48, %v8632_v8  ;;  %v6923_v38 = vadd.f32 %v9184_v15, %v8602_v7  ;;  %v9186_v49 = vld [vmem:[#allocation9_spill] sm:$0xff]  ;;  %v9187_v7 = vld [vmem:[#allocation16_spill] sm:$0xff]  ;;  %v6940_v18 = vpop.f32.mrb[65].mxu0  ;;  %v9191_v21 = vld [vmem:[#allocation18_spill] sm:$0xff] }
 0x1d7   : > { %v4067_v13 = vsel %vm7697_vm7, %v4062_v33, %v4066_v2  ;;  %v8765_v25 = vadd.f32 %v6853_v46, %v8654_v56  ;;  %v8768_v12 = vadd.f32 %v6917_v53, %v9185_v17  ;;  %v8771_v51 = vadd.f32 %v6856_v35, %v8666_v61  ;;  %v6942_v47 = vpop.f32.mrb[66].mxu0  ;;  %v9195_v55 = vld [vmem:[#allocation43_spill] sm:$0xff] }
 0x1d8   : > { %v6280_v30 = vcombine.low %v4057_v43, %v4067_v13  ;;  %v8774_v19 = vadd.f32 %v6920_v54, %v9186_v49  ;;  %v8776_v8 = vadd.f32 %v6859_v63, %v6747_v59  ;;  %v8779_v48 = vadd.f32 %v6923_v38, %v9187_v7  ;;  %v6943_v33 = vpop.f32.mrb[67].mxu0  ;;  %v9197_v38 = vld [vmem:[#allocation46_spill] sm:$0xff] }
 0x1d9   : > { %v6862_v56 = vadd.f32 %v8640_v36, %v9188_v1  ;;  %v6926_v34 = vadd.f32 %v9190_v32, %v9189_v41  ;;  %v6865_v61 = vadd.f32 %v8675_v11, %v8670_v27  ;;  %v6929_v43 = vadd.f32 %v8648_v62, %v8644_v0  ;;  %v9192_v0 = vld [vmem:[#allocation39_spill] sm:$0xff] }
 0x1da   : > { %7192 = vmatmul.mubr.bf16.gmra.mrb[140].mxu0 %v6280_v30  ;;  %v6868_v59 = vadd.f32 %v8684_v9, %v8682_v50  ;;  %v6932_v39 = vadd.f32 %v8660_v31, %v8656_v6  ;;  %v6871_v29 = vadd.f32 %v6870_v5, %v6869_v26  ;;  %v6935_v36 = vadd.f32 %v8696_v24, %v8690_v23  ;;  %v9193_v50 = vld [vmem:[#allocation40_spill] sm:$0xff]  ;;  %v9194_v31 = vld [vmem:[#allocation30_spill] sm:$0xff]  ;;  %v6875_v24 = vpop.f32.mrb[64].mxu1 }
 0x1db   : > { %v8795_v20 = vadd.f32 %v6862_v56, %v6750_v28  ;;  %v8798_v27 = vadd.f32 %v6926_v34, %v9191_v21  ;;  %v8800_v11 = vadd.f32 %v6865_v61, %v6753_v3  ;;  %v8803_v62 = vadd.f32 %v6929_v43, %v9192_v0  ;;  %v6876_v3 = vpop.f32.mrb[65].mxu1 }
 0x1dc   : > { %v8805_v2 = vadd.f32 %v6868_v59, %v6756_v37  ;;  %v8808_v9 = vadd.f32 %v6932_v39, %v9193_v50  ;;  %v8810_v6 = vadd.f32 %v6871_v29, %v6759_v14  ;;  %v8813_v23 = vadd.f32 %v6935_v36, %v9194_v31  ;;  %v6878_v35 = vpop.f32.mrb[66].mxu1  ;;  %v9196_v14 = vld [vmem:[#allocation45_spill] sm:$0xff]  ;;  %v9201_v29 = vld [vmem:[#allocation27_spill] sm:$0xff] }
 0x1dd   : > { %v6874_v28 = vadd.f32 %v6873_v60, %v6872_v4  ;;  %v6938_v26 = vadd.f32 %v8706_v10, %v8700_v16  ;;  %v6941_v5 = vadd.f32 %v6940_v18, %v6939_v44  ;;  %v6944_v46 = vadd.f32 %v6943_v33, %v6942_v47  ;;  %v6879_v15 = vpop.f32.mrb[67].mxu1  ;;  %v9198_v4 = vld [vmem:[#allocation24_spill] sm:$0xff]  ;;  %v9199_v10 = vld [vmem:[#allocation25_spill] sm:$0xff]  ;;  %v9200_v47 = vld [vmem:[#allocation26_spill] sm:$0xff] }
 0x1de   : > { %v6877_v53 = vadd.f32 %v6876_v3, %v6875_v24  ;;  %v6880_v16 = vadd.f32 %v6879_v15, %v6878_v35 }
 0x1df   : > { %v8817_v37 = vadd.f32 %v6874_v28, %v6762_v22  ;;  %v8820_v54 = vadd.f32 %v6938_v26, %v9195_v55  ;;  %v8823_v63 = vadd.f32 %v6941_v5, %v9196_v14  ;;  %v8826_v13 = vadd.f32 %v6944_v46, %v9197_v38  ;;  %v9203_v14 = vld [vmem:[#allocation32_spill] sm:$0xff] }
 0x1e0   : > { %v8829_v60 = vadd.f32 %v6877_v53, %v9198_v4  ;;  %v8832_v17 = vadd.f32 %v6880_v16, %v9199_v10  ;;  %v6945_v44 = vpop.f32.mrb[68].mxu0  ;;  %v9202_v53 = vld [vmem:[#allocation31_spill] sm:$0xff] }
 0x1e1   : > { %v6946_v22 = vpop.f32.mrb[69].mxu0 }
 0x1e2   : > { %v6947_v30 = vadd.f32 %v6946_v22, %v6945_v44  ;;  %v6948_v49 = vpop.f32.mrb[70].mxu0 }
 0x1e3   : > { %v6949_v7 = vpop.f32.mrb[71].mxu0 }
 0x1e4   : > { %v8835_v18 = vadd.f32 %v6947_v30, %v8715_v58  ;;  %v6950_v1 = vadd.f32 %v6949_v7, %v6948_v49 }
 0x1e6   : > { %v6881_v56 = vpop.f32.mrb[68].mxu1  ;;  %v8838_v32 = vadd.f32 %v6950_v1, %v8720_v42 }
 0x1e7   : > { %v6882_v41 = vpop.f32.mrb[69].mxu1 }
 0x1e8   : > { %v6883_v34 = vadd.f32 %v6882_v41, %v6881_v56  ;;  %v6884_v61 = vpop.f32.mrb[70].mxu1 }
 0x1e9   : > { %v6885_v43 = vpop.f32.mrb[71].mxu1 }
 0x1ea   : > { %v8841_v59 = vadd.f32 %v6883_v34, %v9200_v47  ;;  %v6886_v39 = vadd.f32 %v6885_v43, %v6884_v61  ;;  %v9204_v61 = vld [vmem:[#allocation33_spill] sm:$0xff] }
 0x1ec   : > { %v8844_v36 = vadd.f32 %v6886_v39, %v9201_v29 }
 0x1ed   : > { %v6951_v33 = vpop.f32.mrb[72].mxu0 }
 0x1ee   : > { %v6952_v21 = vpop.f32.mrb[73].mxu0 }
 0x1ef   : > { %v6953_v58 = vadd.f32 %v6952_v21, %v6951_v33  ;;  %v6954_v0 = vpop.f32.mrb[74].mxu0 }
 0x1f0   : > { %v6955_v50 = vpop.f32.mrb[75].mxu0 }
 0x1f1   : > { %v8847_v31 = vadd.f32 %v6953_v58, %v8735_v57  ;;  %v6956_v42 = vadd.f32 %v6955_v50, %v6954_v0 }
 0x1f2   : > { %v6887_v24 = vpop.f32.mrb[72].mxu1 }
 0x1f3   : > { %v6888_v28 = vpop.f32.mrb[73].mxu1  ;;  %v8850_v26 = vadd.f32 %v6956_v42, %v8740_v45 }
 0x1f4   : > { %v6889_v3 = vadd.f32 %v6888_v28, %v6887_v24  ;;  %v6890_v5 = vpop.f32.mrb[74].mxu1 }
 0x1f5   : > { %v6891_v46 = vpop.f32.mrb[75].mxu1 }
 0x1f6   : > { %v8853_v35 = vadd.f32 %v6889_v3, %v9202_v53  ;;  %v6892_v55 = vadd.f32 %v6891_v46, %v6890_v5 }
 0x1f8   : > { %v8856_v15 = vadd.f32 %v6892_v55, %v9203_v14  ;;  %v6957_v38 = vpop.f32.mrb[76].mxu0 }
 0x1f9   : > { %v6958_v4 = vpop.f32.mrb[77].mxu0 }
 0x1fa   : > { %v6959_v57 = vadd.f32 %v6958_v4, %v6957_v38  ;;  %v6960_v16 = vpop.f32.mrb[78].mxu0 }
 0x1fb   : > { %v6961_v10 = vpop.f32.mrb[79].mxu0 }
 0x1fc   : > { %v8859_v44 = vadd.f32 %v6959_v57, %v8743_v52  ;;  %v6962_v45 = vadd.f32 %v6961_v10, %v6960_v16  ;;  %v9205_v52 = vld [vmem:[#allocation5_spill] sm:$0xff] }
 0x1fe   : > { %v8862_v22 = vadd.f32 %v6962_v45, %v8754_v40 }
 0x200   : > { %v6893_v30 = vpop.f32.mrb[76].mxu1 }
 0x201   : > { %v6894_v49 = vpop.f32.mrb[77].mxu1  ;;  %v6963_v56 = vpop.f32.mrb[80].mxu0 }
 0x202   : > { %v6895_v7 = vadd.f32 %v6894_v49, %v6893_v30  ;;  %v6896_v1 = vpop.f32.mrb[78].mxu1  ;;  %v6964_v34 = vpop.f32.mrb[81].mxu0 }
 0x203   : > { %v6897_v41 = vpop.f32.mrb[79].mxu1  ;;  %v6965_v39 = vadd.f32 %v6964_v34, %v6963_v56  ;;  %v6966_v29 = vpop.f32.mrb[82].mxu0 }
 0x204   : > { %v8865_v43 = vadd.f32 %v6895_v7, %v9204_v61  ;;  %v6898_v47 = vadd.f32 %v6897_v41, %v6896_v1  ;;  %v6967_v33 = vpop.f32.mrb[83].mxu0 }
 0x205   : > { %v8871_v40 = vadd.f32 %v6965_v39, %v8765_v25  ;;  %v6968_v58 = vadd.f32 %v6967_v33, %v6966_v29 }
 0x206   : > { %v8868_v21 = vadd.f32 %v6898_v47, %v9205_v52 }
 0x207   : > { %v8874_v50 = vadd.f32 %v6968_v58, %v8771_v51 }
 0x208   : > { %v7027_v0 = vpop.f32.mrb[80].mxu1 }
 0x209   : > { %v7028_v42 = vpop.f32.mrb[81].mxu1 }
 0x20a   : > { %v7029_v24 = vadd.f32 %v7028_v42, %v7027_v0  ;;  %v7030_v28 = vpop.f32.mrb[82].mxu1 }
 0x20b   : > { %v7031_v3 = vpop.f32.mrb[83].mxu1  ;;  %v6969_v46 = vpop.f32.mrb[84].mxu0 }
 0x20c   : > { %v7032_v5 = vadd.f32 %v7031_v3, %v7030_v28  ;;  %v8877_v53 = vadd.f32 %v7029_v24, %v8768_v12  ;;  %v6970_v55 = vpop.f32.mrb[85].mxu0 }
 0x20d   : > { %v6971_v14 = vadd.f32 %v6970_v55, %v6969_v46  ;;  %v6972_v38 = vpop.f32.mrb[86].mxu0 }
 0x20e   : > { %v8880_v25 = vadd.f32 %v7032_v5, %v8774_v19  ;;  %v6973_v4 = vpop.f32.mrb[87].mxu0 }
 0x20f   : > { %v8883_v51 = vadd.f32 %v6971_v14, %v8776_v8  ;;  %v6974_v16 = vadd.f32 %v6973_v4, %v6972_v38 }
 0x210   : > { %v7033_v57 = vpop.f32.mrb[84].mxu1 }
 0x211   : > { %v7034_v10 = vpop.f32.mrb[85].mxu1  ;;  %v8886_v49 = vadd.f32 %v6974_v16, %v8795_v20 }
 0x212   : > { %v7035_v45 = vadd.f32 %v7034_v10, %v7033_v57  ;;  %v7036_v30 = vpop.f32.mrb[86].mxu1 }
 0x213   : > { %v7037_v12 = vpop.f32.mrb[87].mxu1 }
 0x214   : > { %v7038_v7 = vadd.f32 %v7037_v12, %v7036_v30  ;;  %v6975_v1 = vpop.f32.mrb[88].mxu0  ;;  %v8889_v56 = vadd.f32 %v7035_v45, %v8779_v48 }
 0x215   : > { %v6976_v19 = vpop.f32.mrb[89].mxu0 }
 0x216   : > { %v6977_v41 = vadd.f32 %v6976_v19, %v6975_v1  ;;  %v6978_v34 = vpop.f32.mrb[90].mxu0  ;;  %v8892_v61 = vadd.f32 %v7038_v7, %v8798_v27 }
 0x217   : > { %v6979_v8 = vpop.f32.mrb[91].mxu0 }
 0x218   : > { %v7039_v47 = vpop.f32.mrb[88].mxu1  ;;  %v8895_v39 = vadd.f32 %v6977_v41, %v8800_v11  ;;  %v6980_v29 = vadd.f32 %v6979_v8, %v6978_v34 }
 0x219   : > { %v7040_v20 = vpop.f32.mrb[89].mxu1 }
 0x21a   : > { %v7041_v33 = vadd.f32 %v7040_v20, %v7039_v47  ;;  %v7042_v52 = vpop.f32.mrb[90].mxu1  ;;  %v8898_v58 = vadd.f32 %v6980_v29, %v8805_v2 }
 0x21b   : > { %v7043_v48 = vpop.f32.mrb[91].mxu1 }
 0x21c   : > { %v7044_v0 = vadd.f32 %v7043_v48, %v7042_v52  ;;  %v6981_v42 = vpop.f32.mrb[92].mxu0  ;;  %v8901_v24 = vadd.f32 %v7041_v33, %v8803_v62 }
 0x21d   : > { %v6982_v27 = vpop.f32.mrb[93].mxu0 }
 0x21e   : > { %v6983_v28 = vadd.f32 %v6982_v27, %v6981_v42  ;;  %v6984_v3 = vpop.f32.mrb[94].mxu0  ;;  %v8904_v5 = vadd.f32 %v7044_v0, %v8808_v9 }
 0x21f   : > { %v6985_v11 = vpop.f32.mrb[95].mxu0 }
 0x220   : > { %v7045_v46 = vpop.f32.mrb[92].mxu1  ;;  %v8907_v55 = vadd.f32 %v6983_v28, %v8810_v6  ;;  %v6986_v14 = vadd.f32 %v6985_v11, %v6984_v3 }
 0x221   : > { %v7046_v2 = vpop.f32.mrb[93].mxu1 }
 0x222   : > { %v7047_v38 = vadd.f32 %v7046_v2, %v7045_v46  ;;  %v7048_v4 = vpop.f32.mrb[94].mxu1  ;;  %v8910_v57 = vadd.f32 %v6986_v14, %v8817_v37 }
 0x223   : > { %v7049_v62 = vpop.f32.mrb[95].mxu1 }
 0x224   : > { %v7050_v16 = vadd.f32 %v7049_v62, %v7048_v4  ;;  %v6987_v10 = vpop.f32.mrb[96].mxu0  ;;  %v8913_v45 = vadd.f32 %v7047_v38, %v8813_v23 }
 0x225   : > { %v6988_v9 = vpop.f32.mrb[97].mxu0 }
 0x226   : > { %v6989_v30 = vadd.f32 %v6988_v9, %v6987_v10  ;;  %v6990_v12 = vpop.f32.mrb[98].mxu0  ;;  %v8916_v7 = vadd.f32 %v7050_v16, %v8820_v54 }
 0x227   : > { %v6991_v6 = vpop.f32.mrb[99].mxu0 }
 0x228   : > { %v7051_v1 = vpop.f32.mrb[96].mxu1  ;;  %v8919_v19 = vadd.f32 %v6989_v30, %v8829_v60  ;;  %v6992_v41 = vadd.f32 %v6991_v6, %v6990_v12 }
 0x229   : > { %v7052_v37 = vpop.f32.mrb[97].mxu1 }
 0x22a   : > { %v7053_v34 = vadd.f32 %v7052_v37, %v7051_v1  ;;  %v7054_v8 = vpop.f32.mrb[98].mxu1  ;;  %v8922_v47 = vadd.f32 %v6992_v41, %v8832_v17 }
 0x22b   : > { %v7055_v23 = vpop.f32.mrb[99].mxu1 }
 0x22c   : > { %v7056_v29 = vadd.f32 %v7055_v23, %v7054_v8  ;;  %v6993_v20 = vpop.f32.mrb[100].mxu0  ;;  %v8925_v33 = vadd.f32 %v7053_v34, %v8823_v63 }
 0x22d   : > { %v6994_v54 = vpop.f32.mrb[101].mxu0 }
 0x22e   : > { %v6995_v52 = vadd.f32 %v6994_v54, %v6993_v20  ;;  %v6996_v48 = vpop.f32.mrb[102].mxu0  ;;  %v8928_v0 = vadd.f32 %v7056_v29, %v8826_v13 }
 0x22f   : > { %v6997_v60 = vpop.f32.mrb[103].mxu0 }
 0x230   : > { %v7057_v42 = vpop.f32.mrb[100].mxu1  ;;  %v8931_v27 = vadd.f32 %v6995_v52, %v8841_v59  ;;  %v6998_v28 = vadd.f32 %v6997_v60, %v6996_v48 }
 0x231   : > { %v7058_v17 = vpop.f32.mrb[101].mxu1 }
 0x232   : > { %v7059_v3 = vadd.f32 %v7058_v17, %v7057_v42  ;;  %v7060_v11 = vpop.f32.mrb[102].mxu1  ;;  %v8934_v46 = vadd.f32 %v6998_v28, %v8844_v36 }
 0x233   : > { %v7061_v63 = vpop.f32.mrb[103].mxu1 }
 0x234   : > { %v7062_v14 = vadd.f32 %v7061_v63, %v7060_v11  ;;  %v6999_v2 = vpop.f32.mrb[104].mxu0  ;;  %v8937_v38 = vadd.f32 %v7059_v3, %v8835_v18 }
 0x235   : > { %v7000_v13 = vpop.f32.mrb[105].mxu0 }
 0x236   : > { %v7001_v4 = vadd.f32 %v7000_v13, %v6999_v2  ;;  %v7002_v62 = vpop.f32.mrb[106].mxu0  ;;  %v8940_v16 = vadd.f32 %v7062_v14, %v8838_v32 }
 0x237   : > { %v7003_v59 = vpop.f32.mrb[107].mxu0 }
 0x238   : > { %v7063_v10 = vpop.f32.mrb[104].mxu1  ;;  %v8943_v9 = vadd.f32 %v7001_v4, %v8853_v35  ;;  %v7004_v30 = vadd.f32 %v7003_v59, %v7002_v62 }
 0x239   : > { %v7064_v36 = vpop.f32.mrb[105].mxu1 }
 0x23a   : > { %v7065_v12 = vadd.f32 %v7064_v36, %v7063_v10  ;;  %v7066_v6 = vpop.f32.mrb[106].mxu1  ;;  %v8946_v1 = vadd.f32 %v7004_v30, %v8856_v15 }
 0x23b   : > { %v7067_v18 = vpop.f32.mrb[107].mxu1 }
 0x23c   : > { %v7068_v41 = vadd.f32 %v7067_v18, %v7066_v6  ;;  %v8949_v37 = vadd.f32 %v7065_v12, %v8847_v31 }
 0x23e   : > { %v8952_v32 = vadd.f32 %v7068_v41, %v8850_v26 }
 0x23f   : > { %v7005_v34 = vpop.f32.mrb[108].mxu0 }
 0x240   : > { %v7069_v8 = vpop.f32.mrb[108].mxu1  ;;  %v7006_v23 = vpop.f32.mrb[109].mxu0 }
 0x241   : > { %v7007_v35 = vadd.f32 %v7006_v23, %v7005_v34  ;;  %v7070_v29 = vpop.f32.mrb[109].mxu1  ;;  %v7008_v20 = vpop.f32.mrb[110].mxu0 }
 0x242   : > { %v7071_v54 = vadd.f32 %v7070_v29, %v7069_v8  ;;  %v7072_v52 = vpop.f32.mrb[110].mxu1  ;;  %v7009_v48 = vpop.f32.mrb[111].mxu0 }
 0x243   : > { %v8955_v15 = vadd.f32 %v7007_v35, %v8865_v43  ;;  %v7010_v60 = vadd.f32 %v7009_v48, %v7008_v20  ;;  %v7073_v42 = vpop.f32.mrb[111].mxu1 }
 0x244   : > { %v7074_v28 = vadd.f32 %v7073_v42, %v7072_v52  ;;  %v8958_v31 = vadd.f32 %v7071_v54, %v8859_v44 }
 0x245   : > { %v8961_v26 = vadd.f32 %v7010_v60, %v8868_v21 }
 0x246   : > { %v8964_v17 = vadd.f32 %v7074_v28, %v8862_v22 }
 0x248   : > { %v7075_v3 = vpop.f32.mrb[112].mxu1 }
 0x249   : > { %v7076_v11 = vpop.f32.mrb[113].mxu1 }
 0x24a   : > { %v7077_v63 = vadd.f32 %v7076_v11, %v7075_v3  ;;  %v7078_v14 = vpop.f32.mrb[114].mxu1 }
 0x24b   : > { %v7079_v2 = vpop.f32.mrb[115].mxu1 }
 0x24c   : > { %v7165_v43 = vpop.f32.mrb[112].mxu0  ;;  %v7080_v13 = vadd.f32 %v7079_v2, %v7078_v14  ;;  %v8967_v4 = vadd.f32 %v7077_v63, %v8871_v40 }
 0x24d   : > { %v5555_v44 = vadd.f32 %v7165_v43, %v8889_v56  ;;  %v5546_v62 = vpop.f32.mrb[113].mxu0 }
 0x24e   : > { %v5547_v21 = vadd.f32 %v5546_v62, %v8877_v53  ;;  %v7166_v59 = vpop.f32.mrb[114].mxu0  ;;  %v8972_v22 = vadd.f32 %v7080_v13, %v8874_v50 }
 0x24f   : > { %v5558_v10 = vadd.f32 %v7166_v59, %v8892_v61  ;;  %v5549_v30 = vpop.f32.mrb[115].mxu0  ;;  %v5873_v61 = vmul.f32 %v5555_v44, %v5555_v44 }
 0x250   : > { %v5550_v40 = vadd.f32 %v5549_v30, %v8880_v25  ;;  %v5871_v36 = vmul.f32 %v5547_v21, %v5547_v21 }
 0x251   : > { %v6565_v56 = vpack.c.bf16 %v5558_v10, %v5555_v44  ;;  %v5874_v35 = vmul.f32 %v5558_v10, %v5558_v10 }
 0x252   : > { %v6560_v53 = vpack.c.bf16 %v5550_v40, %v5547_v21  ;;  %v5833_v12 = vadd.f32 %v5550_v40, %v5547_v21  ;;  %v5872_v6 = vmul.f32 %v5550_v40, %v5550_v40  ;;  %v7081_v50 = vpop.f32.mrb[116].mxu1 }
 0x253   : > { %6660 = vst [vmem:[%s8980_s19 + $0x8] sm:$0xff] %v6565_v56   ;;  %v7082_v18 = vpop.f32.mrb[117].mxu1 }
 0x254   : > { %6561 = vst [vmem:[%s8980_s19] sm:$0xff] %v6560_v53   ;;  %v5834_v41 = vadd.f32 %v5833_v12, %v5555_v44  ;;  %v5903_v34 = vadd.f32 %v5872_v6, %v5871_v36  ;;  %v7083_v8 = vadd.f32 %v7082_v18, %v7081_v50  ;;  %v7084_v23 = vpop.f32.mrb[118].mxu1 }
 0x255   : > { %v7085_v29 = vpop.f32.mrb[119].mxu1 }
 0x256   : > { %v5904_v20 = vadd.f32 %v5903_v34, %v5873_v61  ;;  %v5835_v54 = vadd.f32 %v5834_v41, %v5558_v10  ;;  %v7086_v52 = vadd.f32 %v7085_v29, %v7084_v23  ;;  %v8986_v25 = vadd.f32 %v7083_v8, %v8883_v51 }
 0x258   : > { %v5905_v48 = vadd.f32 %v5904_v20, %v5874_v35  ;;  %v8989_v60 = vadd.f32 %v7086_v52, %v8886_v49 }
 0x259   : > { %v7169_v42 = vpop.f32.mrb[116].mxu0 }
 0x25a   : > { %v5571_v28 = vadd.f32 %v7169_v42, %v8913_v45  ;;  %v5562_v3 = vpop.f32.mrb[117].mxu0 }
 0x25b   : > { %v5563_v11 = vadd.f32 %v5562_v3, %v8901_v24  ;;  %v7170_v63 = vpop.f32.mrb[118].mxu0 }
 0x25c   : > { %v5574_v14 = vadd.f32 %v7170_v63, %v8916_v7  ;;  %v5565_v2 = vpop.f32.mrb[119].mxu0  ;;  %v5877_v30 = vmul.f32 %v5571_v28, %v5571_v28 }
 0x25d   : > { %v5836_v43 = vadd.f32 %v5835_v54, %v5563_v11  ;;  %v5875_v13 = vmul.f32 %v5563_v11, %v5563_v11  ;;  %v5566_v51 = vadd.f32 %v5565_v2, %v8904_v5 }
 0x25e   : > { %v6575_v44 = vpack.c.bf16 %v5574_v14, %v5571_v28  ;;  %v5878_v7 = vmul.f32 %v5574_v14, %v5574_v14 }
 0x25f   : > { %v5906_v62 = vadd.f32 %v5905_v48, %v5875_v13  ;;  %v6570_v49 = vpack.c.bf16 %v5566_v51, %v5563_v11  ;;  %v5837_v21 = vadd.f32 %v5836_v43, %v5566_v51  ;;  %v5876_v59 = vmul.f32 %v5566_v51, %v5566_v51 }
 0x260   : > { %v7087_v10 = vpop.f32.mrb[120].mxu1  ;;  %6662 = vst [vmem:[%s8980_s19 + $0x18] sm:$0xff] %v6575_v44  }
 0x261   : > { %v7088_v45 = vpop.f32.mrb[121].mxu1  ;;  %6661 = vst [vmem:[%s8980_s19 + $0x10] sm:$0xff] %v6570_v49   ;;  %v5838_v24 = vadd.f32 %v5837_v21, %v5571_v28  ;;  %v5907_v40 = vadd.f32 %v5906_v62, %v5876_v59 }
 0x262   : > { %v7089_v56 = vadd.f32 %v7088_v45, %v7087_v10  ;;  %v7090_v36 = vpop.f32.mrb[122].mxu1 }
 0x263   : > { %v7091_v53 = vpop.f32.mrb[123].mxu1  ;;  %v5908_v12 = vadd.f32 %v5907_v40, %v5877_v30  ;;  %v5839_v6 = vadd.f32 %v5838_v24, %v5574_v14 }
 0x264   : > { %v7092_v50 = vadd.f32 %v7091_v53, %v7090_v36  ;;  %v8998_v5 = vadd.f32 %v7089_v56, %v8895_v39 }
 0x265   : > { %v5909_v18 = vadd.f32 %v5908_v12, %v5878_v7 }
 0x266   : > { %v9001_v61 = vadd.f32 %v7092_v50, %v8898_v58 }
 0x267   : > { %v7173_v41 = vpop.f32.mrb[120].mxu0 }
 0x268   : > { %v5587_v34 = vadd.f32 %v7173_v41, %v8937_v38  ;;  %v5578_v8 = vpop.f32.mrb[121].mxu0 }
 0x269   : > { %v5579_v23 = vadd.f32 %v5578_v8, %v8925_v33  ;;  %v7174_v35 = vpop.f32.mrb[122].mxu0 }
 0x26a   : > { %v5590_v29 = vadd.f32 %v7174_v35, %v8940_v16  ;;  %v5581_v20 = vpop.f32.mrb[123].mxu0  ;;  %v5881_v63 = vmul.f32 %v5587_v34, %v5587_v34 }
 0x26b   : > { %v5840_v54 = vadd.f32 %v5839_v6, %v5579_v23  ;;  %v5879_v52 = vmul.f32 %v5579_v23, %v5579_v23  ;;  %v5582_v39 = vadd.f32 %v5581_v20, %v8928_v0 }
 0x26c   : > { %v6585_v48 = vpack.c.bf16 %v5590_v29, %v5587_v34  ;;  %v5882_v16 = vmul.f32 %v5590_v29, %v5590_v29 }
 0x26d   : > { %v5910_v42 = vadd.f32 %v5909_v18, %v5879_v52  ;;  %v6580_v58 = vpack.c.bf16 %v5582_v39, %v5579_v23  ;;  %v5841_v28 = vadd.f32 %v5840_v54, %v5582_v39  ;;  %v5880_v3 = vmul.f32 %v5582_v39, %v5582_v39 }
 0x26e   : > { %v7093_v11 = vpop.f32.mrb[124].mxu1  ;;  %6664 = vst [vmem:[%s8980_s19 + $0x28] sm:$0xff] %v6585_v48  }
 0x26f   : > { %v7094_v38 = vpop.f32.mrb[125].mxu1  ;;  %6663 = vst [vmem:[%s8980_s19 + $0x20] sm:$0xff] %v6580_v58   ;;  %v5842_v33 = vadd.f32 %v5841_v28, %v5587_v34  ;;  %v5911_v14 = vadd.f32 %v5910_v42, %v5880_v3 }
 0x270   : > { %v7095_v2 = vadd.f32 %v7094_v38, %v7093_v11  ;;  %v7096_v43 = vpop.f32.mrb[126].mxu1 }
 0x271   : > { %v7097_v13 = vpop.f32.mrb[127].mxu1  ;;  %v5912_v51 = vadd.f32 %v5911_v14, %v5881_v63  ;;  %v5843_v44 = vadd.f32 %v5842_v33, %v5590_v29 }
 0x272   : > { %v7098_v62 = vadd.f32 %v7097_v13, %v7096_v43  ;;  %v9010_v0 = vadd.f32 %v7095_v2, %v8907_v55 }
 0x273   : > { %v5913_v49 = vadd.f32 %v5912_v51, %v5882_v16 }
 0x274   : > { %v9013_v21 = vadd.f32 %v7098_v62, %v8910_v57 }
 0x276   : > { %v7177_v59 = vpop.f32.mrb[124].mxu0 }
 0x277   : > { %v5603_v10 = vadd.f32 %v7177_v59, %v8958_v31  ;;  %v5594_v45 = vpop.f32.mrb[125].mxu0 }
 0x278   : > { %v5595_v30 = vadd.f32 %v5594_v45, %v8949_v37  ;;  %v7178_v24 = vpop.f32.mrb[126].mxu0 }
 0x279   : > { %v5606_v40 = vadd.f32 %v7178_v24, %v8964_v17  ;;  %v5597_v56 = vpop.f32.mrb[127].mxu0  ;;  %v5885_v37 = vmul.f32 %v5603_v10, %v5603_v10 }
 0x27a   : > { %v5844_v36 = vadd.f32 %v5843_v44, %v5595_v30  ;;  %v5883_v7 = vmul.f32 %v5595_v30, %v5595_v30  ;;  %v5598_v55 = vadd.f32 %v5597_v56, %v8952_v32 }
 0x27b   : > { %v6595_v53 = vpack.c.bf16 %v5606_v40, %v5603_v10  ;;  %v7099_v12 = vpop.f32.mrb[128].mxu1  ;;  %v5886_v32 = vmul.f32 %v5606_v40, %v5606_v40 }
 0x27c   : > { %v5914_v57 = vadd.f32 %v5913_v49, %v5883_v7  ;;  %v6590_v6 = vpack.c.bf16 %v5598_v55, %v5595_v30  ;;  %v5845_v50 = vadd.f32 %v5844_v36, %v5598_v55  ;;  %v5884_v18 = vmul.f32 %v5598_v55, %v5598_v55  ;;  %v7100_v31 = vpop.f32.mrb[129].mxu1 }
 0x27d   : > { %6666 = vst [vmem:[%s8980_s19 + $0x38] sm:$0xff] %v6595_v53   ;;  %v7101_v41 = vadd.f32 %v7100_v31, %v7099_v12  ;;  %v7102_v34 = vpop.f32.mrb[130].mxu1 }
 0x27e   : > { %6665 = vst [vmem:[%s8980_s19 + $0x30] sm:$0xff] %v6590_v6   ;;  %v5846_v8 = vadd.f32 %v5845_v50, %v5603_v10  ;;  %v5915_v17 = vadd.f32 %v5914_v57, %v5884_v18  ;;  %v7103_v23 = vpop.f32.mrb[131].mxu1 }
 0x27f   : > { %v7104_v35 = vadd.f32 %v7103_v23, %v7102_v34  ;;  %v9022_v29 = vadd.f32 %v7101_v41, %v8919_v19 }
 0x280   : > { %v5916_v20 = vadd.f32 %v5915_v17, %v5885_v37  ;;  %v5847_v54 = vadd.f32 %v5846_v8, %v5606_v40 }
 0x281   : > { %v9025_v52 = vadd.f32 %v7104_v35, %v8922_v47 }
 0x282   : > { %v7181_v39 = vpop.f32.mrb[128].mxu0  ;;  %v5917_v48 = vadd.f32 %v5916_v20, %v5886_v32 }
 0x283   : > { %v5619_v42 = vadd.f32 %v7181_v39, %v8986_v25  ;;  %v5610_v58 = vpop.f32.mrb[129].mxu0 }
 0x284   : > { %v5611_v28 = vadd.f32 %v5610_v58, %v8967_v4  ;;  %v7182_v3 = vpop.f32.mrb[130].mxu0 }
 0x285   : > { %v5622_v11 = vadd.f32 %v7182_v3, %v8989_v60  ;;  %v5613_v19 = vpop.f32.mrb[131].mxu0  ;;  %v5889_v13 = vmul.f32 %v5619_v42, %v5619_v42 }
 0x286   : > { %v5848_v38 = vadd.f32 %v5847_v54, %v5611_v28  ;;  %v5887_v63 = vmul.f32 %v5611_v28, %v5611_v28  ;;  %v5614_v33 = vadd.f32 %v5613_v19, %v8972_v22 }
 0x287   : > { %v6605_v14 = vpack.c.bf16 %v5622_v11, %v5619_v42  ;;  %v5890_v4 = vmul.f32 %v5622_v11, %v5622_v11 }
 0x288   : > { %v5918_v47 = vadd.f32 %v5917_v48, %v5887_v63  ;;  %v6600_v2 = vpack.c.bf16 %v5614_v33, %v5611_v28  ;;  %v5849_v43 = vadd.f32 %v5848_v38, %v5614_v33  ;;  %v5888_v16 = vmul.f32 %v5614_v33, %v5614_v33 }
 0x289   : > { %6668 = vst [vmem:[%s8980_s19 + $0x48] sm:$0xff] %v6605_v14  }
 0x28a   : > { %6667 = vst [vmem:[%s8980_s19 + $0x40] sm:$0xff] %v6600_v2   ;;  %v5850_v25 = vadd.f32 %v5849_v43, %v5619_v42  ;;  %v5919_v51 = vadd.f32 %v5918_v47, %v5888_v16 }
 0x28b   : > { %v7105_v44 = vpop.f32.mrb[132].mxu1 }
 0x28c   : > { %v5920_v62 = vadd.f32 %v5919_v51, %v5889_v13  ;;  %v7106_v49 = vpop.f32.mrb[133].mxu1  ;;  %v5851_v60 = vadd.f32 %v5850_v25, %v5622_v11 }
 0x28d   : > { %v7107_v59 = vadd.f32 %v7106_v49, %v7105_v44  ;;  %v7108_v10 = vpop.f32.mrb[134].mxu1 }
 0x28e   : > { %v5921_v45 = vadd.f32 %v5920_v62, %v5890_v4  ;;  %v7109_v30 = vpop.f32.mrb[135].mxu1 }
 0x28f   : > { %v7110_v22 = vadd.f32 %v7109_v30, %v7108_v10  ;;  %v5490_v24 = vadd.f32 %v7107_v59, %v8931_v27 }
 0x290   : > { %v7185_v40 = vpop.f32.mrb[132].mxu0 }
 0x291   : > { %v5635_v56 = vadd.f32 %v7185_v40, %v9010_v0  ;;  %v5626_v36 = vpop.f32.mrb[133].mxu0  ;;  %v5493_v7 = vadd.f32 %v7110_v22, %v8934_v46 }
 0x292   : > { %v5627_v55 = vadd.f32 %v5626_v36, %v8998_v5  ;;  %v7186_v53 = vpop.f32.mrb[134].mxu0 }
 0x293   : > { %v5638_v12 = vadd.f32 %v7186_v53, %v9013_v21  ;;  %v5629_v57 = vpop.f32.mrb[135].mxu0  ;;  %v5893_v8 = vmul.f32 %v5635_v56, %v5635_v56 }
 0x294   : > { %v5852_v6 = vadd.f32 %v5851_v60, %v5627_v55  ;;  %v5891_v50 = vmul.f32 %v5627_v55, %v5627_v55  ;;  %v5630_v18 = vadd.f32 %v5629_v57, %v9001_v61 }
 0x295   : > { %v6615_v31 = vpack.c.bf16 %v5638_v12, %v5635_v56  ;;  %v5894_v21 = vmul.f32 %v5638_v12, %v5638_v12 }
 0x296   : > { %v5922_v27 = vadd.f32 %v5921_v45, %v5891_v50  ;;  %v6610_v41 = vpack.c.bf16 %v5630_v18, %v5627_v55  ;;  %v5853_v34 = vadd.f32 %v5852_v6, %v5630_v18  ;;  %v5892_v37 = vmul.f32 %v5630_v18, %v5630_v18 }
 0x297   : > { %6670 = vst [vmem:[%s8980_s19 + $0x58] sm:$0xff] %v6615_v31   ;;  %v7111_v0 = vpop.f32.mrb[136].mxu1 }
 0x298   : > { %6669 = vst [vmem:[%s8980_s19 + $0x50] sm:$0xff] %v6610_v41   ;;  %v5854_v46 = vadd.f32 %v5853_v34, %v5635_v56  ;;  %v5923_v17 = vadd.f32 %v5922_v27, %v5892_v37  ;;  %v7112_v5 = vpop.f32.mrb[137].mxu1 }
 0x299   : > { %v7113_v23 = vadd.f32 %v7112_v5, %v7111_v0  ;;  %v7114_v35 = vpop.f32.mrb[138].mxu1 }
 0x29a   : > { %v5924_v32 = vadd.f32 %v5923_v17, %v5893_v8  ;;  %v5855_v20 = vadd.f32 %v5854_v46, %v5638_v12  ;;  %v7115_v54 = vpop.f32.mrb[139].mxu1 }
 0x29b   : > { %v7116_v39 = vadd.f32 %v7115_v54, %v7114_v35  ;;  %v5498_v61 = vadd.f32 %v7113_v23, %v8943_v9 }
 0x29c   : > { %v5925_v48 = vadd.f32 %v5924_v32, %v5894_v21 }
 0x29d   : > { %v7189_v42 = vpop.f32.mrb[136].mxu0  ;;  %v5501_v58 = vadd.f32 %v7116_v39, %v8946_v1 }
 0x29e   : > { %v5651_v28 = vadd.f32 %v7189_v42, %v5490_v24  ;;  %v5642_v3 = vpop.f32.mrb[137].mxu0 }
 0x29f   : > { %v5643_v11 = vadd.f32 %v5642_v3, %v9022_v29  ;;  %v7190_v19 = vpop.f32.mrb[138].mxu0 }
 0x2a0   : > { %v5654_v38 = vadd.f32 %v7190_v19, %v5493_v7  ;;  %v5645_v63 = vpop.f32.mrb[139].mxu0  ;;  %v5897_v25 = vmul.f32 %v5651_v28, %v5651_v28 }
 0x2a1   : > { %v5856_v33 = vadd.f32 %v5855_v20, %v5643_v11  ;;  %v5895_v14 = vmul.f32 %v5643_v11, %v5643_v11  ;;  %v5646_v47 = vadd.f32 %v5645_v63, %v9025_v52 }
 0x2a2   : > { %v6625_v2 = vpack.c.bf16 %v5654_v38, %v5651_v28  ;;  %v5898_v29 = vmul.f32 %v5654_v38, %v5654_v38 }
 0x2a3   : > { %v5926_v43 = vadd.f32 %v5925_v48, %v5895_v14  ;;  %v6620_v9 = vpack.c.bf16 %v5646_v47, %v5643_v11  ;;  %v5857_v16 = vadd.f32 %v5856_v33, %v5646_v47  ;;  %v5896_v13 = vmul.f32 %v5646_v47, %v5646_v47 }
 0x2a4   : > { %6672 = vst [vmem:[%s8980_s19 + $0x68] sm:$0xff] %v6625_v2  }
 0x2a5   : > { %6671 = vst [vmem:[%s8980_s19 + $0x60] sm:$0xff] %v6620_v9   ;;  %v5858_v1 = vadd.f32 %v5857_v16, %v5651_v28  ;;  %v5927_v51 = vadd.f32 %v5926_v43, %v5896_v13  ;;  %v7117_v44 = vpop.f32.mrb[140].mxu1 }
 0x2a6   : > { %v7118_v4 = vpop.f32.mrb[141].mxu1 }
 0x2a7   : > { %v5928_v62 = vadd.f32 %v5927_v51, %v5897_v25  ;;  %v7119_v49 = vadd.f32 %v7118_v4, %v7117_v44  ;;  %v5859_v60 = vadd.f32 %v5858_v1, %v5654_v38  ;;  %v7120_v59 = vpop.f32.mrb[142].mxu1 }
 0x2a8   : > { %v7121_v10 = vpop.f32.mrb[143].mxu1 }
 0x2a9   : > { %v5506_v52 = vadd.f32 %v7119_v49, %v8955_v15  ;;  %v5929_v45 = vadd.f32 %v5928_v62, %v5898_v29  ;;  %v7122_v30 = vadd.f32 %v7121_v10, %v7120_v59 }
 0x2ab   : > { %v5509_v22 = vadd.f32 %v7122_v30, %v8961_v26 }
 0x2ad   : > { %v7193_v24 = vpop.f32.mrb[140].mxu0 }
 0x2ae   : > { %v5667_v40 = vadd.f32 %v7193_v24, %v5506_v52  ;;  %v5658_v56 = vpop.f32.mrb[141].mxu0 }
 0x2af   : > { %v5659_v36 = vadd.f32 %v5658_v56, %v5498_v61  ;;  %v7194_v7 = vpop.f32.mrb[142].mxu0 }
 0x2b0   : > { %v5670_v55 = vadd.f32 %v7194_v7, %v5509_v22  ;;  %v5661_v53 = vpop.f32.mrb[143].mxu0  ;;  %v5901_v50 = vmul.f32 %v5667_v40, %v5667_v40 }
 0x2b1   : > { %v5860_v12 = vadd.f32 %v5859_v60, %v5659_v36  ;;  %v5899_v57 = vmul.f32 %v5659_v36, %v5659_v36  ;;  %v5662_v6 = vadd.f32 %v5661_v53, %v5501_v58 }
 0x2b2   : > { %v6635_v18 = vpack.c.bf16 %v5670_v55, %v5667_v40  ;;  %v5902_v26 = vmul.f32 %v5670_v55, %v5670_v55 }
 0x2b3   : > { %v5930_v31 = vadd.f32 %v5929_v45, %v5899_v57  ;;  %v6630_v15 = vpack.c.bf16 %v5662_v6, %v5659_v36  ;;  %v5861_v27 = vadd.f32 %v5860_v12, %v5662_v6  ;;  %v5900_v41 = vmul.f32 %v5662_v6, %v5662_v6 }
 0x2b4   : > { %6674 = vst [vmem:[%s8980_s19 + $0x78] sm:$0xff] %v6635_v18  }
 0x2b5   : > { %6673 = vst [vmem:[%s8980_s19 + $0x70] sm:$0xff] %v6630_v15   ;;  %v5862_v34 = vadd.f32 %v5861_v27, %v5667_v40  ;;  %v5931_v37 = vadd.f32 %v5930_v31, %v5900_v41 }
 0x2b7   : > { %v5863_v0 = vadd.f32 %v5862_v34, %v5670_v55  ;;  %v5932_v8 = vadd.f32 %v5931_v37, %v5901_v50 }
 0x2b9   : > { %v5864_v46 = vrot.slane %v5863_v0, 4  ;;  %v5933_v17 = vadd.f32 %v5932_v8, %v5902_v26 }
 0x2bb   : > { %v5865_v5 = vadd.f32 %v5864_v46, %v5863_v0  ;;  %v5934_v23 = vrot.slane %v5933_v17, 4 }
 0x2bd   : > { %v5866_v35 = vrot.slane %v5865_v5, 2  ;;  %v5935_v21 = vadd.f32 %v5934_v23, %v5933_v17 }
 0x2bf   : > { %v5867_v32 = vadd.f32 %v5866_v35, %v5865_v5  ;;  %v5936_v20 = vrot.slane %v5935_v21, 2 }
 0x2c1   : > { %v5868_v54 = vrot.slane %v5867_v32, 1  ;;  %v5937_v39 = vadd.f32 %v5936_v20, %v5935_v21 }
 0x2c3   : > { %v5869_v61 = vadd.f32 %v5868_v54, %v5867_v32  ;;  %v5938_v48 = vrot.slane %v5937_v39, 1 }
 0x2c5   : > { %5870 = vst [vmem:[%s265_s20] sm:$0x1] %v5869_v61  ;;  %v5939_v42 = vadd.f32 %v5938_v48, %v5937_v39 }
 0x2c7   : > { %5940 = vst [vmem:[%s268_s26] sm:$0x1] %v5939_v42 }
 0x2c8 PF: > { %s17_s21 = sadd.s32 1, %s7350_s21  }
 0x2c9   : > { %p14_p4 = scmp.ge.s32.totalorder %s17_s21, 4  }
 0x2cb   :  { %16 = sbr.rel (!%p14_p4) target bundleno = 1 (0x1), region = 92 }

</bundles_post_ra>
